<compile_context>
chip_gen: v7x
topology: tpu7x:2x2x1
jax: 0.10.0
libtpu: 0.0.40
codegen_flags: <defaults>
</compile_context>

<pallas_src>
import functools

import jax
import jax.numpy as jnp
from jax.experimental import pallas as pl
from jax.experimental.pallas import tpu as pltpu


# ---------------------------------------------------------------------------
# Kernels
# ---------------------------------------------------------------------------
def _conv1x1_bn_silu_kernel(x_ref, w_ref, b_ref, o_ref):
    """Fused 1x1 conv (matmul) + folded-BN bias + SiLU for one M tile."""
    acc = jnp.dot(x_ref[...], w_ref[...], preferred_element_type=jnp.float32)
    y = acc + b_ref[...]                       # BN scale already folded into w
    o_ref[...] = (y * jax.nn.sigmoid(y)).astype(o_ref.dtype)   # SiLU


def _sppf_pool_cv2_kernel(x_ref, w2_ref, b2_ref, o_ref, pad_ref, *, pool_k):
    """Per-batch-item: 3 cascaded k x k maxpools + fused cv2 (1x1 conv+BN+SiLU).

    x_ref  : [H, W, Cp]      cv1 output (compute dtype), Cp % 128 == 0
    w2_ref : [4, Cp, C2p]    cv2 weight split into the 4 concat chunks
    b2_ref : [1, C2p]        folded BN bias (f32)
    o_ref  : [H, W, C2p]     SPPF output tile
    pad_ref: VMEM [H+2p, W+2p, Cp] f32 scratch for the -inf padded pooling.
    """
    H, W, cp = x_ref.shape
    pad = pool_k // 2
    hw = H * W
    cdt = x_ref.dtype

    # -inf border written once; each cascaded pool only rewrites the centre,
    # so PyTorch MaxPool2d's implicit -inf padding is reproduced exactly.
    pad_ref[...] = jnp.full(pad_ref.shape, -jnp.inf, dtype=pad_ref.dtype)

    def pool(v):                                   # k x k, stride 1, same pad
        pad_ref[pad:pad + H, pad:pad + W, :] = v
        out = pad_ref[0:H, 0:W, :]
        for dy in range(pool_k):
            for dx in range(pool_k):
                if dy == 0 and dx == 0:
                    continue
                out = jnp.maximum(out, pad_ref[dy:dy + H, dx:dx + W, :])
        return out

    x = x_ref[...]
    x_f = x.astype(jnp.float32)     # pool in f32 (robust 32-bit sublane layout)
    y1 = pool(x_f)
    y2 = pool(y1)
    y3 = pool(y2)

    # cv2 over concat([x, y1, y2, y3]) as 4 MXU matmuls: the 4x-wide concat is
    # never written to HBM.  Casting the pooled values back to the compute
    # dtype is exact (max never creates new values).
    acc = jnp.dot(x.reshape(hw, cp), w2_ref[0],
                  preferred_element_type=jnp.float32)
    acc = acc + jnp.dot(y1.astype(cdt).reshape(hw, cp), w2_ref[1],
                        preferred_element_type=jnp.float32)
    acc = acc + jnp.dot(y2.astype(cdt).reshape(hw, cp), w2_ref[2],
                        preferred_element_type=jnp.float32)
    acc = acc + jnp.dot(y3.astype(cdt).reshape(hw, cp), w2_ref[3],
                        preferred_element_type=jnp.float32)
    y = acc + b2_ref[...]
    y = y * jax.nn.sigmoid(y)                                   # SiLU
    o_ref[...] = y.reshape(H, W, y.shape[-1]).astype(o_ref.dtype)


# ---------------------------------------------------------------------------
# Wrappers
# ---------------------------------------------------------------------------
def _round_up(v, m):
    return (v + m - 1) // m * m


def _fold_bn(w_2d, gamma, beta, mean, var, eps):
    """Fold inference BatchNorm into matmul weights + a per-channel bias.

    w_2d: [Cin, Cout].  Returns (w * scale, beta - mean * scale)."""
    inv_std = jax.lax.rsqrt(var + eps)
    scale = gamma * inv_std
    return w_2d * scale[None, :], beta - mean * scale


def _conv1x1_bn_silu(x2d, w2d, bias, *, out_dtype):
    """Tiled fused 1x1-conv + BN bias + SiLU.

    x2d: [M, Kp] (Kp % 128 == 0), w2d: [Kp, Np] (Np % 128 == 0), bias: [1, Np].
    """
    M, Kp = x2d.shape
    Np = w2d.shape[1]

    # Large tiles amortize the ~0.35 us per-grid-step overhead, but keep >= 2
    # grid steps whenever possible so v7x's two TensorCores both get work.
    tm = 128
    for cand in (1024, 512, 256, 128):
        if M >= 2 * cand:
            tm = cand
            break
    m_pad = _round_up(M, tm)
    if m_pad != M:
        x2d = jnp.pad(x2d, ((0, m_pad - M), (0, 0)))

    in_b = jnp.dtype(x2d.dtype).itemsize
    out_b = jnp.dtype(out_dtype).itemsize
    cost = pl.CostEstimate(
        flops=2 * m_pad * Kp * Np,
        transcendentals=m_pad * Np,
        bytes_accessed=m_pad * Kp * in_b + Kp * Np * in_b
        + m_pad * Np * out_b + Np * 4)

    out = pl.pallas_call(
        _conv1x1_bn_silu_kernel,
        out_shape=jax.ShapeDtypeStruct((m_pad, Np), out_dtype),
        grid_spec=pltpu.PrefetchScalarGridSpec(
            num_scalar_prefetch=0,
            grid=(m_pad // tm,),
            in_specs=[
                pl.BlockSpec((tm, Kp), lambda i: (i, 0)),   # activation tile
                pl.BlockSpec((Kp, Np), lambda i: (0, 0)),   # resident weights
                pl.BlockSpec((1, Np), lambda i: (0, 0)),    # folded BN bias
            ],
            out_specs=pl.BlockSpec((tm, Np), lambda i: (i, 0)),
        ),
        compiler_params=pltpu.CompilerParams(
            dimension_semantics=("parallel",)),
        cost_estimate=cost,
    )(x2d, w2d, bias)
    return out[:M]


@functools.partial(jax.jit, static_argnames=("k", "compute_dtype"))
def sppf_forward(x, params, *, k=5, eps=1e-3, compute_dtype=jnp.bfloat16):
    """SPPF forward (eval-mode BN).  x: [N, C1, H, W] -> [N, C2, H, W]."""
    N, C1, H, W = x.shape
    c_hidden = C1 // 2
    C2 = params["cv2_w"].shape[0]
    out_dtype = x.dtype

    c1p = _round_up(C1, 128)            # lane-dense channel paddings
    cp = _round_up(c_hidden, 128)
    c2p = _round_up(C2, 128)

    # NCHW -> NHWC (channels on the 128-lane axis).  A full CSPdarknet stack
    # would keep activations NHWC end-to-end; the transposes here only exist
    # to preserve the PyTorch NCHW module interface.
    x_nhwc = jnp.transpose(x, (0, 2, 3, 1))
    M = N * H * W
    x2d = x_nhwc.reshape(M, C1).astype(compute_dtype)
    x2d = jnp.pad(x2d, ((0, 0), (0, c1p - C1)))

    # ---- cv1: 1x1 conv + BN + SiLU (BN scale folded into weights). ----
    w1, b1 = _fold_bn(params["cv1_w"].reshape(c_hidden, C1).T,
                      params["cv1_gamma"], params["cv1_beta"],
                      params["cv1_mean"], params["cv1_var"], eps)
    w1p = jnp.zeros((c1p, cp), compute_dtype).at[:C1, :c_hidden].set(
        w1.astype(compute_dtype))
    b1p = jnp.zeros((1, cp), jnp.float32).at[0, :c_hidden].set(b1)

    x_cv1 = _conv1x1_bn_silu(x2d, w1p, b1p, out_dtype=compute_dtype)
    x_cv1 = x_cv1.reshape(N, H, W, cp)

    # ---- cv2 weights, split into the 4 concat chunks (x, y1, y2, y3). ----
    w2, b2 = _fold_bn(params["cv2_w"].reshape(C2, 4 * c_hidden).T,
                      params["cv2_gamma"], params["cv2_beta"],
                      params["cv2_mean"], params["cv2_var"], eps)
    w2 = w2.reshape(4, c_hidden, C2)
    w2p = jnp.zeros((4, cp, c2p), compute_dtype).at[:, :c_hidden, :C2].set(
        w2.astype(compute_dtype))
    b2p = jnp.zeros((1, c2p), jnp.float32).at[0, :C2].set(b2)

    pad = k // 2
    in_b = jnp.dtype(compute_dtype).itemsize
    out_b = jnp.dtype(out_dtype).itemsize
    cost = pl.CostEstimate(
        flops=2 * N * H * W * 4 * cp * c2p + 3 * (k * k - 1) * N * H * W * cp,
        transcendentals=N * H * W * c2p,
        bytes_accessed=N * H * W * (cp * in_b + c2p * out_b)
        + 4 * cp * c2p * in_b + c2p * 4)

    # Fused 3x maxpool + cv2.  VMEM footprint per step is small (<< the 32 MiB
    # scoped default even on v7x), so no vmem_limit_bytes override is needed.
    out_nhwc = pl.pallas_call(
        functools.partial(_sppf_pool_cv2_kernel, pool_k=k),
        out_shape=jax.ShapeDtypeStruct((N, H, W, c2p), out_dtype),
        grid_spec=pltpu.PrefetchScalarGridSpec(
            num_scalar_prefetch=0,
            grid=(N,),
            in_specs=[
                pl.BlockSpec((None, H, W, cp), lambda n: (n, 0, 0, 0)),
                pl.BlockSpec((4, cp, c2p), lambda n: (0, 0, 0)),
                pl.BlockSpec((1, c2p), lambda n: (0, 0)),
            ],
            out_specs=pl.BlockSpec((None, H, W, c2p), lambda n: (n, 0, 0, 0)),
            scratch_shapes=[
                pltpu.VMEM((H + 2 * pad, W + 2 * pad, cp), jnp.float32),
            ],
        ),
        compiler_params=pltpu.CompilerParams(
            dimension_semantics=("parallel",)),
        cost_estimate=cost,
    )(x_cv1, w2p, b2p)

    out = out_nhwc[..., :C2]
    return jnp.transpose(out, (0, 3, 1, 2))        # back to NCHW


# ---------------------------------------------------------------------------
# Pure-JAX reference (mirrors the PyTorch module, eval mode)
# ---------------------------------------------------------------------------
def _conv_bn_silu_ref(x, w, gamma, beta, mean, var, eps=1e-3):
    y = jax.lax.conv_general_dilated(
        x, w, window_strides=(1, 1), padding=[(0, 0), (0, 0)],
        dimension_numbers=("NCHW", "OIHW", "NCHW"))
    inv_std = jax.lax.rsqrt(var + eps)
    y = y * (gamma * inv_std)[None, :, None, None] \
        + (beta - mean * gamma * inv_std)[None, :, None, None]
    return y * jax.nn.sigmoid(y)


def _maxpool_ref(x, k):
    p = k // 2
    return jax.lax.reduce_window(
        x, -jnp.inf, jax.lax.max,
        window_dimensions=(1, 1, k, k), window_strides=(1, 1, 1, 1),
        padding=[(0, 0), (0, 0), (p, p), (p, p)])


def sppf_reference(x, params, *, k=5, eps=1e-3):
    x1 = _conv_bn_silu_ref(x, params["cv1_w"], params["cv1_gamma"],
                           params["cv1_beta"], params["cv1_mean"],
                           params["cv1_var"], eps)
    y1 = _maxpool_ref(x1, k)
    y2 = _maxpool_ref(y1, k)
    y3 = _maxpool_ref(y2, k)
    cat = jnp.concatenate([x1, y1, y2, y3], axis=1)
    return _conv_bn_silu_ref(cat, params["cv2_w"], params["cv2_gamma"],
                             params["cv2_beta"], params["cv2_mean"],
                             params["cv2_var"], eps)


# ---------------------------------------------------------------------------
if __name__ == "__main__":
    # SPPF(c1=4, c2=8, k=5) on a small feature map.
    N, C1, H, W = 2, 4, 16, 16
    C2, k = 8, 5
    c_ = C1 // 2

    key = jax.random.PRNGKey(0)
    keys = jax.random.split(key, 11)
    x = jax.random.normal(keys[0], (N, C1, H, W), dtype=jnp.float32)

    def bn_params(kg, kb, km, kv, c):
        gamma = jax.random.normal(kg, (c,), jnp.float32) * 0.1 + 1.0
        beta = jax.random.normal(kb, (c,), jnp.float32) * 0.1
        mean = jax.random.normal(km, (c,), jnp.float32) * 0.1
        var = jax.nn.softplus(jax.random.normal(kv, (c,), jnp.float32)) + 0.5
        return gamma, beta, mean, var

    g1, b1, m1, v1 = bn_params(keys[3], keys[4], keys[5], keys[6], c_)
    g2, b2, m2, v2 = bn_params(keys[7], keys[8], keys[9], keys[10], C2)
    params = {
        "cv1_w": jax.random.normal(keys[1], (c_, C1, 1, 1), jnp.float32) * 0.1,
        "cv2_w": jax.random.normal(keys[2], (C2, 4 * c_, 1, 1), jnp.float32) * 0.1,
        "cv1_gamma": g1, "cv1_beta": b1, "cv1_mean": m1, "cv1_var": v1,
        "cv2_gamma": g2, "cv2_beta": b2, "cv2_mean": m2, "cv2_var": v2,
    }

    ref = sppf_reference(x, params, k=k)

    # f32 compute path: tight check against the pure-JAX reference.
    out_f32 = jax.block_until_ready(
        sppf_forward(x, params, k=k, compute_dtype=jnp.float32))
    assert out_f32.shape == (N, C2, H, W), out_f32.shape
    assert jnp.allclose(out_f32, ref, atol=1e-3, rtol=1e-3), \
        float(jnp.max(jnp.abs(out_f32 - ref)))

    # bf16 matmul-input path (perf default): looser tolerance vs f32 reference.
    out_bf16 = jax.block_until_ready(
        sppf_forward(x, params, k=k, compute_dtype=jnp.bfloat16))
    assert out_bf16.shape == (N, C2, H, W), out_bf16.shape
    assert jnp.allclose(out_bf16, ref, atol=5e-2, rtol=5e-2), \
        float(jnp.max(jnp.abs(out_bf16 - ref)))

    print("KERNEL_OK")
</pallas_src>

<mosaic_0001>
module attributes {stable_mosaic.version = 11 : i64} {
  func.func @_conv1x1_bn_silu_kernel(%arg0: i32, %arg1: memref<256x128xf32, #tpu.memory_space<vmem>>, %arg2: memref<128x128xf32, #tpu.memory_space<vmem>>, %arg3: memref<1x128xf32, #tpu.memory_space<vmem>>, %arg4: memref<256x128xf32, #tpu.memory_space<vmem>>) attributes {dimension_semantics = [#tpu.dimension_semantics<parallel>], iteration_bounds = array<i64: 2>, scalar_prefetch = 0 : i64, scratch_operands = 0 : i64, tpu.core_type = #tpu.core_type<tc>, window_params = [{transform_indices = @transform_0, window_bounds = array<i64: 256, 128>}, {pipeline_mode = #tpu.pipeline_mode<synchronous>, transform_indices = @transform_1, window_bounds = array<i64: 128, 128>}, {pipeline_mode = #tpu.pipeline_mode<synchronous>, transform_indices = @transform_2, window_bounds = array<i64: 1, 128>}, {transform_indices = @transform_3, window_bounds = array<i64: 256, 128>}]} {
    %c0 = arith.constant 0 : index
    %c0_0 = arith.constant 0 : index
    %0 = vector.load %arg1[%c0, %c0_0] : memref<256x128xf32, #tpu.memory_space<vmem>>, vector<256x128xf32>
    %c0_1 = arith.constant 0 : index
    %c0_2 = arith.constant 0 : index
    %1 = vector.load %arg2[%c0_1, %c0_2] : memref<128x128xf32, #tpu.memory_space<vmem>>, vector<128x128xf32>
    %cst = arith.constant dense<0.000000e+00> : vector<256x128xf32>
    %2 = tpu.matmul %0, %1, %cst {dimension_numbers = #tpu.dot_dimension_numbers<[1], [0], [0], [1], [0, 0, 1, 1], [], []>} : vector<256x128xf32>, vector<128x128xf32>, vector<256x128xf32> -> vector<256x128xf32>
    %c0_3 = arith.constant 0 : index
    %c0_4 = arith.constant 0 : index
    %3 = vector.load %arg3[%c0_3, %c0_4] : memref<1x128xf32, #tpu.memory_space<vmem>>, vector<1x128xf32>
    %4 = vector.broadcast %3 : vector<1x128xf32> to vector<256x128xf32>
    %5 = arith.addf %2, %4 : vector<256x128xf32>
    %6 = arith.negf %5 : vector<256x128xf32>
    %7 = math.exp %6 : vector<256x128xf32>
    %cst_5 = arith.constant 1.000000e+00 : f32
    %8 = vector.broadcast %cst_5 : f32 to vector<256x128xf32>
    %9 = arith.addf %8, %7 : vector<256x128xf32>
    %10 = arith.divf %8, %9 : vector<256x128xf32>
    %11 = arith.mulf %5, %10 : vector<256x128xf32>
    %c0_6 = arith.constant 0 : index
    %c0_7 = arith.constant 0 : index
    %12 = vector.load %arg4[%c0_6, %c0_7] : memref<256x128xf32, #tpu.memory_space<vmem>>, vector<256x128xf32>
    tpu.vector_store %arg4[%c0_6, %c0_7], %11 {strides = array<i32>} : memref<256x128xf32, #tpu.memory_space<vmem>>, vector<256x128xf32>,
    return
  }
  func.func @transform_0(%arg0: i32) -> (i32, i32) {
    %c0_i32 = arith.constant 0 : i32
    %c0_i32_0 = arith.constant 0 : i32
    return %arg0, %c0_i32 : i32, i32
  }
  func.func @transform_1(%arg0: i32) -> (i32, i32) {
    %c0_i32 = arith.constant 0 : i32
    %c0_i32_0 = arith.constant 0 : i32
    %c0_i32_1 = arith.constant 0 : i32
    return %c0_i32, %c0_i32_0 : i32, i32
  }
  func.func @transform_2(%arg0: i32) -> (i32, i32) {
    %c0_i32 = arith.constant 0 : i32
    %c0_i32_0 = arith.constant 0 : i32
    %c0_i32_1 = arith.constant 0 : i32
    return %c0_i32, %c0_i32_0 : i32, i32
  }
  func.func @transform_3(%arg0: i32) -> (i32, i32) {
    %c0_i32 = arith.constant 0 : i32
    %c0_i32_0 = arith.constant 0 : i32
    return %arg0, %c0_i32 : i32, i32
  }
}

module attributes {stable_mosaic.version = 11 : i64} {
  func.func @_sppf_pool_cv2_kernel(%arg0: i32, %arg1: memref<1x16x16x128xf32, #tpu.memory_space<vmem>>, %arg2: memref<4x128x128xf32, #tpu.memory_space<vmem>>, %arg3: memref<1x128xf32, #tpu.memory_space<vmem>>, %arg4: memref<1x16x16x128xf32, #tpu.memory_space<vmem>>, %arg5: memref<20x20x128xf32, #tpu.memory_space<vmem>>) attributes {dimension_semantics = [#tpu.dimension_semantics<parallel>], iteration_bounds = array<i64: 2>, scalar_prefetch = 0 : i64, scratch_operands = 1 : i64, tpu.core_type = #tpu.core_type<tc>, window_params = [{transform_indices = @transform_0, window_bounds = array<i64: 1, 16, 16, 128>}, {pipeline_mode = #tpu.pipeline_mode<synchronous>, transform_indices = @transform_1, window_bounds = array<i64: 4, 128, 128>}, {pipeline_mode = #tpu.pipeline_mode<synchronous>, transform_indices = @transform_2, window_bounds = array<i64: 1, 128>}, {transform_indices = @transform_3, window_bounds = array<i64: 1, 16, 16, 128>}]} {
    %cst = arith.constant 0xFF800000 : f32
    %0 = vector.broadcast %cst : f32 to vector<20x20x128xf32>
    %c0 = arith.constant 0 : index
    %c0_0 = arith.constant 0 : index
    %c0_1 = arith.constant 0 : index
    %1 = vector.load %arg5[%c0, %c0_0, %c0_1] : memref<20x20x128xf32, #tpu.memory_space<vmem>>, vector<20x20x128xf32>
    tpu.vector_store %arg5[%c0, %c0_0, %c0_1], %0 {strides = array<i32>} : memref<20x20x128xf32, #tpu.memory_space<vmem>>, vector<20x20x128xf32>,
    %c0_2 = arith.constant 0 : index
    %c0_3 = arith.constant 0 : index
    %c0_4 = arith.constant 0 : index
    %c0_5 = arith.constant 0 : index
    %2 = vector.load %arg1[%c0_2, %c0_3, %c0_4, %c0_5] : memref<1x16x16x128xf32, #tpu.memory_space<vmem>>, vector<1x16x16x128xf32>
    %3 = vector.shape_cast %2 : vector<1x16x16x128xf32> to vector<16x16x128xf32>
    %c2 = arith.constant 2 : index
    %c2_6 = arith.constant 2 : index
    %c0_7 = arith.constant 0 : index
    %4 = vector.load %arg5[%c2, %c2_6, %c0_7] : memref<20x20x128xf32, #tpu.memory_space<vmem>>, vector<16x16x128xf32>
    tpu.vector_store %arg5[%c2, %c2_6, %c0_7], %3 {strides = array<i32>} : memref<20x20x128xf32, #tpu.memory_space<vmem>>, vector<16x16x128xf32>,
    %c0_8 = arith.constant 0 : index
    %c0_9 = arith.constant 0 : index
    %c0_10 = arith.constant 0 : index
    %5 = vector.load %arg5[%c0_8, %c0_9, %c0_10] : memref<20x20x128xf32, #tpu.memory_space<vmem>>, vector<16x16x128xf32>
    %c0_11 = arith.constant 0 : index
    %c1 = arith.constant 1 : index
    %c0_12 = arith.constant 0 : index
    %6 = vector.load %arg5[%c0_11, %c1, %c0_12] : memref<20x20x128xf32, #tpu.memory_space<vmem>>, vector<16x16x128xf32>
    %7 = arith.maximumf %5, %6 : vector<16x16x128xf32>
    %c0_13 = arith.constant 0 : index
    %c2_14 = arith.constant 2 : index
    %c0_15 = arith.constant 0 : index
    %8 = vector.load %arg5[%c0_13, %c2_14, %c0_15] : memref<20x20x128xf32, #tpu.memory_space<vmem>>, vector<16x16x128xf32>
    %9 = arith.maximumf %7, %8 : vector<16x16x128xf32>
    %c0_16 = arith.constant 0 : index
    %c3 = arith.constant 3 : index
    %c0_17 = arith.constant 0 : index
    %10 = vector.load %arg5[%c0_16, %c3, %c0_17] : memref<20x20x128xf32, #tpu.memory_space<vmem>>, vector<16x16x128xf32>
    %11 = arith.maximumf %9, %10 : vector<16x16x128xf32>
    %c0_18 = arith.constant 0 : index
    %c4 = arith.constant 4 : index
    %c0_19 = arith.constant 0 : index
    %12 = vector.load %arg5[%c0_18, %c4, %c0_19] : memref<20x20x128xf32, #tpu.memory_space<vmem>>, vector<16x16x128xf32>
    %13 = arith.maximumf %11, %12 : vector<16x16x128xf32>
    %c1_20 = arith.constant 1 : index
    %c0_21 = arith.constant 0 : index
    %c0_22 = arith.constant 0 : index
    %14 = vector.load %arg5[%c1_20, %c0_21, %c0_22] : memref<20x20x128xf32, #tpu.memory_space<vmem>>, vector<16x16x128xf32>
    %15 = arith.maximumf %13, %14 : vector<16x16x128xf32>
    %c1_23 = arith.constant 1 : index
    %c1_24 = arith.constant 1 : index
    %c0_25 = arith.constant 0 : index
    %16 = vector.load %arg5[%c1_23, %c1_24, %c0_25] : memref<20x20x128xf32, #tpu.memory_space<vmem>>, vector<16x16x128xf32>
    %17 = arith.maximumf %15, %16 : vector<16x16x128xf32>
    %c1_26 = arith.constant 1 : index
    %c2_27 = arith.constant 2 : index
    %c0_28 = arith.constant 0 : index
    %18 = vector.load %arg5[%c1_26, %c2_27, %c0_28] : memref<20x20x128xf32, #tpu.memory_space<vmem>>, vector<16x16x128xf32>
    %19 = arith.maximumf %17, %18 : vector<16x16x128xf32>
    %c1_29 = arith.constant 1 : index
    %c3_30 = arith.constant 3 : index
    %c0_31 = arith.constant 0 : index
    %20 = vector.load %arg5[%c1_29, %c3_30, %c0_31] : memref<20x20x128xf32, #tpu.memory_space<vmem>>, vector<16x16x128xf32>
    %21 = arith.maximumf %19, %20 : vector<16x16x128xf32>
    %c1_32 = arith.constant 1 : index
    %c4_33 = arith.constant 4 : index
    %c0_34 = arith.constant 0 : index
    %22 = vector.load %arg5[%c1_32, %c4_33, %c0_34] : memref<20x20x128xf32, #tpu.memory_space<vmem>>, vector<16x16x128xf32>
    %23 = arith.maximumf %21, %22 : vector<16x16x128xf32>
    %c2_35 = arith.constant 2 : index
    %c0_36 = arith.constant 0 : index
    %c0_37 = arith.constant 0 : index
    %24 = vector.load %arg5[%c2_35, %c0_36, %c0_37] : memref<20x20x128xf32, #tpu.memory_space<vmem>>, vector<16x16x128xf32>
    %25 = arith.maximumf %23, %24 : vector<16x16x128xf32>
    %c2_38 = arith.constant 2 : index
    %c1_39 = arith.constant 1 : index
    %c0_40 = arith.constant 0 : index
    %26 = vector.load %arg5[%c2_38, %c1_39, %c0_40] : memref<20x20x128xf32, #tpu.memory_space<vmem>>, vector<16x16x128xf32>
    %27 = arith.maximumf %25, %26 : vector<16x16x128xf32>
    %c2_41 = arith.constant 2 : index
    %c2_42 = arith.constant 2 : index
    %c0_43 = arith.constant 0 : index
    %28 = vector.load %arg5[%c2_41, %c2_42, %c0_43] : memref<20x20x128xf32, #tpu.memory_space<vmem>>, vector<16x16x128xf32>
    %29 = arith.maximumf %27, %28 : vector<16x16x128xf32>
    %c2_44 = arith.constant 2 : index
    %c3_45 = arith.constant 3 : index
    %c0_46 = arith.constant 0 : index
    %30 = vector.load %arg5[%c2_44, %c3_45, %c0_46] : memref<20x20x128xf32, #tpu.memory_space<vmem>>, vector<16x16x128xf32>
    %31 = arith.maximumf %29, %30 : vector<16x16x128xf32>
    %c2_47 = arith.constant 2 : index
    %c4_48 = arith.constant 4 : index
    %c0_49 = arith.constant 0 : index
    %32 = vector.load %arg5[%c2_47, %c4_48, %c0_49] : memref<20x20x128xf32, #tpu.memory_space<vmem>>, vector<16x16x128xf32>
    %33 = arith.maximumf %31, %32 : vector<16x16x128xf32>
    %c3_50 = arith.constant 3 : index
    %c0_51 = arith.constant 0 : index
    %c0_52 = arith.constant 0 : index
    %34 = vector.load %arg5[%c3_50, %c0_51, %c0_52] : memref<20x20x128xf32, #tpu.memory_space<vmem>>, vector<16x16x128xf32>
    %35 = arith.maximumf %33, %34 : vector<16x16x128xf32>
    %c3_53 = arith.constant 3 : index
    %c1_54 = arith.constant 1 : index
    %c0_55 = arith.constant 0 : index
    %36 = vector.load %arg5[%c3_53, %c1_54, %c0_55] : memref<20x20x128xf32, #tpu.memory_space<vmem>>, vector<16x16x128xf32>
    %37 = arith.maximumf %35, %36 : vector<16x16x128xf32>
    %c3_56 = arith.constant 3 : index
    %c2_57 = arith.constant 2 : index
    %c0_58 = arith.constant 0 : index
    %38 = vector.load %arg5[%c3_56, %c2_57, %c0_58] : memref<20x20x128xf32, #tpu.memory_space<vmem>>, vector<16x16x128xf32>
    %39 = arith.maximumf %37, %38 : vector<16x16x128xf32>
    %c3_59 = arith.constant 3 : index
    %c3_60 = arith.constant 3 : index
    %c0_61 = arith.constant 0 : index
    %40 = vector.load %arg5[%c3_59, %c3_60, %c0_61] : memref<20x20x128xf32, #tpu.memory_space<vmem>>, vector<16x16x128xf32>
    %41 = arith.maximumf %39, %40 : vector<16x16x128xf32>
    %c3_62 = arith.constant 3 : index
    %c4_63 = arith.constant 4 : index
    %c0_64 = arith.constant 0 : index
    %42 = vector.load %arg5[%c3_62, %c4_63, %c0_64] : memref<20x20x128xf32, #tpu.memory_space<vmem>>, vector<16x16x128xf32>
    %43 = arith.maximumf %41, %42 : vector<16x16x128xf32>
    %c4_65 = arith.constant 4 : index
    %c0_66 = arith.constant 0 : index
    %c0_67 = arith.constant 0 : index
    %44 = vector.load %arg5[%c4_65, %c0_66, %c0_67] : memref<20x20x128xf32, #tpu.memory_space<vmem>>, vector<16x16x128xf32>
    %45 = arith.maximumf %43, %44 : vector<16x16x128xf32>
    %c4_68 = arith.constant 4 : index
    %c1_69 = arith.constant 1 : index
    %c0_70 = arith.constant 0 : index
    %46 = vector.load %arg5[%c4_68, %c1_69, %c0_70] : memref<20x20x128xf32, #tpu.memory_space<vmem>>, vector<16x16x128xf32>
    %47 = arith.maximumf %45, %46 : vector<16x16x128xf32>
    %c4_71 = arith.constant 4 : index
    %c2_72 = arith.constant 2 : index
    %c0_73 = arith.constant 0 : index
    %48 = vector.load %arg5[%c4_71, %c2_72, %c0_73] : memref<20x20x128xf32, #tpu.memory_space<vmem>>, vector<16x16x128xf32>
    %49 = arith.maximumf %47, %48 : vector<16x16x128xf32>
    %c4_74 = arith.constant 4 : index
    %c3_75 = arith.constant 3 : index
    %c0_76 = arith.constant 0 : index
    %50 = vector.load %arg5[%c4_74, %c3_75, %c0_76] : memref<20x20x128xf32, #tpu.memory_space<vmem>>, vector<16x16x128xf32>
    %51 = arith.maximumf %49, %50 : vector<16x16x128xf32>
    %c4_77 = arith.constant 4 : index
    %c4_78 = arith.constant 4 : index
    %c0_79 = arith.constant 0 : index
    %52 = vector.load %arg5[%c4_77, %c4_78, %c0_79] : memref<20x20x128xf32, #tpu.memory_space<vmem>>, vector<16x16x128xf32>
    %53 = arith.maximumf %51, %52 : vector<16x16x128xf32>
    %c2_80 = arith.constant 2 : index
    %c2_81 = arith.constant 2 : index
    %c0_82 = arith.constant 0 : index
    %54 = vector.load %arg5[%c2_80, %c2_81, %c0_82] : memref<20x20x128xf32, #tpu.memory_space<vmem>>, vector<16x16x128xf32>
    tpu.vector_store %arg5[%c2_80, %c2_81, %c0_82], %53 {strides = array<i32>} : memref<20x20x128xf32, #tpu.memory_space<vmem>>, vector<16x16x128xf32>,
    %c0_83 = arith.constant 0 : index
    %c0_84 = arith.constant 0 : index
    %c0_85 = arith.constant 0 : index
    %55 = vector.load %arg5[%c0_83, %c0_84, %c0_85] : memref<20x20x128xf32, #tpu.memory_space<vmem>>, vector<16x16x128xf32>
    %c0_86 = arith.constant 0 : index
    %c1_87 = arith.constant 1 : index
    %c0_88 = arith.constant 0 : index
    %56 = vector.load %arg5[%c0_86, %c1_87, %c0_88] : memref<20x20x128xf32, #tpu.memory_space<vmem>>, vector<16x16x128xf32>
    %57 = arith.maximumf %55, %56 : vector<16x16x128xf32>
    %c0_89 = arith.constant 0 : index
    %c2_90 = arith.constant 2 : index
    %c0_91 = arith.constant 0 : index
    %58 = vector.load %arg5[%c0_89, %c2_90, %c0_91] : memref<20x20x128xf32, #tpu.memory_space<vmem>>, vector<16x16x128xf32>
    %59 = arith.maximumf %57, %58 : vector<16x16x128xf32>
    %c0_92 = arith.constant 0 : index
    %c3_93 = arith.constant 3 : index
    %c0_94 = arith.constant 0 : index
    %60 = vector.load %arg5[%c0_92, %c3_93, %c0_94] : memref<20x20x128xf32, #tpu.memory_space<vmem>>, vector<16x16x128xf32>
    %61 = arith.maximumf %59, %60 : vector<16x16x128xf32>
    %c0_95 = arith.constant 0 : index
    %c4_96 = arith.constant 4 : index
    %c0_97 = arith.constant 0 : index
    %62 = vector.load %arg5[%c0_95, %c4_96, %c0_97] : memref<20x20x128xf32, #tpu.memory_space<vmem>>, vector<16x16x128xf32>
    %63 = arith.maximumf %61, %62 : vector<16x16x128xf32>
    %c1_98 = arith.constant 1 : index
    %c0_99 = arith.constant 0 : index
    %c0_100 = arith.constant 0 : index
    %64 = vector.load %arg5[%c1_98, %c0_99, %c0_100] : memref<20x20x128xf32, #tpu.memory_space<vmem>>, vector<16x16x128xf32>
    %65 = arith.maximumf %63, %64 : vector<16x16x128xf32>
    %c1_101 = arith.constant 1 : index
    %c1_102 = arith.constant 1 : index
    %c0_103 = arith.constant 0 : index
    %66 = vector.load %arg5[%c1_101, %c1_102, %c0_103] : memref<20x20x128xf32, #tpu.memory_space<vmem>>, vector<16x16x128xf32>
    %67 = arith.maximumf %65, %66 : vector<16x16x128xf32>
    %c1_104 = arith.constant 1 : index
    %c2_105 = arith.constant 2 : index
    %c0_106 = arith.constant 0 : index
    %68 = vector.load %arg5[%c1_104, %c2_105, %c0_106] : memref<20x20x128xf32, #tpu.memory_space<vmem>>, vector<16x16x128xf32>
    %69 = arith.maximumf %67, %68 : vector<16x16x128xf32>
    %c1_107 = arith.constant 1 : index
    %c3_108 = arith.constant 3 : index
    %c0_109 = arith.constant 0 : index
    %70 = vector.load %arg5[%c1_107, %c3_108, %c0_109] : memref<20x20x128xf32, #tpu.memory_space<vmem>>, vector<16x16x128xf32>
    %71 = arith.maximumf %69, %70 : vector<16x16x128xf32>
    %c1_110 = arith.constant 1 : index
    %c4_111 = arith.constant 4 : index
    %c0_112 = arith.constant 0 : index
    %72 = vector.load %arg5[%c1_110, %c4_111, %c0_112] : memref<20x20x128xf32, #tpu.memory_space<vmem>>, vector<16x16x128xf32>
    %73 = arith.maximumf %71, %72 : vector<16x16x128xf32>
    %c2_113 = arith.constant 2 : index
    %c0_114 = arith.constant 0 : index
    %c0_115 = arith.constant 0 : index
    %74 = vector.load %arg5[%c2_113, %c0_114, %c0_115] : memref<20x20x128xf32, #tpu.memory_space<vmem>>, vector<16x16x128xf32>
    %75 = arith.maximumf %73, %74 : vector<16x16x128xf32>
    %c2_116 = arith.constant 2 : index
    %c1_117 = arith.constant 1 : index
    %c0_118 = arith.constant 0 : index
    %76 = vector.load %arg5[%c2_116, %c1_117, %c0_118] : memref<20x20x128xf32, #tpu.memory_space<vmem>>, vector<16x16x128xf32>
    %77 = arith.maximumf %75, %76 : vector<16x16x128xf32>
    %c2_119 = arith.constant 2 : index
    %c2_120 = arith.constant 2 : index
    %c0_121 = arith.constant 0 : index
    %78 = vector.load %arg5[%c2_119, %c2_120, %c0_121] : memref<20x20x128xf32, #tpu.memory_space<vmem>>, vector<16x16x128xf32>
    %79 = arith.maximumf %77, %78 : vector<16x16x128xf32>
    %c2_122 = arith.constant 2 : index
    %c3_123 = arith.constant 3 : index
    %c0_124 = arith.constant 0 : index
    %80 = vector.load %arg5[%c2_122, %c3_123, %c0_124] : memref<20x20x128xf32, #tpu.memory_space<vmem>>, vector<16x16x128xf32>
    %81 = arith.maximumf %79, %80 : vector<16x16x128xf32>
    %c2_125 = arith.constant 2 : index
    %c4_126 = arith.constant 4 : index
    %c0_127 = arith.constant 0 : index
    %82 = vector.load %arg5[%c2_125, %c4_126, %c0_127] : memref<20x20x128xf32, #tpu.memory_space<vmem>>, vector<16x16x128xf32>
    %83 = arith.maximumf %81, %82 : vector<16x16x128xf32>
    %c3_128 = arith.constant 3 : index
    %c0_129 = arith.constant 0 : index
    %c0_130 = arith.constant 0 : index
    %84 = vector.load %arg5[%c3_128, %c0_129, %c0_130] : memref<20x20x128xf32, #tpu.memory_space<vmem>>, vector<16x16x128xf32>
    %85 = arith.maximumf %83, %84 : vector<16x16x128xf32>
    %c3_131 = arith.constant 3 : index
    %c1_132 = arith.constant 1 : index
    %c0_133 = arith.constant 0 : index
    %86 = vector.load %arg5[%c3_131, %c1_132, %c0_133] : memref<20x20x128xf32, #tpu.memory_space<vmem>>, vector<16x16x128xf32>
    %87 = arith.maximumf %85, %86 : vector<16x16x128xf32>
    %c3_134 = arith.constant 3 : index
    %c2_135 = arith.constant 2 : index
    %c0_136 = arith.constant 0 : index
    %88 = vector.load %arg5[%c3_134, %c2_135, %c0_136] : memref<20x20x128xf32, #tpu.memory_space<vmem>>, vector<16x16x128xf32>
    %89 = arith.maximumf %87, %88 : vector<16x16x128xf32>
    %c3_137 = arith.constant 3 : index
    %c3_138 = arith.constant 3 : index
    %c0_139 = arith.constant 0 : index
    %90 = vector.load %arg5[%c3_137, %c3_138, %c0_139] : memref<20x20x128xf32, #tpu.memory_space<vmem>>, vector<16x16x128xf32>
    %91 = arith.maximumf %89, %90 : vector<16x16x128xf32>
    %c3_140 = arith.constant 3 : index
    %c4_141 = arith.constant 4 : index
    %c0_142 = arith.constant 0 : index
    %92 = vector.load %arg5[%c3_140, %c4_141, %c0_142] : memref<20x20x128xf32, #tpu.memory_space<vmem>>, vector<16x16x128xf32>
    %93 = arith.maximumf %91, %92 : vector<16x16x128xf32>
    %c4_143 = arith.constant 4 : index
    %c0_144 = arith.constant 0 : index
    %c0_145 = arith.constant 0 : index
    %94 = vector.load %arg5[%c4_143, %c0_144, %c0_145] : memref<20x20x128xf32, #tpu.memory_space<vmem>>, vector<16x16x128xf32>
    %95 = arith.maximumf %93, %94 : vector<16x16x128xf32>
    %c4_146 = arith.constant 4 : index
    %c1_147 = arith.constant 1 : index
    %c0_148 = arith.constant 0 : index
    %96 = vector.load %arg5[%c4_146, %c1_147, %c0_148] : memref<20x20x128xf32, #tpu.memory_space<vmem>>, vector<16x16x128xf32>
    %97 = arith.maximumf %95, %96 : vector<16x16x128xf32>
    %c4_149 = arith.constant 4 : index
    %c2_150 = arith.constant 2 : index
    %c0_151 = arith.constant 0 : index
    %98 = vector.load %arg5[%c4_149, %c2_150, %c0_151] : memref<20x20x128xf32, #tpu.memory_space<vmem>>, vector<16x16x128xf32>
    %99 = arith.maximumf %97, %98 : vector<16x16x128xf32>
    %c4_152 = arith.constant 4 : index
    %c3_153 = arith.constant 3 : index
    %c0_154 = arith.constant 0 : index
    %100 = vector.load %arg5[%c4_152, %c3_153, %c0_154] : memref<20x20x128xf32, #tpu.memory_space<vmem>>, vector<16x16x128xf32>
    %101 = arith.maximumf %99, %100 : vector<16x16x128xf32>
    %c4_155 = arith.constant 4 : index
    %c4_156 = arith.constant 4 : index
    %c0_157 = arith.constant 0 : index
    %102 = vector.load %arg5[%c4_155, %c4_156, %c0_157] : memref<20x20x128xf32, #tpu.memory_space<vmem>>, vector<16x16x128xf32>
    %103 = arith.maximumf %101, %102 : vector<16x16x128xf32>
    %c2_158 = arith.constant 2 : index
    %c2_159 = arith.constant 2 : index
    %c0_160 = arith.constant 0 : index
    %104 = vector.load %arg5[%c2_158, %c2_159, %c0_160] : memref<20x20x128xf32, #tpu.memory_space<vmem>>, vector<16x16x128xf32>
    tpu.vector_store %arg5[%c2_158, %c2_159, %c0_160], %103 {strides = array<i32>} : memref<20x20x128xf32, #tpu.memory_space<vmem>>, vector<16x16x128xf32>,
    %c0_161 = arith.constant 0 : index
    %c0_162 = arith.constant 0 : index
    %c0_163 = arith.constant 0 : index
    %105 = vector.load %arg5[%c0_161, %c0_162, %c0_163] : memref<20x20x128xf32, #tpu.memory_space<vmem>>, vector<16x16x128xf32>
    %c0_164 = arith.constant 0 : index
    %c1_165 = arith.constant 1 : index
    %c0_166 = arith.constant 0 : index
    %106 = vector.load %arg5[%c0_164, %c1_165, %c0_166] : memref<20x20x128xf32, #tpu.memory_space<vmem>>, vector<16x16x128xf32>
    %107 = arith.maximumf %105, %106 : vector<16x16x128xf32>
    %c0_167 = arith.constant 0 : index
    %c2_168 = arith.constant 2 : index
    %c0_169 = arith.constant 0 : index
    %108 = vector.load %arg5[%c0_167, %c2_168, %c0_169] : memref<20x20x128xf32, #tpu.memory_space<vmem>>, vector<16x16x128xf32>
    %109 = arith.maximumf %107, %108 : vector<16x16x128xf32>
    %c0_170 = arith.constant 0 : index
    %c3_171 = arith.constant 3 : index
    %c0_172 = arith.constant 0 : index
    %110 = vector.load %arg5[%c0_170, %c3_171, %c0_172] : memref<20x20x128xf32, #tpu.memory_space<vmem>>, vector<16x16x128xf32>
    %111 = arith.maximumf %109, %110 : vector<16x16x128xf32>
    %c0_173 = arith.constant 0 : index
    %c4_174 = arith.constant 4 : index
    %c0_175 = arith.constant 0 : index
    %112 = vector.load %arg5[%c0_173, %c4_174, %c0_175] : memref<20x20x128xf32, #tpu.memory_space<vmem>>, vector<16x16x128xf32>
    %113 = arith.maximumf %111, %112 : vector<16x16x128xf32>
    %c1_176 = arith.constant 1 : index
    %c0_177 = arith.constant 0 : index
    %c0_178 = arith.constant 0 : index
    %114 = vector.load %arg5[%c1_176, %c0_177, %c0_178] : memref<20x20x128xf32, #tpu.memory_space<vmem>>, vector<16x16x128xf32>
    %115 = arith.maximumf %113, %114 : vector<16x16x128xf32>
    %c1_179 = arith.constant 1 : index
    %c1_180 = arith.constant 1 : index
    %c0_181 = arith.constant 0 : index
    %116 = vector.load %arg5[%c1_179, %c1_180, %c0_181] : memref<20x20x128xf32, #tpu.memory_space<vmem>>, vector<16x16x128xf32>
    %117 = arith.maximumf %115, %116 : vector<16x16x128xf32>
    %c1_182 = arith.constant 1 : index
    %c2_183 = arith.constant 2 : index
    %c0_184 = arith.constant 0 : index
    %118 = vector.load %arg5[%c1_182, %c2_183, %c0_184] : memref<20x20x128xf32, #tpu.memory_space<vmem>>, vector<16x16x128xf32>
    %119 = arith.maximumf %117, %118 : vector<16x16x128xf32>
    %c1_185 = arith.constant 1 : index
    %c3_186 = arith.constant 3 : index
    %c0_187 = arith.constant 0 : index
    %120 = vector.load %arg5[%c1_185, %c3_186, %c0_187] : memref<20x20x128xf32, #tpu.memory_space<vmem>>, vector<16x16x128xf32>
    %121 = arith.maximumf %119, %120 : vector<16x16x128xf32>
    %c1_188 = arith.constant 1 : index
    %c4_189 = arith.constant 4 : index
    %c0_190 = arith.constant 0 : index
    %122 = vector.load %arg5[%c1_188, %c4_189, %c0_190] : memref<20x20x128xf32, #tpu.memory_space<vmem>>, vector<16x16x128xf32>
    %123 = arith.maximumf %121, %122 : vector<16x16x128xf32>
    %c2_191 = arith.constant 2 : index
    %c0_192 = arith.constant 0 : index
    %c0_193 = arith.constant 0 : index
    %124 = vector.load %arg5[%c2_191, %c0_192, %c0_193] : memref<20x20x128xf32, #tpu.memory_space<vmem>>, vector<16x16x128xf32>
    %125 = arith.maximumf %123, %124 : vector<16x16x128xf32>
    %c2_194 = arith.constant 2 : index
    %c1_195 = arith.constant 1 : index
    %c0_196 = arith.constant 0 : index
    %126 = vector.load %arg5[%c2_194, %c1_195, %c0_196] : memref<20x20x128xf32, #tpu.memory_space<vmem>>, vector<16x16x128xf32>
    %127 = arith.maximumf %125, %126 : vector<16x16x128xf32>
    %c2_197 = arith.constant 2 : index
    %c2_198 = arith.constant 2 : index
    %c0_199 = arith.constant 0 : index
    %128 = vector.load %arg5[%c2_197, %c2_198, %c0_199] : memref<20x20x128xf32, #tpu.memory_space<vmem>>, vector<16x16x128xf32>
    %129 = arith.maximumf %127, %128 : vector<16x16x128xf32>
    %c2_200 = arith.constant 2 : index
    %c3_201 = arith.constant 3 : index
    %c0_202 = arith.constant 0 : index
    %130 = vector.load %arg5[%c2_200, %c3_201, %c0_202] : memref<20x20x128xf32, #tpu.memory_space<vmem>>, vector<16x16x128xf32>
    %131 = arith.maximumf %129, %130 : vector<16x16x128xf32>
    %c2_203 = arith.constant 2 : index
    %c4_204 = arith.constant 4 : index
    %c0_205 = arith.constant 0 : index
    %132 = vector.load %arg5[%c2_203, %c4_204, %c0_205] : memref<20x20x128xf32, #tpu.memory_space<vmem>>, vector<16x16x128xf32>
    %133 = arith.maximumf %131, %132 : vector<16x16x128xf32>
    %c3_206 = arith.constant 3 : index
    %c0_207 = arith.constant 0 : index
    %c0_208 = arith.constant 0 : index
    %134 = vector.load %arg5[%c3_206, %c0_207, %c0_208] : memref<20x20x128xf32, #tpu.memory_space<vmem>>, vector<16x16x128xf32>
    %135 = arith.maximumf %133, %134 : vector<16x16x128xf32>
    %c3_209 = arith.constant 3 : index
    %c1_210 = arith.constant 1 : index
    %c0_211 = arith.constant 0 : index
    %136 = vector.load %arg5[%c3_209, %c1_210, %c0_211] : memref<20x20x128xf32, #tpu.memory_space<vmem>>, vector<16x16x128xf32>
    %137 = arith.maximumf %135, %136 : vector<16x16x128xf32>
    %c3_212 = arith.constant 3 : index
    %c2_213 = arith.constant 2 : index
    %c0_214 = arith.constant 0 : index
    %138 = vector.load %arg5[%c3_212, %c2_213, %c0_214] : memref<20x20x128xf32, #tpu.memory_space<vmem>>, vector<16x16x128xf32>
    %139 = arith.maximumf %137, %138 : vector<16x16x128xf32>
    %c3_215 = arith.constant 3 : index
    %c3_216 = arith.constant 3 : index
    %c0_217 = arith.constant 0 : index
    %140 = vector.load %arg5[%c3_215, %c3_216, %c0_217] : memref<20x20x128xf32, #tpu.memory_space<vmem>>, vector<16x16x128xf32>
    %141 = arith.maximumf %139, %140 : vector<16x16x128xf32>
    %c3_218 = arith.constant 3 : index
    %c4_219 = arith.constant 4 : index
    %c0_220 = arith.constant 0 : index
    %142 = vector.load %arg5[%c3_218, %c4_219, %c0_220] : memref<20x20x128xf32, #tpu.memory_space<vmem>>, vector<16x16x128xf32>
    %143 = arith.maximumf %141, %142 : vector<16x16x128xf32>
    %c4_221 = arith.constant 4 : index
    %c0_222 = arith.constant 0 : index
    %c0_223 = arith.constant 0 : index
    %144 = vector.load %arg5[%c4_221, %c0_222, %c0_223] : memref<20x20x128xf32, #tpu.memory_space<vmem>>, vector<16x16x128xf32>
    %145 = arith.maximumf %143, %144 : vector<16x16x128xf32>
    %c4_224 = arith.constant 4 : index
    %c1_225 = arith.constant 1 : index
    %c0_226 = arith.constant 0 : index
    %146 = vector.load %arg5[%c4_224, %c1_225, %c0_226] : memref<20x20x128xf32, #tpu.memory_space<vmem>>, vector<16x16x128xf32>
    %147 = arith.maximumf %145, %146 : vector<16x16x128xf32>
    %c4_227 = arith.constant 4 : index
    %c2_228 = arith.constant 2 : index
    %c0_229 = arith.constant 0 : index
    %148 = vector.load %arg5[%c4_227, %c2_228, %c0_229] : memref<20x20x128xf32, #tpu.memory_space<vmem>>, vector<16x16x128xf32>
    %149 = arith.maximumf %147, %148 : vector<16x16x128xf32>
    %c4_230 = arith.constant 4 : index
    %c3_231 = arith.constant 3 : index
    %c0_232 = arith.constant 0 : index
    %150 = vector.load %arg5[%c4_230, %c3_231, %c0_232] : memref<20x20x128xf32, #tpu.memory_space<vmem>>, vector<16x16x128xf32>
    %151 = arith.maximumf %149, %150 : vector<16x16x128xf32>
    %c4_233 = arith.constant 4 : index
    %c4_234 = arith.constant 4 : index
    %c0_235 = arith.constant 0 : index
    %152 = vector.load %arg5[%c4_233, %c4_234, %c0_235] : memref<20x20x128xf32, #tpu.memory_space<vmem>>, vector<16x16x128xf32>
    %153 = arith.maximumf %151, %152 : vector<16x16x128xf32>
    %154 = vector.shape_cast %3 : vector<16x16x128xf32> to vector<256x128xf32>
    %c0_236 = arith.constant 0 : index
    %c0_237 = arith.constant 0 : index
    %c0_238 = arith.constant 0 : index
    %155 = vector.load %arg2[%c0_236, %c0_237, %c0_238] : memref<4x128x128xf32, #tpu.memory_space<vmem>>, vector<1x128x128xf32>
    %156 = vector.shape_cast %155 : vector<1x128x128xf32> to vector<128x128xf32>
    %cst_239 = arith.constant dense<0.000000e+00> : vector<256x128xf32>
    %157 = tpu.matmul %154, %156, %cst_239 {dimension_numbers = #tpu.dot_dimension_numbers<[1], [0], [0], [1], [0, 0, 1, 1], [], []>} : vector<256x128xf32>, vector<128x128xf32>, vector<256x128xf32> -> vector<256x128xf32>
    %158 = vector.shape_cast %53 : vector<16x16x128xf32> to vector<256x128xf32>
    %c1_240 = arith.constant 1 : index
    %c0_241 = arith.constant 0 : index
    %c0_242 = arith.constant 0 : index
    %159 = vector.load %arg2[%c1_240, %c0_241, %c0_242] : memref<4x128x128xf32, #tpu.memory_space<vmem>>, vector<1x128x128xf32>
    %160 = vector.shape_cast %159 : vector<1x128x128xf32> to vector<128x128xf32>
    %cst_243 = arith.constant dense<0.000000e+00> : vector<256x128xf32>
    %161 = tpu.matmul %158, %160, %cst_243 {dimension_numbers = #tpu.dot_dimension_numbers<[1], [0], [0], [1], [0, 0, 1, 1], [], []>} : vector<256x128xf32>, vector<128x128xf32>, vector<256x128xf32> -> vector<256x128xf32>
    %162 = arith.addf %157, %161 : vector<256x128xf32>
    %163 = vector.shape_cast %103 : vector<16x16x128xf32> to vector<256x128xf32>
    %c2_244 = arith.constant 2 : index
    %c0_245 = arith.constant 0 : index
    %c0_246 = arith.constant 0 : index
    %164 = vector.load %arg2[%c2_244, %c0_245, %c0_246] : memref<4x128x128xf32, #tpu.memory_space<vmem>>, vector<1x128x128xf32>
    %165 = vector.shape_cast %164 : vector<1x128x128xf32> to vector<128x128xf32>
    %cst_247 = arith.constant dense<0.000000e+00> : vector<256x128xf32>
    %166 = tpu.matmul %163, %165, %cst_247 {dimension_numbers = #tpu.dot_dimension_numbers<[1], [0], [0], [1], [0, 0, 1, 1], [], []>} : vector<256x128xf32>, vector<128x128xf32>, vector<256x128xf32> -> vector<256x128xf32>
    %167 = arith.addf %162, %166 : vector<256x128xf32>
    %168 = vector.shape_cast %153 : vector<16x16x128xf32> to vector<256x128xf32>
    %c3_248 = arith.constant 3 : index
    %c0_249 = arith.constant 0 : index
    %c0_250 = arith.constant 0 : index
    %169 = vector.load %arg2[%c3_248, %c0_249, %c0_250] : memref<4x128x128xf32, #tpu.memory_space<vmem>>, vector<1x128x128xf32>
    %170 = vector.shape_cast %169 : vector<1x128x128xf32> to vector<128x128xf32>
    %cst_251 = arith.constant dense<0.000000e+00> : vector<256x128xf32>
    %171 = tpu.matmul %168, %170, %cst_251 {dimension_numbers = #tpu.dot_dimension_numbers<[1], [0], [0], [1], [0, 0, 1, 1], [], []>} : vector<256x128xf32>, vector<128x128xf32>, vector<256x128xf32> -> vector<256x128xf32>
    %172 = arith.addf %167, %171 : vector<256x128xf32>
    %c0_252 = arith.constant 0 : index
    %c0_253 = arith.constant 0 : index
    %173 = vector.load %arg3[%c0_252, %c0_253] : memref<1x128xf32, #tpu.memory_space<vmem>>, vector<1x128xf32>
    %174 = vector.broadcast %173 : vector<1x128xf32> to vector<256x128xf32>
    %175 = arith.addf %172, %174 : vector<256x128xf32>
    %176 = arith.negf %175 : vector<256x128xf32>
    %177 = math.exp %176 : vector<256x128xf32>
    %cst_254 = arith.constant 1.000000e+00 : f32
    %178 = vector.broadcast %cst_254 : f32 to vector<256x128xf32>
    %179 = arith.addf %178, %177 : vector<256x128xf32>
    %180 = arith.divf %178, %179 : vector<256x128xf32>
    %181 = arith.mulf %175, %180 : vector<256x128xf32>
    %182 = vector.shape_cast %181 : vector<256x128xf32> to vector<16x16x128xf32>
    %c0_255 = arith.constant 0 : index
    %c0_256 = arith.constant 0 : index
    %c0_257 = arith.constant 0 : index
    %c0_258 = arith.constant 0 : index
    %183 = vector.load %arg4[%c0_255, %c0_256, %c0_257, %c0_258] : memref<1x16x16x128xf32, #tpu.memory_space<vmem>>, vector<1x16x16x128xf32>
    %184 = vector.shape_cast %183 : vector<1x16x16x128xf32> to vector<16x16x128xf32>
    %185 = vector.shape_cast %182 : vector<16x16x128xf32> to vector<1x16x16x128xf32>
    tpu.vector_store %arg4[%c0_255, %c0_256, %c0_257, %c0_258], %185 {strides = array<i32>} : memref<1x16x16x128xf32, #tpu.memory_space<vmem>>, vector<1x16x16x128xf32>,
    return
  }
  func.func @transform_0(%arg0: i32) -> (i32, i32, i32, i32) {
    %c0_i32 = arith.constant 0 : i32
    %c0_i32_0 = arith.constant 0 : i32
    %c0_i32_1 = arith.constant 0 : i32
    %c0_i32_2 = arith.constant 0 : i32
    return %arg0, %c0_i32, %c0_i32_0, %c0_i32_1 : i32, i32, i32, i32
  }
  func.func @transform_1(%arg0: i32) -> (i32, i32, i32) {
    %c0_i32 = arith.constant 0 : i32
    %c0_i32_0 = arith.constant 0 : i32
    %c0_i32_1 = arith.constant 0 : i32
    %c0_i32_2 = arith.constant 0 : i32
    return %c0_i32, %c0_i32_0, %c0_i32_1 : i32, i32, i32
  }
  func.func @transform_2(%arg0: i32) -> (i32, i32) {
    %c0_i32 = arith.constant 0 : i32
    %c0_i32_0 = arith.constant 0 : i32
    %c0_i32_1 = arith.constant 0 : i32
    return %c0_i32, %c0_i32_0 : i32, i32
  }
  func.func @transform_3(%arg0: i32) -> (i32, i32, i32, i32) {
    %c0_i32 = arith.constant 0 : i32
    %c0_i32_0 = arith.constant 0 : i32
    %c0_i32_1 = arith.constant 0 : i32
    %c0_i32_2 = arith.constant 0 : i32
    return %arg0, %c0_i32, %c0_i32_0, %c0_i32_1 : i32, i32, i32, i32
  }
}

</mosaic_0001>

<bundles_post_ra>
// kernel: sppf_forward.2
= control target key start
LH: loop header
LB: loop body
LE: loop exit
PB: predicated region body
PF: predicated region fallthrough
CT: control target
= control target key end

     0   :  { %s1150_s12 = smov 0   ;;  %s1476_s0 = inlined_call_operand.vmem [shape: f32[512,128], index: 0, kind: input, shape index: {}]   ;;  %s1477_s1 = inlined_call_operand.vmem [shape: f32[128,128], index: 1, kind: input, shape index: {}]   ;;  %s1478_s2 = inlined_call_operand.vmem [shape: f32[1,128], index: 2, kind: input, shape index: {}]   ;;  %s1479_s3 = inlined_call_operand.vmem [shape: f32[512,128], index: 3, kind: output, shape index: {}]  }
   0x1 LB: > { %s766_s13 = sadd.s32 4294967295, %s1128_s12   ;;  %p770_p0 = scmp.ge.s32.totalorder %s1128_s12, 1  ;;  %s1128_s12 = sphi %s1150_s12, %s13_s12  }
   0x2   : > { %p138_p1 = scmp.lt.s32.totalorder %s1128_s12, 3 }
   0x4   : > { %p139_p2 = pnand %p770_p0, %p138_p1 }
   0x5   : > { %v206_v0 = vld [vmem:[%s1477_s1] sm:$0xff] (!%p139_p2)  ;;  %v207_v1 = vld [vmem:[%s1477_s1 + $0x8] sm:$0xff] (!%p139_p2)  ;;  %v208_v2 = vld [vmem:[%s1477_s1 + $0x10] sm:$0xff] (!%p139_p2)  ;;  %s771_s20 = sshll.u32 (!%p139_p2), %s766_s13, 5 }
   0x6   : > { %142 = sbr.rel (%p139_p2) target bundleno = 340 (0x154), region = 32  ;;  %v938_v3 = vpack.c.bf16 (!%p139_p2), %v207_v1, %v206_v0  ;;  %v209_v4 = vld [vmem:[%s1477_s1 + $0x18] sm:$0xff] (!%p139_p2)  ;;  %p163_p3 = scmp.lt.s32.totalorder (!%p139_p2), %s771_s20, 63  ;;  %v210_v6 = vld [vmem:[%s1477_s1 + $0x20] sm:$0xff] (!%p139_p2)  ;;  %v211_v7 = vld [vmem:[%s1477_s1 + $0x28] sm:$0xff] (!%p139_p2) }
   0x7   : > { %v942_v5 = vpack.c.bf16 (!%p139_p2), %v209_v4, %v208_v2  ;;  %v946_v8 = vpack.c.bf16 (!%p139_p2), %v211_v7, %v210_v6  ;;  %v212_v9 = vld [vmem:[%s1477_s1 + $0x30] sm:$0xff] (!%p139_p2)  ;;  %v213_v10 = vld [vmem:[%s1477_s1 + $0x38] sm:$0xff] (!%p139_p2)  ;;  %v214_v14 = vld [vmem:[%s1477_s1 + $0x40] sm:$0xff] (!%p139_p2) }
   0x8   : > { %939 = vmatprep.subr.bf16.mxu0 (!%p139_p2), %v938_v3  ;;  %970 = vmatprep.subr.bf16.mxu1 (!%p139_p2), %v938_v3  ;;  %v950_v13 = vpack.c.bf16 (!%p139_p2), %v213_v10, %v212_v9  ;;  %v215_v15 = vld [vmem:[%s1477_s1 + $0x48] sm:$0xff] (!%p139_p2)  ;;  %v216_v17 = vld [vmem:[%s1477_s1 + $0x50] sm:$0xff] (!%p139_p2)  ;;  %v217_v18 = vld [vmem:[%s1477_s1 + $0x58] sm:$0xff] (!%p139_p2) }
   0x9   : > { %941 = vmatpush3.bf16.msra.mxu0 (!%p139_p2), %v938_v3  ;;  %978 = vmatpush3.bf16.msra.mxu1 (!%p139_p2), %v938_v3  ;;  %v954_v16 = vpack.c.bf16 (!%p139_p2), %v215_v15, %v214_v14  ;;  %v958_v19 = vpack.c.bf16 (!%p139_p2), %v217_v18, %v216_v17  ;;  %v218_v20 = vld [vmem:[%s1477_s1 + $0x60] sm:$0xff] (!%p139_p2)  ;;  %v219_v21 = vld [vmem:[%s1477_s1 + $0x68] sm:$0xff] (!%p139_p2)  ;;  %v220_v23 = vld [vmem:[%s1477_s1 + $0x70] sm:$0xff] (!%p139_p2) }
   0xa   : > { %943 = vmatprep.subr.bf16.mxu0 (!%p139_p2), %v942_v5  ;;  %971 = vmatprep.subr.bf16.mxu1 (!%p139_p2), %v942_v5  ;;  %v962_v22 = vpack.c.bf16 (!%p139_p2), %v219_v21, %v218_v20  ;;  %v221_v24 = vld [vmem:[%s1477_s1 + $0x78] sm:$0xff] (!%p139_p2)  ;;  %v1251_v56 = vld [vmem:[%s1478_s2] ss:$0 sm:$0xff] (!%p139_p2) }
   0xb   : > { %v966_v25 = vpack.c.bf16 (!%p139_p2), %v221_v24, %v220_v23 }
   0xd   : > { %s1481_s20 = smov (!%p163_p3, %s771_s20), 63  ;;  %945 = vmatpush3.bf16.msra.mxu0 %v942_v5  ;;  %979 = vmatpush3.bf16.msra.mxu1 %v942_v5 }
   0xe   : > { %s772_s27 = sshll.u32 %s1481_s20, 3  ;;  %947 = vmatprep.subr.bf16.mxu0 %v946_v8  ;;  %972 = vmatprep.subr.bf16.mxu1 %v946_v8 }
   0xf   : > { %s1190_s7 = scalar_lea.vmem %s1476_s0, %s772_s27  ;;  %s1332_s4 = scalar_lea.vmem %s1479_s3, %s772_s27 }
  0x10   : > { %v174_v11 = vld [vmem:[%s1190_s7] sm:$0xff]  ;;  %v175_v26 = vld [vmem:[%s1190_s7 + $0x8] sm:$0xff]  ;;  %v176_v28 = vld [vmem:[%s1190_s7 + $0x10] sm:$0xff] }
  0x11   : > { %v190_v12 = vld [vmem:[%s1190_s7 + $0x80] sm:$0xff]  ;;  %890 = vmatprep.mubr.f32.mxu0 %v174_v11  ;;  %949 = vmatpush3.bf16.msra.mxu0 %v946_v8  ;;  %v191_v27 = vld [vmem:[%s1190_s7 + $0x88] sm:$0xff]  ;;  %v192_v29 = vld [vmem:[%s1190_s7 + $0x90] sm:$0xff] }
  0x12   : > { %914 = vmatprep.mubr.f32.mxu1 %v190_v12  ;;  %980 = vmatpush3.bf16.msra.mxu1 %v946_v8  ;;  %v177_v30 = vld [vmem:[%s1190_s7 + $0x18] sm:$0xff]  ;;  %v178_v32 = vld [vmem:[%s1190_s7 + $0x20] sm:$0xff]  ;;  %v179_v34 = vld [vmem:[%s1190_s7 + $0x28] sm:$0xff] }
  0x13   : > { %951 = vmatprep.subr.bf16.mxu0 %v950_v13  ;;  %973 = vmatprep.subr.bf16.mxu1 %v950_v13  ;;  %v193_v31 = vld [vmem:[%s1190_s7 + $0x98] sm:$0xff]  ;;  %v194_v33 = vld [vmem:[%s1190_s7 + $0xa0] sm:$0xff]  ;;  %v195_v35 = vld [vmem:[%s1190_s7 + $0xa8] sm:$0xff] }
  0x14   : > { %v180_v36 = vld [vmem:[%s1190_s7 + $0x30] sm:$0xff]  ;;  %v181_v38 = vld [vmem:[%s1190_s7 + $0x38] sm:$0xff]  ;;  %v182_v40 = vld [vmem:[%s1190_s7 + $0x40] sm:$0xff] }
  0x15   : > { %953 = vmatpush3.bf16.msra.mxu0 %v950_v13  ;;  %v196_v37 = vld [vmem:[%s1190_s7 + $0xb0] sm:$0xff]  ;;  %v197_v39 = vld [vmem:[%s1190_s7 + $0xb8] sm:$0xff]  ;;  %v198_v41 = vld [vmem:[%s1190_s7 + $0xc0] sm:$0xff] }
  0x16   : > { %981 = vmatpush3.bf16.msra.mxu1 %v950_v13  ;;  %955 = vmatprep.subr.bf16.mxu0 %v954_v16  ;;  %v183_v42 = vld [vmem:[%s1190_s7 + $0x48] sm:$0xff]  ;;  %v184_v44 = vld [vmem:[%s1190_s7 + $0x50] sm:$0xff]  ;;  %v185_v46 = vld [vmem:[%s1190_s7 + $0x58] sm:$0xff] }
  0x17   : > { %974 = vmatprep.subr.bf16.mxu1 %v954_v16  ;;  %v199_v43 = vld [vmem:[%s1190_s7 + $0xc8] sm:$0xff]  ;;  %v200_v45 = vld [vmem:[%s1190_s7 + $0xd0] sm:$0xff]  ;;  %v201_v47 = vld [vmem:[%s1190_s7 + $0xd8] sm:$0xff] }
  0x18   : > { %v186_v48 = vld [vmem:[%s1190_s7 + $0x60] sm:$0xff]  ;;  %v187_v50 = vld [vmem:[%s1190_s7 + $0x68] sm:$0xff]  ;;  %v188_v52 = vld [vmem:[%s1190_s7 + $0x70] sm:$0xff] }
  0x19   : > { %957 = vmatpush3.bf16.msra.mxu0 %v954_v16  ;;  %v202_v49 = vld [vmem:[%s1190_s7 + $0xe0] sm:$0xff]  ;;  %v203_v51 = vld [vmem:[%s1190_s7 + $0xe8] sm:$0xff]  ;;  %v204_v53 = vld [vmem:[%s1190_s7 + $0xf0] sm:$0xff] }
  0x1a   : > { %982 = vmatpush3.bf16.msra.mxu1 %v954_v16  ;;  %959 = vmatprep.subr.bf16.mxu0 %v958_v19  ;;  %v189_v54 = vld [vmem:[%s1190_s7 + $0x78] sm:$0xff] }
  0x1b   : > { %975 = vmatprep.subr.bf16.mxu1 %v958_v19  ;;  %v205_v55 = vld [vmem:[%s1190_s7 + $0xf8] sm:$0xff] }
  0x1d   : > { %961 = vmatpush3.bf16.msra.mxu0 %v958_v19 }
  0x1e   : > { %983 = vmatpush3.bf16.msra.mxu1 %v958_v19  ;;  %963 = vmatprep.subr.bf16.mxu0 %v962_v22 }
  0x1f   : > { %976 = vmatprep.subr.bf16.mxu1 %v962_v22 }
  0x21   : > { %965 = vmatpush3.bf16.msra.mxu0 %v962_v22 }
  0x22   : > { %984 = vmatpush3.bf16.msra.mxu1 %v962_v22  ;;  %967 = vmatprep.subr.bf16.mxu0 %v966_v25 }
  0x23   : > { %977 = vmatprep.subr.bf16.mxu1 %v966_v25 }
  0x25   : > { %969 = vmatpush3.bf16.msra.mxu0 %v966_v25 }
  0x26   : > { %985 = vmatpush3.bf16.msra.mxu1 %v966_v25 }
  0x28   : > { %891 = vmatmul.mubr.f32.vlgmr.msra.gmra.mrb[0].mxu0 %v175_v26 }
  0x29   : > { %915 = vmatmul.mubr.f32.vlgmr.msra.gmra.mrb[0].mxu1 %v191_v27  ;;  %893 = vmatprep.mubr.f32.mxu0 %v176_v28 }
  0x2a   : > { %917 = vmatprep.mubr.f32.mxu1 %v192_v29 }
  0x2c   : > { %894 = vmatmul.mubr.f32.gmra.mrb[2].mxu0 %v177_v30 }
  0x2d   : > { %918 = vmatmul.mubr.f32.gmra.mrb[2].mxu1 %v193_v31  ;;  %896 = vmatprep.mubr.f32.mxu0 %v178_v32 }
  0x2e   : > { %920 = vmatprep.mubr.f32.mxu1 %v194_v33 }
  0x30   : > { %897 = vmatmul.mubr.f32.gmra.mrb[4].mxu0 %v179_v34 }
  0x31   : > { %921 = vmatmul.mubr.f32.gmra.mrb[4].mxu1 %v195_v35  ;;  %899 = vmatprep.mubr.f32.mxu0 %v180_v36 }
  0x32   : > { %923 = vmatprep.mubr.f32.mxu1 %v196_v37 }
  0x34   : > { %900 = vmatmul.mubr.f32.gmra.mrb[6].mxu0 %v181_v38 }
  0x35   : > { %924 = vmatmul.mubr.f32.gmra.mrb[6].mxu1 %v197_v39  ;;  %902 = vmatprep.mubr.f32.mxu0 %v182_v40 }
  0x36   : > { %926 = vmatprep.mubr.f32.mxu1 %v198_v41 }
  0x38   : > { %903 = vmatmul.mubr.f32.gmra.mrb[8].mxu0 %v183_v42 }
  0x39   : > { %927 = vmatmul.mubr.f32.gmra.mrb[8].mxu1 %v199_v43  ;;  %905 = vmatprep.mubr.f32.mxu0 %v184_v44 }
  0x3a   : > { %929 = vmatprep.mubr.f32.mxu1 %v200_v45 }
  0x3c   : > { %906 = vmatmul.mubr.f32.gmra.mrb[10].mxu0 %v185_v46 }
  0x3d   : > { %930 = vmatmul.mubr.f32.gmra.mrb[10].mxu1 %v201_v47  ;;  %908 = vmatprep.mubr.f32.mxu0 %v186_v48 }
  0x3e   : > { %932 = vmatprep.mubr.f32.mxu1 %v202_v49 }
  0x40   : > { %909 = vmatmul.mubr.f32.gmra.mrb[12].mxu0 %v187_v50 }
  0x41   : > { %933 = vmatmul.mubr.f32.gmra.mrb[12].mxu1 %v203_v51  ;;  %911 = vmatprep.mubr.f32.mxu0 %v188_v52 }
  0x42   : > { %935 = vmatprep.mubr.f32.mxu1 %v204_v53 }
  0x44   : > { %912 = vmatmul.mubr.f32.gmra.mrb[14].mxu0 %v189_v54 }
  0x45   : > { %936 = vmatmul.mubr.f32.gmra.mrb[14].mxu1 %v205_v55 }
  0xfb   : > { %v892_v57 = vpop.f32.mrb[0].mxu0 }
  0xfc   : > { %v916_v58 = vpop.f32.mrb[0].mxu1  ;;  %v1254_v59 = vadd.f32 %v892_v57, %v1251_v56  ;;  %v295_v61 = vpop.f32.mrb[1].mxu0 }
  0xfd   : > { %v1257_v60 = vadd.f32 %v916_v58, %v1251_v56  ;;  %v375_v62 = vpop.f32.mrb[1].mxu1  ;;  %v1260_v63 = vadd.f32 %v1251_v56, %v295_v61 }
  0xfe   : > { %v1263_v0 = vadd.f32 %v1251_v56, %v375_v62  ;;  %v777_v1 = vmul.f32 -1.442695, %v1254_v59 }
  0xff   : > { %v793_v2 = vmul.f32 -1.442695, %v1257_v60  ;;  %v776_v3 = vmul.f32 -1.442695, %v1260_v63  ;;  %v895_v5 = vpop.f32.mrb[2].mxu0 }
 0x100   : > { %v792_v4 = vmul.f32 -1.442695, %v1263_v0  ;;  %v919_v6 = vpop.f32.mrb[2].mxu1  ;;  %994 = vpow2.f32 %v777_v1  ;;  %v1270_v7 = vadd.f32 %v895_v5, %v1251_v56  ;;  %v305_v9 = vpop.f32.mrb[3].mxu0 }
 0x101   : > { %v1273_v8 = vadd.f32 %v919_v6, %v1251_v56  ;;  %v385_v10 = vpop.f32.mrb[3].mxu1  ;;  %996 = vpow2.f32 %v793_v2  ;;  %v1276_v11 = vadd.f32 %v1251_v56, %v305_v9 }
 0x102   : > { %v1279_v12 = vadd.f32 %v1251_v56, %v385_v10  ;;  %998 = vpow2.f32 %v776_v3  ;;  %v779_v13 = vmul.f32 -1.442695, %v1270_v7 }
 0x103   : > { %v795_v14 = vmul.f32 -1.442695, %v1273_v8  ;;  %1000 = vpow2.f32 %v792_v4  ;;  %v778_v15 = vmul.f32 -1.442695, %v1276_v11  ;;  %v898_v17 = vpop.f32.mrb[4].mxu0 }
 0x104   : > { %v794_v16 = vmul.f32 -1.442695, %v1279_v12  ;;  %v922_v18 = vpop.f32.mrb[4].mxu1  ;;  %1002 = vpow2.f32 %v779_v13  ;;  %v1286_v19 = vadd.f32 %v898_v17, %v1251_v56  ;;  %v315_v21 = vpop.f32.mrb[5].mxu0 }
 0x105   : > { %v1289_v20 = vadd.f32 %v922_v18, %v1251_v56  ;;  %v395_v22 = vpop.f32.mrb[5].mxu1  ;;  %1004 = vpow2.f32 %v795_v14  ;;  %v1292_v23 = vadd.f32 %v1251_v56, %v315_v21 }
 0x106   : > { %v1295_v24 = vadd.f32 %v1251_v56, %v395_v22  ;;  %1006 = vpow2.f32 %v778_v15  ;;  %v781_v25 = vmul.f32 -1.442695, %v1286_v19 }
 0x107   : > { %v797_v26 = vmul.f32 -1.442695, %v1289_v20  ;;  %1008 = vpow2.f32 %v794_v16  ;;  %v780_v27 = vmul.f32 -1.442695, %v1292_v23  ;;  %v901_v29 = vpop.f32.mrb[6].mxu0 }
 0x108   : > { %v796_v28 = vmul.f32 -1.442695, %v1295_v24  ;;  %v925_v30 = vpop.f32.mrb[6].mxu1  ;;  %1010 = vpow2.f32 %v781_v25  ;;  %v1302_v31 = vadd.f32 %v901_v29, %v1251_v56  ;;  %v325_v32 = vpop.f32.mrb[7].mxu0 }
 0x109   : > { %v405_v33 = vpop.f32.mrb[7].mxu1  ;;  %1012 = vpow2.f32 %v797_v26  ;;  %v1308_v1 = vadd.f32 %v925_v30, %v1251_v56  ;;  %v1311_v4 = vadd.f32 %v1251_v56, %v325_v32 }
 0x10a   : > { %v995_v34 = vpop.eup %994  ;;  %1014 = vpow2.f32 %v780_v27  ;;  %v783_v35 = vmul.f32 -1.442695, %v1302_v31  ;;  %v1314_v10 = vadd.f32 %v1251_v56, %v405_v33 }
 0x10b   : > { %v997_v36 = vpop.eup %996  ;;  %v551_v37 = vadd.f32 1.0, %v995_v34  ;;  %1016 = vpow2.f32 %v796_v28  ;;  %v904_v38 = vpop.f32.mrb[8].mxu0  ;;  %v799_v25 = vmul.f32 -1.442695, %v1308_v1  ;;  %v782_v29 = vmul.f32 -1.442695, %v1311_v4 }
 0x10c   : > { %v999_v39 = vpop.eup %998  ;;  %v567_v40 = vadd.f32 1.0, %v997_v36  ;;  %1018 = vpow2.f32 %v783_v35  ;;  %v928_v41 = vpop.f32.mrb[8].mxu1  ;;  %v1319_v17 = vadd.f32 %v904_v38, %v1251_v56  ;;  %v798_v35 = vmul.f32 -1.442695, %v1314_v10 }
 0x10d   : > { %v335_v42 = vpop.f32.mrb[9].mxu0  ;;  %v1001_v43 = vpop.eup %1000  ;;  %1020 = vrcp.f32 %v551_v37  ;;  %v550_v44 = vadd.f32 1.0, %v999_v39  ;;  %v1325_v26 = vadd.f32 %v928_v41, %v1251_v56 }
 0x10e   : > { %v415_v45 = vpop.f32.mrb[9].mxu1  ;;  %v1003_v46 = vpop.eup %1002  ;;  %1022 = vrcp.f32 %v567_v40  ;;  %v566_v47 = vadd.f32 1.0, %v1001_v43  ;;  %v1336_v30 = vadd.f32 %v1251_v56, %v335_v42  ;;  %v785_v41 = vmul.f32 -1.442695, %v1319_v17 }
 0x10f   : > { %v1005_v48 = vpop.eup %1004  ;;  %1024 = vrcp.f32 %v550_v44  ;;  %v553_v49 = vadd.f32 1.0, %v1003_v46  ;;  %v907_v50 = vpop.f32.mrb[10].mxu0  ;;  %v1343_v36 = vadd.f32 %v1251_v56, %v415_v45  ;;  %v801_v45 = vmul.f32 -1.442695, %v1325_v26 }
 0x110   : > { %v1007_v51 = vpop.eup %1006  ;;  %1026 = vrcp.f32 %v566_v47  ;;  %v569_v52 = vadd.f32 1.0, %v1005_v48  ;;  %v931_v53 = vpop.f32.mrb[10].mxu1  ;;  %v784_v48 = vmul.f32 -1.442695, %v1336_v30 }
 0x111   : > { %v345_v54 = vpop.f32.mrb[11].mxu0  ;;  %v1009_v55 = vpop.eup %1008  ;;  %1028 = vrcp.f32 %v553_v49  ;;  %v552_v57 = vadd.f32 1.0, %v1007_v51  ;;  %v1360_v46 = vadd.f32 %v931_v53, %v1251_v56  ;;  %v800_v51 = vmul.f32 -1.442695, %v1343_v36 }
 0x112   : > { %v1305_v58 = vpop.f32.mrb[11].mxu1  ;;  %v1011_v61 = vpop.eup %1010  ;;  %1030 = vrcp.f32 %v569_v52  ;;  %v568_v62 = vadd.f32 1.0, %v1009_v55  ;;  %v1366_v49 = vadd.f32 %v1251_v56, %v345_v54 }
 0x113   : > { %v1013_v2 = vpop.eup %1012  ;;  %1032 = vrcp.f32 %v552_v57  ;;  %v555_v3 = vadd.f32 1.0, %v1011_v61  ;;  %v910_v5 = vpop.f32.mrb[12].mxu0  ;;  %v1373_v52 = vadd.f32 %v1251_v56, %v1305_v58  ;;  %v803_v58 = vmul.f32 -1.442695, %v1360_v46 }
 0x114   : > { %v1015_v6 = vpop.eup %1014  ;;  %1034 = vrcp.f32 %v568_v62  ;;  %v571_v9 = vadd.f32 1.0, %v1013_v2  ;;  %v934_v13 = vpop.f32.mrb[12].mxu1  ;;  %v1379_v55 = vadd.f32 %v910_v5, %v1251_v56  ;;  %v786_v2 = vmul.f32 -1.442695, %v1366_v49 }
 0x115   : > { %v1316_v14 = vpop.f32.mrb[13].mxu0  ;;  %v1017_v15 = vpop.eup %1016  ;;  %1036 = vrcp.f32 %v555_v3  ;;  %v554_v16 = vadd.f32 1.0, %v1015_v6  ;;  %v1385_v61 = vadd.f32 %v934_v13, %v1251_v56 }
 0x116   : > { %v1321_v18 = vpop.f32.mrb[13].mxu1  ;;  %v1019_v21 = vpop.eup %1018  ;;  %1038 = vrcp.f32 %v571_v9  ;;  %v570_v22 = vadd.f32 1.0, %v1017_v15 }
 0x117   : > { %v1021_v27 = vpop.eup %1020  ;;  %1040 = vrcp.f32 %v554_v16  ;;  %v557_v28 = vadd.f32 1.0, %v1019_v21  ;;  %v1338_v32 = vpop.f32.mrb[14].mxu0 }
 0x118   : > { %v1023_v33 = vpop.eup %1022  ;;  %v647_v34 = vmul.f32 %v1021_v27, %v1254_v59  ;;  %1042 = vrcp.f32 %v570_v22  ;;  %v1345_v37 = vpop.f32.mrb[14].mxu1  ;;  %v1352_v59 = vadd.f32 %v907_v50, %v1251_v56 }
 0x119   : > { %v1347_v38 = vpop.f32.mrb[15].mxu0  ;;  %v1025_v39 = vpop.eup %1024  ;;  %v663_v40 = vmul.f32 %v1023_v33, %v1257_v60  ;;  %1044 = vrcp.f32 %v557_v28 }
 0x11a   : > { %v1354_v42 = vpop.f32.mrb[15].mxu1  ;;  %v1027_v43 = vpop.eup %1026  ;;  %679 = vst [vmem:[%s1332_s4 + $0x8] sm:$0xff] %v647_v34  ;;  %v646_v44 = vmul.f32 %v1025_v39, %v1260_v63  ;;  %1046 = vpow2.f32 %v799_v25  ;;  %v787_v54 = vmul.f32 -1.442695, %v1352_v59 }
 0x11b   : > { %v1029_v60 = vpop.eup %1028  ;;  %695 = vst [vmem:[%s1332_s4 + $0x88] sm:$0xff] %v663_v40  ;;  %v662_v47 = vmul.f32 %v1027_v43, %v1263_v0  ;;  %1048 = vpow2.f32 %v782_v29 }
 0x11c   : > { %v1031_v50 = vpop.eup %1030  ;;  %678 = vst [vmem:[%s1332_s4] sm:$0xff] %v646_v44  ;;  %v649_v63 = vmul.f32 %v1029_v60, %v1270_v7  ;;  %1050 = vpow2.f32 %v798_v35  ;;  %v1407_v60 = vadd.f32 %v1251_v56, %v1316_v14  ;;  %v1419_v14 = vadd.f32 %v1345_v37, %v1251_v56 }
 0x11d   : > { %v1033_v0 = vpop.eup %1032  ;;  %694 = vst [vmem:[%s1332_s4 + $0x80] sm:$0xff] %v662_v47  ;;  %v665_v53 = vmul.f32 %v1031_v50, %v1273_v8  ;;  %1052 = vpow2.f32 %v785_v41  ;;  %v1411_v50 = vadd.f32 %v1251_v56, %v1321_v18  ;;  %v1429_v37 = vadd.f32 %v1251_v56, %v1354_v42 }
 0x11e   : > { %v1035_v7 = vpop.eup %1034  ;;  %681 = vst [vmem:[%s1332_s4 + $0x18] sm:$0xff] %v649_v63  ;;  %v648_v57 = vmul.f32 %v1033_v0, %v1276_v11  ;;  %1054 = vpow2.f32 %v801_v45  ;;  %v802_v11 = vmul.f32 -1.442695, %v1373_v52  ;;  %v1415_v0 = vadd.f32 %v1338_v32, %v1251_v56 }
 0x11f   : > { %v1037_v62 = vpop.eup %1036  ;;  %697 = vst [vmem:[%s1332_s4 + $0x98] sm:$0xff] %v665_v53  ;;  %v664_v8 = vmul.f32 %v1035_v7, %v1279_v12  ;;  %1056 = vpow2.f32 %v784_v48  ;;  %v789_v12 = vmul.f32 -1.442695, %v1379_v55  ;;  %v788_v18 = vmul.f32 -1.442695, %v1407_v60 }
 0x120   : > { %v1039_v3 = vpop.eup %1038  ;;  %680 = vst [vmem:[%s1332_s4 + $0x10] sm:$0xff] %v648_v57  ;;  %v651_v5 = vmul.f32 %v1037_v62, %v1286_v19  ;;  %1058 = vpow2.f32 %v800_v51  ;;  %v805_v19 = vmul.f32 -1.442695, %v1385_v61 }
 0x121   : > { %v1041_v6 = vpop.eup %1040  ;;  %696 = vst [vmem:[%s1332_s4 + $0x90] sm:$0xff] %v664_v8  ;;  %v667_v9 = vmul.f32 %v1039_v3, %v1289_v20  ;;  %1060 = vpow2.f32 %v787_v54  ;;  %v804_v8 = vmul.f32 -1.442695, %v1411_v50 }
 0x122   : > { %v1043_v13 = vpop.eup %1042  ;;  %683 = vst [vmem:[%s1332_s4 + $0x28] sm:$0xff] %v651_v5  ;;  %v650_v15 = vmul.f32 %v1041_v6, %v1292_v23  ;;  %1062 = vpow2.f32 %v803_v58  ;;  %v1424_v58 = vadd.f32 %v1251_v56, %v1347_v38  ;;  %v791_v5 = vmul.f32 -1.442695, %v1415_v0 }
 0x123   : > { %v1045_v16 = vpop.eup %1044  ;;  %699 = vst [vmem:[%s1332_s4 + $0xa8] sm:$0xff] %v667_v9  ;;  %v666_v21 = vmul.f32 %v1043_v13, %v1295_v24  ;;  %1064 = vpow2.f32 %v786_v2  ;;  %v807_v6 = vmul.f32 -1.442695, %v1419_v14 }
 0x124   : > { %v1047_v22 = vpop.eup %1046  ;;  %682 = vst [vmem:[%s1332_s4 + $0x20] sm:$0xff] %v650_v15  ;;  %v653_v20 = vmul.f32 %v1045_v16, %v1302_v31  ;;  %1066 = vpow2.f32 %v802_v11  ;;  %v790_v56 = vmul.f32 -1.442695, %v1424_v58 }
 0x125   : > { %v1049_v25 = vpop.eup %1048  ;;  %698 = vst [vmem:[%s1332_s4 + $0xa0] sm:$0xff] %v666_v21  ;;  %v573_v27 = vadd.f32 1.0, %v1047_v22  ;;  %1068 = vpow2.f32 %v789_v12 }
 0x126   : > { %v1051_v28 = vpop.eup %1050  ;;  %685 = vst [vmem:[%s1332_s4 + $0x38] sm:$0xff] %v653_v20  ;;  %v556_v23 = vadd.f32 1.0, %v1049_v25  ;;  %1070 = vpow2.f32 %v805_v19 }
 0x127   : > { %v1053_v29 = vpop.eup %1052  ;;  %1072 = vrcp.f32 %v573_v27  ;;  %v572_v33 = vadd.f32 1.0, %v1051_v28 }
 0x128   : > { %v1055_v34 = vpop.eup %1054  ;;  %1074 = vrcp.f32 %v556_v23  ;;  %v559_v24 = vadd.f32 1.0, %v1053_v29 }
 0x129   : > { %v1057_v35 = vpop.eup %1056  ;;  %1076 = vrcp.f32 %v572_v33  ;;  %v575_v39 = vadd.f32 1.0, %v1055_v34 }
 0x12a   : > { %v1059_v40 = vpop.eup %1058  ;;  %1078 = vrcp.f32 %v559_v24  ;;  %v558_v31 = vadd.f32 1.0, %v1057_v35 }
 0x12b   : > { %v1061_v41 = vpop.eup %1060  ;;  %1080 = vrcp.f32 %v575_v39  ;;  %v574_v43 = vadd.f32 1.0, %v1059_v40 }
 0x12c   : > { %v1063_v44 = vpop.eup %1062  ;;  %1082 = vrcp.f32 %v558_v31  ;;  %v561_v45 = vadd.f32 1.0, %v1061_v41 }
 0x12d   : > { %v1065_v47 = vpop.eup %1064  ;;  %1084 = vrcp.f32 %v574_v43  ;;  %v577_v48 = vadd.f32 1.0, %v1063_v44 }
 0x12e   : > { %v1067_v63 = vpop.eup %1066  ;;  %1086 = vrcp.f32 %v561_v45  ;;  %v560_v51 = vadd.f32 1.0, %v1065_v47 }
 0x12f   : > { %v1069_v53 = vpop.eup %1068  ;;  %1088 = vrcp.f32 %v577_v48  ;;  %v576_v54 = vadd.f32 1.0, %v1067_v63 }
 0x130   : > { %v1071_v7 = vpop.eup %1070  ;;  %1090 = vrcp.f32 %v560_v51  ;;  %v563_v57 = vadd.f32 1.0, %v1069_v53 }
 0x131   : > { %v1073_v62 = vpop.eup %1072  ;;  %1092 = vrcp.f32 %v576_v54  ;;  %v579_v32 = vadd.f32 1.0, %v1071_v7 }
 0x132   : > { %v1075_v2 = vpop.eup %1074  ;;  %v669_v3 = vmul.f32 %v1073_v62, %v1308_v1  ;;  %1094 = vrcp.f32 %v563_v57 }
 0x133   : > { %v1077_v11 = vpop.eup %1076  ;;  %v652_v38 = vmul.f32 %v1075_v2, %v1311_v4  ;;  %1096 = vrcp.f32 %v579_v32  ;;  %v806_v4 = vmul.f32 -1.442695, %v1429_v37 }
 0x134   : > { %v1079_v9 = vpop.eup %1078  ;;  %701 = vst [vmem:[%s1332_s4 + $0xb8] sm:$0xff] %v669_v3  ;;  %v668_v12 = vmul.f32 %v1077_v11, %v1314_v10  ;;  %1098 = vpow2.f32 %v788_v18 }
 0x135   : > { %v1081_v1 = vpop.eup %1080  ;;  %684 = vst [vmem:[%s1332_s4 + $0x30] sm:$0xff] %v652_v38  ;;  %v655_v42 = vmul.f32 %v1079_v9, %v1319_v17  ;;  %1100 = vpow2.f32 %v804_v8 }
 0x136   : > { %v1083_v13 = vpop.eup %1082  ;;  %700 = vst [vmem:[%s1332_s4 + $0xb0] sm:$0xff] %v668_v12  ;;  %v671_v15 = vmul.f32 %v1081_v1, %v1325_v26  ;;  %1102 = vpow2.f32 %v791_v5 }
 0x137   : > { %v1085_v19 = vpop.eup %1084  ;;  %687 = vst [vmem:[%s1332_s4 + $0x48] sm:$0xff] %v655_v42  ;;  %v654_v10 = vmul.f32 %v1083_v13, %v1336_v30  ;;  %1104 = vpow2.f32 %v807_v6 }
 0x138   : > { %v1087_v16 = vpop.eup %1086  ;;  %703 = vst [vmem:[%s1332_s4 + $0xc8] sm:$0xff] %v671_v15  ;;  %v670_v17 = vmul.f32 %v1085_v19, %v1343_v36  ;;  %1106 = vpow2.f32 %v790_v56 }
 0x139   : > { %v1089_v21 = vpop.eup %1088  ;;  %686 = vst [vmem:[%s1332_s4 + $0x40] sm:$0xff] %v654_v10  ;;  %v657_v22 = vmul.f32 %v1087_v16, %v1352_v59  ;;  %1108 = vpow2.f32 %v806_v4 }
 0x13a   : > { %v1091_v26 = vpop.eup %1090  ;;  %702 = vst [vmem:[%s1332_s4 + $0xc0] sm:$0xff] %v670_v17  ;;  %v673_v20 = vmul.f32 %v1089_v21, %v1360_v46 }
 0x13b   : > { %v1093_v30 = vpop.eup %1092  ;;  %689 = vst [vmem:[%s1332_s4 + $0x58] sm:$0xff] %v657_v22  ;;  %v656_v25 = vmul.f32 %v1091_v26, %v1366_v49 }
 0x13c   : > { %v1095_v27 = vpop.eup %1094  ;;  %705 = vst [vmem:[%s1332_s4 + $0xd8] sm:$0xff] %v673_v20  ;;  %v672_v36 = vmul.f32 %v1093_v30, %v1373_v52 }
 0x13d   : > { %v1097_v28 = vpop.eup %1096  ;;  %688 = vst [vmem:[%s1332_s4 + $0x50] sm:$0xff] %v656_v25  ;;  %v659_v23 = vmul.f32 %v1095_v27, %v1379_v55 }
 0x13e   : > { %v1099_v59 = vpop.eup %1098  ;;  %704 = vst [vmem:[%s1332_s4 + $0xd0] sm:$0xff] %v672_v36  ;;  %v675_v29 = vmul.f32 %v1097_v28, %v1385_v61 }
 0x13f   : > { %v1101_v33 = vpop.eup %1100  ;;  %691 = vst [vmem:[%s1332_s4 + $0x68] sm:$0xff] %v659_v23  ;;  %v562_v46 = vadd.f32 1.0, %v1099_v59 }
 0x140   : > { %v1103_v34 = vpop.eup %1102  ;;  %707 = vst [vmem:[%s1332_s4 + $0xe8] sm:$0xff] %v675_v29  ;;  %v578_v24 = vadd.f32 1.0, %v1101_v33 }
 0x141   : > { %v1105_v35 = vpop.eup %1104  ;;  %1110 = vrcp.f32 %v562_v46  ;;  %v565_v49 = vadd.f32 1.0, %v1103_v34 }
 0x142   : > { %v1107_v39 = vpop.eup %1106  ;;  %1112 = vrcp.f32 %v578_v24  ;;  %v581_v52 = vadd.f32 1.0, %v1105_v35 }
 0x143   : > { %v1109_v40 = vpop.eup %1108  ;;  %1114 = vrcp.f32 %v565_v49  ;;  %v564_v55 = vadd.f32 1.0, %v1107_v39 }
 0x144   : > { %1116 = vrcp.f32 %v581_v52  ;;  %v580_v61 = vadd.f32 1.0, %v1109_v40 }
 0x145   : > { %1118 = vrcp.f32 %v564_v55 }
 0x146   : > { %1120 = vrcp.f32 %v580_v61 }
 0x14b   : > { %v1111_v31 = vpop.eup %1110 }
 0x14c   : > { %v1113_v41 = vpop.eup %1112  ;;  %v658_v43 = vmul.f32 %v1111_v31, %v1407_v60 }
 0x14d   : > { %v1115_v44 = vpop.eup %1114  ;;  %v674_v45 = vmul.f32 %v1113_v41, %v1411_v50 }
 0x14e   : > { %v1117_v47 = vpop.eup %1116  ;;  %690 = vst [vmem:[%s1332_s4 + $0x60] sm:$0xff] %v658_v43  ;;  %v661_v48 = vmul.f32 %v1115_v44, %v1415_v0 }
 0x14f   : > { %v1119_v63 = vpop.eup %1118  ;;  %706 = vst [vmem:[%s1332_s4 + $0xe0] sm:$0xff] %v674_v45  ;;  %v677_v51 = vmul.f32 %v1117_v47, %v1419_v14 }
 0x150   : > { %v1121_v53 = vpop.eup %1120  ;;  %693 = vst [vmem:[%s1332_s4 + $0x78] sm:$0xff] %v661_v48  ;;  %v660_v54 = vmul.f32 %v1119_v63, %v1424_v58 }
 0x151   : > { %709 = vst [vmem:[%s1332_s4 + $0xf8] sm:$0xff] %v677_v51  ;;  %v676_v7 = vmul.f32 %v1121_v53, %v1429_v37 }
 0x152   : > { %692 = vst [vmem:[%s1332_s4 + $0x70] sm:$0xff] %v660_v54 }
 0x153   : > { %708 = vst [vmem:[%s1332_s4 + $0xf0] sm:$0xff] %v676_v7 }
 0x154 PF: > { %s13_s12 = sadd.s32 1, %s1128_s12  }
 0x155   : > { %p10_p4 = scmp.ge.s32.totalorder %s13_s12, 4  }
 0x157   :  { %12 = sbr.rel (!%p10_p4) target bundleno = 1 (0x1), region = 62 }

// kernel: sppf_forward.3
= control target key start
LH: loop header
LB: loop body
LE: loop exit
PB: predicated region body
PF: predicated region fallthrough
CT: control target
= control target key end

     0   :  { %s7457_s12 = smov 0   ;;  %s10493_s0 = inlined_call_operand.vmem [shape: f32[2,16,16,128], index: 0, kind: input, shape index: {}]   ;;  %s10494_s1 = inlined_call_operand.vmem [shape: f32[4,128,128], index: 1, kind: input, shape index: {}]   ;;  %s10495_s2 = inlined_call_operand.vmem [shape: f32[1,128], index: 2, kind: input, shape index: {}]   ;;  %s10496_s3 = inlined_call_operand.vmem [shape: f32[2,16,16,128], index: 3, kind: output, shape index: {}]  }
   0x1 LB: > { %s6448_s13 = sadd.s32 4294967295, %s7434_s12   ;;  %p6452_p0 = scmp.ge.s32.totalorder %s7434_s12, 1  ;;  %s7434_s12 = sphi %s7457_s12, %s13_s12  }
   0x2   : > { %p137_p1 = scmp.lt.s32.totalorder %s7434_s12, 3 }
   0x4   : > { %p138_p2 = pnand %p6452_p0, %p137_p1 }
   0x6   : > { %141 = sbr.rel (%p138_p2) target bundleno = 910 (0x38e), region = 32 }
   0xd   : > { %v6457_v0 = vld [vmem:[%s10494_s1 + $0x80] sm:$0xff]  ;;  %v6458_v1 = vld [vmem:[%s10494_s1 + $0x88] sm:$0xff]  ;;  %v7474_v2 = vld [vmem:[%s10494_s1 + $0x90] sm:$0xff]  ;;  %p7478_p3 = scmp.lt.s32.totalorder %s6448_s13, 1  ;;  %v7436_v5 = vmov -inf  }
   0xe   : > { %v7482_v3 = vpack.c.bf16 %v6458_v1, %v6457_v0  ;;  %v6460_v4 = vld [vmem:[%s10494_s1 + $0x98] sm:$0xff]  ;;  %171 = vst [vmem:[#allocation2] sm:$0xff] %v7436_v5  ;;  %172 = vst [vmem:[#allocation2 + $0x8] sm:$0xff] %v7436_v5  ;;  %v6461_v7 = vld [vmem:[%s10494_s1 + $0xa0] sm:$0xff] }
   0xf   : > { %174 = vst [vmem:[#allocation2 + $0x18] sm:$0xff] %v7436_v5  ;;  %175 = vst [vmem:[#allocation2 + $0x20] sm:$0xff] %v7436_v5  ;;  %v7058_v6 = vpack.c.bf16 %v6460_v4, %v7474_v2  ;;  %v6462_v8 = vld [vmem:[%s10494_s1 + $0xa8] sm:$0xff]  ;;  %s10684_s13 = smov (!%p7478_p3, %s6448_s13), 1  ;;  %v6463_v9 = vld [vmem:[%s10494_s1 + $0xb0] sm:$0xff] }
  0x10   : > { %177 = vst [vmem:[#allocation2 + $0x30] sm:$0xff] %v7436_v5  ;;  %178 = vst [vmem:[#allocation2 + $0x38] sm:$0xff] %v7436_v5  ;;  %7055 = vmatprep.subr.bf16.mxu1 %v7482_v3  ;;  %s6540_s29 = sshll.u32 %s10684_s13, 8  ;;  %v7062_v10 = vpack.c.bf16 %v6462_v8, %v6461_v7  ;;  %v6464_v11 = vld [vmem:[%s10494_s1 + $0xb8] sm:$0xff]  ;;  %v6473_v12 = vld [vmem:[%s10494_s1 + $0x100] sm:$0xff] }
  0x11   : > { %179 = vst [vmem:[#allocation2 + $0x40] sm:$0xf] %v7436_v5  ;;  %180 = vst [vmem:[#allocation2 + $0x48] sm:$0xff] %v7436_v5  ;;  %7057 = vmatpush3.bf16.msra.mxu1 %v7482_v3  ;;  %s7514_s7 = scalar_lea.vmem %s10493_s0, %s6540_s29  ;;  %v6474_v13 = vld [vmem:[%s10494_s1 + $0x108] sm:$0xff]  ;;  %v6465_v18 = vld [vmem:[%s10494_s1 + $0xc0] sm:$0xff]  ;;  %v7066_v28 = vpack.c.bf16 %v6464_v11, %v6463_v9  ;;  %s10360_s4 = scalar_lea.vmem %s10496_s3, %s6540_s29 }
  0x12   : > { %181 = vst [vmem:[#allocation2 + $0x50] sm:$0xff] %v7436_v5  ;;  %182 = vst [vmem:[#allocation2 + $0x58] sm:$0xf] %v7436_v5  ;;  %7059 = vmatprep.subr.bf16.mxu1 %v7058_v6  ;;  %v7523_v14 = vld [vmem:[%s7514_s7] sm:$0xff]  ;;  %v7526_v15 = vld [vmem:[%s7514_s7 + $0x8] sm:$0xff]  ;;  %v7118_v17 = vpack.c.bf16 %v6474_v13, %v6473_v12 }
  0x13   : > { %183 = vst [vmem:[#allocation2 + $0x60] sm:$0xff] %v7436_v5  ;;  %184 = vst [vmem:[#allocation2 + $0x68] sm:$0xff] %v7436_v5  ;;  %v7529_v16 = vld [vmem:[%s7514_s7 + $0x10] sm:$0xff]  ;;  %v6466_v19 = vld [vmem:[%s10494_s1 + $0xc8] sm:$0xff] }
  0x14   : > { %185 = vst [vmem:[#allocation2 + $0x70] sm:$0xf] %v7436_v5  ;;  %173 = vst [vmem:[#allocation2 + $0x10] sm:$0xf] %v7436_v5  ;;  %v6467_v20 = vld [vmem:[%s10494_s1 + $0xd0] sm:$0xff]  ;;  %v428_v21 = vmax.f32 %v7529_v16, %v7523_v14  ;;  %v7543_v22 = vld [vmem:[%s7514_s7 + $0x18] sm:$0xff]  ;;  %7119 = vmatprep.subr.bf16.mxu0 %v7118_v17  ;;  %v7070_v44 = vpack.c.bf16 %v6466_v19, %v6465_v18 }
  0x15   : > { %176 = vst [vmem:[#allocation2 + $0x28] sm:$0xf] %v7436_v5  ;;  %186 = vst [vmem:[#allocation2 + $0x78] sm:$0xff] %v7436_v5  ;;  %v7546_v23 = vld [vmem:[%s7514_s7 + $0x20] sm:$0xff]  ;;  %v7549_v24 = vld [vmem:[%s7514_s7 + $0x28] sm:$0xff]  ;;  %7061 = vmatpush3.bf16.msra.mxu1 %v7058_v6  ;;  %7121 = vmatpush3.bf16.msra.mxu0 %v7118_v17  ;;  %v429_v35 = vmax.f32 %v7543_v22, %v7526_v15 }
  0x16   : > { %187 = vst [vmem:[#allocation2 + $0x80] sm:$0xff] %v7436_v5  ;;  %188 = vst [vmem:[#allocation2 + $0x88] sm:$0xf] %v7436_v5  ;;  %v6468_v25 = vld [vmem:[%s10494_s1 + $0xd8] sm:$0xff]  ;;  %v328_v26 = vld [vmem:[#allocation2 + $0x1] sm:$0xff]  ;;  %7063 = vmatprep.subr.bf16.mxu1 %v7062_v10  ;;  %v490_v33 = vmax.f32 %v428_v21, %v7546_v23  ;;  %v430_v46 = vmax.f32 %v7546_v23, %v7529_v16  ;;  %v431_v60 = vmax.f32 %v7549_v24, %v7543_v22 }
  0x17   : > { %189 = vst [vmem:[#allocation2 + $0x90] sm:$0xff] %v7436_v5  ;;  %190 = vst [vmem:[#allocation2 + $0x98] sm:$0xff] %v7436_v5  ;;  %v392_v27 = vld [vmem:[#allocation2 + $0x2] sm:$0xff]  ;;  %v6471_v31 = vld [vmem:[%s10494_s1 + $0xf0] sm:$0xff]  ;;  %v7582_v45 = vpack.c.bf16 %v6468_v25, %v6467_v20  ;;  %v493_v61 = vmax.f32 %v429_v35, %v7549_v24 }
  0x18   : > { %191 = vst [vmem:[#allocation2 + $0xa0] sm:$0xf] %v7436_v5  ;;  %192 = vst [vmem:[#allocation2 + $0xa8] sm:$0xff] %v7436_v5  ;;  %v6469_v29 = vld [vmem:[%s10494_s1 + $0xe0] sm:$0xff]  ;;  %v6470_v30 = vld [vmem:[%s10494_s1 + $0xe8] sm:$0xff]  ;;  %v424_v39 = vmax.f32 %v328_v26, %v392_v27 }
  0x19   : > { %193 = vst [vmem:[#allocation2 + $0xb0] sm:$0xff] %v7436_v5  ;;  %194 = vst [vmem:[#allocation2 + $0xb8] sm:$0xf] %v7436_v5  ;;  %v6472_v32 = vld [vmem:[%s10494_s1 + $0xf8] sm:$0xff]  ;;  %v456_v36 = vld [vmem:[#allocation2 + $0x3] sm:$0xff]  ;;  %7065 = vmatpush3.bf16.msra.mxu1 %v7062_v10  ;;  %v7601_v58 = vpack.c.bf16 %v6470_v30, %v6469_v29 }
  0x1a   : > { %195 = vst [vmem:[#allocation2 + $0xc0] sm:$0xff] %v7436_v5  ;;  %196 = vst [vmem:[#allocation2 + $0xc8] sm:$0xff] %v7436_v5  ;;  %v7573_v34 = vld [vmem:[#allocation2 + $0x1a] sm:$0xff]  ;;  %v520_v40 = vld [vmem:[#allocation2 + $0x4] sm:$0xff]  ;;  %7067 = vmatprep.subr.bf16.mxu1 %v7066_v28  ;;  %v488_v50 = vmax.f32 %v424_v39, %v456_v36  ;;  %v7603_v59 = vpack.c.bf16 %v6472_v32, %v6471_v31 }
  0x1b   : > { %197 = vst [vmem:[#allocation2 + $0xd0] sm:$0xf] %v7436_v5  ;;  %198 = vst [vmem:[#allocation2 + $0xd8] sm:$0xff] %v7436_v5  ;;  %v7577_v37 = vld [vmem:[#allocation2 + $0x1b] sm:$0xff]  ;;  %v329_v38 = vld [vmem:[#allocation2 + $0x9] sm:$0xff]  ;;  %v554_v41 = vmax.f32 %v490_v33, %v7573_v34 }
  0x1c   : > { %199 = vst [vmem:[#allocation2 + $0xe0] sm:$0xff] %v7436_v5  ;;  %200 = vst [vmem:[#allocation2 + $0xe8] sm:$0xf] %v7436_v5  ;;  %v7580_v42 = vld [vmem:[#allocation2 + $0x1c] sm:$0xff]  ;;  %v393_v43 = vld [vmem:[#allocation2 + $0xa] sm:$0xff]  ;;  %v552_v1 = vmax.f32 %v488_v50, %v520_v40 }
  0x1d   : > { %201 = vst [vmem:[#allocation2 + $0xf0] sm:$0xff] %v7436_v5  ;;  %202 = vst [vmem:[#allocation2 + $0xf8] sm:$0xff] %v7436_v5  ;;  %v457_v47 = vld [vmem:[#allocation2 + $0xb] sm:$0xff]  ;;  %v7586_v48 = vld [vmem:[#allocation2 + $0x21] sm:$0xff]  ;;  %v619_v52 = vmax.f32 %v554_v41, %v7577_v37  ;;  %v425_v53 = vmax.f32 %v329_v38, %v393_v43  ;;  %7069 = vmatpush3.bf16.msra.mxu1 %v7066_v28 }
  0x1e   : > { %203 = vst [vmem:[#allocation2 + $0x100] sm:$0xf] %v7436_v5  ;;  %204 = vst [vmem:[#allocation2 + $0x108] sm:$0xff] %v7436_v5  ;;  %v7588_v49 = vld [vmem:[#allocation2 + $0x22] sm:$0xff]  ;;  %v7590_v51 = vld [vmem:[#allocation2 + $0x19] sm:$0xff]  ;;  %7071 = vmatprep.subr.bf16.mxu1 %v7070_v44 }
  0x1f   : > { %205 = vst [vmem:[#allocation2 + $0x110] sm:$0xff] %v7436_v5  ;;  %206 = vst [vmem:[#allocation2 + $0x118] sm:$0xf] %v7436_v5  ;;  %v521_v54 = vld [vmem:[#allocation2 + $0xc] sm:$0xff]  ;;  %v7593_v55 = vld [vmem:[#allocation2 + $0x23] sm:$0xff]  ;;  %v683_v2 = vmax.f32 %v619_v52, %v7580_v42  ;;  %v489_v7 = vmax.f32 %v425_v53, %v457_v47  ;;  %v427_v12 = vmax.f32 %v7586_v48, %v7588_v49 }
  0x20   : > { %207 = vst [vmem:[#allocation2 + $0x120] sm:$0xff] %v7436_v5  ;;  %208 = vst [vmem:[#allocation2 + $0x128] sm:$0xff] %v7436_v5  ;;  %v7596_v56 = vld [vmem:[%s7514_s7 + $0x30] sm:$0xff]  ;;  %v7599_v57 = vld [vmem:[%s7514_s7 + $0x38] sm:$0xff]  ;;  %v681_v32 = vmax.f32 %v552_v1, %v7590_v51 }
  0x21   : > { %209 = vst [vmem:[#allocation2 + $0x130] sm:$0xf] %v7436_v5  ;;  %210 = vst [vmem:[#allocation2 + $0x138] sm:$0xff] %v7436_v5  ;;  %v7624_v8 = vld [vmem:[#allocation2 + $0x24] sm:$0xff]  ;;  %v553_v28 = vmax.f32 %v489_v7, %v521_v54  ;;  %v7652_v30 = vmax.f32 %v427_v12, %v7593_v55  ;;  %7073 = vmatpush3.bf16.msra.mxu1 %v7070_v44  ;;  %v7776_v31 = vld [vmem:[%s7514_s7 + $0x90] sm:$0xff] }
  0x22   : > { %211 = vst [vmem:[#allocation2 + $0x140] sm:$0xff] %v7436_v5  ;;  %212 = vst [vmem:[#allocation2 + $0x148] sm:$0xf] %v7436_v5  ;;  %7075 = vmatprep.subr.bf16.mxu1 %v7582_v45  ;;  %v745_v47 = vmax.f32 %v681_v32, %v7573_v34 }
  0x23   : > { %213 = vst [vmem:[#allocation2 + $0x150] sm:$0xff] %v7436_v5  ;;  %214 = vst [vmem:[#allocation2 + $0x158] sm:$0xff] %v7436_v5  ;;  %v682_v1 = vmax.f32 %v553_v28, %v7586_v48 }
  0x24   : > { %215 = vst [vmem:[#allocation2 + $0x160] sm:$0xf] %v7436_v5  ;;  %216 = vst [vmem:[#allocation2 + $0x168] sm:$0xff] %v7436_v5  ;;  %v809_v7 = vmax.f32 %v745_v47, %v7577_v37  ;;  %v7715_v47 = vld [vmem:[%s7514_s7 + $0x48] sm:$0xff] }
  0x25   : > { %217 = vst [vmem:[#allocation2 + $0x170] sm:$0xff] %v7436_v5  ;;  %218 = vst [vmem:[#allocation2 + $0x178] sm:$0xf] %v7436_v5  ;;  %7077 = vmatpush3.bf16.msra.mxu1 %v7582_v45 }
  0x26   : > { %219 = vst [vmem:[#allocation2 + $0x180] sm:$0xff] %v7436_v5  ;;  %220 = vst [vmem:[#allocation2 + $0x188] sm:$0xff] %v7436_v5  ;;  %7079 = vmatprep.subr.bf16.mxu1 %v7601_v58  ;;  %v873_v45 = vmax.f32 %v809_v7, %v7580_v42 }
  0x27   : > { %221 = vst [vmem:[#allocation2 + $0x190] sm:$0xf] %v7436_v5  ;;  %222 = vst [vmem:[#allocation2 + $0x198] sm:$0xff] %v7436_v5 }
  0x28   : > { %223 = vst [vmem:[#allocation2 + $0x1a0] sm:$0xff] %v7436_v5  ;;  %224 = vst [vmem:[#allocation2 + $0x1a8] sm:$0xf] %v7436_v5 }
  0x29   : > { %225 = vst [vmem:[#allocation2 + $0x1b0] sm:$0xff] %v7436_v5  ;;  %226 = vst [vmem:[#allocation2 + $0x1b8] sm:$0xff] %v7436_v5  ;;  %7081 = vmatpush3.bf16.msra.mxu1 %v7601_v58 }
  0x2a   : > { %227 = vst [vmem:[#allocation2 + $0x1c0] sm:$0xf] %v7436_v5  ;;  %228 = vst [vmem:[#allocation2 + $0x1c8] sm:$0xff] %v7436_v5  ;;  %7083 = vmatprep.subr.bf16.mxu1 %v7603_v59 }
  0x2b   : > { %229 = vst [vmem:[#allocation2 + $0x1d0] sm:$0xff] %v7436_v5  ;;  %230 = vst [vmem:[#allocation2 + $0x1d8] sm:$0xf] %v7436_v5 }
  0x2c   : > { %10554 = vst [vmem:[#allocation3_spill] sm:$0xff] %v7523_v14  ;;  %10555 = vst [vmem:[#allocation4_spill] sm:$0xff] %v7526_v15 }
  0x2d   : > { %10556 = vst [vmem:[#allocation5_spill] sm:$0xff] %v7529_v16  ;;  %10557 = vst [vmem:[#allocation6_spill] sm:$0xff] %v7543_v22  ;;  %7085 = vmatpush3.bf16.msra.mxu1 %v7603_v59 }
  0x2e   : > { %10558 = vst [vmem:[#allocation7_spill] sm:$0xff] %v7546_v23  ;;  %10559 = vst [vmem:[#allocation8_spill] sm:$0xff] %v7549_v24 }
  0x2f   : > { %264 = vst [vmem:[#allocation2 + $0x32] sm:$0xff] %v7523_v14  ;;  %265 = vst [vmem:[#allocation2 + $0x3a] sm:$0xff] %v7526_v15 }
  0x30   : > { %266 = vst [vmem:[#allocation2 + $0x4a] sm:$0xff] %v7529_v16  ;;  %267 = vst [vmem:[#allocation2 + $0x52] sm:$0xff] %v7543_v22 }
  0x31   : > { %268 = vst [vmem:[#allocation2 + $0x62] sm:$0xff] %v7546_v23  ;;  %269 = vst [vmem:[#allocation2 + $0x6a] sm:$0xff] %v7549_v24 }
  0x32   : > { %10560 = vst [vmem:[#allocation9_spill] sm:$0xff] %v7596_v56  ;;  %10561 = vst [vmem:[#allocation10_spill] sm:$0xff] %v7599_v57 }
  0x33   : > { %270 = vst [vmem:[#allocation2 + $0x7a] sm:$0xff] %v7596_v56  ;;  %271 = vst [vmem:[#allocation2 + $0x82] sm:$0xff] %v7599_v57 }
  0x34   : > { %10563 = vst [vmem:[#allocation12_spill] sm:$0xff] %v7715_v47  ;;  %273 = vst [vmem:[#allocation2 + $0x9a] sm:$0xff] %v7715_v47 }
  0x35   : > { %10572 = vst [vmem:[#allocation21_spill] sm:$0xff] %v7776_v31  ;;  %282 = vst [vmem:[#allocation2 + $0x10a] sm:$0xff] %v7776_v31 }
  0x36   : > { %v7608_v62 = vld [vmem:[#allocation2 + $0x30] sm:$0xff]  ;;  %v7649_v29 = vld [vmem:[#allocation2 + $0x3b] sm:$0xff] }
  0x37   : > { %v7610_v63 = vld [vmem:[#allocation2 + $0x31] sm:$0xff]  ;;  %v7620_v5 = vld [vmem:[#allocation2 + $0x48] sm:$0xff]  ;;  %v747_v18 = vmax.f32 %v683_v2, %v7608_v62  ;;  %v7660_v38 = vld [vmem:[#allocation2 + $0x3c] sm:$0xff]  ;;  %v557_v40 = vmax.f32 %v493_v61, %v7649_v29 }
  0x38   : > { %v7612_v0 = vld [vmem:[#allocation2 + $0x33] sm:$0xff]  ;;  %v7622_v6 = vld [vmem:[#allocation2 + $0x49] sm:$0xff]  ;;  %v7630_v11 = vld [vmem:[#allocation2 + $0x60] sm:$0xff] }
  0x39   : > { %v556_v3 = vmax.f32 %v490_v33, %v7612_v0  ;;  %v7618_v4 = vld [vmem:[#allocation2 + $0x34] sm:$0xff]  ;;  %v7626_v9 = vld [vmem:[#allocation2 + $0x4b] sm:$0xff]  ;;  %v7641_v21 = vld [vmem:[#allocation2 + $0x61] sm:$0xff]  ;;  %v811_v33 = vmax.f32 %v747_v18, %v7610_v63  ;;  %v622_v2 = vmax.f32 %v557_v40, %v7660_v38 }
  0x3a   : > { %v7628_v10 = vld [vmem:[#allocation2 + $0x4c] sm:$0xff]  ;;  %v494_v20 = vmax.f32 %v430_v46, %v7626_v9  ;;  %v7643_v25 = vld [vmem:[#allocation2 + $0x63] sm:$0xff]  ;;  %v7677_v53 = vld [vmem:[#allocation2 + $0x54] sm:$0xff] }
  0x3b   : > { %v621_v19 = vmax.f32 %v556_v3, %v7618_v4  ;;  %v7645_v26 = vld [vmem:[#allocation2 + $0x64] sm:$0xff]  ;;  %v432_v27 = vmax.f32 %v7643_v25, %v7546_v23  ;;  %v7666_v41 = vld [vmem:[#allocation2 + $0x50] sm:$0xff]  ;;  %v875_v50 = vmax.f32 %v811_v33, %v7612_v0  ;;  %v7704_v33 = vld [vmem:[#allocation2 + $0x78] sm:$0xff] }
  0x3c   : > { %v558_v36 = vmax.f32 %v494_v20, %v7628_v10  ;;  %v7668_v43 = vld [vmem:[#allocation2 + $0x53] sm:$0xff]  ;;  %v7679_v54 = vld [vmem:[#allocation2 + $0x6b] sm:$0xff] }
  0x3d   : > { %v685_v35 = vmax.f32 %v621_v19, %v7620_v5  ;;  %v7663_v39 = vmax.f32 %v432_v27, %v7645_v26  ;;  %v7681_v61 = vld [vmem:[#allocation2 + $0x6c] sm:$0xff]  ;;  %v495_v3 = vmax.f32 %v431_v60, %v7668_v43  ;;  %v939_v12 = vmax.f32 %v875_v50, %v7618_v4  ;;  %v7722_v50 = vld [vmem:[%s7514_s7 + $0x58] sm:$0xff] }
  0x3e   : > { %v623_v52 = vmax.f32 %v558_v36, %v7630_v11  ;;  %v497_v34 = vmax.f32 %v7681_v61, %v7679_v54  ;;  %v7692_v20 = vld [vmem:[#allocation2 + $0x51] sm:$0xff]  ;;  %v7694_v48 = vld [vmem:[#allocation2 + $0x68] sm:$0xff]  ;;  %v746_v60 = vmax.f32 %v682_v1, %v7588_v49  ;;  %v686_v27 = vmax.f32 %v622_v2, %v7666_v41  ;;  %10565 = vst [vmem:[#allocation14_spill] sm:$0xff] %v7722_v50  ;;  %v7734_v2 = vld [vmem:[%s7514_s7 + $0x60] sm:$0xff] }
  0x3f   : > { %v749_v44 = vmax.f32 %v685_v35, %v7622_v6  ;;  %v559_v37 = vmax.f32 %v495_v3, %v7677_v53  ;;  %v7700_v28 = vld [vmem:[#allocation2 + $0x69] sm:$0xff]  ;;  %v560_v32 = vmax.f32 %v7663_v39, %v7596_v56  ;;  %v7707_v35 = vld [vmem:[%s7514_s7 + $0x40] sm:$0xff]  ;;  %v1003_v49 = vmax.f32 %v939_v12, %v7620_v5  ;;  %275 = vst [vmem:[#allocation2 + $0xb2] sm:$0xff] %v7722_v50  ;;  %v7785_v46 = vld [vmem:[%s7514_s7 + $0x98] sm:$0xff] }
  0x40   : > { %v687_v19 = vmax.f32 %v623_v52, %v7641_v21  ;;  %10562 = vst [vmem:[#allocation11_spill] sm:$0xff] %v7707_v35  ;;  %272 = vst [vmem:[#allocation2 + $0x92] sm:$0xff] %v7707_v35  ;;  %v7719_v39 = vld [vmem:[%s7514_s7 + $0x50] sm:$0xff]  ;;  %v750_v42 = vmax.f32 %v686_v27, %v7692_v20  ;;  %v7728_v1 = vmax.f32 %v497_v34, %v7599_v57  ;;  %v7737_v3 = vld [vmem:[%s7514_s7 + $0x68] sm:$0xff] }
  0x41   : > { %v813_v18 = vmax.f32 %v749_v44, %v7626_v9  ;;  %10564 = vst [vmem:[#allocation13_spill] sm:$0xff] %v7719_v39  ;;  %v810_v44 = vmax.f32 %v746_v60, %v7593_v55  ;;  %v624_v52 = vmax.f32 %v559_v37, %v7694_v48  ;;  %274 = vst [vmem:[#allocation2 + $0xaa] sm:$0xff] %v7719_v39  ;;  %v7751_v60 = vld [vmem:[%s7514_s7 + $0x78] sm:$0xff] }
  0x42   : > { %v751_v40 = vmax.f32 %v687_v19, %v7643_v25  ;;  %10566 = vst [vmem:[#allocation15_spill] sm:$0xff] %v7734_v2  ;;  %10567 = vst [vmem:[#allocation16_spill] sm:$0xff] %v7737_v3  ;;  %v937_v55 = vmax.f32 %v873_v45, %v7608_v62  ;;  %v1067_v7 = vmax.f32 %v1003_v49, %v7622_v6  ;;  %v7748_v19 = vld [vmem:[%s7514_s7 + $0x70] sm:$0xff]  ;;  %v7779_v13 = vld [vmem:[#allocation2 + $0x39] sm:$0xff] }
  0x43   : > { %v877_v36 = vmax.f32 %v813_v18, %v7628_v10  ;;  %v7743_v18 = vld [vmem:[#allocation2 + $0x79] sm:$0xff]  ;;  %276 = vst [vmem:[#allocation2 + $0xc2] sm:$0xff] %v7734_v2  ;;  %277 = vst [vmem:[#allocation2 + $0xca] sm:$0xff] %v7737_v3  ;;  %v874_v27 = vmax.f32 %v810_v44, %v7624_v8  ;;  %v814_v37 = vmax.f32 %v750_v42, %v7668_v43 }
  0x44   : > { %v815_v34 = vmax.f32 %v751_v40, %v7645_v26  ;;  %10568 = vst [vmem:[#allocation17_spill] sm:$0xff] %v7748_v19  ;;  %10569 = vst [vmem:[#allocation18_spill] sm:$0xff] %v7751_v60  ;;  %v688_v45 = vmax.f32 %v624_v52, %v7700_v28  ;;  %v625_v49 = vmax.f32 %v560_v32, %v7704_v33  ;;  %v7764_v40 = vld [vmem:[%s7514_s7 + $0x88] sm:$0xff]  ;;  %v7770_v52 = vld [vmem:[#allocation2 + $0x38] sm:$0xff] }
  0x45   : > { %v941_v12 = vmax.f32 %v877_v36, %v7630_v11  ;;  %278 = vst [vmem:[#allocation2 + $0xda] sm:$0xff] %v7748_v19  ;;  %279 = vst [vmem:[#allocation2 + $0xe2] sm:$0xff] %v7751_v60  ;;  %v7761_v36 = vld [vmem:[%s7514_s7 + $0x80] sm:$0xff]  ;;  %v1001_v58 = vmax.f32 %v937_v55, %v7610_v63  ;;  %v1131_v44 = vmax.f32 %v1067_v7, %v7626_v9 }
  0x46   : > { %10570 = vst [vmem:[#allocation19_spill] sm:$0xff] %v7761_v36  ;;  %10571 = vst [vmem:[#allocation20_spill] sm:$0xff] %v7764_v40  ;;  %v879_v32 = vmax.f32 %v815_v34, %v7596_v56  ;;  %v938_v17 = vmax.f32 %v874_v27, %v7770_v52  ;;  %v878_v55 = vmax.f32 %v814_v37, %v7677_v53  ;;  %v7792_v60 = vld [vmem:[#allocation2 + $0x7b] sm:$0xff]  ;;  %v7851_v19 = vld [vmem:[#allocation2 + $0x83] sm:$0xff] }
  0x47   : > { %v1005_v42 = vmax.f32 %v941_v12, %v7641_v21  ;;  %280 = vst [vmem:[#allocation2 + $0xf2] sm:$0xff] %v7761_v36  ;;  %281 = vst [vmem:[#allocation2 + $0xfa] sm:$0xff] %v7764_v40  ;;  %v752_v7 = vmax.f32 %v688_v45, %v7679_v54  ;;  %v689_v12 = vmax.f32 %v625_v49, %v7743_v18  ;;  %v7796_v37 = vld [vmem:[%s7514_s7 + $0xa0] sm:$0xff]  ;;  %v7799_v45 = vld [vmem:[%s7514_s7 + $0xa8] sm:$0xff] }
  0x48   : > { %10573 = vst [vmem:[#allocation22_spill] sm:$0xff] %v7785_v46  ;;  %v1065_v34 = vmax.f32 %v1001_v58, %v7523_v14  ;;  %v1195_v40 = vmax.f32 %v1131_v44, %v7628_v10  ;;  %v943_v27 = vmax.f32 %v879_v32, %v7704_v33  ;;  %283 = vst [vmem:[#allocation2 + $0x112] sm:$0xff] %v7785_v46 }
  0x49   : > { %v1069_v36 = vmax.f32 %v1005_v42, %v7643_v25  ;;  %10574 = vst [vmem:[#allocation23_spill] sm:$0xff] %v7796_v37  ;;  %10575 = vst [vmem:[#allocation24_spill] sm:$0xff] %v7799_v45  ;;  %v1002_v49 = vmax.f32 %v938_v17, %v7779_v13  ;;  %v942_v58 = vmax.f32 %v878_v55, %v7694_v48  ;;  %v7813_v17 = vld [vmem:[#allocation2 + $0x7c] sm:$0xff] }
  0x4a   : > { %v816_v44 = vmax.f32 %v752_v7, %v7681_v61  ;;  %v434_v42 = vmax.f32 %v7792_v60, %v7596_v56  ;;  %284 = vst [vmem:[#allocation2 + $0x122] sm:$0xff] %v7796_v37  ;;  %285 = vst [vmem:[#allocation2 + $0x12a] sm:$0xff] %v7799_v45  ;;  %v1129_v32 = vmax.f32 %v1065_v34, %v7612_v0  ;;  %v7823_v34 = vld [vmem:[#allocation2 + $0x80] sm:$0xff] }
  0x4b   : > { %v1260_v14 = vmax.f32 %v1195_v40, %v7630_v11  ;;  %v1133_v46 = vmax.f32 %v1069_v36, %v7645_v26  ;;  %v1007_v59 = vmax.f32 %v943_v27, %v7743_v18  ;;  %v1066_v55 = vmax.f32 %v1002_v49, %v7526_v15 }
  0x4c   : > { %v1006_v7 = vmax.f32 %v942_v58, %v7700_v28  ;;  %v880_v31 = vmax.f32 %v816_v44, %v7599_v57  ;;  %v753_v37 = vmax.f32 %v689_v12, %v7792_v60  ;;  %v1193_v45 = vmax.f32 %v1129_v32, %v7618_v4  ;;  %v7837_v32 = vld [vmem:[#allocation2 + $0x81] sm:$0xff] }
  0x4d   : > { %v1324_v0 = vmax.f32 %v1260_v14, %v7641_v21  ;;  %v1197_v40 = vmax.f32 %v1133_v46, %v7596_v56  ;;  %v1071_v36 = vmax.f32 %v1007_v59, %v7792_v60  ;;  %v1130_v27 = vmax.f32 %v1066_v55, %v7649_v29 }
  0x4e   : > { %v1070_v49 = vmax.f32 %v1006_v7, %v7679_v54  ;;  %v7828_v58 = vmax.f32 %v434_v42, %v7813_v17  ;;  %v817_v44 = vmax.f32 %v753_v37, %v7813_v17  ;;  %v1258_v12 = vmax.f32 %v1193_v45, %v7620_v5 }
  0x4f   : > { %v1388_v4 = vmax.f32 %v1324_v0, %v7643_v25  ;;  %v1262_v14 = vmax.f32 %v1197_v40, %v7704_v33  ;;  %v7835_v46 = vmax.f32 %v1071_v36, %v7813_v17  ;;  %v1194_v59 = vmax.f32 %v1130_v27, %v7660_v38 }
  0x50   : > { %v1134_v55 = vmax.f32 %v1070_v49, %v7681_v61  ;;  %v10576_v42 = vmax.f32 %v7652_v30, %v7624_v8  ;;  %v626_v45 = vmax.f32 %v7728_v1, %v7823_v34  ;;  %v1322_v7 = vmax.f32 %v1258_v12, %v7622_v6 }
  0x51   : > { %v1452_v0 = vmax.f32 %v1388_v4, %v7645_v26  ;;  %v1326_v40 = vmax.f32 %v1262_v14, %v7743_v18  ;;  %v944_v36 = vmax.f32 %v880_v31, %v7823_v34  ;;  %v1259_v27 = vmax.f32 %v1194_v59, %v7666_v41 }
  0x52   : > { %v620_v37 = vmax.f32 %v10576_v42, %v7770_v52  ;;  %v1198_v49 = vmax.f32 %v1134_v55, %v7599_v57  ;;  %v690_v30 = vmax.f32 %v626_v45, %v7837_v32  ;;  %v1386_v1 = vmax.f32 %v1322_v7, %v7529_v16 }
  0x53   : > { %v1516_v12 = vmax.f32 %v1452_v0, %v7596_v56  ;;  %v1390_v4 = vmax.f32 %v1326_v40, %v7792_v60  ;;  %v1008_v14 = vmax.f32 %v944_v36, %v7837_v32  ;;  %v1323_v31 = vmax.f32 %v1259_v27, %v7692_v20 }
  0x54   : > { %v684_v8 = vmax.f32 %v620_v37, %v7779_v13  ;;  %v1263_v59 = vmax.f32 %v1198_v49, %v7823_v34  ;;  %v435_v55 = vmax.f32 %v7851_v19, %v7599_v57  ;;  %v7866_v37 = vld [vmem:[#allocation2 + $0x84] sm:$0xff]  ;;  %v1450_v45 = vmax.f32 %v1386_v1, %v7626_v9 }
  0x55   : > { %v1581_v7 = vmax.f32 %v1516_v12, %v7590_v51  ;;  %v1454_v0 = vmax.f32 %v1390_v4, %v7813_v17  ;;  %v754_v40 = vmax.f32 %v690_v30, %v7851_v19  ;;  %v1387_v36 = vmax.f32 %v1323_v31, %v7543_v22 }
  0x56   : > { %v748_v42 = vmax.f32 %v684_v8, %v7526_v15  ;;  %v1327_v8 = vmax.f32 %v1263_v59, %v7837_v32  ;;  %v1072_v49 = vmax.f32 %v1008_v14, %v7851_v19  ;;  %v1514_v56 = vmax.f32 %v1450_v45, %v7628_v10 }
  0x57   : > { %v1645_v16 = vmax.f32 %v1581_v7, %v7704_v33  ;;  %v7879_v9 = vmax.f32 %v435_v55, %v7866_v37  ;;  %v7882_v51 = vmax.f32 %v754_v40, %v7866_v37  ;;  %v1451_v30 = vmax.f32 %v1387_v36, %v7668_v43 }
  0x58   : > { %v812_v27 = vmax.f32 %v748_v42, %v7649_v29  ;;  %v1391_v29 = vmax.f32 %v1327_v8, %v7851_v19  ;;  %v7888_v12 = vmax.f32 %v1072_v49, %v7866_v37  ;;  %v1579_v4 = vmax.f32 %v1514_v56, %v7630_v11 }
  0x59   : > { %v1709_v10 = vmax.f32 %v1645_v16, %v7743_v18  ;;  %v562_v14 = vmax.f32 %v7828_v58, %v7707_v35  ;;  %v881_v31 = vmax.f32 %v817_v44, %v7707_v35  ;;  %v1515_v42 = vmax.f32 %v1451_v30, %v7677_v53  ;;  %v7905_v44 = vld [vmem:[#allocation2 + $0x90] sm:$0xff] }
  0x5a   : > { %v876_v1 = vmax.f32 %v812_v27, %v7660_v38  ;;  %v1455_v38 = vmax.f32 %v1391_v29, %v7866_v37  ;;  %v1199_v55 = vmax.f32 %v7835_v46, %v7707_v35  ;;  %v1643_v45 = vmax.f32 %v1579_v4, %v7641_v21  ;;  %v1743_v27 = vld [vmem:[#allocation2 + $0x93] sm:$0xff] }
  0x5b   : > { %v1773_v56 = vmax.f32 %v1709_v10, %v7792_v60  ;;  %v1518_v16 = vmax.f32 %v1454_v0, %v7707_v35  ;;  %v563_v58 = vmax.f32 %v7879_v9, %v7715_v47  ;;  %v1580_v7 = vmax.f32 %v1515_v42, %v7694_v48  ;;  %v7921_v30 = vld [vmem:[#allocation2 + $0x91] sm:$0xff] }
  0x5c   : > { %v940_v59 = vmax.f32 %v876_v1, %v7666_v41  ;;  %v882_v46 = vmax.f32 %v7882_v51, %v7715_v47  ;;  %v1200_v36 = vmax.f32 %v7888_v12, %v7715_v47  ;;  %v1707_v60 = vmax.f32 %v1643_v45, %v7546_v23  ;;  %v7924_v1 = vld [vmem:[%s7514_s7 + $0xb0] sm:$0xff]  ;;  %v7933_v42 = vld [vmem:[%s7514_s7 + $0xb8] sm:$0xff] }
  0x5d   : > { %v7915_v0 = vmax.f32 %v1773_v56, %v7813_v17  ;;  %v1519_v8 = vmax.f32 %v1455_v38, %v7715_v47  ;;  %v10577_v49 = vmax.f32 %v7608_v62, %v7610_v63  ;;  %10578 = vst [vmem:[#allocation25_spill] sm:$0xff] %v7924_v1  ;;  %v1644_v51 = vmax.f32 %v1580_v7, %v7700_v28  ;;  %v7930_v10 = vld [vmem:[#allocation2 + $0x94] sm:$0xff]  ;;  %v2124_v23 = vld [vmem:[#allocation2 + $0xc] sm:$0xff] }
  0x5e   : > { %v1004_v40 = vmax.f32 %v940_v59, %v7692_v20  ;;  %v627_v4 = vmax.f32 %v562_v14, %v7905_v44  ;;  %v945_v17 = vmax.f32 %v881_v31, %v7905_v44  ;;  %10579 = vst [vmem:[#allocation26_spill] sm:$0xff] %v7933_v42  ;;  %286 = vst [vmem:[#allocation2 + $0x13a] sm:$0xff] %v7924_v1  ;;  %v255_v14 = vld [vmem:[%s7514_s7 + $0xc0] sm:$0xff] }
  0x5f   : > { %v1583_v9 = vmax.f32 %v1518_v16, %v10577_v49  ;;  %v1771_v62 = vmax.f32 %v1707_v60, %v7643_v25  ;;  %v1264_v63 = vmax.f32 %v1199_v55, %v7905_v44  ;;  %v436_v38 = vmax.f32 %v1743_v27, %v7707_v35  ;;  %1869 = vst [vmem:[#allocation2 + $0x4a] sm:$0xff] %v7915_v0  ;;  %v7947_v55 = vld [vmem:[#allocation2 + $0x98] sm:$0xff]  ;;  %v256_v16 = vld [vmem:[%s7514_s7 + $0xc8] sm:$0xff] }
  0x60   : > { %v1068_v29 = vmax.f32 %v1004_v40, %v7543_v22  ;;  %287 = vst [vmem:[#allocation2 + $0x142] sm:$0xff] %v7933_v42  ;;  %v1708_v31 = vmax.f32 %v1644_v51, %v7549_v24  ;;  %v691_v56 = vmax.f32 %v627_v4, %v7921_v30  ;;  %v1009_v25 = vmax.f32 %v945_v17, %v7921_v30  ;;  %v258_v17 = vld [vmem:[%s7514_s7 + $0xd8] sm:$0xff] }
  0x61   : > { %v1647_v59 = vmax.f32 %v1583_v9, %v7905_v44  ;;  %288 = vst [vmem:[#allocation2 + $0x152] sm:$0xff] %v255_v14  ;;  %v1835_v7 = vmax.f32 %v1771_v62, %v7645_v26  ;;  %v1328_v40 = vmax.f32 %v1264_v63, %v7921_v30  ;;  %v500_v49 = vmax.f32 %v436_v38, %v7930_v10  ;;  %v257_v9 = vld [vmem:[%s7514_s7 + $0xd0] sm:$0xff]  ;;  %v7961_v38 = vld [vmem:[#allocation2 + $0x99] sm:$0xff] }
  0x62   : > { %v1132_v45 = vmax.f32 %v1068_v29, %v7668_v43  ;;  %289 = vst [vmem:[#allocation2 + $0x15a] sm:$0xff] %v256_v16  ;;  %v1772_v43 = vmax.f32 %v1708_v31, %v7679_v54  ;;  %v755_v29 = vmax.f32 %v691_v56, %v1743_v27  ;;  %v1073_v4 = vmax.f32 %v1009_v25, %v1743_v27  ;;  %v1744_v14 = vld [vmem:[#allocation2 + $0x9b] sm:$0xff] }
  0x63   : > { %v1711_v60 = vmax.f32 %v1647_v59, %v7921_v30  ;;  %290 = vst [vmem:[#allocation2 + $0x16a] sm:$0xff] %v257_v9  ;;  %6766 = vmatprep.mubr.f32.mxu1 %v1835_v7  ;;  %v1392_v26 = vmax.f32 %v1328_v40, %v1743_v27  ;;  %v365_v63 = vmax.f32 %v7770_v52, %v7779_v13  ;;  %1867 = vst [vmem:[#allocation2 + $0x32] sm:$0xff] %v1835_v7  ;;  %v259_v25 = vld [vmem:[%s7514_s7 + $0xe0] sm:$0xff] }
  0x64   : > { %v1196_v51 = vmax.f32 %v1132_v45, %v7677_v53  ;;  %v628_v59 = vmax.f32 %v563_v58, %v7947_v55  ;;  %291 = vst [vmem:[#allocation2 + $0x172] sm:$0xff] %v258_v17  ;;  %v1836_v53 = vmax.f32 %v1772_v43, %v7681_v61  ;;  %v819_v45 = vmax.f32 %v755_v29, %v7930_v10  ;;  %v1808_v7 = vld [vmem:[#allocation2 + $0x9c] sm:$0xff]  ;;  %v7989_v17 = vld [vmem:[#allocation2 + $0xa8] sm:$0xff] }
  0x65   : > { %v1775_v62 = vmax.f32 %v1711_v60, %v1743_v27  ;;  %v1137_v56 = vmax.f32 %v1073_v4, %v7930_v10  ;;  %v260_v27 = vld [vmem:[%s7514_s7 + $0xe8] sm:$0xff]  ;;  %v1456_v16 = vmax.f32 %v1392_v26, %v7930_v10  ;;  %v1584_v52 = vmax.f32 %v1519_v8, %v365_v63  ;;  %292 = vst [vmem:[#allocation2 + $0x182] sm:$0xff] %v259_v25 }
  0x66   : > { %v1261_v31 = vmax.f32 %v1196_v51, %v7694_v48  ;;  %v946_v58 = vmax.f32 %v882_v46, %v7947_v55  ;;  %293 = vst [vmem:[#allocation2 + $0x18a] sm:$0xff] %v260_v27  ;;  %6767 = vmatmul.mubr.f32.vlgmr.msra.gmra.mrb[0].mxu1 %v1836_v53  ;;  %v1265_v60 = vmax.f32 %v1200_v36, %v7947_v55  ;;  %1868 = vst [vmem:[#allocation2 + $0x3a] sm:$0xff] %v1836_v53 }
  0x67   : > { %v7971_v13 = vmax.f32 %v1775_v62, %v7930_v10  ;;  %v692_v9 = vmax.f32 %v628_v59, %v7961_v38  ;;  %v437_v43 = vmax.f32 %v1744_v14, %v7715_v47  ;;  %6769 = vmatprep.mubr.f32.mxu1 %v7915_v0  ;;  %v1648_v46 = vmax.f32 %v1584_v52, %v7947_v55 }
  0x68   : > { %v1325_v40 = vmax.f32 %v1261_v31, %v7700_v28  ;;  %v1010_v8 = vmax.f32 %v946_v58, %v7961_v38  ;;  %v564_v10 = vmax.f32 %v500_v49, %v7719_v39  ;;  %v883_v51 = vmax.f32 %v819_v45, %v7719_v39 }
  0x69   : > { %1871 = vst [vmem:[#allocation2 + $0x62] sm:$0xff] %v7971_v13  ;;  %v1329_v36 = vmax.f32 %v1265_v60, %v7961_v38  ;;  %v756_v29 = vmax.f32 %v692_v9, %v1744_v14  ;;  %v501_v4 = vmax.f32 %v437_v43, %v1808_v7  ;;  %v1712_v0 = vmax.f32 %v1648_v46, %v7961_v38  ;;  %v1745_v9 = vld [vmem:[#allocation2 + $0xab] sm:$0xff] }
  0x6a   : > { %v1389_v12 = vmax.f32 %v1325_v40, %v7549_v24  ;;  %v1074_v26 = vmax.f32 %v1010_v8, %v1744_v14  ;;  %v1201_v62 = vmax.f32 %v1137_v56, %v7719_v39  ;;  %v1520_v63 = vmax.f32 %v1456_v16, %v7719_v39  ;;  %v8000_v40 = vld [vmem:[#allocation2 + $0xa9] sm:$0xff]  ;;  %v8503_v24 = vld [vmem:[#allocation2 + $0x158] sm:$0xff] }
  0x6b   : > { %v1393_v59 = vmax.f32 %v1329_v36, %v1744_v14  ;;  %v820_v53 = vmax.f32 %v756_v29, %v1808_v7  ;;  %v565_v31 = vmax.f32 %v501_v4, %v7722_v50  ;;  %v1776_v45 = vmax.f32 %v1712_v0, %v1744_v14  ;;  %v8016_v36 = vld [vmem:[#allocation2 + $0x6a] sm:$0xff]  ;;  %10600 = vst [vmem:[#allocation35_spill] sm:$0xff] %v8503_v24 }
  0x6c   : > { %v1453_v49 = vmax.f32 %v1389_v12, %v7679_v54  ;;  %v1138_v25 = vmax.f32 %v1074_v26, %v1808_v7  ;;  %v10580_v27 = vmax.f32 %v7620_v5, %v7622_v6  ;;  %v629_v58 = vmax.f32 %v564_v10, %v7989_v17  ;;  %v8010_v6 = vld [vmem:[#allocation2 + $0xb0] sm:$0xff] }
  0x6d   : > { %v1457_v60 = vmax.f32 %v1393_v59, %v1808_v7  ;;  %v884_v16 = vmax.f32 %v820_v53, %v7722_v50  ;;  %v947_v54 = vmax.f32 %v883_v51, %v7989_v17  ;;  %v8005_v43 = vmax.f32 %v1776_v45, %v1808_v7  ;;  %v1809_v51 = vld [vmem:[#allocation2 + $0xac] sm:$0xff]  ;;  %v8535_v22 = vld [vmem:[#allocation2 + $0x3c] sm:$0xff] }
  0x6e   : > { %v1585_v52 = vmax.f32 %v1520_v63, %v10580_v27  ;;  %v1517_v56 = vmax.f32 %v1453_v49, %v7681_v61  ;;  %v1202_v14 = vmax.f32 %v1138_v25, %v7722_v50  ;;  %v1266_v46 = vmax.f32 %v1201_v62, %v7989_v17  ;;  %v8026_v27 = vld [vmem:[#allocation2 + $0xb1] sm:$0xff] }
  0x6f   : > { %v1521_v61 = vmax.f32 %v1457_v60, %v7722_v50  ;;  %v693_v10 = vmax.f32 %v629_v58, %v8000_v40  ;;  %v1011_v12 = vmax.f32 %v947_v54, %v8000_v40  ;;  %v438_v4 = vmax.f32 %v1745_v9, %v7719_v39  ;;  %1872 = vst [vmem:[#allocation2 + $0x6a] sm:$0xff] %v8005_v43 }
  0x70   : > { %v1649_v5 = vmax.f32 %v1585_v52, %v7989_v17  ;;  %v1582_v8 = vmax.f32 %v1517_v56, %v7823_v34  ;;  %v1330_v7 = vmax.f32 %v1266_v46, %v8000_v40  ;;  %v367_v0 = vmax.f32 %v7666_v41, %v7692_v20  ;;  %v1746_v52 = vld [vmem:[#allocation2 + $0xb3] sm:$0xff] }
  0x71   : > { %v757_v62 = vmax.f32 %v693_v10, %v1745_v9  ;;  %v1075_v63 = vmax.f32 %v1011_v12, %v1745_v9  ;;  %v630_v49 = vmax.f32 %v565_v31, %v8010_v6  ;;  %v502_v45 = vmax.f32 %v438_v4, %v1809_v51  ;;  %v1810_v31 = vld [vmem:[#allocation2 + $0xb4] sm:$0xff] }
  0x72   : > { %v1713_v29 = vmax.f32 %v1649_v5, %v8000_v40  ;;  %v1646_v26 = vmax.f32 %v1582_v8, %v7837_v32  ;;  %v1394_v59 = vmax.f32 %v1330_v7, %v1745_v9  ;;  %v1586_v25 = vmax.f32 %v1521_v61, %v367_v0 }
  0x73   : > { %v821_v56 = vmax.f32 %v757_v62, %v1809_v51  ;;  %v1139_v60 = vmax.f32 %v1075_v63, %v1809_v51  ;;  %v948_v41 = vmax.f32 %v884_v16, %v8010_v6  ;;  %v1267_v46 = vmax.f32 %v1202_v14, %v8010_v6  ;;  %v8040_v14 = vld [vmem:[#allocation2 + $0xc0] sm:$0xff] }
  0x74   : > { %v1777_v53 = vmax.f32 %v1713_v29, %v1745_v9  ;;  %v1710_v58 = vmax.f32 %v1646_v26, %v7599_v57  ;;  %v1458_v20 = vmax.f32 %v1394_v59, %v1809_v51  ;;  %v1650_v5 = vmax.f32 %v1586_v25, %v8010_v6  ;;  %v8045_v59 = vld [vmem:[#allocation2 + $0xc1] sm:$0xff] }
  0x75   : > { %v694_v8 = vmax.f32 %v630_v49, %v8026_v27  ;;  %v1012_v61 = vmax.f32 %v948_v41, %v8026_v27  ;;  %v439_v10 = vmax.f32 %v1746_v52, %v7722_v50  ;;  %v1331_v12 = vmax.f32 %v1267_v46, %v8026_v27  ;;  %v8054_v46 = vld [vmem:[#allocation2 + $0xc8] sm:$0xff]  ;;  %v8496_v50 = vld [vmem:[#allocation2 + $0x153] sm:$0xff] }
  0x76   : > { %v1841_v54 = vmax.f32 %v1777_v53, %v1809_v51  ;;  %v1774_v9 = vmax.f32 %v1710_v58, %v7851_v19  ;;  %v1714_v7 = vmax.f32 %v1650_v5, %v8026_v27  ;;  %v566_v16 = vmax.f32 %v502_v45, %v7734_v2 }
  0x77   : > { %v885_v51 = vmax.f32 %v821_v56, %v7734_v2  ;;  %v758_v19 = vmax.f32 %v694_v8, %v1746_v52  ;;  %v1076_v4 = vmax.f32 %v1012_v61, %v1746_v52  ;;  %v503_v0 = vmax.f32 %v439_v10, %v1810_v31  ;;  %v1811_v61 = vld [vmem:[#allocation2 + $0xc4] sm:$0xff] }
  0x78   : > { %1873 = vst [vmem:[#allocation2 + $0x7a] sm:$0xff] %v1841_v54  ;;  %v1838_v29 = vmax.f32 %v1774_v9, %v7866_v37  ;;  %v1395_v26 = vmax.f32 %v1331_v12, %v1746_v52  ;;  %v1778_v62 = vmax.f32 %v1714_v7, %v1746_v52  ;;  %v1203_v63 = vmax.f32 %v1139_v60, %v7734_v2  ;;  %v1747_v37 = vld [vmem:[#allocation2 + $0xc3] sm:$0xff]  ;;  %v261_v12 = vld [vmem:[%s7514_s7 + $0xf0] sm:$0xff] }
  0x79   : > { %v1522_v49 = vmax.f32 %v1458_v20, %v7734_v2  ;;  %v822_v53 = vmax.f32 %v758_v19, %v1810_v31  ;;  %v1140_v45 = vmax.f32 %v1076_v4, %v1810_v31  ;;  %v567_v25 = vmax.f32 %v503_v0, %v7737_v3  ;;  %v8070_v19 = vld [vmem:[#allocation2 + $0xc9] sm:$0xff]  ;;  %v262_v4 = vld [vmem:[%s7514_s7 + $0xf8] sm:$0xff]  ;;  %294 = vst [vmem:[#allocation2 + $0x19a] sm:$0xff] %v261_v12 }
  0x7a   : > { %6770 = vmatmul.mubr.f32.gmra.mrb[2].mxu1 %v1838_v29  ;;  %1870 = vst [vmem:[#allocation2 + $0x52] sm:$0xff] %v1838_v29  ;;  %v631_v58 = vmax.f32 %v566_v16, %v8040_v14  ;;  %v1459_v56 = vmax.f32 %v1395_v26, %v1810_v31  ;;  %v1842_v52 = vmax.f32 %v1778_v62, %v1810_v31  ;;  %295 = vst [vmem:[#allocation2 + $0x1a2] sm:$0xff] %v262_v4 }
  0x7b   : > { %6772 = vmatprep.mubr.f32.mxu1 %v7971_v13  ;;  %v10581_v60 = vmax.f32 %v7630_v11, %v7641_v21  ;;  %v949_v20 = vmax.f32 %v885_v51, %v8040_v14  ;;  %v886_v5 = vmax.f32 %v822_v53, %v7737_v3  ;;  %v1204_v9 = vmax.f32 %v1140_v45, %v7737_v3 }
  0x7c   : > { %v1268_v8 = vmax.f32 %v1203_v63, %v8040_v14  ;;  %v695_v13 = vmax.f32 %v631_v58, %v8045_v59  ;;  %v1523_v31 = vmax.f32 %v1459_v56, %v7737_v3  ;;  %v440_v21 = vmax.f32 %v1747_v37, %v7734_v2  ;;  %1874 = vst [vmem:[#allocation2 + $0x82] sm:$0xff] %v1842_v52  ;;  %v1812_v56 = vld [vmem:[#allocation2 + $0xcc] sm:$0xff] }
  0x7d   : > { %v1587_v41 = vmax.f32 %v1522_v49, %v10581_v60  ;;  %v1013_v11 = vmax.f32 %v949_v20, %v8045_v59  ;;  %v369_v51 = vmax.f32 %v7694_v48, %v7700_v28  ;;  %v632_v29 = vmax.f32 %v567_v25, %v8054_v46  ;;  %v8492_v2 = vld [vmem:[#allocation2 + $0x151] sm:$0xff] }
  0x7e   : > { %6773 = vmatmul.mubr.f32.gmra.mrb[4].mxu1 %v8005_v43  ;;  %v1332_v7 = vmax.f32 %v1268_v8, %v8045_v59  ;;  %v759_v16 = vmax.f32 %v695_v13, %v1747_v37  ;;  %v504_v62 = vmax.f32 %v440_v21, %v1811_v61  ;;  %v950_v63 = vmax.f32 %v886_v5, %v8054_v46  ;;  %v1748_v43 = vld [vmem:[#allocation2 + $0xcb] sm:$0xff] }
  0x7f   : > { %v1651_v10 = vmax.f32 %v1587_v41, %v8040_v14  ;;  %6775 = vmatprep.mubr.f32.mxu1 %v1841_v54  ;;  %v1077_v26 = vmax.f32 %v1013_v11, %v1747_v37  ;;  %v433_v45 = vmax.f32 %v369_v51, %v8016_v36  ;;  %v1269_v48 = vmax.f32 %v1204_v9, %v8054_v46  ;;  %v10582_v36 = vld [vmem:[#allocation17_spill] sm:$0xff] }
  0x80   : > { %v1396_v49 = vmax.f32 %v1332_v7, %v1747_v37  ;;  %v823_v53 = vmax.f32 %v759_v16, %v1811_v61  ;;  %v696_v58 = vmax.f32 %v632_v29, %v8070_v19  ;;  %v1014_v54 = vmax.f32 %v950_v63, %v8070_v19  ;;  %v8084_v7 = vld [vmem:[#allocation2 + $0xd8] sm:$0xff] }
  0x81   : > { %v1715_v0 = vmax.f32 %v1651_v10, %v8045_v59  ;;  %v1141_v25 = vmax.f32 %v1077_v26, %v1811_v61  ;;  %v1588_v41 = vmax.f32 %v1523_v31, %v433_v45  ;;  %v1333_v20 = vmax.f32 %v1269_v48, %v8070_v19  ;;  %v8095_v63 = vld [vmem:[#allocation2 + $0xd9] sm:$0xff] }
  0x82   : > { %6776 = vmatmul.mubr.f32.gmra.mrb[6].mxu1 %v1842_v52  ;;  %v1460_v60 = vmax.f32 %v1396_v49, %v1811_v61  ;;  %v441_v5 = vmax.f32 %v1748_v43, %v7737_v3  ;;  %v760_v13 = vmax.f32 %v696_v58, %v1748_v43  ;;  %v1078_v10 = vmax.f32 %v1014_v54, %v1748_v43  ;;  %v1749_v49 = vld [vmem:[#allocation2 + $0xdb] sm:$0xff] }
  0x83   : > { %v1779_v28 = vmax.f32 %v1715_v0, %v1747_v37  ;;  %v568_v11 = vmax.f32 %v504_v62, %v10582_v36  ;;  %v1652_v37 = vmax.f32 %v1588_v41, %v8054_v46  ;;  %v1397_v9 = vmax.f32 %v1333_v20, %v1748_v43  ;;  %v10583_v0 = vld [vmem:[#allocation18_spill] sm:$0xff]  ;;  %v8106_v41 = vld [vmem:[#allocation2 + $0xe0] sm:$0xff] }
  0x84   : > { %v505_v21 = vmax.f32 %v441_v5, %v1812_v56  ;;  %v887_v12 = vmax.f32 %v823_v53, %v10582_v36  ;;  %v824_v52 = vmax.f32 %v760_v13, %v1812_v56  ;;  %v1142_v31 = vmax.f32 %v1078_v10, %v1812_v56  ;;  %v6476_v53 = vld [vmem:[%s10494_s1 + $0x118] sm:$0xff] }
  0x85   : > { %v1843_v8 = vmax.f32 %v1779_v28, %v1811_v61  ;;  %v1205_v16 = vmax.f32 %v1141_v25, %v10582_v36  ;;  %v1524_v51 = vmax.f32 %v1460_v60, %v10582_v36  ;;  %v6475_v61 = vld [vmem:[%s10494_s1 + $0x110] sm:$0xff]  ;;  %v1716_v29 = vmax.f32 %v1652_v37, %v8070_v19  ;;  %v8550_v15 = vld [vmem:[#allocation2 + $0x19a] sm:$0xff] }
  0x86   : > { %v1461_v4 = vmax.f32 %v1397_v9, %v1812_v56  ;;  %v569_v26 = vmax.f32 %v505_v21, %v10583_v0  ;;  %v370_v62 = vmax.f32 %v7704_v33, %v7743_v18  ;;  %v888_v45 = vmax.f32 %v824_v52, %v10583_v0  ;;  %v1813_v18 = vld [vmem:[#allocation2 + $0xdc] sm:$0xff]  ;;  %10603 = vst [vmem:[#allocation38_spill] sm:$0xff] %v8550_v15 }
  0x87   : > { %6778 = vmatprep.mubr.f32.mxu1 %v1843_v8  ;;  %1875 = vst [vmem:[#allocation2 + $0x92] sm:$0xff] %v1843_v8  ;;  %v1206_v48 = vmax.f32 %v1142_v31, %v10583_v0  ;;  %v633_v28 = vmax.f32 %v568_v11, %v8084_v7  ;;  %v951_v25 = vmax.f32 %v887_v12, %v8084_v7  ;;  %v8115_v9 = vld [vmem:[#allocation2 + $0xe1] sm:$0xff] }
  0x88   : > { %v1780_v58 = vmax.f32 %v1716_v29, %v1748_v43  ;;  %v1525_v54 = vmax.f32 %v1461_v4, %v10583_v0  ;;  %v1589_v60 = vmax.f32 %v1524_v51, %v370_v62  ;;  %v1270_v33 = vmax.f32 %v1205_v16, %v8084_v7  ;;  %v1750_v29 = vld [vmem:[#allocation2 + $0xe3] sm:$0xff] }
  0x89   : > { %v697_v20 = vmax.f32 %v633_v28, %v8095_v63  ;;  %v1015_v5 = vmax.f32 %v951_v25, %v8095_v63  ;;  %v442_v8 = vmax.f32 %v1749_v49, %v10582_v36  ;;  %v7122_v13 = vpack.c.bf16 %v6476_v53, %v6475_v61  ;;  %v8484_v36 = vld [vmem:[#allocation2 + $0x23] sm:$0xff] }
  0x8a   : > { %v1844_v10 = vmax.f32 %v1780_v58, %v1812_v56  ;;  %v1653_v11 = vmax.f32 %v1589_v60, %v8084_v7  ;;  %v1334_v43 = vmax.f32 %v1270_v33, %v8095_v63  ;;  %v371_v37 = vmax.f32 %v7823_v34, %v7837_v32  ;;  %v1814_v58 = vld [vmem:[#allocation2 + $0xe4] sm:$0xff] }
  0x8b   : > { %v761_v21 = vmax.f32 %v697_v20, %v1749_v49  ;;  %v1079_v12 = vmax.f32 %v1015_v5, %v1749_v49  ;;  %v506_v52 = vmax.f32 %v442_v8, %v1813_v18  ;;  %7123 = vmatprep.subr.bf16.mxu0 %v7122_v13  ;;  %v634_v31 = vmax.f32 %v569_v26, %v8106_v41  ;;  %v10584_v33 = vld [vmem:[#allocation19_spill] sm:$0xff] }
  0x8c   : > { %6779 = vmatmul.mubr.f32.gmra.mrb[8].mxu1 %v1844_v10  ;;  %v1717_v16 = vmax.f32 %v1653_v11, %v8095_v63  ;;  %v1398_v51 = vmax.f32 %v1334_v43, %v1749_v49  ;;  %v1590_v56 = vmax.f32 %v1525_v54, %v371_v37  ;;  %v952_v61 = vmax.f32 %v888_v45, %v8106_v41 }
  0x8d   : > { %1876 = vst [vmem:[#allocation2 + $0x9a] sm:$0xff] %v1844_v10  ;;  %v825_v4 = vmax.f32 %v761_v21, %v1813_v18  ;;  %v1143_v62 = vmax.f32 %v1079_v12, %v1813_v18  ;;  %v1271_v34 = vmax.f32 %v1206_v48, %v8106_v41  ;;  %v698_v32 = vmax.f32 %v634_v31, %v8115_v9 }
  0x8e   : > { %7125 = vmatpush3.bf16.msra.mxu0 %v7122_v13  ;;  %v1781_v53 = vmax.f32 %v1717_v16, %v1749_v49  ;;  %v1462_v28 = vmax.f32 %v1398_v51, %v1813_v18  ;;  %v1654_v26 = vmax.f32 %v1590_v56, %v8106_v41  ;;  %v1016_v25 = vmax.f32 %v952_v61, %v8115_v9  ;;  %v8129_v49 = vld [vmem:[#allocation2 + $0xf0] sm:$0xff]  ;;  %v10585_v56 = vld [vmem:[#allocation20_spill] sm:$0xff] }
  0x8f   : > { %v1335_v54 = vmax.f32 %v1271_v34, %v8115_v9  ;;  %v443_v45 = vmax.f32 %v1750_v29, %v10583_v0  ;;  %v762_v60 = vmax.f32 %v698_v32, %v1750_v29  ;;  %v570_v20 = vmax.f32 %v506_v52, %v10584_v33  ;;  %v8135_v52 = vld [vmem:[#allocation2 + $0xf1] sm:$0xff]  ;;  %v8482_v0 = vld [vmem:[#allocation2 + $0x22] sm:$0xff] }
  0x90   : > { %v1845_v5 = vmax.f32 %v1781_v53, %v1813_v18  ;;  %v1718_v48 = vmax.f32 %v1654_v26, %v8115_v9  ;;  %v1080_v8 = vmax.f32 %v1016_v25, %v1750_v29  ;;  %v889_v13 = vmax.f32 %v825_v4, %v10584_v33  ;;  %v1751_v16 = vld [vmem:[#allocation2 + $0xf3] sm:$0xff] }
  0x91   : > { %v1399_v10 = vmax.f32 %v1335_v54, %v1750_v29  ;;  %v507_v11 = vmax.f32 %v443_v45, %v1814_v58  ;;  %v826_v43 = vmax.f32 %v762_v60, %v1814_v58  ;;  %v1207_v37 = vmax.f32 %v1143_v62, %v10584_v33  ;;  %v6478_v62 = vld [vmem:[%s10494_s1 + $0x128] sm:$0xff]  ;;  %v8148_v26 = vld [vmem:[#allocation2 + $0xf8] sm:$0xff] }
  0x92   : > { %6781 = vmatprep.mubr.f32.mxu1 %v1845_v5  ;;  %v1782_v21 = vmax.f32 %v1718_v48, %v1750_v29  ;;  %v1144_v12 = vmax.f32 %v1080_v8, %v1814_v58  ;;  %v1526_v31 = vmax.f32 %v1462_v28, %v10584_v33  ;;  %v372_v18 = vmax.f32 %v7905_v44, %v7921_v30  ;;  %v6477_v29 = vld [vmem:[%s10494_s1 + $0x120] sm:$0xff]  ;;  %v1815_v28 = vld [vmem:[#allocation2 + $0xf4] sm:$0xff] }
  0x93   : > { %1877 = vst [vmem:[#allocation2 + $0xaa] sm:$0xff] %v1845_v5  ;;  %v1463_v51 = vmax.f32 %v1399_v10, %v1814_v58  ;;  %v571_v61 = vmax.f32 %v507_v11, %v10585_v56  ;;  %v890_v4 = vmax.f32 %v826_v43, %v10585_v56  ;;  %v635_v34 = vmax.f32 %v570_v20, %v8129_v49  ;;  %v8158_v8 = vld [vmem:[#allocation2 + $0xf9] sm:$0xff] }
  0x94   : > { %v1846_v44 = vmax.f32 %v1782_v21, %v1814_v58  ;;  %v1208_v30 = vmax.f32 %v1144_v12, %v10585_v56  ;;  %v1591_v32 = vmax.f32 %v1526_v31, %v372_v18  ;;  %v953_v53 = vmax.f32 %v889_v13, %v8129_v49  ;;  %v1752_v18 = vld [vmem:[#allocation2 + $0xfb] sm:$0xff] }
  0x95   : > { %v1527_v25 = vmax.f32 %v1463_v51, %v10585_v56  ;;  %v1272_v54 = vmax.f32 %v1207_v37, %v8129_v49  ;;  %v699_v45 = vmax.f32 %v635_v34, %v8135_v52  ;;  %v444_v60 = vmax.f32 %v1751_v16, %v10584_v33 }
  0x96   : > { %6782 = vmatmul.mubr.f32.gmra.mrb[10].mxu1 %v1846_v44  ;;  %v1655_v20 = vmax.f32 %v1591_v32, %v8129_v49  ;;  %v1017_v58 = vmax.f32 %v953_v53, %v8135_v52  ;;  %v7126_v5 = vpack.c.bf16 %v6478_v62, %v6477_v29  ;;  %v373_v48 = vmax.f32 %v7947_v55, %v7961_v38  ;;  %v1816_v32 = vld [vmem:[#allocation2 + $0xfc] sm:$0xff] }
  0x97   : > { %1878 = vst [vmem:[#allocation2 + $0xb2] sm:$0xff] %v1846_v44  ;;  %v1336_v13 = vmax.f32 %v1272_v54, %v8135_v52  ;;  %v763_v10 = vmax.f32 %v699_v45, %v1751_v16  ;;  %v508_v11 = vmax.f32 %v444_v60, %v1815_v28  ;;  %v636_v43 = vmax.f32 %v571_v61, %v8148_v26 }
  0x98   : > { %v1719_v37 = vmax.f32 %v1655_v20, %v8135_v52  ;;  %v1081_v21 = vmax.f32 %v1017_v58, %v1751_v16  ;;  %7127 = vmatprep.subr.bf16.mxu0 %v7126_v5  ;;  %v1592_v12 = vmax.f32 %v1527_v25, %v373_v48  ;;  %v954_v31 = vmax.f32 %v890_v4, %v8148_v26  ;;  %v10586_v20 = vld [vmem:[#allocation21_spill] sm:$0xff] }
  0x99   : > { %v1400_v51 = vmax.f32 %v1336_v13, %v1751_v16  ;;  %v827_v34 = vmax.f32 %v763_v10, %v1815_v28  ;;  %v1273_v55 = vmax.f32 %v1208_v30, %v8148_v26  ;;  %v700_v38 = vmax.f32 %v636_v43, %v8158_v8  ;;  %7129 = vmatpush3.bf16.msra.mxu0 %v7126_v5  ;;  %v8173_v10 = vld [vmem:[#allocation2 + $0x108] sm:$0xff] }
  0x9a   : > { %v1783_v29 = vmax.f32 %v1719_v37, %v1751_v16  ;;  %v1145_v62 = vmax.f32 %v1081_v21, %v1815_v28  ;;  %v1656_v44 = vmax.f32 %v1592_v12, %v8148_v26  ;;  %v1018_v61 = vmax.f32 %v954_v31, %v8158_v8 }
  0x9b   : > { %v1464_v53 = vmax.f32 %v1400_v51, %v1815_v28  ;;  %v1337_v25 = vmax.f32 %v1273_v55, %v8158_v8  ;;  %v445_v4 = vmax.f32 %v1752_v18, %v10585_v56  ;;  %v764_v54 = vmax.f32 %v700_v38, %v1752_v18  ;;  %v10587_v51 = vld [vmem:[#allocation22_spill] sm:$0xff] }
  0x9c   : > { %v1847_v45 = vmax.f32 %v1783_v29, %v1815_v28  ;;  %v1720_v60 = vmax.f32 %v1656_v44, %v8158_v8  ;;  %v1082_v30 = vmax.f32 %v1018_v61, %v1752_v18  ;;  %v572_v58 = vmax.f32 %v508_v11, %v10586_v20  ;;  %v1753_v28 = vld [vmem:[#allocation2 + $0x10b] sm:$0xff]  ;;  %v6480_v29 = vld [vmem:[%s10494_s1 + $0x138] sm:$0xff] }
  0x9d   : > { %v1401_v5 = vmax.f32 %v1337_v25, %v1752_v18  ;;  %v509_v16 = vmax.f32 %v445_v4, %v1816_v32  ;;  %v828_v48 = vmax.f32 %v764_v54, %v1816_v32  ;;  %v891_v13 = vmax.f32 %v827_v34, %v10586_v20  ;;  %v8181_v34 = vld [vmem:[#allocation2 + $0x109] sm:$0xff] }
  0x9e   : > { %6784 = vmatprep.mubr.f32.mxu1 %v1847_v45  ;;  %v1784_v43 = vmax.f32 %v1720_v60, %v1752_v18  ;;  %v1146_v37 = vmax.f32 %v1082_v30, %v1816_v32  ;;  %v1209_v21 = vmax.f32 %v1145_v62, %v10586_v20  ;;  %v1528_v12 = vmax.f32 %v1464_v53, %v10586_v20  ;;  %v6479_v18 = vld [vmem:[%s10494_s1 + $0x130] sm:$0xff] }
  0x9f   : > { %1879 = vst [vmem:[#allocation2 + $0xc2] sm:$0xff] %v1847_v45  ;;  %v1465_v31 = vmax.f32 %v1401_v5, %v1816_v32  ;;  %v573_v55 = vmax.f32 %v509_v16, %v10587_v51  ;;  %v892_v11 = vmax.f32 %v828_v48, %v10587_v51  ;;  %v374_v38 = vmax.f32 %v7989_v17, %v8000_v40  ;;  %v1817_v25 = vld [vmem:[#allocation2 + $0x10c] sm:$0xff] }
  0xa0   : > { %v1848_v62 = vmax.f32 %v1784_v43, %v1816_v32  ;;  %v1210_v44 = vmax.f32 %v1146_v37, %v10587_v51  ;;  %v637_v61 = vmax.f32 %v572_v58, %v8173_v10  ;;  %v955_v53 = vmax.f32 %v891_v13, %v8173_v10  ;;  %v8192_v4 = vld [vmem:[#allocation2 + $0x110] sm:$0xff] }
  0xa1   : > { %v1529_v17 = vmax.f32 %v1465_v31, %v10587_v51  ;;  %v1593_v40 = vmax.f32 %v1528_v12, %v374_v38  ;;  %v1274_v54 = vmax.f32 %v1209_v21, %v8173_v10  ;;  %v446_v45 = vmax.f32 %v1753_v28, %v10586_v20  ;;  %v8201_v5 = vld [vmem:[#allocation2 + $0x111] sm:$0xff] }
  0xa2   : > { %6785 = vmatmul.mubr.f32.gmra.mrb[12].mxu1 %v1848_v62  ;;  %v701_v60 = vmax.f32 %v637_v61, %v8181_v34  ;;  %v1019_v32 = vmax.f32 %v955_v53, %v8181_v34  ;;  %v7130_v30 = vpack.c.bf16 %v6480_v29, %v6479_v18  ;;  %v375_v58 = vmax.f32 %v8010_v6, %v8026_v27  ;;  %v1754_v29 = vld [vmem:[#allocation2 + $0x113] sm:$0xff] }
  0xa3   : > { %1880 = vst [vmem:[#allocation2 + $0xca] sm:$0xff] %v1848_v62  ;;  %v1657_v16 = vmax.f32 %v1593_v40, %v8173_v10  ;;  %v1338_v48 = vmax.f32 %v1274_v54, %v8181_v34  ;;  %v510_v13 = vmax.f32 %v446_v45, %v1817_v25  ;;  %v638_v43 = vmax.f32 %v573_v55, %v8192_v4  ;;  %v1818_v62 = vld [vmem:[#allocation2 + $0x114] sm:$0xff] }
  0xa4   : > { %v765_v37 = vmax.f32 %v701_v60, %v1753_v28  ;;  %v1083_v21 = vmax.f32 %v1019_v32, %v1753_v28  ;;  %7131 = vmatprep.subr.bf16.mxu0 %v7130_v30  ;;  %v1594_v12 = vmax.f32 %v1529_v17, %v375_v58  ;;  %v956_v31 = vmax.f32 %v892_v11, %v8192_v4  ;;  %v10588_v58 = vld [vmem:[#allocation23_spill] sm:$0xff] }
  0xa5   : > { %v1721_v38 = vmax.f32 %v1657_v16, %v8181_v34  ;;  %v1402_v18 = vmax.f32 %v1338_v48, %v1753_v28  ;;  %v1275_v6 = vmax.f32 %v1210_v44, %v8192_v4  ;;  %v702_v27 = vmax.f32 %v638_v43, %v8201_v5  ;;  %7133 = vmatpush3.bf16.msra.mxu0 %v7130_v30 }
  0xa6   : > { %v829_v61 = vmax.f32 %v765_v37, %v1817_v25  ;;  %v1147_v53 = vmax.f32 %v1083_v21, %v1817_v25  ;;  %v1658_v55 = vmax.f32 %v1594_v12, %v8192_v4  ;;  %v1020_v40 = vmax.f32 %v956_v31, %v8201_v5  ;;  %v8216_v21 = vld [vmem:[#allocation2 + $0x120] sm:$0xff] }
  0xa7   : > { %v1785_v54 = vmax.f32 %v1721_v38, %v1753_v28  ;;  %v1466_v17 = vmax.f32 %v1402_v18, %v1817_v25  ;;  %v1339_v11 = vmax.f32 %v1275_v6, %v8201_v5  ;;  %v766_v45 = vmax.f32 %v702_v27, %v1754_v29  ;;  %v1755_v18 = vld [vmem:[#allocation2 + $0x123] sm:$0xff] }
  0xa8   : > { %v1722_v60 = vmax.f32 %v1658_v55, %v8201_v5  ;;  %v1084_v32 = vmax.f32 %v1020_v40, %v1754_v29  ;;  %v511_v44 = vmax.f32 %v1818_v62, %v1754_v29  ;;  %v574_v16 = vmax.f32 %v510_v13, %v10588_v58  ;;  %v10589_v27 = vld [vmem:[#allocation24_spill] sm:$0xff] }
  0xa9   : > { %v1849_v48 = vmax.f32 %v1785_v54, %v1817_v25  ;;  %v1403_v43 = vmax.f32 %v1339_v11, %v1754_v29  ;;  %v830_v30 = vmax.f32 %v766_v45, %v1818_v62  ;;  %v893_v37 = vmax.f32 %v829_v61, %v10588_v58  ;;  %v8224_v40 = vld [vmem:[#allocation2 + $0x121] sm:$0xff] }
  0xaa   : > { %v1786_v12 = vmax.f32 %v1722_v60, %v1754_v29  ;;  %v1148_v31 = vmax.f32 %v1084_v32, %v1818_v62  ;;  %v1211_v28 = vmax.f32 %v1147_v53, %v10588_v58  ;;  %v1530_v38 = vmax.f32 %v1466_v17, %v10588_v58  ;;  %v6481_v29 = vld [vmem:[%s10494_s1 + $0x140] sm:$0xff]  ;;  %v6482_v61 = vld [vmem:[%s10494_s1 + $0x148] sm:$0xff] }
  0xab   : > { %6787 = vmatprep.mubr.f32.mxu1 %v1849_v48  ;;  %v1467_v6 = vmax.f32 %v1403_v43, %v1818_v62  ;;  %v575_v55 = vmax.f32 %v511_v44, %v10589_v27  ;;  %v894_v13 = vmax.f32 %v830_v30, %v10589_v27  ;;  %v376_v25 = vmax.f32 %v8040_v14, %v8045_v59  ;;  %v1819_v45 = vld [vmem:[#allocation2 + $0x124] sm:$0xff] }
  0xac   : > { %1881 = vst [vmem:[#allocation2 + $0xda] sm:$0xff] %v1849_v48  ;;  %v1850_v53 = vmax.f32 %v1786_v12, %v1818_v62  ;;  %v1212_v54 = vmax.f32 %v1148_v31, %v10589_v27  ;;  %v639_v17 = vmax.f32 %v574_v16, %v8216_v21  ;;  %v957_v11 = vmax.f32 %v893_v37, %v8216_v21  ;;  %v8235_v14 = vld [vmem:[#allocation2 + $0x128] sm:$0xff] }
  0xad   : > { %v1531_v59 = vmax.f32 %v1467_v6, %v10589_v27  ;;  %v1595_v60 = vmax.f32 %v1530_v38, %v376_v25  ;;  %v1276_v32 = vmax.f32 %v1211_v28, %v8216_v21  ;;  %v8239_v44 = vld [vmem:[#allocation2 + $0x122] sm:$0xff]  ;;  %v7134_v16 = vpack.c.bf16 %v6482_v61, %v6481_v29  ;;  %v1756_v29 = vld [vmem:[#allocation2 + $0x12b] sm:$0xff] }
  0xae   : > { %10590 = vst [vmem:[#allocation23_spill] sm:$0xff] %v8239_v44  ;;  %v448_v58 = vmax.f32 %v1755_v18, %v8239_v44  ;;  %6788 = vmatmul.mubr.f32.gmra.mrb[14].mxu1 %v1850_v53  ;;  %v703_v62 = vmax.f32 %v639_v17, %v8224_v40  ;;  %v1021_v48 = vmax.f32 %v957_v11, %v8224_v40  ;;  %v8246_v30 = vld [vmem:[#allocation2 + $0x129] sm:$0xff]  ;;  %1882 = vst [vmem:[#allocation2 + $0xe2] sm:$0xff] %v1850_v53 }
  0xaf   : > { %v377_v43 = vmax.f32 %v8054_v46, %v8070_v19  ;;  %v1659_v37 = vmax.f32 %v1595_v60, %v8216_v21  ;;  %v1340_v12 = vmax.f32 %v1276_v32, %v8224_v40  ;;  %v640_v28 = vmax.f32 %v575_v55, %v8235_v14  ;;  %7135 = vmatprep.subr.bf16.mxu0 %v7134_v16  ;;  %v1820_v11 = vld [vmem:[#allocation2 + $0x12c] sm:$0xff]  ;;  %v5067_v60 = vld [vmem:[%s10494_s1] sm:$0xff] }
  0xb0   : > { %v512_v31 = vmax.f32 %v448_v58, %v1819_v45  ;;  %v767_v38 = vmax.f32 %v703_v62, %v1755_v18  ;;  %v1085_v6 = vmax.f32 %v1021_v48, %v1755_v18  ;;  %v958_v17 = vmax.f32 %v894_v13, %v8235_v14  ;;  %v5068_v55 = vld [vmem:[%s10494_s1 + $0x8] sm:$0xff]  ;;  %7137 = vmatpush3.bf16.msra.mxu0 %v7134_v16 }
  0xb1   : > { %v1596_v25 = vmax.f32 %v1531_v59, %v377_v43  ;;  %v1723_v61 = vmax.f32 %v1659_v37, %v8224_v40  ;;  %v1404_v46 = vmax.f32 %v1340_v12, %v1755_v18  ;;  %v1277_v19 = vmax.f32 %v1212_v54, %v8235_v14 }
  0xb2   : > { %v704_v53 = vmax.f32 %v640_v28, %v8246_v30  ;;  %v831_v59 = vmax.f32 %v767_v38, %v1819_v45  ;;  %v1149_v13 = vmax.f32 %v1085_v6, %v1819_v45  ;;  %v1022_v58 = vmax.f32 %v958_v17, %v8246_v30  ;;  %v1565_v17 = vld [vmem:[#allocation2 + $0x138] sm:$0xff] }
  0xb3   : > { %v1660_v32 = vmax.f32 %v1596_v25, %v8235_v14  ;;  %v1787_v62 = vmax.f32 %v1723_v61, %v1755_v18  ;;  %v1468_v54 = vmax.f32 %v1404_v46, %v1819_v45  ;;  %v1341_v48 = vmax.f32 %v1277_v19, %v8246_v30 }
  0xb4   : > { %v768_v43 = vmax.f32 %v704_v53, %v1756_v29  ;;  %v1086_v12 = vmax.f32 %v1022_v58, %v1756_v29  ;;  %v513_v28 = vmax.f32 %v1820_v11, %v1756_v29  ;;  %v7086_v27 = vpack.c.bf16 %v5068_v55, %v5067_v60  ;;  %v1629_v55 = vld [vmem:[#allocation2 + $0x139] sm:$0xff] }
  0xb5   : > { %v1724_v37 = vmax.f32 %v1660_v32, %v8246_v30  ;;  %v1851_v44 = vmax.f32 %v1787_v62, %v1819_v45  ;;  %v1405_v51 = vmax.f32 %v1341_v48, %v1756_v29  ;;  %v576_v16 = vmax.f32 %v512_v31, %v7924_v1  ;;  %v6483_v45 = vld [vmem:[%s10494_s1 + $0x150] sm:$0xff]  ;;  %v6484_v31 = vld [vmem:[%s10494_s1 + $0x158] sm:$0xff]  ;;  %v1630_v62 = vld [vmem:[#allocation2 + $0x141] sm:$0xff] }
  0xb6   : > { %v832_v20 = vmax.f32 %v768_v43, %v1820_v11  ;;  %v1150_v6 = vmax.f32 %v1086_v12, %v1820_v11  ;;  %7087 = vmatprep.subr.bf16.mxu1 %v7086_v27  ;;  %v895_v25 = vmax.f32 %v831_v59, %v7924_v1  ;;  %v1213_v18 = vmax.f32 %v1149_v13, %v7924_v1  ;;  %v1757_v48 = vld [vmem:[#allocation2 + $0x13b] sm:$0xff] }
  0xb7   : > { %v1788_v38 = vmax.f32 %v1724_v37, %v1756_v29  ;;  %6790 = vmatprep.mubr.f32.mxu1 %v1851_v44  ;;  %v1469_v61 = vmax.f32 %v1405_v51, %v1820_v11  ;;  %7089 = vmatpush3.bf16.msra.mxu1 %v7086_v27  ;;  %v1532_v46 = vmax.f32 %v1468_v54, %v7924_v1  ;;  %v1566_v29 = vld [vmem:[#allocation2 + $0x140] sm:$0xff]  ;;  %v1932_v1 = vld [vmem:[#allocation2 + $0x9] sm:$0xff] }
  0xb8   : > { %v577_v19 = vmax.f32 %v513_v28, %v7933_v42  ;;  %1883 = vst [vmem:[#allocation2 + $0xf2] sm:$0xff] %v1851_v44  ;;  %v896_v60 = vmax.f32 %v832_v20, %v7933_v42  ;;  %v1214_v51 = vmax.f32 %v1150_v6, %v7933_v42  ;;  %v378_v27 = vmax.f32 %v8084_v7, %v8095_v63  ;;  %v1758_v63 = vld [vmem:[#allocation2 + $0x143] sm:$0xff] }
  0xb9   : > { %v1852_v53 = vmax.f32 %v1788_v38, %v1820_v11  ;;  %v1533_v59 = vmax.f32 %v1469_v61, %v7933_v42  ;;  %v641_v13 = vmax.f32 %v576_v16, %v1565_v17  ;;  %v959_v32 = vmax.f32 %v895_v25, %v1565_v17  ;;  %v1821_v38 = vld [vmem:[#allocation2 + $0x13c] sm:$0xff]  ;;  %v8437_v42 = vld [vmem:[#allocation2 + $0x31] sm:$0xff] }
  0xba   : > { %v1278_v58 = vmax.f32 %v1213_v18, %v1565_v17  ;;  %v1597_v54 = vmax.f32 %v1532_v46, %v378_v27  ;;  %v7138_v43 = vpack.c.bf16 %v6484_v31, %v6483_v45  ;;  %v379_v44 = vmax.f32 %v8106_v41, %v8115_v9  ;;  %v1822_v31 = vld [vmem:[#allocation2 + $0x144] sm:$0xff] }
  0xbb   : > { %6791 = vmatmul.mubr.f32.gmra.mrb[16].mxu1 %v1852_v53  ;;  %v642_v20 = vmax.f32 %v577_v19, %v1566_v29  ;;  %1884 = vst [vmem:[#allocation2 + $0xfa] sm:$0xff] %v1852_v53  ;;  %v705_v11 = vmax.f32 %v641_v13, %v1629_v55  ;;  %v1023_v37 = vmax.f32 %v959_v32, %v1629_v55 }
  0xbc   : > { %v1342_v12 = vmax.f32 %v1278_v58, %v1629_v55  ;;  %v960_v7 = vmax.f32 %v896_v60, %v1566_v29  ;;  %v1661_v28 = vmax.f32 %v1597_v54, %v1565_v17  ;;  %7139 = vmatprep.subr.bf16.mxu0 %v7138_v43  ;;  %v1598_v16 = vmax.f32 %v1533_v59, %v379_v44  ;;  %v5069_v60 = vld [vmem:[%s10494_s1 + $0x10] sm:$0xff]  ;;  %v5070_v17 = vld [vmem:[%s10494_s1 + $0x18] sm:$0xff] }
  0xbd   : > { %v1279_v6 = vmax.f32 %v1214_v51, %v1566_v29  ;;  %v706_v25 = vmax.f32 %v642_v20, %v1630_v62  ;;  %v769_v18 = vmax.f32 %v705_v11, %v1757_v48  ;;  %v1087_v61 = vmax.f32 %v1023_v37, %v1757_v48  ;;  %7141 = vmatpush3.bf16.msra.mxu0 %v7138_v43  ;;  %v8289_v20 = vld [vmem:[#allocation2 + $0x152] sm:$0xff] }
  0xbe   : > { %v1406_v46 = vmax.f32 %v1342_v12, %v1757_v48  ;;  %v1024_v45 = vmax.f32 %v960_v7, %v1630_v62  ;;  %v1725_v41 = vmax.f32 %v1661_v28, %v1629_v55  ;;  %v1662_v9 = vmax.f32 %v1598_v16, %v1566_v29  ;;  %v1567_v55 = vld [vmem:[#allocation2 + $0x150] sm:$0xff]  ;;  %10591 = vst [vmem:[#allocation27_spill] sm:$0xff] %v8289_v20 }
  0xbf   : > { %v1343_v19 = vmax.f32 %v1279_v6, %v1630_v62  ;;  %v770_v53 = vmax.f32 %v706_v25, %v1758_v63  ;;  %v833_v51 = vmax.f32 %v769_v18, %v1821_v38  ;;  %v1151_v27 = vmax.f32 %v1087_v61, %v1821_v38  ;;  %v1631_v6 = vld [vmem:[#allocation2 + $0x151] sm:$0xff]  ;;  %v8300_v25 = vld [vmem:[#allocation2 + $0x15a] sm:$0xff] }
  0xc0   : > { %v1470_v59 = vmax.f32 %v1406_v46, %v1821_v38  ;;  %v1088_v13 = vmax.f32 %v1024_v45, %v1758_v63  ;;  %v1789_v32 = vmax.f32 %v1725_v41, %v1757_v48  ;;  %v1726_v58 = vmax.f32 %v1662_v9, %v1630_v62  ;;  %v6485_v62 = vld [vmem:[%s10494_s1 + $0x160] sm:$0xff]  ;;  %v6486_v48 = vld [vmem:[%s10494_s1 + $0x168] sm:$0xff]  ;;  %10592 = vst [vmem:[#allocation28_spill] sm:$0xff] %v8300_v25  ;;  %v1759_v9 = vld [vmem:[#allocation2 + $0x153] sm:$0xff] }
  0xc1   : > { %v1407_v54 = vmax.f32 %v1343_v19, %v1758_v63  ;;  %v834_v43 = vmax.f32 %v770_v53, %v1822_v31  ;;  %v7090_v44 = vpack.c.bf16 %v5070_v17, %v5069_v60  ;;  %v897_v11 = vmax.f32 %v833_v51, %v8289_v20  ;;  %v1568_v19 = vld [vmem:[#allocation2 + $0x158] sm:$0xff] }
  0xc2   : > { %v1152_v29 = vmax.f32 %v1088_v13, %v1822_v31  ;;  %v1215_v37 = vmax.f32 %v1151_v27, %v8289_v20  ;;  %v1853_v12 = vmax.f32 %v1789_v32, %v1821_v38  ;;  %v1790_v7 = vmax.f32 %v1726_v58, %v1758_v63  ;;  %v1632_v53 = vld [vmem:[#allocation2 + $0x159] sm:$0xff] }
  0xc3   : > { %v1471_v28 = vmax.f32 %v1407_v54, %v1822_v31  ;;  %v1534_v16 = vmax.f32 %v1470_v59, %v8289_v20  ;;  %7091 = vmatprep.subr.bf16.mxu1 %v7090_v44  ;;  %v898_v18 = vmax.f32 %v834_v43, %v8300_v25  ;;  %v380_v63 = vmax.f32 %v8129_v49, %v8135_v52  ;;  %v8308_v59 = vld [vmem:[#allocation2 + $0x112] sm:$0xff]  ;;  %v1760_v58 = vld [vmem:[#allocation2 + $0x15b] sm:$0xff] }
  0xc4   : > { %v1216_v38 = vmax.f32 %v1152_v29, %v8300_v25  ;;  %v643_v61 = vmax.f32 %v8289_v20, %v1567_v55  ;;  %6793 = vmatprep.mubr.f32.mxu1 %v1853_v12  ;;  %v1854_v46 = vmax.f32 %v1790_v7, %v1822_v31  ;;  %7093 = vmatpush3.bf16.msra.mxu1 %v7090_v44  ;;  %v1823_v52 = vld [vmem:[#allocation2 + $0x154] sm:$0xff] }
  0xc5   : > { %v1535_v45 = vmax.f32 %v1471_v28, %v8300_v25  ;;  %v961_v41 = vmax.f32 %v897_v11, %v1567_v55  ;;  %1885 = vst [vmem:[#allocation2 + $0x10a] sm:$0xff] %v1853_v12  ;;  %v1599_v60 = vmax.f32 %v1534_v16, %v380_v63  ;;  %v1280_v17 = vmax.f32 %v1215_v37, %v1567_v55  ;;  %v1824_v28 = vld [vmem:[#allocation2 + $0x15c] sm:$0xff] }
  0xc6   : > { %v707_v51 = vmax.f32 %v643_v61, %v1631_v6  ;;  %v7142_v27 = vpack.c.bf16 %v6486_v48, %v6485_v62  ;;  %6794 = vmatmul.mubr.f32.gmra.mrb[18].mxu1 %v1854_v46  ;;  %v381_v31 = vmax.f32 %v8148_v26, %v8158_v8  ;;  %v962_v13 = vmax.f32 %v898_v18, %v1568_v19  ;;  %v5071_v16 = vld [vmem:[%s10494_s1 + $0x20] sm:$0xff]  ;;  %v5072_v26 = vld [vmem:[%s10494_s1 + $0x28] sm:$0xff] }
  0xc7   : > { %v1025_v49 = vmax.f32 %v961_v41, %v1631_v6  ;;  %v1281_v32 = vmax.f32 %v1216_v38, %v1568_v19  ;;  %1886 = vst [vmem:[#allocation2 + $0x112] sm:$0xff] %v1854_v46  ;;  %v1663_v54 = vmax.f32 %v1599_v60, %v1567_v55  ;;  %v1344_v43 = vmax.f32 %v1280_v17, %v1631_v6 }
  0xc8   : > { %v771_v29 = vmax.f32 %v707_v51, %v1759_v9  ;;  %7143 = vmatprep.subr.bf16.mxu0 %v7142_v27  ;;  %v644_v44 = vmax.f32 %v1632_v53, %v1568_v19  ;;  %v1600_v37 = vmax.f32 %v1535_v45, %v381_v31  ;;  %v1026_v12 = vmax.f32 %v962_v13, %v1632_v53  ;;  %v8318_v31 = vld [vmem:[#allocation2 + $0x16a] sm:$0xff] }
  0xc9   : > { %v1089_v11 = vmax.f32 %v1025_v49, %v1759_v9  ;;  %v1345_v7 = vmax.f32 %v1281_v32, %v1632_v53  ;;  %7145 = vmatpush3.bf16.msra.mxu0 %v7142_v27  ;;  %v1727_v8 = vmax.f32 %v1663_v54, %v1631_v6  ;;  %v1408_v55 = vmax.f32 %v1344_v43, %v1759_v9  ;;  %v1569_v27 = vld [vmem:[#allocation2 + $0x168] sm:$0xff]  ;;  %v6487_v6 = vld [vmem:[%s10494_s1 + $0x170] sm:$0xff] }
  0xca   : > { %v835_v62 = vmax.f32 %v771_v29, %v1823_v52  ;;  %v708_v48 = vmax.f32 %v644_v44, %v1760_v58  ;;  %v1664_v38 = vmax.f32 %v1600_v37, %v1568_v19  ;;  %v1090_v63 = vmax.f32 %v1026_v12, %v1760_v58  ;;  %10593 = vst [vmem:[#allocation29_spill] sm:$0xff] %v8318_v31  ;;  %v6488_v19 = vld [vmem:[%s10494_s1 + $0x178] sm:$0xff]  ;;  %v8332_v29 = vld [vmem:[#allocation2 + $0x170] sm:$0xff] }
  0xcb   : > { %v1153_v18 = vmax.f32 %v1089_v11, %v1823_v52  ;;  %v1409_v61 = vmax.f32 %v1345_v7, %v1760_v58  ;;  %v1791_v46 = vmax.f32 %v1727_v8, %v1759_v9  ;;  %v1472_v45 = vmax.f32 %v1408_v55, %v1823_v52  ;;  %v8329_v54 = vld [vmem:[#allocation2 + $0x172] sm:$0xff]  ;;  %v1633_v12 = vld [vmem:[#allocation2 + $0x169] sm:$0xff]  ;;  %v8338_v7 = vld [vmem:[#allocation2] sm:$0xff] }
  0xcc   : > { %v772_v41 = vmax.f32 %v708_v48, %v1824_v28  ;;  %v7094_v60 = vpack.c.bf16 %v5072_v26, %v5071_v16  ;;  %v1728_v17 = vmax.f32 %v1664_v38, %v1632_v53  ;;  %v1154_v51 = vmax.f32 %v1090_v63, %v1824_v28  ;;  %10594 = vst [vmem:[#allocation30_spill] sm:$0xff] %v8329_v54  ;;  %v5074_v48 = vld [vmem:[%s10494_s1 + $0x38] sm:$0xff] }
  0xcd   : > { %v1473_v49 = vmax.f32 %v1409_v61, %v1824_v28  ;;  %v899_v13 = vmax.f32 %v835_v62, %v8318_v31  ;;  %v1855_v9 = vmax.f32 %v1791_v46, %v1823_v52  ;;  %v1217_v32 = vmax.f32 %v1153_v18, %v8318_v31  ;;  %v8341_v62 = vld [vmem:[#allocation2 + $0x171] sm:$0xff] }
  0xce   : > { %7095 = vmatprep.subr.bf16.mxu1 %v7094_v60  ;;  %v1536_v53 = vmax.f32 %v1472_v45, %v8318_v31  ;;  %v836_v43 = vmax.f32 %v772_v41, %v8329_v54  ;;  %v1792_v44 = vmax.f32 %v1728_v17, %v1760_v58  ;;  %v1218_v11 = vmax.f32 %v1154_v51, %v8329_v54  ;;  %v5073_v58 = vld [vmem:[%s10494_s1 + $0x30] sm:$0xff]  ;;  %v8427_v31 = vld [vmem:[#allocation2 + $0x48] sm:$0xff] }
  0xcf   : > { %7097 = vmatpush3.bf16.msra.mxu1 %v7094_v60  ;;  %v1537_v37 = vmax.f32 %v1473_v49, %v8329_v54  ;;  %v382_v52 = vmax.f32 %v8173_v10, %v8181_v34  ;;  %6796 = vmatprep.mubr.f32.mxu1 %v1855_v9  ;;  %v645_v16 = vmax.f32 %v8338_v7, %v1569_v27  ;;  %v1761_v18 = vld [vmem:[#allocation2 + $0x16b] sm:$0xff]  ;;  %v8353_v60 = vld [vmem:[#allocation2 + $0x173] sm:$0xff] }
  0xd0   : > { %v963_v26 = vmax.f32 %v899_v13, %v1569_v27  ;;  %v1282_v8 = vmax.f32 %v1217_v32, %v1569_v27  ;;  %v7146_v55 = vpack.c.bf16 %v6488_v19, %v6487_v6  ;;  %1887 = vst [vmem:[#allocation2 + $0x122] sm:$0xff] %v1855_v9  ;;  %v1856_v10 = vmax.f32 %v1792_v44, %v1824_v28  ;;  %v8355_v17 = vld [vmem:[#allocation2 + $0x12a] sm:$0xff]  ;;  %v8360_v32 = vld [vmem:[#allocation2 + $0x174] sm:$0xff] }
  0xd1   : > { %v1601_v34 = vmax.f32 %v1536_v53, %v382_v52  ;;  %v383_v38 = vmax.f32 %v8192_v4, %v8201_v5  ;;  %v900_v63 = vmax.f32 %v836_v43, %v8332_v29  ;;  %v709_v61 = vmax.f32 %v645_v16, %v1633_v12  ;;  %v1825_v28 = vld [vmem:[#allocation2 + $0x16c] sm:$0xff]  ;;  %v1931_v53 = vld [vmem:[#allocation2 + $0x1] sm:$0xff] }
  0xd2   : > { %v1027_v46 = vmax.f32 %v963_v26, %v1633_v12  ;;  %v1346_v45 = vmax.f32 %v1282_v8, %v1633_v12  ;;  %7147 = vmatprep.subr.bf16.mxu0 %v7146_v55  ;;  %v1283_v41 = vmax.f32 %v1218_v11, %v8332_v29  ;;  %6797 = vmatmul.mubr.f32.gmra.mrb[20].mxu1 %v1856_v10  ;;  %v1995_v11 = vld [vmem:[#allocation2 + $0x2] sm:$0xff] }
  0xd3   : > { %v1665_v51 = vmax.f32 %v1601_v34, %v1569_v27  ;;  %v447_v49 = vmax.f32 %v383_v38, %v8308_v59  ;;  %v964_v13 = vmax.f32 %v900_v63, %v8341_v62  ;;  %v7098_v4 = vpack.c.bf16 %v5074_v48, %v5073_v58  ;;  %1888 = vst [vmem:[#allocation2 + $0x12a] sm:$0xff] %v1856_v10  ;;  %v1571_v58 = vld [vmem:[#allocation2 + $0x180] sm:$0xff]  ;;  %v8375_v38 = vld [vmem:[#allocation2 + $0x32] sm:$0xff] }
  0xd4   : > { %v773_v5 = vmax.f32 %v709_v61, %v1761_v18  ;;  %v1091_v6 = vmax.f32 %v1027_v46, %v1761_v18  ;;  %v1410_v19 = vmax.f32 %v1346_v45, %v1761_v18  ;;  %v1347_v9 = vmax.f32 %v1283_v41, %v8341_v62  ;;  %7149 = vmatpush3.bf16.msra.mxu0 %v7146_v55  ;;  %v2059_v48 = vld [vmem:[#allocation2 + $0x3] sm:$0xff]  ;;  %v8366_v10 = vld [vmem:[#allocation2 + $0x1a] sm:$0xff] }
  0xd5   : > { %v1729_v43 = vmax.f32 %v1665_v51, %v1633_v12  ;;  %v1602_v44 = vmax.f32 %v1537_v37, %v447_v49  ;;  %v1028_v27 = vmax.f32 %v964_v13, %v8353_v60  ;;  %7099 = vmatprep.subr.bf16.mxu1 %v7098_v4  ;;  %v384_v59 = vmax.f32 %v8216_v21, %v8224_v40  ;;  %v1635_v34 = vld [vmem:[#allocation2 + $0x181] sm:$0xff]  ;;  %v8377_v63 = vld [vmem:[#allocation2 + $0x33] sm:$0xff] }
  0xd6   : > { %v837_v52 = vmax.f32 %v773_v5, %v1825_v28  ;;  %v1155_v16 = vmax.f32 %v1091_v6, %v1825_v28  ;;  %v1474_v26 = vmax.f32 %v1410_v19, %v1825_v28  ;;  %v1411_v8 = vmax.f32 %v1347_v9, %v8353_v60  ;;  %7101 = vmatpush3.bf16.msra.mxu1 %v7098_v4  ;;  %v8373_v40 = vld [vmem:[#allocation2 + $0x1b] sm:$0xff]  ;;  %v2123_v41 = vld [vmem:[#allocation2 + $0x4] sm:$0xff] }
  0xd7   : > { %v1793_v55 = vmax.f32 %v1729_v43, %v1761_v18  ;;  %v1666_v37 = vmax.f32 %v1602_v44, %v8332_v29  ;;  %v8370_v12 = vmax.f32 %v1028_v27, %v8360_v32  ;;  %v1963_v21 = vmax.f32 %v8338_v7, %v1931_v53  ;;  %v8382_v46 = vld [vmem:[#allocation2 + $0x182] sm:$0xff]  ;;  %v8389_v49 = vld [vmem:[#allocation2 + $0x34] sm:$0xff]  ;;  %v8398_v9 = vld [vmem:[#allocation2 + $0x18a] sm:$0xff] }
  0xd8   : > { %v8380_v61 = vmax.f32 %v1411_v8, %v8360_v32  ;;  %10595 = vst [vmem:[#allocation31_spill] sm:$0xff] %v8382_v46  ;;  %v901_v18 = vmax.f32 %v837_v52, %v8382_v46  ;;  %v1219_v29 = vmax.f32 %v1155_v16, %v8382_v46  ;;  %v1538_v45 = vmax.f32 %v1474_v26, %v8382_v46  ;;  %v8387_v51 = vld [vmem:[#allocation2 + $0x1c] sm:$0xff]  ;;  %v6490_v27 = vld [vmem:[%s10494_s1 + $0x188] sm:$0xff] }
  0xd9   : > { %v8391_v13 = vld [vmem:[#allocation2 + $0x138] sm:$0xff]  ;;  %v8393_v4 = vld [vmem:[#allocation2 + $0x140] sm:$0xff]  ;;  %v1857_v6 = vmax.f32 %v1793_v55, %v1825_v28  ;;  %v1730_v19 = vmax.f32 %v1666_v37, %v8341_v62  ;;  %10596 = vst [vmem:[#allocation32_spill] sm:$0xff] %v8398_v9  ;;  %v1156_v53 = vmax.f32 %v8370_v12, %v8398_v9  ;;  %v2027_v43 = vmax.f32 %v1963_v21, %v1995_v11  ;;  %v8425_v28 = vld [vmem:[#allocation2 + $0x30] sm:$0xff] }
  0xda   : > { %v8395_v5 = vld [vmem:[#allocation2 + $0x141] sm:$0xff]  ;;  %v8408_v52 = vld [vmem:[#allocation2 + $0x139] sm:$0xff]  ;;  %v1603_v62 = vmax.f32 %v1538_v45, %v384_v59  ;;  %v965_v16 = vmax.f32 %v901_v18, %v1571_v58  ;;  %v1284_v26 = vmax.f32 %v1219_v29, %v1571_v58  ;;  %v2029_v54 = vmax.f32 %v8373_v40, %v8366_v10 }
  0xdb   : > { %v6489_v44 = vld [vmem:[%s10494_s1 + $0x180] sm:$0xff]  ;;  %6799 = vmatprep.mubr.f32.mxu1 %v1857_v6  ;;  %v1794_v37 = vmax.f32 %v1730_v19, %v8353_v60  ;;  %v2091_v46 = vmax.f32 %v2027_v43, %v2059_v48  ;;  %v2031_v59 = vmax.f32 %v8377_v63, %v8375_v38  ;;  %v8431_v60 = vld [vmem:[#allocation2 + $0x188] sm:$0xff] }
  0xdc   : > { %v8412_v8 = vld [vmem:[#allocation2 + $0x13a] sm:$0xff]  ;;  %v1763_v12 = vld [vmem:[#allocation2 + $0x183] sm:$0xff]  ;;  %v1667_v18 = vmax.f32 %v1603_v62, %v1571_v58  ;;  %v1029_v29 = vmax.f32 %v965_v16, %v1635_v34  ;;  %v1348_v45 = vmax.f32 %v1284_v26, %v1635_v34  ;;  %v8429_v25 = vpack.c.bf16 %v6490_v27, %v6489_v44 }
  0xdd   : > { %v8414_v55 = vld [vmem:[#allocation2 + $0x13b] sm:$0xff]  ;;  %v8419_v21 = vld [vmem:[#allocation2 + $0x184] sm:$0xff]  ;;  %v1858_v48 = vmax.f32 %v1794_v37, %v8360_v32  ;;  %v2155_v19 = vmax.f32 %v2091_v46, %v2123_v41  ;;  %v2093_v20 = vmax.f32 %v2029_v54, %v8387_v51  ;;  %v2095_v58 = vmax.f32 %v2031_v59, %v8389_v49 }
  0xde   : > { %v8416_v11 = vld [vmem:[#allocation2 + $0x13c] sm:$0xff]  ;;  %10597 = vst [vmem:[#allocation33_spill] sm:$0xff] %v8429_v25  ;;  %v1731_v62 = vmax.f32 %v1667_v18, %v1635_v34  ;;  %v8442_v16 = vmax.f32 %v1029_v29, %v1763_v12  ;;  %v1412_v44 = vmax.f32 %v1348_v45, %v1763_v12  ;;  %7151 = vmatprep.subr.bf16.mxu0 %v8429_v25  ;;  %v8451_v54 = vld [vmem:[#allocation2 + $0x144] sm:$0xff]  ;;  %v8480_v29 = vld [vmem:[#allocation2 + $0x18c] sm:$0xff] }
  0xdf   : > { %1889 = vst [vmem:[#allocation2 + $0x13a] sm:$0xff] %v1857_v6  ;;  %v8434_v43 = vld [vmem:[#allocation2 + $0x19] sm:$0xff]  ;;  %v8440_v6 = vld [vmem:[#allocation2 + $0x49] sm:$0xff]  ;;  %v385_v32 = vmax.f32 %v8235_v14, %v8246_v30  ;;  %6800 = vmatmul.mubr.f32.gmra.mrb[22].mxu1 %v1858_v48  ;;  %v2219_v27 = vmax.f32 %v2155_v19, %v8338_v7  ;;  %v2157_v26 = vmax.f32 %v2093_v20, %v8425_v28 }
  0xe0   : > { %v8447_v46 = vld [vmem:[#allocation2 + $0x142] sm:$0xff]  ;;  %v2159_v34 = vmax.f32 %v2095_v58, %v8427_v31  ;;  %v453_v37 = vmax.f32 %v8431_v60, %v8338_v7  ;;  %v1795_v18 = vmax.f32 %v1731_v62, %v1763_v12  ;;  %v8467_v20 = vmax.f32 %v1412_v44, %v8419_v21  ;;  %v8469_v45 = vld [vmem:[#allocation2 + $0x4a] sm:$0xff]  ;;  %v8563_v25 = vld [vmem:[#allocation2 + $0x15a] sm:$0xff] }
  0xe1   : > { %v8449_v41 = vld [vmem:[#allocation2 + $0x143] sm:$0xff]  ;;  %v449_v19 = vmax.f32 %v385_v32, %v8355_v17  ;;  %v8472_v58 = vld [vmem:[#allocation2 + $0x18b] sm:$0xff]  ;;  %v2283_v56 = vmax.f32 %v2219_v27, %v8434_v43  ;;  %v2221_v33 = vmax.f32 %v2157_v26, %v8437_v42  ;;  %v1220_v62 = vmax.f32 %v1156_v53, %v8431_v60 }
  0xe2   : > { %v1636_v59 = vld [vmem:[#allocation2 + $0x189] sm:$0xff]  ;;  %v5075_v14 = vld [vmem:[%s10494_s1 + $0x40] sm:$0xff]  ;;  %1890 = vst [vmem:[#allocation2 + $0x142] sm:$0xff] %v1858_v48  ;;  %v2223_v48 = vmax.f32 %v2159_v34, %v8440_v6  ;;  %v1859_v32 = vmax.f32 %v1795_v18, %v8419_v21  ;;  %v10598_v27 = vmax.f32 %v8380_v61, %v8398_v9  ;;  %v8494_v53 = vld [vmem:[#allocation2 + $0x152] sm:$0xff] }
  0xe3   : > { %v5076_v30 = vld [vmem:[%s10494_s1 + $0x48] sm:$0xff]  ;;  %v8486_v17 = vld [vmem:[#allocation2 + $0x150] sm:$0xff]  ;;  %v517_v34 = vmax.f32 %v453_v37, %v1636_v59  ;;  %v2347_v39 = vmax.f32 %v2283_v56, %v8366_v10  ;;  %v2285_v47 = vmax.f32 %v2221_v33, %v8375_v38  ;;  %v1285_v57 = vmax.f32 %v1220_v62, %v1636_v59  ;;  %v8505_v61 = vld [vmem:[#allocation2 + $0x159] sm:$0xff] }
  0xe4   : > { %v8477_v12 = vld [vmem:[#allocation2 + $0x4b] sm:$0xff]  ;;  %v1604_v26 = vmax.f32 %v10598_v27, %v449_v19  ;;  %v7102_v3 = vpack.c.bf16 %v5076_v30, %v5075_v14  ;;  %v2287_v35 = vmax.f32 %v2223_v48, %v8469_v45  ;;  %v8501_v18 = vld [vmem:[#allocation2 + $0x154] sm:$0xff]  ;;  %10601 = vst [vmem:[#allocation36_spill] sm:$0xff] %v8505_v61  ;;  %6802 = vmatprep.mubr.f32.mxu1 %v1859_v32 }
  0xe5   : > { %v1996_v44 = vld [vmem:[#allocation2 + $0xa] sm:$0xff]  ;;  %10599 = vst [vmem:[#allocation34_spill] sm:$0xff] %v8501_v18  ;;  %v581_v30 = vmax.f32 %v517_v34, %v8472_v58  ;;  %v1964_v56 = vmax.f32 %v8338_v7, %v1932_v1  ;;  %1891 = vst [vmem:[#allocation2 + $0x152] sm:$0xff] %v1859_v32  ;;  %v2411_v10 = vmax.f32 %v2347_v39, %v8373_v40  ;;  %v8518_v9 = vld [vmem:[#allocation2 + $0x3a] sm:$0xff] }
  0xe6   : > { %v8507_v37 = vld [vmem:[#allocation2 + $0x4c] sm:$0xff]  ;;  %v1668_v14 = vmax.f32 %v1604_v26, %v8431_v60  ;;  %7103 = vmatprep.subr.bf16.mxu1 %v7102_v3  ;;  %v2349_v19 = vmax.f32 %v2285_v47, %v8377_v63  ;;  %v2351_v48 = vmax.f32 %v2287_v35, %v8477_v12  ;;  %v1349_v62 = vmax.f32 %v1285_v57, %v8472_v58  ;;  %v8516_v27 = vld [vmem:[#allocation2 + $0x24] sm:$0xff]  ;;  %v8520_v60 = vld [vmem:[#allocation2 + $0x3b] sm:$0xff] }
  0xe7   : > { %v2060_v33 = vld [vmem:[#allocation2 + $0xb] sm:$0xff]  ;;  %7105 = vmatpush3.bf16.msra.mxu1 %v7102_v3  ;;  %v8522_v26 = vld [vmem:[#allocation2 + $0x60] sm:$0xff]  ;;  %v8525_v32 = vmax.f32 %v581_v30, %v8480_v29  ;;  %v2028_v39 = vmax.f32 %v1964_v56, %v1996_v44  ;;  %v2030_v47 = vmax.f32 %v8484_v36, %v8482_v0  ;;  %v2475_v35 = vmax.f32 %v2411_v10, %v8387_v51  ;;  %v8533_v3 = vld [vmem:[#allocation2 + $0x38] sm:$0xff] }
  0xe8   : > { %v1732_v1 = vmax.f32 %v1668_v14, %v1636_v59  ;;  %v2413_v57 = vmax.f32 %v2349_v19, %v8389_v49  ;;  %v2415_v40 = vmax.f32 %v2351_v48, %v8507_v37  ;;  %v1413_v34 = vmax.f32 %v1349_v62, %v8480_v29  ;;  %10602 = vst [vmem:[#allocation37_spill] sm:$0xff] %v8533_v3  ;;  %v8537_v59 = vld [vmem:[#allocation2 + $0x61] sm:$0xff]  ;;  %v8546_v48 = vld [vmem:[#allocation2 + $0x39] sm:$0xff]  ;;  %v8548_v62 = vld [vmem:[#allocation2 + $0x50] sm:$0xff] }
  0xe9   : > { %v2092_v14 = vmax.f32 %v2028_v39, %v2060_v33  ;;  %v2094_v30 = vmax.f32 %v2030_v47, %v8516_v27  ;;  %v2032_v51 = vmax.f32 %v8520_v60, %v8518_v9  ;;  %v2539_v56 = vmax.f32 %v2475_v35, %v8425_v28  ;;  %v8559_v35 = vld [vmem:[#allocation2 + $0x21] sm:$0xff] }
  0xea   : > { %v1796_v44 = vmax.f32 %v1732_v1, %v8472_v58  ;;  %v2477_v10 = vmax.f32 %v2413_v57, %v8427_v31  ;;  %v2479_v19 = vmax.f32 %v2415_v40, %v8522_v26  ;;  %v10604_v58 = vmax.f32 %v8442_v16, %v8419_v21  ;;  %v8556_v1 = vld [vmem:[#allocation2 + $0x62] sm:$0xff]  ;;  %v8568_v16 = vld [vmem:[#allocation2 + $0x51] sm:$0xff] }
  0xeb   : > { %v2156_v47 = vmax.f32 %v2092_v14, %v2124_v23  ;;  %v2158_v57 = vmax.f32 %v2094_v30, %v8533_v3  ;;  %v2096_v40 = vmax.f32 %v2032_v51, %v8535_v22  ;;  %v2603_v24 = vmax.f32 %v2539_v56, %v8437_v42  ;;  %v8572_v23 = vld [vmem:[#allocation2 + $0x15b] sm:$0xff]  ;;  %v8576_v14 = vld [vmem:[#allocation2 + $0x63] sm:$0xff] }
  0xec   : > { %v1221_v33 = vmax.f32 %v10604_v58, %v8550_v15  ;;  %v1860_v39 = vmax.f32 %v1796_v44, %v8480_v29  ;;  %v2541_v61 = vmax.f32 %v2477_v10, %v8440_v6  ;;  %v2543_v21 = vmax.f32 %v2479_v19, %v8537_v59  ;;  %10605 = vst [vmem:[#allocation39_spill] sm:$0xff] %v8572_v23  ;;  %v8574_v44 = vld [vmem:[#allocation2 + $0x15c] sm:$0xff] }
  0xed   : > { %v1540_v29 = vmax.f32 %v8467_v20, %v8550_v15  ;;  %10606 = vst [vmem:[#allocation40_spill] sm:$0xff] %v8574_v44  ;;  %v2220_v30 = vmax.f32 %v2156_v47, %v8338_v7  ;;  %v2222_v51 = vmax.f32 %v2158_v57, %v8546_v48  ;;  %v2160_v56 = vmax.f32 %v2096_v40, %v8548_v62  ;;  %v8581_v10 = vld [vmem:[#allocation2 + $0x1a2] sm:$0xff]  ;;  %v8588_v44 = vld [vmem:[#allocation2 + $0x52] sm:$0xff] }
  0xee   : > { %6803 = vmatmul.mubr.f32.gmra.mrb[24].mxu1 %v1860_v39  ;;  %10607 = vst [vmem:[#allocation41_spill] sm:$0xff] %v8581_v10  ;;  %1892 = vst [vmem:[#allocation2 + $0x15a] sm:$0xff] %v1860_v39  ;;  %v2667_v20 = vmax.f32 %v2603_v24, %v8375_v38  ;;  %v2605_v58 = vmax.f32 %v2541_v61, %v8469_v45  ;;  %v2607_v15 = vmax.f32 %v2543_v21, %v8556_v1  ;;  %v8593_v57 = vld [vmem:[#allocation2 + $0x64] sm:$0xff]  ;;  %v8600_v38 = vld [vmem:[#allocation2 + $0x198] sm:$0xff] }
  0xef   : > { %v8591_v47 = vmax.f32 %v1413_v34, %v8581_v10  ;;  %v2284_v40 = vmax.f32 %v2220_v30, %v8559_v35  ;;  %v2286_v23 = vmax.f32 %v2222_v51, %v8518_v9  ;;  %v2224_v19 = vmax.f32 %v2160_v56, %v8568_v16  ;;  %10608 = vst [vmem:[#allocation42_spill] sm:$0xff] %v8600_v38  ;;  %v8605_v21 = vld [vmem:[#allocation2 + $0x53] sm:$0xff] }
  0xf0   : > { %v386_v24 = vmax.f32 %v8391_v13, %v8408_v52  ;;  %v2731_v61 = vmax.f32 %v2667_v20, %v8377_v63  ;;  %v2669_v39 = vmax.f32 %v2605_v58, %v8477_v12  ;;  %v2671_v34 = vmax.f32 %v2607_v15, %v8576_v14  ;;  %v8612_v52 = vld [vmem:[#allocation2 + $0x199] sm:$0xff] }
  0xf1   : > { %v1286_v18 = vmax.f32 %v1221_v33, %v8600_v38  ;;  %v2348_v30 = vmax.f32 %v2284_v40, %v8482_v0  ;;  %v2350_v51 = vmax.f32 %v2286_v23, %v8520_v60  ;;  %v2288_v56 = vmax.f32 %v2224_v19, %v8588_v44  ;;  %10609 = vst [vmem:[#allocation43_spill] sm:$0xff] %v8612_v52  ;;  %v8617_v58 = vld [vmem:[#allocation2 + $0x54] sm:$0xff] }
  0xf2   : > { %v450_v13 = vmax.f32 %v386_v24, %v8412_v8  ;;  %v2795_v63 = vmax.f32 %v2731_v61, %v8389_v49  ;;  %v2733_v20 = vmax.f32 %v2669_v39, %v8507_v37  ;;  %v2735_v15 = vmax.f32 %v2671_v34, %v8593_v57  ;;  %v8624_v40 = vld [vmem:[#allocation2 + $0x19b] sm:$0xff]  ;;  %v8628_v61 = vld [vmem:[#allocation2 + $0x68] sm:$0xff] }
  0xf3   : > { %v1350_v33 = vmax.f32 %v1286_v18, %v8612_v52  ;;  %v2412_v0 = vmax.f32 %v2348_v30, %v8484_v36  ;;  %v2414_v23 = vmax.f32 %v2350_v51, %v8535_v22  ;;  %v2352_v19 = vmax.f32 %v2288_v56, %v8605_v21  ;;  %10610 = vst [vmem:[#allocation44_spill] sm:$0xff] %v8624_v40  ;;  %v8637_v51 = vld [vmem:[#allocation2 + $0x19c] sm:$0xff] }
  0xf4   : > { %v514_v8 = vmax.f32 %v450_v13, %v8414_v55  ;;  %v2859_v49 = vmax.f32 %v2795_v63, %v8427_v31  ;;  %v2797_v24 = vmax.f32 %v2733_v20, %v8522_v26  ;;  %v1965_v18 = vmax.f32 %v8338_v7, %v8434_v43  ;;  %10611 = vst [vmem:[#allocation45_spill] sm:$0xff] %v8637_v51  ;;  %v8639_v31 = vld [vmem:[#allocation2 + $0x78] sm:$0xff]  ;;  %v8645_v20 = vld [vmem:[#allocation2 + $0x69] sm:$0xff] }
  0xf5   : > { %v1414_v39 = vmax.f32 %v1350_v33, %v8624_v40  ;;  %v2476_v36 = vmax.f32 %v2412_v0, %v8516_v27  ;;  %v2478_v34 = vmax.f32 %v2414_v23, %v8548_v62  ;;  %v2416_v30 = vmax.f32 %v2352_v19, %v8617_v58  ;;  %v8641_v56 = vld [vmem:[#allocation2 + $0x79] sm:$0xff] }
  0xf6   : > { %v578_v55 = vmax.f32 %v514_v8, %v8416_v11  ;;  %v2923_v13 = vmax.f32 %v2859_v49, %v8440_v6  ;;  %v2861_v63 = vmax.f32 %v2797_v24, %v8537_v59  ;;  %v2799_v27 = vmax.f32 %v2735_v15, %v8639_v31  ;;  %v8654_v19 = vld [vmem:[#allocation2 + $0x7a] sm:$0xff]  ;;  %v8658_v49 = vld [vmem:[#allocation2 + $0x6a] sm:$0xff] }
  0xf7   : > { %v8648_v43 = vmax.f32 %v1414_v39, %v8637_v51  ;;  %v2540_v33 = vmax.f32 %v2476_v36, %v8533_v3  ;;  %v2542_v11 = vmax.f32 %v2478_v34, %v8568_v16  ;;  %v2480_v0 = vmax.f32 %v2416_v30, %v8628_v61  ;;  %v8667_v30 = vld [vmem:[#allocation2 + $0x7b] sm:$0xff] }
  0xf8   : > { %v1605_v23 = vmax.f32 %v1540_v29, %v578_v55  ;;  %v2987_v6 = vmax.f32 %v2923_v13, %v8469_v45  ;;  %v2925_v8 = vmax.f32 %v2861_v63, %v8556_v1  ;;  %v2545_v24 = vmax.f32 %v8641_v56, %v8639_v31  ;;  %v8671_v13 = vld [vmem:[#allocation2 + $0x6b] sm:$0xff] }
  0xf9   : > { %v2863_v15 = vmax.f32 %v2799_v27, %v8641_v56  ;;  %v2604_v39 = vmax.f32 %v2540_v33, %v8546_v48  ;;  %v2606_v36 = vmax.f32 %v2542_v11, %v8588_v44  ;;  %v2544_v34 = vmax.f32 %v2480_v0, %v8645_v20 }
  0xfa   : > { %v1669_v29 = vmax.f32 %v1605_v23, %v8600_v38  ;;  %v3051_v45 = vmax.f32 %v2987_v6, %v8477_v12  ;;  %v2989_v55 = vmax.f32 %v2925_v8, %v8576_v14  ;;  %v2609_v63 = vmax.f32 %v2545_v24, %v8654_v19  ;;  %v8679_v38 = vld [vmem:[#allocation2 + $0x7c] sm:$0xff]  ;;  %v8683_v8 = vld [vmem:[#allocation2 + $0x6c] sm:$0xff] }
  0xfb   : > { %v2927_v27 = vmax.f32 %v2863_v15, %v8654_v19  ;;  %v2668_v33 = vmax.f32 %v2604_v39, %v8518_v9  ;;  %v2670_v11 = vmax.f32 %v2606_v36, %v8605_v21  ;;  %v2608_v0 = vmax.f32 %v2544_v34, %v8658_v49 }
  0xfc   : > { %v1733_v23 = vmax.f32 %v1669_v29, %v8612_v52  ;;  %v3115_v12 = vmax.f32 %v3051_v45, %v8507_v37  ;;  %v3053_v6 = vmax.f32 %v2989_v55, %v8593_v57  ;;  %v2673_v24 = vmax.f32 %v2609_v63, %v8667_v30  ;;  %v8693_v29 = vld [vmem:[#allocation2 + $0x1a0] sm:$0xff] }
  0xfd   : > { %v8687_v15 = vmax.f32 %v2927_v27, %v8667_v30  ;;  %v2732_v9 = vmax.f32 %v2668_v33, %v8520_v60  ;;  %v2734_v39 = vmax.f32 %v2670_v11, %v8617_v58  ;;  %v2672_v36 = vmax.f32 %v2608_v0, %v8671_v13  ;;  %v8695_v37 = vld [vmem:[#allocation2 + $0x1a1] sm:$0xff]  ;;  %v5077_v33 = vld [vmem:[%s10494_s1 + $0x50] sm:$0xff]  ;;  %v5078_v11 = vld [vmem:[%s10494_s1 + $0x58] sm:$0xff] }
  0xfe   : > { %v1797_v34 = vmax.f32 %v1733_v23, %v8624_v40  ;;  %v3179_v45 = vmax.f32 %v3115_v12, %v8522_v26  ;;  %v3117_v55 = vmax.f32 %v3053_v6, %v1965_v18  ;;  %v8699_v63 = vmax.f32 %v2673_v24, %v8679_v38  ;;  %v8703_v60 = vld [vmem:[#allocation2 + $0x1a3] sm:$0xff]  ;;  %v8717_v6 = vld [vmem:[#allocation2 + $0x170] sm:$0xff] }
  0xff   : > { %v8711_v0 = vld [vmem:[#allocation2 + $0x16a] sm:$0xff]  ;;  %v2796_v26 = vmax.f32 %v2732_v9, %v8535_v22  ;;  %v2798_v18 = vmax.f32 %v2734_v39, %v8628_v61  ;;  %v2736_v23 = vmax.f32 %v2672_v36, %v8683_v8  ;;  %v387_v3 = vmax.f32 %v8393_v4, %v8395_v5 }
 0x100   : > { %v1861_v12 = vmax.f32 %v1797_v34, %v8637_v51  ;;  %v8719_v24 = vld [vmem:[#allocation2 + $0x168] sm:$0xff]  ;;  %v3243_v40 = vmax.f32 %v3179_v45, %v8537_v59  ;;  %v3181_v52 = vmax.f32 %v3117_v55, %v8639_v31  ;;  %v10612_v22 = vmax.f32 %v8525_v32, %v8581_v10  ;;  %v8731_v39 = vld [vmem:[#allocation2 + $0x171] sm:$0xff] }
 0x101   : > { %v8721_v27 = vld [vmem:[#allocation2 + $0x169] sm:$0xff]  ;;  %v2860_v51 = vmax.f32 %v2796_v26, %v8548_v62  ;;  %v2862_v59 = vmax.f32 %v2798_v18, %v8645_v20  ;;  %v455_v31 = vmax.f32 %v8695_v37, %v8693_v29  ;;  %v7106_v4 = vpack.c.bf16 %v5078_v11, %v5077_v33 }
 0x102   : > { %v774_v9 = vmax.f32 %v10612_v22, %v8563_v25  ;;  %v8733_v36 = vld [vmem:[#allocation2 + $0x16b] sm:$0xff]  ;;  %6805 = vmatprep.mubr.f32.mxu1 %v1861_v12  ;;  %v3307_v5 = vmax.f32 %v3243_v40, %v8556_v1  ;;  %v3245_v32 = vmax.f32 %v3181_v52, %v8641_v56  ;;  %v451_v45 = vmax.f32 %v387_v3, %v8447_v46  ;;  %v3150_v40 = vld [vmem:[#allocation2 + $0x80] sm:$0xff] }
 0x103   : > { %v8735_v34 = vld [vmem:[#allocation2 + $0x16c] sm:$0xff]  ;;  %v8745_v22 = vld [vmem:[#allocation2 + $0x1a4] sm:$0xff]  ;;  %v2924_v62 = vmax.f32 %v2860_v51, %v8568_v16  ;;  %v2926_v26 = vmax.f32 %v2862_v59, %v8658_v49  ;;  %v8750_v18 = vmax.f32 %v455_v31, %v8703_v60  ;;  %7107 = vmatprep.subr.bf16.mxu1 %v7106_v4  ;;  %v1966_v33 = vmax.f32 %v8338_v7, %v8559_v35 }
 0x104   : > { %1893 = vst [vmem:[#allocation2 + $0x16a] sm:$0xff] %v1861_v12  ;;  %v838_v55 = vmax.f32 %v774_v9, %v8693_v29  ;;  %v3371_v1 = vmax.f32 %v3307_v5, %v8576_v14  ;;  %v3309_v52 = vmax.f32 %v3245_v32, %v8654_v19  ;;  %v515_v46 = vmax.f32 %v451_v45, %v8449_v41  ;;  %v3214_v56 = vld [vmem:[#allocation2 + $0x81] sm:$0xff]  ;;  %v8777_v5 = vld [vmem:[#allocation2 + $0x49] sm:$0xff] }
 0x105   : > { %7109 = vmatpush3.bf16.msra.mxu1 %v7106_v4  ;;  %v2988_v16 = vmax.f32 %v2924_v62, %v8588_v44  ;;  %v2990_v51 = vmax.f32 %v2926_v26, %v8671_v13  ;;  %v583_v11 = vmax.f32 %v8750_v18, %v8745_v22  ;;  %v2800_v12 = vmax.f32 %v2736_v23, %v3150_v40  ;;  %v3278_v19 = vld [vmem:[#allocation2 + $0x82] sm:$0xff]  ;;  %v8781_v32 = vld [vmem:[#allocation2 + $0x4b] sm:$0xff] }
 0x106   : > { %v902_v3 = vmax.f32 %v838_v55, %v8695_v37  ;;  %v3435_v7 = vmax.f32 %v3371_v1, %v8593_v57  ;;  %v3373_v35 = vmax.f32 %v3309_v52, %v8667_v30  ;;  %v579_v14 = vmax.f32 %v515_v46, %v8451_v54  ;;  %v3342_v31 = vld [vmem:[#allocation2 + $0x83] sm:$0xff]  ;;  %v8784_v26 = vld [vmem:[#allocation2 + $0x4c] sm:$0xff] }
 0x107   : > { %v3052_v9 = vmax.f32 %v2988_v16, %v8605_v21  ;;  %v3054_v59 = vmax.f32 %v2990_v51, %v8683_v8  ;;  %v2036_v44 = vmax.f32 %v3214_v56, %v3150_v40  ;;  %v8768_v4 = vld [vmem:[#allocation2 + $0x48] sm:$0xff]  ;;  %v2864_v54 = vmax.f32 %v2800_v12, %v3214_v56  ;;  %v8786_v1 = vld [vmem:[#allocation2 + $0x50] sm:$0xff] }
 0x108   : > { %v966_v41 = vmax.f32 %v902_v3, %v8703_v60  ;;  %6926 = vmatprep.mubr.f32.mxu0 %v3435_v7  ;;  %v8771_v23 = vmax.f32 %v3373_v35, %v8679_v38  ;;  %v1541_v57 = vmax.f32 %v8591_v47, %v579_v14  ;;  %3467 = vst [vmem:[#allocation2 + $0x32] sm:$0xff] %v3435_v7  ;;  %v8779_v21 = vld [vmem:[#allocation2 + $0x4a] sm:$0xff]  ;;  %v8880_v18 = vld [vmem:[#allocation2 + $0x62] sm:$0xff] }
 0x109   : > { %v3116_v45 = vmax.f32 %v3052_v9, %v8617_v58  ;;  %v3118_v55 = vmax.f32 %v3054_v59, %v1966_v33  ;;  %v2100_v62 = vmax.f32 %v2036_v44, %v3278_v19  ;;  %v8788_v47 = vld [vmem:[#allocation2 + $0x51] sm:$0xff]  ;;  %v2928_v46 = vmax.f32 %v2864_v54, %v3278_v19  ;;  %v8791_v3 = vld [vmem:[#allocation2 + $0x84] sm:$0xff] }
 0x10a   : > { %v8775_v30 = vmax.f32 %v966_v41, %v8745_v22  ;;  %v1606_v52 = vmax.f32 %v1541_v57, %v8563_v25  ;;  %v388_v16 = vmax.f32 %v8486_v17, %v8492_v2  ;;  %v1967_v51 = vmax.f32 %v8425_v28, %v8437_v42  ;;  %3469 = vst [vmem:[#allocation2 + $0x4a] sm:$0xff] %v8771_v23  ;;  %v3151_v28 = vld [vmem:[#allocation2 + $0x90] sm:$0xff]  ;;  %v10614_v57 = vld [vmem:[#allocation34_spill] sm:$0xff] }
 0x10b   : > { %v3180_v58 = vmax.f32 %v3116_v45, %v8628_v61  ;;  %v3182_v33 = vmax.f32 %v3118_v55, %v3150_v40  ;;  %v2164_v12 = vmax.f32 %v2100_v62, %v3342_v31  ;;  %v8800_v35 = vmax.f32 %v2928_v46, %v3342_v31  ;;  %v3215_v61 = vld [vmem:[#allocation2 + $0x91] sm:$0xff] }
 0x10c   : > { %v1670_v7 = vmax.f32 %v1606_v52, %v8693_v29  ;;  %v452_v25 = vmax.f32 %v388_v16, %v8494_v53  ;;  %v10613_v14 = vmax.f32 %v8687_v15, %v8679_v38  ;;  %v2801_v53 = vmax.f32 %v8699_v63, %v3151_v28  ;;  %v3343_v46 = vld [vmem:[#allocation2 + $0x93] sm:$0xff] }
 0x10d   : > { %v3244_v2 = vmax.f32 %v3180_v58, %v8645_v20  ;;  %v3246_v17 = vmax.f32 %v3182_v33, %v3214_v56  ;;  %v8808_v42 = vmax.f32 %v2164_v12, %v8791_v3  ;;  %v3056_v29 = vmax.f32 %v8800_v35, %v8791_v3  ;;  %v3279_v56 = vld [vmem:[#allocation2 + $0x92] sm:$0xff] }
 0x10e   : > { %v3119_v41 = vmax.f32 %v10613_v14, %v1967_v51  ;;  %v1734_v40 = vmax.f32 %v1670_v7, %v8695_v37  ;;  %v516_v9 = vmax.f32 %v452_v25, %v8496_v50  ;;  %v2037_v20 = vmax.f32 %v3215_v61, %v3151_v28  ;;  %v6491_v50 = vld [vmem:[%s10494_s1 + $0x190] sm:$0xff]  ;;  %v5079_v25 = vld [vmem:[%s10494_s1 + $0x60] sm:$0xff] }
 0x10f   : > { %v3308_v38 = vmax.f32 %v3244_v2, %v8658_v49  ;;  %v3310_v15 = vmax.f32 %v3246_v17, %v3278_v19  ;;  %v2865_v45 = vmax.f32 %v2801_v53, %v3215_v61  ;;  %v6492_v49 = vld [vmem:[%s10494_s1 + $0x198] sm:$0xff] }
 0x110   : > { %v3183_v59 = vmax.f32 %v3119_v41, %v3151_v28  ;;  %v1798_v44 = vmax.f32 %v1734_v40, %v8703_v60  ;;  %v580_v54 = vmax.f32 %v516_v9, %v10614_v57  ;;  %v2101_v52 = vmax.f32 %v2037_v20, %v3279_v56  ;;  %v8827_v16 = vld [vmem:[#allocation2 + $0x94] sm:$0xff] }
 0x111   : > { %v3372_v37 = vmax.f32 %v3308_v38, %v8671_v13  ;;  %v3374_v55 = vmax.f32 %v3310_v15, %v3342_v31  ;;  %v2929_v19 = vmax.f32 %v2865_v45, %v3279_v56  ;;  %v8829_v13 = vld [vmem:[#allocation2 + $0x172] sm:$0xff]  ;;  %v10615_v38 = vld [vmem:[#allocation36_spill] sm:$0xff]  ;;  %v10616_v15 = vld [vmem:[#allocation35_spill] sm:$0xff] }
 0x112   : > { %v3247_v62 = vmax.f32 %v3183_v59, %v3215_v61  ;;  %v1862_v63 = vmax.f32 %v1798_v44, %v8745_v22  ;;  %v1542_v60 = vmax.f32 %v8648_v43, %v580_v54  ;;  %v8831_v31 = vld [vmem:[#allocation2 + $0x173] sm:$0xff]  ;;  %v2165_v12 = vmax.f32 %v2101_v52, %v3343_v46  ;;  %v5080_v43 = vld [vmem:[%s10494_s1 + $0x68] sm:$0xff]  ;;  %v8878_v22 = vld [vmem:[#allocation2 + $0x9b] sm:$0xff] }
 0x113   : > { %v3436_v51 = vmax.f32 %v3372_v37, %v8683_v8  ;;  %v3438_v58 = vmax.f32 %v3374_v55, %v8791_v3  ;;  %v8835_v7 = vld [vmem:[#allocation2 + $0x174] sm:$0xff]  ;;  %v8844_v41 = vmax.f32 %v2929_v19, %v3343_v46  ;;  %v7154_v8 = vpack.c.bf16 %v6492_v49, %v6491_v50  ;;  %v8872_v45 = vld [vmem:[#allocation2 + $0x18a] sm:$0xff] }
 0x114   : > { %v3311_v33 = vmax.f32 %v3247_v62, %v3279_v56  ;;  %6806 = vmatmul.mubr.f32.gmra.mrb[26].mxu1 %v1862_v63  ;;  %v1607_v14 = vmax.f32 %v1542_v60, %v8711_v0  ;;  %1894 = vst [vmem:[#allocation2 + $0x172] sm:$0xff] %v1862_v63  ;;  %v8846_v2 = vld [vmem:[#allocation2 + $0x52] sm:$0xff]  ;;  %v8857_v53 = vmax.f32 %v2165_v12, %v8827_v16  ;;  %v8876_v55 = vld [vmem:[#allocation2 + $0x9a] sm:$0xff]  ;;  %v8887_v50 = vld [vmem:[#allocation2 + $0x63] sm:$0xff] }
 0x115   : > { %v8848_v17 = vld [vmem:[#allocation2 + $0x53] sm:$0xff]  ;;  %6927 = vmatmul.mubr.f32.vlgmr.msra.gmra.mrb[0].mxu0 %v3436_v51  ;;  %v389_v59 = vmax.f32 %v10616_v15, %v10615_v38  ;;  %v648_v20 = vmax.f32 %v583_v11, %v8829_v13  ;;  %3468 = vst [vmem:[#allocation2 + $0x3a] sm:$0xff] %v3436_v51  ;;  %v7110_v52 = vpack.c.bf16 %v5080_v43, %v5079_v25  ;;  %v8889_v49 = vld [vmem:[#allocation2 + $0x64] sm:$0xff]  ;;  %v3408_v15 = vld [vmem:[#allocation2 + $0x9c] sm:$0xff] }
 0x116   : > { %v8850_v28 = vld [vmem:[#allocation2 + $0x54] sm:$0xff]  ;;  %v3375_v9 = vmax.f32 %v3311_v33, %v3343_v46  ;;  %6929 = vmatprep.mubr.f32.mxu0 %v8771_v23  ;;  %v8885_v46 = vld [vmem:[#allocation2 + $0x60] sm:$0xff]  ;;  %v8900_v12 = vld [vmem:[#allocation2 + $0x69] sm:$0xff] }
 0x117   : > { %v8852_v61 = vld [vmem:[#allocation2 + $0x1b1] sm:$0xff]  ;;  %3470 = vst [vmem:[#allocation2 + $0x52] sm:$0xff] %v3438_v58  ;;  %v8874_v37 = vld [vmem:[#allocation2 + $0x99] sm:$0xff]  ;;  %v1094_v23 = vmax.f32 %v8775_v30, %v389_v59  ;;  %v712_v62 = vmax.f32 %v648_v20, %v8831_v31  ;;  %v8896_v33 = vld [vmem:[#allocation2 + $0x61] sm:$0xff]  ;;  %7111 = vmatprep.subr.bf16.mxu1 %v7110_v52 }
 0x118   : > { %v8854_v40 = vld [vmem:[#allocation2 + $0x1b2] sm:$0xff]  ;;  %v1671_v57 = vmax.f32 %v1607_v14, %v8852_v61  ;;  %v3439_v11 = vmax.f32 %v3375_v9, %v8827_v16  ;;  %v8898_v30 = vld [vmem:[#allocation2 + $0x68] sm:$0xff]  ;;  %v10620_v43 = vld [vmem:[#allocation39_spill] sm:$0xff]  ;;  %7113 = vmatpush3.bf16.msra.mxu1 %v7110_v52 }
 0x119   : > { %v8865_v56 = vld [vmem:[#allocation2 + $0x98] sm:$0xff]  ;;  %v10618_v44 = vld [vmem:[#allocation33_spill] sm:$0xff]  ;;  %6930 = vmatmul.mubr.f32.gmra.mrb[2].mxu0 %v3438_v58  ;;  %v1158_v14 = vmax.f32 %v1094_v23, %v10620_v43  ;;  %v8906_v9 = vmax.f32 %v712_v62, %v8835_v7  ;;  %v10621_v20 = vld [vmem:[#allocation40_spill] sm:$0xff]  ;;  %v2040_v62 = vmax.f32 %v8878_v22, %v8876_v55 }
 0x11a   : > { %10617 = vst [vmem:[#allocation34_spill] sm:$0xff] %v8865_v56  ;;  %7153 = vmatpush3.bf16.msra.mxu0 %v10618_v44  ;;  %v1735_v63 = vmax.f32 %v1671_v57, %v8854_v40  ;;  %v10619_v60 = vld [vmem:[#allocation37_spill] sm:$0xff]  ;;  %v2292_v51 = vmax.f32 %v8808_v42, %v8865_v56  ;;  %3471 = vst [vmem:[#allocation2 + $0x62] sm:$0xff] %v3439_v11  ;;  %6932 = vmatprep.mubr.f32.mxu0 %v3439_v11  ;;  %v8923_v11 = vld [vmem:[#allocation2 + $0x180] sm:$0xff] }
 0x11b   : > { %7155 = vmatprep.subr.bf16.mxu0 %v7154_v8  ;;  %v1968_v19 = vmax.f32 %v10619_v60, %v8546_v48  ;;  %v8902_v25 = vld [vmem:[#allocation2 + $0x1b3] sm:$0xff]  ;;  %v2230_v48 = vmax.f32 %v8874_v37, %v8865_v56  ;;  %v1222_v44 = vmax.f32 %v1158_v14, %v10621_v20  ;;  %v8928_v60 = vld [vmem:[#allocation2 + $0x182] sm:$0xff]  ;;  %v8934_v14 = vmax.f32 %v2040_v62, %v3408_v15 }
 0x11c   : > { %v1799_v42 = vmax.f32 %v1735_v63, %v8902_v25  ;;  %v2356_v58 = vmax.f32 %v2292_v51, %v8874_v37  ;;  %v8915_v59 = vld [vmem:[#allocation2 + $0x1b4] sm:$0xff]  ;;  %v679_v63 = vld [vmem:[#allocation2 + $0x181] sm:$0xff]  ;;  %v1969_v20 = vmax.f32 %v8768_v4, %v8777_v5  ;;  %v2291_v62 = vmax.f32 %v8857_v53, %v8880_v18  ;;  %v8956_v54 = vld [vmem:[#allocation2 + $0xa9] sm:$0xff] }
 0x11d   : > { %v3120_v38 = vmax.f32 %v3056_v29, %v1968_v19  ;;  %v2294_v23 = vmax.f32 %v2230_v48, %v8876_v55  ;;  %v8930_v19 = vld [vmem:[#allocation2 + $0x183] sm:$0xff]  ;;  %v1287_v51 = vmax.f32 %v1222_v44, %v8717_v6  ;;  %v8971_v57 = vld [vmem:[#allocation2 + $0xac] sm:$0xff] }
 0x11e   : > { %7157 = vmatpush3.bf16.msra.mxu0 %v7154_v8  ;;  %v1863_v3 = vmax.f32 %v1799_v42, %v8915_v59  ;;  %v2420_v29 = vmax.f32 %v2356_v58, %v8876_v55  ;;  %v390_v8 = vmax.f32 %v8719_v24, %v8721_v27  ;;  %v8938_v48 = vld [vmem:[#allocation2 + $0x184] sm:$0xff] }
 0x11f   : > { %v3184_v35 = vmax.f32 %v3120_v38, %v8865_v56  ;;  %v2358_v43 = vmax.f32 %v2294_v23, %v8878_v22  ;;  %v8940_v42 = vld [vmem:[#allocation2 + $0x188] sm:$0xff]  ;;  %v1351_v23 = vmax.f32 %v1287_v51, %v8731_v39 }
 0x120   : > { %v8942_v38 = vld [vmem:[#allocation2 + $0x189] sm:$0xff]  ;;  %6808 = vmatprep.mubr.f32.mxu1 %v1863_v3  ;;  %v2484_v58 = vmax.f32 %v2420_v29, %v8878_v22  ;;  %v454_v24 = vmax.f32 %v390_v8, %v8711_v0  ;;  %v2355_v0 = vmax.f32 %v2291_v62, %v8887_v50 }
 0x121   : > { %v3248_v52 = vmax.f32 %v3184_v35, %v8874_v37  ;;  %v8948_v44 = vld [vmem:[#allocation2 + $0xa8] sm:$0xff]  ;;  %1895 = vst [vmem:[#allocation2 + $0x182] sm:$0xff] %v1863_v3  ;;  %v8951_v27 = vmax.f32 %v2358_v43, %v3408_v15  ;;  %v2033_v3 = vmax.f32 %v1969_v20, %v8779_v21  ;;  %v1415_v51 = vmax.f32 %v1351_v23, %v8829_v13 }
 0x122   : > { %v8958_v35 = vld [vmem:[#allocation2 + $0xaa] sm:$0xff]  ;;  %v8963_v5 = vmax.f32 %v2484_v58, %v3408_v15  ;;  %v518_v43 = vmax.f32 %v454_v24, %v8733_v36  ;;  %v2293_v8 = vmax.f32 %v8857_v53, %v8948_v44 }
 0x123   : > { %v8960_v29 = vld [vmem:[#allocation2 + $0xab] sm:$0xff]  ;;  %v3312_v4 = vmax.f32 %v3248_v52, %v8876_v55  ;;  %v2097_v56 = vmax.f32 %v2033_v3, %v8781_v32  ;;  %v2231_v55 = vmax.f32 %v8956_v54, %v8948_v44  ;;  %v1479_v13 = vmax.f32 %v1415_v51, %v8831_v31  ;;  %v5082_v32 = vld [vmem:[%s10494_s1 + $0x78] sm:$0xff] }
 0x124   : > { %v2041_v21 = vmax.f32 %v8960_v29, %v8958_v35  ;;  %v582_v36 = vmax.f32 %v518_v43, %v8735_v34  ;;  %v2419_v52 = vmax.f32 %v2355_v0, %v8889_v49  ;;  %v2357_v53 = vmax.f32 %v2293_v8, %v8956_v54  ;;  %v8998_v3 = vld [vmem:[#allocation2 + $0x6a] sm:$0xff] }
 0x125   : > { %v3376_v10 = vmax.f32 %v3312_v4, %v8878_v22  ;;  %v5081_v22 = vld [vmem:[%s10494_s1 + $0x70] sm:$0xff]  ;;  %v2161_v20 = vmax.f32 %v2097_v56, %v8784_v26  ;;  %v2295_v23 = vmax.f32 %v2231_v55, %v8958_v35  ;;  %v1543_v34 = vmax.f32 %v1479_v13, %v8835_v7  ;;  %v9013_v55 = vld [vmem:[#allocation2 + $0x1b9] sm:$0xff] }
 0x126   : > { %v8992_v31 = vmax.f32 %v2041_v21, %v8971_v57  ;;  %v647_v24 = vmax.f32 %v582_v36, %v8923_v11  ;;  %v2483_v62 = vmax.f32 %v2419_v52, %v8948_v44  ;;  %v2421_v4 = vmax.f32 %v2357_v53, %v8958_v35  ;;  %v9000_v51 = vld [vmem:[#allocation2 + $0x6b] sm:$0xff] }
 0x127   : > { %v3440_v58 = vmax.f32 %v3376_v10, %v3408_v15  ;;  %v9002_v10 = vld [vmem:[#allocation2 + $0x6c] sm:$0xff]  ;;  %v2225_v26 = vmax.f32 %v2161_v20, %v8885_v46  ;;  %v2359_v56 = vmax.f32 %v2295_v23, %v8960_v29  ;;  %v391_v7 = vmax.f32 %v8717_v6, %v8731_v39 }
 0x128   : > { %v7114_v15 = vpack.c.bf16 %v5082_v32, %v5081_v22  ;;  %v1608_v11 = vmax.f32 %v1543_v34, %v8872_v45  ;;  %v711_v43 = vmax.f32 %v647_v24, %v679_v63  ;;  %v2547_v0 = vmax.f32 %v2483_v62, %v8956_v54  ;;  %v9024_v36 = vld [vmem:[#allocation2 + $0xb0] sm:$0xff]  ;;  %v9043_v62 = vld [vmem:[#allocation2 + $0x1bb] sm:$0xff] }
 0x129   : > { %6933 = vmatmul.mubr.f32.gmra.mrb[4].mxu0 %v3440_v58  ;;  %3472 = vst [vmem:[#allocation2 + $0x6a] sm:$0xff] %v3440_v58  ;;  %v9011_v8 = vmax.f32 %v2421_v4, %v8960_v29  ;;  %v2289_v21 = vmax.f32 %v2225_v26, %v8896_v33  ;;  %v9017_v13 = vmax.f32 %v2359_v56, %v8971_v57  ;;  %v9031_v58 = vld [vmem:[#allocation2 + $0x1ba] sm:$0xff]  ;;  %v808_v34 = vld [vmem:[#allocation2 + $0x18b] sm:$0xff] }
 0x12a   : > { %v10622_v6 = vmax.f32 %v8906_v9, %v8872_v45  ;;  %7115 = vmatprep.subr.bf16.mxu1 %v7114_v15  ;;  %v1970_v63 = vmax.f32 %v8786_v1, %v8788_v47  ;;  %v1672_v52 = vmax.f32 %v1608_v11, %v9013_v55  ;;  %v775_v53 = vmax.f32 %v711_v43, %v8928_v60  ;;  %v9049_v26 = vld [vmem:[#allocation2 + $0xb1] sm:$0xff]  ;;  %v9056_v11 = vld [vmem:[#allocation2 + $0x1bc] sm:$0xff] }
 0x12b   : > { %v2611_v22 = vmax.f32 %v2547_v0, %v8958_v35  ;;  %v2549_v32 = vmax.f32 %v9011_v8, %v8971_v57  ;;  %7117 = vmatpush3.bf16.msra.mxu1 %v7114_v15  ;;  %v2353_v45 = vmax.f32 %v2289_v21, %v8880_v18  ;;  %v2612_v47 = vmax.f32 %v8963_v5, %v8998_v3  ;;  %v872_v15 = vld [vmem:[#allocation2 + $0x18c] sm:$0xff] }
 0x12c   : > { %v904_v39 = vmax.f32 %v10622_v6, %v391_v7  ;;  %v2034_v1 = vmax.f32 %v1970_v63, %v8846_v2  ;;  %v1736_v20 = vmax.f32 %v1672_v52, %v9031_v58  ;;  %v839_v60 = vmax.f32 %v775_v53, %v8930_v19  ;;  %v9061_v0 = vld [vmem:[#allocation2 + $0xb2] sm:$0xff]  ;;  %v1064_v63 = vld [vmem:[#allocation2 + $0x1a2] sm:$0xff] }
 0x12d   : > { %v2675_v23 = vmax.f32 %v2611_v22, %v8960_v29  ;;  %v2168_v24 = vmax.f32 %v8934_v14, %v9024_v36  ;;  %v2417_v18 = vmax.f32 %v2353_v45, %v8887_v50  ;;  %v2676_v4 = vmax.f32 %v2612_v47, %v9000_v51  ;;  %v9063_v21 = vld [vmem:[#allocation2 + $0xb3] sm:$0xff] }
 0x12e   : > { %v968_v9 = vmax.f32 %v904_v39, %v8940_v42  ;;  %v2098_v2 = vmax.f32 %v2034_v1, %v8848_v17  ;;  %v1800_v19 = vmax.f32 %v1736_v20, %v9043_v62  ;;  %v903_v56 = vmax.f32 %v839_v60, %v8938_v48  ;;  %v10623_v6 = vld [vmem:[#allocation42_spill] sm:$0xff]  ;;  %v10625_v1 = vld [vmem:[#allocation43_spill] sm:$0xff] }
 0x12f   : > { %v2739_v7 = vmax.f32 %v2675_v23, %v8971_v57  ;;  %v2486_v14 = vmax.f32 %v8951_v27, %v9024_v36  ;;  %v2481_v50 = vmax.f32 %v2417_v18, %v8889_v49  ;;  %v2740_v43 = vmax.f32 %v2676_v4, %v9002_v10  ;;  %v10626_v18 = vld [vmem:[#allocation38_spill] sm:$0xff] }
 0x130   : > { %v1032_v42 = vmax.f32 %v968_v9, %v8942_v38  ;;  %v2162_v17 = vmax.f32 %v2098_v2, %v8850_v28  ;;  %v1864_v48 = vmax.f32 %v1800_v19, %v9056_v11  ;;  %v967_v39 = vmax.f32 %v903_v56, %v10623_v6  ;;  %v9074_v9 = vld [vmem:[#allocation2 + $0xb4] sm:$0xff] }
 0x131   : > { %v2232_v27 = vmax.f32 %v2168_v24, %v9049_v26  ;;  %v2550_v52 = vmax.f32 %v2486_v14, %v9049_v26  ;;  %v10624_v49 = vmax.f32 %v8844_v41, %v8827_v16  ;;  %v2804_v45 = vmax.f32 %v2740_v43, %v9024_v36  ;;  %v9100_v43 = vld [vmem:[#allocation2 + $0xc0] sm:$0xff] }
 0x132   : > { %v1096_v38 = vmax.f32 %v1032_v42, %v808_v34  ;;  %v2226_v22 = vmax.f32 %v2162_v17, %v8898_v30  ;;  %6809 = vmatmul.mubr.f32.gmra.mrb[28].mxu1 %v1864_v48  ;;  %v1031_v47 = vmax.f32 %v967_v39, %v10625_v1  ;;  %1896 = vst [vmem:[#allocation2 + $0x18a] sm:$0xff] %v1864_v48  ;;  %v2323_v17 = vld [vmem:[#allocation2 + $0x7a] sm:$0xff]  ;;  %v10627_v48 = vld [vmem:[#allocation44_spill] sm:$0xff] }
 0x133   : > { %v3121_v53 = vmax.f32 %v10624_v49, %v2481_v50  ;;  %v2296_v20 = vmax.f32 %v2232_v27, %v9061_v0  ;;  %v2614_v60 = vmax.f32 %v2550_v52, %v9061_v0  ;;  %v2042_v23 = vmax.f32 %v9063_v21, %v9061_v0 }
 0x134   : > { %v1160_v28 = vmax.f32 %v1096_v38, %v872_v15  ;;  %v2290_v34 = vmax.f32 %v2226_v22, %v8900_v12  ;;  %v2868_v24 = vmax.f32 %v2804_v45, %v9049_v26  ;;  %v1095_v42 = vmax.f32 %v1031_v47, %v10626_v18  ;;  %v9095_v15 = vld [vmem:[#allocation2] sm:$0xff]  ;;  %v10628_v45 = vld [vmem:[#allocation45_spill] sm:$0xff] }
 0x135   : > { %v3185_v16 = vmax.f32 %v3121_v53, %v8948_v44  ;;  %v9086_v2 = vmax.f32 %v2296_v20, %v9063_v21  ;;  %v9089_v4 = vmax.f32 %v2614_v60, %v9063_v21  ;;  %v9092_v19 = vmax.f32 %v2042_v23, %v9074_v9  ;;  %v2387_v22 = vld [vmem:[#allocation2 + $0x7b] sm:$0xff] }
 0x136   : > { %v1224_v41 = vmax.f32 %v1160_v28, %v1064_v63  ;;  %v2354_v50 = vmax.f32 %v2290_v34, %v8998_v3  ;;  %v2932_v38 = vmax.f32 %v2868_v24, %v9061_v0  ;;  %v1159_v6 = vmax.f32 %v1095_v42, %v10627_v48  ;;  %v9113_v28 = vld [vmem:[#allocation2 + $0x78] sm:$0xff]  ;;  %v9150_v48 = vld [vmem:[#allocation2 + $0x81] sm:$0xff] }
 0x137   : > { %v3249_v56 = vmax.f32 %v3185_v16, %v8956_v54  ;;  %v2424_v39 = vmax.f32 %v9086_v2, %v9074_v9  ;;  %v2742_v63 = vmax.f32 %v9089_v4, %v9074_v9  ;;  %v1971_v27 = vmax.f32 %v8885_v46, %v8896_v33  ;;  %v9121_v33 = vld [vmem:[#allocation2 + $0xc1] sm:$0xff]  ;;  %v9129_v23 = vld [vmem:[#allocation2 + $0x79] sm:$0xff] }
 0x138   : > { %v1289_v14 = vmax.f32 %v1224_v41, %v9095_v15  ;;  %v2418_v49 = vmax.f32 %v2354_v50, %v9000_v51  ;;  %v2996_v53 = vmax.f32 %v2932_v38, %v9063_v21  ;;  %v1223_v1 = vmax.f32 %v1159_v6, %v10628_v45  ;;  %v9135_v41 = vld [vmem:[#allocation2 + $0xc2] sm:$0xff] }
 0x139   : > { %v3313_v52 = vmax.f32 %v3249_v56, %v8958_v35  ;;  %v2803_v47 = vmax.f32 %v2739_v7, %v1971_v27  ;;  %v2613_v20 = vmax.f32 %v2549_v32, %v2323_v17  ;;  %v2169_v46 = vmax.f32 %v8992_v31, %v9100_v43  ;;  %v2451_v7 = vld [vmem:[#allocation2 + $0x7c] sm:$0xff]  ;;  %v1642_v27 = vld [vmem:[#allocation2 + $0x1d1] sm:$0xff] }
 0x13a   : > { %v1353_v3 = vmax.f32 %v1289_v14, %v9013_v55  ;;  %v2482_v55 = vmax.f32 %v2418_v49, %v9002_v10  ;;  %v9127_v60 = vmax.f32 %v2996_v53, %v9074_v9  ;;  %v1288_v8 = vmax.f32 %v1223_v1, %v9095_v15  ;;  %v9148_v38 = vld [vmem:[#allocation2 + $0x80] sm:$0xff]  ;;  %v6494_v53 = vld [vmem:[%s10494_s1 + $0x1a8] sm:$0xff] }
 0x13b   : > { %v3377_v35 = vmax.f32 %v3313_v52, %v8960_v29  ;;  %v2867_v32 = vmax.f32 %v2803_v47, %v9113_v28  ;;  %v2677_v16 = vmax.f32 %v2613_v20, %v2387_v22  ;;  %v2487_v31 = vmax.f32 %v9017_v13, %v9100_v43  ;;  %v9137_v29 = vld [vmem:[#allocation2 + $0xc3] sm:$0xff]  ;;  %v1706_v20 = vld [vmem:[#allocation2 + $0x1d2] sm:$0xff] }
 0x13c   : > { %v1417_v51 = vmax.f32 %v1353_v3, %v9031_v58  ;;  %v3122_v34 = vmax.f32 %v8963_v5, %v2482_v55  ;;  %v2233_v24 = vmax.f32 %v2169_v46, %v9121_v33  ;;  %v1352_v42 = vmax.f32 %v1288_v8, %v8852_v61  ;;  %v9146_v13 = vld [vmem:[#allocation2 + $0xc4] sm:$0xff] }
 0x13d   : > { %v3441_v10 = vmax.f32 %v3377_v35, %v8971_v57  ;;  %v2931_v56 = vmax.f32 %v2867_v32, %v9129_v23  ;;  %v2741_v14 = vmax.f32 %v2677_v16, %v2451_v7  ;;  %v2551_v50 = vmax.f32 %v2487_v31, %v9121_v33  ;;  %v9179_v55 = vld [vmem:[#allocation2 + $0xc8] sm:$0xff] }
 0x13e   : > { %v1481_v58 = vmax.f32 %v1417_v51, %v9043_v62  ;;  %v3186_v5 = vmax.f32 %v3122_v34, %v9024_v36  ;;  %v2297_v62 = vmax.f32 %v2233_v24, %v9135_v41  ;;  %v2043_v61 = vmax.f32 %v9137_v29, %v9135_v41  ;;  %v1641_v24 = vld [vmem:[#allocation2 + $0x1c9] sm:$0xff] }
 0x13f   : > { %6935 = vmatprep.mubr.f32.mxu0 %v3441_v10  ;;  %3473 = vst [vmem:[#allocation2 + $0x7a] sm:$0xff] %v3441_v10  ;;  %v1416_v6 = vmax.f32 %v1352_v42, %v8854_v40  ;;  %v2995_v52 = vmax.f32 %v2931_v56, %v2323_v17  ;;  %v2805_v3 = vmax.f32 %v2741_v14, %v9100_v43 }
 0x140   : > { %v1545_v57 = vmax.f32 %v1481_v58, %v9056_v11  ;;  %v2615_v49 = vmax.f32 %v2551_v50, %v9135_v41  ;;  %v6493_v11 = vld [vmem:[%s10494_s1 + $0x1a0] sm:$0xff]  ;;  %v3250_v1 = vmax.f32 %v3186_v5, %v9049_v26  ;;  %v9169_v40 = vmax.f32 %v2297_v62, %v9137_v29  ;;  %v1770_v58 = vld [vmem:[#allocation2 + $0x1d3] sm:$0xff]  ;;  %v9193_v50 = vld [vmem:[#allocation2 + $0xc9] sm:$0xff] }
 0x141   : > { %v9172_v17 = vmax.f32 %v2043_v61, %v9146_v13  ;;  %v1480_v47 = vmax.f32 %v1416_v6, %v8902_v25  ;;  %v3059_v46 = vmax.f32 %v2995_v52, %v2387_v22  ;;  %v2869_v35 = vmax.f32 %v2805_v3, %v9121_v33  ;;  %v1705_v62 = vld [vmem:[#allocation2 + $0x1ca] sm:$0xff]  ;;  %v9211_v3 = vld [vmem:[#allocation2 + $0x82] sm:$0xff] }
 0x142   : > { %v1610_v45 = vmax.f32 %v1545_v57, %v9095_v15  ;;  %v9177_v51 = vmax.f32 %v2615_v49, %v9137_v29  ;;  %v3314_v32 = vmax.f32 %v3250_v1, %v9061_v0  ;;  %v2425_v16 = vmax.f32 %v9169_v40, %v9146_v13  ;;  %v3284_v61 = vld [vmem:[#allocation2 + $0xca] sm:$0xff]  ;;  %v9258_v40 = vld [vmem:[#allocation2 + $0xdc] sm:$0xff] }
 0x143   : > { %v7158_v31 = vpack.c.bf16 %v6494_v53, %v6493_v11  ;;  %v1544_v10 = vmax.f32 %v1480_v47, %v8915_v59  ;;  %v3123_v25 = vmax.f32 %v3059_v46, %v2451_v7  ;;  %v2933_v22 = vmax.f32 %v2869_v35, %v9135_v41  ;;  %v1834_v7 = vld [vmem:[#allocation2 + $0x1d4] sm:$0xff]  ;;  %v3348_v6 = vld [vmem:[#allocation2 + $0xcb] sm:$0xff]  ;;  %v9213_v49 = vld [vmem:[#allocation2 + $0x83] sm:$0xff] }
 0x144   : > { %v1674_v8 = vmax.f32 %v1610_v45, %v1642_v27  ;;  %v2743_v34 = vmax.f32 %v9177_v51, %v9146_v13  ;;  %v3378_v56 = vmax.f32 %v3314_v32, %v9063_v21  ;;  %v1972_v0 = vmax.f32 %v8898_v30, %v8900_v12  ;;  %v9215_v11 = vld [vmem:[#allocation2 + $0x84] sm:$0xff]  ;;  %v3412_v45 = vld [vmem:[#allocation2 + $0xcc] sm:$0xff] }
 0x145   : > { %7159 = vmatprep.subr.bf16.mxu0 %v7158_v31  ;;  %v2170_v14 = vmax.f32 %v9092_v19, %v9179_v55  ;;  %v1609_v59 = vmax.f32 %v1544_v10, %v9095_v15  ;;  %v3187_v57 = vmax.f32 %v3123_v25, %v9100_v43  ;;  %v2997_v5 = vmax.f32 %v2933_v22, %v9137_v29  ;;  %v1833_v35 = vld [vmem:[#allocation2 + $0x1cc] sm:$0xff] }
 0x146   : > { %v1738_v42 = vmax.f32 %v1674_v8, %v1706_v20  ;;  %v2488_v21 = vmax.f32 %v2424_v39, %v9179_v55  ;;  %7161 = vmatpush3.bf16.msra.mxu0 %v7158_v31  ;;  %v3442_v12 = vmax.f32 %v3378_v56, %v9074_v9  ;;  %v3124_v19 = vmax.f32 %v9127_v60, %v1972_v0  ;;  %v1769_v60 = vld [vmem:[#allocation2 + $0x1cb] sm:$0xff] }
 0x147   : > { %v2806_v15 = vmax.f32 %v2742_v63, %v9179_v55  ;;  %v1673_v27 = vmax.f32 %v1609_v59, %v1641_v24  ;;  %v3251_v52 = vmax.f32 %v3187_v57, %v9121_v33  ;;  %v3061_v2 = vmax.f32 %v2997_v5, %v9146_v13  ;;  %v9227_v59 = vld [vmem:[#allocation2 + $0xd9] sm:$0xff] }
 0x148   : > { %v1802_v30 = vmax.f32 %v1738_v42, %v1770_v58  ;;  %v2234_v39 = vmax.f32 %v2170_v14, %v9193_v50  ;;  %6936 = vmatmul.mubr.f32.gmra.mrb[6].mxu0 %v3442_v12  ;;  %v3188_v9 = vmax.f32 %v3124_v19, %v9179_v55  ;;  %v2552_v4 = vmax.f32 %v2488_v21, %v9193_v50  ;;  %v9224_v58 = vld [vmem:[#allocation2 + $0xd8] sm:$0xff] }
 0x149   : > { %v2870_v63 = vmax.f32 %v2806_v15, %v9193_v50  ;;  %3474 = vst [vmem:[#allocation2 + $0x82] sm:$0xff] %v3442_v12  ;;  %v1737_v1 = vmax.f32 %v1673_v27, %v1705_v62  ;;  %v3315_v47 = vmax.f32 %v3251_v52, %v9135_v41  ;;  %v2044_v46 = vmax.f32 %v3348_v6, %v3284_v61  ;;  %v9229_v57 = vld [vmem:[#allocation2 + $0xdb] sm:$0xff]  ;;  %v9246_v27 = vld [vmem:[#allocation2 + $0x92] sm:$0xff] }
 0x14a   : > { %v1866_v53 = vmax.f32 %v1802_v30, %v1834_v7  ;;  %v2298_v20 = vmax.f32 %v2234_v39, %v3284_v61  ;;  %v3252_v8 = vmax.f32 %v3188_v9, %v9193_v50  ;;  %v2616_v32 = vmax.f32 %v2552_v4, %v3284_v61  ;;  %v3285_v7 = vld [vmem:[#allocation2 + $0xda] sm:$0xff]  ;;  %v9238_v30 = vld [vmem:[#allocation2 + $0x91] sm:$0xff] }
 0x14b   : > { %v2934_v31 = vmax.f32 %v2870_v63, %v3284_v61  ;;  %v1973_v10 = vmax.f32 %v9113_v28, %v9129_v23  ;;  %v1801_v25 = vmax.f32 %v1737_v1, %v1769_v60  ;;  %v3379_v22 = vmax.f32 %v3315_v47, %v9137_v29  ;;  %v9234_v62 = vld [vmem:[#allocation2 + $0xe0] sm:$0xff]  ;;  %v9236_v29 = vld [vmem:[#allocation2 + $0x90] sm:$0xff] }
 0x14c   : > { %1898 = vst [vmem:[#allocation2 + $0x1a2] sm:$0xff] %v1866_v53  ;;  %v2362_v24 = vmax.f32 %v2298_v20, %v3348_v6  ;;  %v2108_v42 = vmax.f32 %v2044_v46, %v3412_v45  ;;  %v3316_v56 = vmax.f32 %v3252_v8, %v3284_v61  ;;  %v2680_v41 = vmax.f32 %v2616_v32, %v3348_v6  ;;  %v9248_v52 = vld [vmem:[#allocation2 + $0x93] sm:$0xff]  ;;  %v10629_v63 = vld [vmem:[#allocation3_spill] sm:$0xff]  ;;  %v10630_v32 = vld [vmem:[#allocation4_spill] sm:$0xff] }
 0x14d   : > { %v2998_v0 = vmax.f32 %v2934_v31, %v3348_v6  ;;  %v3125_v14 = vmax.f32 %v3061_v2, %v1973_v10  ;;  %v1865_v5 = vmax.f32 %v1801_v25, %v1833_v35  ;;  %v3443_v21 = vmax.f32 %v3379_v22, %v9146_v13  ;;  %v9268_v47 = vld [vmem:[#allocation2 + $0xe1] sm:$0xff] }
 0x14e   : > { %v2426_v28 = vmax.f32 %v2362_v24, %v3412_v45  ;;  %v2171_v23 = vmax.f32 %v9172_v17, %v9224_v58  ;;  %v3380_v12 = vmax.f32 %v3316_v56, %v3348_v6  ;;  %v2744_v19 = vmax.f32 %v2680_v41, %v3412_v45  ;;  %v9250_v17 = vld [vmem:[#allocation2 + $0x94] sm:$0xff]  ;;  %v9280_v24 = vld [vmem:[#allocation2 + $0xe3] sm:$0xff] }
 0x14f   : > { %v9240_v15 = vmax.f32 %v2998_v0, %v3412_v45  ;;  %v2489_v61 = vmax.f32 %v2425_v16, %v9224_v58  ;;  %6811 = vmatprep.mubr.f32.mxu1 %v1865_v5  ;;  %1897 = vst [vmem:[#allocation2 + $0x19a] sm:$0xff] %v1865_v5  ;;  %6938 = vmatprep.mubr.f32.mxu0 %v3443_v21  ;;  %3475 = vst [vmem:[#allocation2 + $0x92] sm:$0xff] %v3443_v21 }
 0x150   : > { %v2807_v6 = vmax.f32 %v2743_v34, %v9224_v58  ;;  %v3189_v2 = vmax.f32 %v3125_v14, %v9224_v58  ;;  %v2235_v39 = vmax.f32 %v2171_v23, %v9227_v59  ;;  %6812 = vmatmul.mubr.f32.gmra.mrb[30].mxu1 %v1866_v53  ;;  %v3444_v16 = vmax.f32 %v3380_v12, %v3412_v45  ;;  %v9291_v23 = vld [vmem:[#allocation2 + $0xf0] sm:$0xff] }
 0x151   : > { %v2553_v60 = vmax.f32 %v2489_v61, %v9227_v59  ;;  %v2045_v9 = vmax.f32 %v9229_v57, %v3285_v7  ;;  %v1974_v4 = vmax.f32 %v9148_v38, %v9150_v48  ;;  %6846 = vmatprep.mubr.f32.mxu1 %v10629_v63  ;;  %v2172_v1 = vmax.f32 %v2108_v42, %v9234_v62  ;;  %v10631_v42 = vld [vmem:[#allocation5_spill] sm:$0xff]  ;;  %v10633_v63 = vld [vmem:[#allocation7_spill] sm:$0xff] }
 0x152   : > { %v2871_v13 = vmax.f32 %v2807_v6, %v9227_v59  ;;  %v3253_v51 = vmax.f32 %v3189_v2, %v9227_v59  ;;  %v2299_v34 = vmax.f32 %v2235_v39, %v3285_v7  ;;  %6939 = vmatmul.mubr.f32.gmra.mrb[8].mxu0 %v3444_v16  ;;  %v2490_v46 = vmax.f32 %v2426_v28, %v9234_v62  ;;  %v9289_v28 = vld [vmem:[#allocation2 + $0xe4] sm:$0xff]  ;;  %v10632_v6 = vld [vmem:[#allocation6_spill] sm:$0xff] }
 0x153   : > { %v2617_v53 = vmax.f32 %v2553_v60, %v3285_v7  ;;  %v2109_v45 = vmax.f32 %v2045_v9, %v9258_v40  ;;  %v2038_v20 = vmax.f32 %v1974_v4, %v9211_v3  ;;  %3476 = vst [vmem:[#allocation2 + $0x9a] sm:$0xff] %v3444_v16  ;;  %v2808_v8 = vmax.f32 %v2744_v19, %v9234_v62  ;;  %v3286_v3 = vld [vmem:[#allocation2 + $0xe2] sm:$0xff]  ;;  %v9304_v60 = vld [vmem:[#allocation2 + $0xf1] sm:$0xff] }
 0x154   : > { %v2935_v38 = vmax.f32 %v2871_v13, %v3285_v7  ;;  %v3317_v48 = vmax.f32 %v3253_v51, %v3285_v7  ;;  %v2363_v35 = vmax.f32 %v2299_v34, %v9229_v57  ;;  %6847 = vmatmul.mubr.f32.vlgmr.msra.gmra.mrb[0].mxu1 %v10630_v32  ;;  %v2236_v25 = vmax.f32 %v2172_v1, %v9268_v47  ;;  %v9306_v9 = vld [vmem:[#allocation2 + $0xf2] sm:$0xff] }
 0x155   : > { %v2681_v31 = vmax.f32 %v2617_v53, %v9229_v57  ;;  %v2102_v10 = vmax.f32 %v2038_v20, %v9213_v49  ;;  %v2554_v22 = vmax.f32 %v2490_v46, %v9268_v47  ;;  %6849 = vmatprep.mubr.f32.mxu1 %v10631_v42  ;;  %v2872_v14 = vmax.f32 %v2808_v8, %v9268_v47  ;;  %v9312_v13 = vld [vmem:[#allocation2 + $0xf3] sm:$0xff] }
 0x156   : > { %v2999_v56 = vmax.f32 %v2935_v38, %v9229_v57  ;;  %v3381_v41 = vmax.f32 %v3317_v48, %v9229_v57  ;;  %v2427_v0 = vmax.f32 %v2363_v35, %v9258_v40  ;;  %v2300_v5 = vmax.f32 %v2236_v25, %v3286_v3  ;;  %v6495_v51 = vld [vmem:[%s10494_s1 + $0x1b0] sm:$0xff]  ;;  %v9330_v35 = vld [vmem:[#allocation2 + $0xf8] sm:$0xff] }
 0x157   : > { %v2745_v7 = vmax.f32 %v2681_v31, %v9258_v40  ;;  %v2166_v49 = vmax.f32 %v2102_v10, %v9215_v11  ;;  %v2618_v21 = vmax.f32 %v2554_v22, %v3286_v3  ;;  %v2936_v57 = vmax.f32 %v2872_v14, %v3286_v3  ;;  %v9328_v48 = vld [vmem:[#allocation2 + $0xf4] sm:$0xff]  ;;  %v10634_v10 = vld [vmem:[#allocation8_spill] sm:$0xff] }
 0x158   : > { %v9294_v12 = vmax.f32 %v2999_v56, %v9258_v40  ;;  %v3445_v19 = vmax.f32 %v3381_v41, %v9258_v40  ;;  %v2046_v61 = vmax.f32 %v9280_v24, %v3286_v3  ;;  %6850 = vmatmul.mubr.f32.gmra.mrb[2].mxu1 %v10632_v6  ;;  %v2364_v11 = vmax.f32 %v2300_v5, %v9280_v24  ;;  %v10635_v56 = vld [vmem:[#allocation34_spill] sm:$0xff] }
 0x159   : > { %v3126_v2 = vmax.f32 %v9240_v15, %v2166_v49  ;;  %v2682_v39 = vmax.f32 %v2618_v21, %v9280_v24  ;;  %v1975_v16 = vmax.f32 %v9236_v29, %v9238_v30  ;;  %v3000_v40 = vmax.f32 %v2936_v57, %v9280_v24  ;;  %6852 = vmatprep.mubr.f32.mxu1 %v10633_v63  ;;  %v6496_v29 = vld [vmem:[%s10494_s1 + $0x1b8] sm:$0xff] }
 0x15a   : > { %6941 = vmatprep.mubr.f32.mxu0 %v3445_v19  ;;  %v2110_v4 = vmax.f32 %v2046_v61, %v9289_v28  ;;  %v2173_v15 = vmax.f32 %v2109_v45, %v9291_v23  ;;  %3477 = vst [vmem:[#allocation2 + $0xaa] sm:$0xff] %v3445_v19  ;;  %v2428_v34 = vmax.f32 %v2364_v11, %v9289_v28  ;;  %v9351_v61 = vld [vmem:[#allocation2 + $0xf9] sm:$0xff] }
 0x15b   : > { %v3190_v30 = vmax.f32 %v3126_v2, %v9234_v62  ;;  %v2746_v1 = vmax.f32 %v2682_v39, %v9289_v28  ;;  %v2039_v53 = vmax.f32 %v1975_v16, %v9246_v27  ;;  %v3064_v45 = vmax.f32 %v3000_v40, %v9289_v28  ;;  %v10637_v2 = vld [vmem:[#allocation10_spill] sm:$0xff] }
 0x15c   : > { %v2491_v20 = vmax.f32 %v2427_v0, %v9291_v23  ;;  %v2809_v46 = vmax.f32 %v2745_v7, %v9291_v23  ;;  %v2237_v38 = vmax.f32 %v2173_v15, %v9304_v60  ;;  %v2047_v31 = vmax.f32 %v9312_v13, %v9306_v9  ;;  %6853 = vmatmul.mubr.f32.gmra.mrb[4].mxu1 %v10634_v10  ;;  %v10636_v0 = vld [vmem:[#allocation9_spill] sm:$0xff]  ;;  %v3352_v63 = vld [vmem:[#allocation2 + $0xfb] sm:$0xff] }
 0x15d   : > { %v3254_v8 = vmax.f32 %v3190_v30, %v9268_v47  ;;  %v2103_v32 = vmax.f32 %v2039_v53, %v9248_v52  ;;  %v7162_v27 = vpack.c.bf16 %v6496_v29, %v6495_v51  ;;  %v1976_v41 = vmax.f32 %v10635_v56, %v8874_v37  ;;  %6855 = vmatprep.mubr.f32.mxu1 %v10636_v0  ;;  %v10638_v15 = vld [vmem:[#allocation11_spill] sm:$0xff]  ;;  %v9367_v30 = vld [vmem:[#allocation2 + $0x108] sm:$0xff] }
 0x15e   : > { %v2555_v25 = vmax.f32 %v2491_v20, %v9304_v60  ;;  %v2873_v22 = vmax.f32 %v2809_v46, %v9304_v60  ;;  %v2301_v42 = vmax.f32 %v2237_v38, %v9306_v9  ;;  %v9345_v7 = vmax.f32 %v2047_v31, %v9328_v48  ;;  %v3416_v20 = vld [vmem:[#allocation2 + $0xfc] sm:$0xff]  ;;  %v9380_v0 = vld [vmem:[#allocation2 + $0x109] sm:$0xff] }
 0x15f   : > { %v3318_v14 = vmax.f32 %v3254_v8, %v3286_v3  ;;  %v2167_v52 = vmax.f32 %v2103_v32, %v9250_v17  ;;  %7163 = vmatprep.subr.bf16.mxu0 %v7162_v27  ;;  %v2174_v49 = vmax.f32 %v2110_v4, %v9330_v35  ;;  %v3128_v57 = vmax.f32 %v3064_v45, %v1976_v41  ;;  %v3288_v4 = vld [vmem:[#allocation2 + $0xfa] sm:$0xff] }
 0x160   : > { %v2619_v5 = vmax.f32 %v2555_v25, %v9306_v9  ;;  %v2937_v21 = vmax.f32 %v2873_v22, %v9306_v9  ;;  %v2365_v19 = vmax.f32 %v2301_v42, %v9312_v13  ;;  %7165 = vmatpush3.bf16.msra.mxu0 %v7162_v27  ;;  %v2492_v3 = vmax.f32 %v2428_v34, %v9330_v35  ;;  %v10639_v25 = vld [vmem:[#allocation12_spill] sm:$0xff] }
 0x161   : > { %v3382_v37 = vmax.f32 %v3318_v14, %v9280_v24  ;;  %v3127_v17 = vmax.f32 %v9294_v12, %v2167_v52  ;;  %v2810_v6 = vmax.f32 %v2746_v1, %v9330_v35  ;;  %6856 = vmatmul.mubr.f32.gmra.mrb[6].mxu1 %v10637_v2  ;;  %v3192_v40 = vmax.f32 %v3128_v57, %v9330_v35  ;;  %v10640_v14 = vld [vmem:[#allocation13_spill] sm:$0xff] }
 0x162   : > { %v2683_v11 = vmax.f32 %v2619_v5, %v9312_v13  ;;  %v3001_v39 = vmax.f32 %v2937_v21, %v9312_v13  ;;  %v2429_v16 = vmax.f32 %v2365_v19, %v9328_v48  ;;  %6858 = vmatprep.mubr.f32.mxu1 %v10638_v15  ;;  %v2238_v51 = vmax.f32 %v2174_v49, %v9351_v61 }
 0x163   : > { %v3446_v24 = vmax.f32 %v3382_v37, %v9289_v28  ;;  %v3191_v12 = vmax.f32 %v3127_v17, %v9291_v23  ;;  %v2556_v29 = vmax.f32 %v2492_v3, %v9351_v61  ;;  %v2874_v53 = vmax.f32 %v2810_v6, %v9351_v61  ;;  %v9386_v37 = vld [vmem:[#allocation2 + $0x110] sm:$0xff] }
 0x164   : > { %v2747_v34 = vmax.f32 %v2683_v11, %v9328_v48  ;;  %v3065_v1 = vmax.f32 %v3001_v39, %v9328_v48  ;;  %v3256_v45 = vmax.f32 %v3192_v40, %v9351_v61  ;;  %v2302_v46 = vmax.f32 %v2238_v51, %v3288_v4  ;;  %v9390_v11 = vld [vmem:[#allocation2 + $0x10c] sm:$0xff]  ;;  %v10641_v39 = vld [vmem:[#allocation14_spill] sm:$0xff] }
 0x165   : > { %6942 = vmatmul.mubr.f32.gmra.mrb[10].mxu0 %v3446_v24  ;;  %v3255_v28 = vmax.f32 %v3191_v12, %v9304_v60  ;;  %v2620_v38 = vmax.f32 %v2556_v29, %v3288_v4  ;;  %v2048_v8 = vmax.f32 %v3352_v63, %v3288_v4  ;;  %3478 = vst [vmem:[#allocation2 + $0xb2] sm:$0xff] %v3446_v24  ;;  %v9401_v29 = vld [vmem:[#allocation2 + $0x111] sm:$0xff] }
 0x166   : > { %v2938_v32 = vmax.f32 %v2874_v53, %v3288_v4  ;;  %v3320_v31 = vmax.f32 %v3256_v45, %v3288_v4  ;;  %v1977_v27 = vmax.f32 %v8948_v44, %v8956_v54  ;;  %v2175_v10 = vmax.f32 %v9345_v7, %v9367_v30  ;;  %6859 = vmatmul.mubr.f32.gmra.mrb[8].mxu1 %v10639_v25  ;;  %v3289_v54 = vld [vmem:[#allocation2 + $0x10a] sm:$0xff] }
 0x167   : > { %v3319_v22 = vmax.f32 %v3255_v28, %v9306_v9  ;;  %v2366_v42 = vmax.f32 %v2302_v46, %v3352_v63  ;;  %v2684_v56 = vmax.f32 %v2620_v38, %v3352_v63  ;;  %v2112_v41 = vmax.f32 %v2048_v8, %v3416_v20  ;;  %6861 = vmatprep.mubr.f32.mxu1 %v10640_v14  ;;  %v3353_v44 = vld [vmem:[#allocation2 + $0x10b] sm:$0xff] }
 0x168   : > { %v3002_v52 = vmax.f32 %v2938_v32, %v3352_v63  ;;  %v3384_v49 = vmax.f32 %v3320_v31, %v3352_v63  ;;  %v3129_v5 = vmax.f32 %v3065_v1, %v1977_v27  ;;  %v2493_v21 = vmax.f32 %v2429_v16, %v9367_v30  ;;  %v10642_v63 = vld [vmem:[#allocation15_spill] sm:$0xff]  ;;  %v3290_v32 = vld [vmem:[#allocation2 + $0x112] sm:$0xff]  ;;  %v10643_v27 = vld [vmem:[#allocation16_spill] sm:$0xff] }
 0x169   : > { %v3383_v7 = vmax.f32 %v3319_v22, %v9312_v13  ;;  %v2430_v19 = vmax.f32 %v2366_v42, %v3416_v20  ;;  %v2748_v57 = vmax.f32 %v2684_v56, %v3416_v20  ;;  %v2811_v9 = vmax.f32 %v2747_v34, %v9367_v30  ;;  %v3354_v31 = vld [vmem:[#allocation2 + $0x113] sm:$0xff]  ;;  %v9412_v56 = vld [vmem:[#allocation2 + $0x120] sm:$0xff] }
 0x16a   : > { %v3066_v17 = vmax.f32 %v3002_v52, %v3416_v20  ;;  %v3448_v3 = vmax.f32 %v3384_v49, %v3416_v20  ;;  %v3193_v6 = vmax.f32 %v3129_v5, %v9367_v30  ;;  %v2239_v2 = vmax.f32 %v2175_v10, %v9380_v0  ;;  %6862 = vmatmul.mubr.f32.gmra.mrb[10].mxu1 %v10641_v39  ;;  %v10645_v39 = vld [vmem:[#allocation18_spill] sm:$0xff] }
 0x16b   : > { %v3447_v16 = vmax.f32 %v3383_v7, %v9328_v48  ;;  %v2557_v13 = vmax.f32 %v2493_v21, %v9380_v0  ;;  %v2875_v40 = vmax.f32 %v2811_v9, %v9380_v0  ;;  %v2049_v4 = vmax.f32 %v3353_v44, %v3289_v54  ;;  %6864 = vmatprep.mubr.f32.mxu1 %v10642_v63  ;;  %v3418_v21 = vld [vmem:[#allocation2 + $0x114] sm:$0xff]  ;;  %v6497_v63 = vld [vmem:[%s10494_s1 + $0x1c0] sm:$0xff] }
 0x16c   : > { %v3257_v15 = vmax.f32 %v3193_v6, %v9380_v0  ;;  %v2303_v24 = vmax.f32 %v2239_v2, %v3289_v54  ;;  %v1978_v12 = vmax.f32 %v9024_v36, %v9049_v26  ;;  %v2176_v51 = vmax.f32 %v2112_v41, %v9386_v37  ;;  %3480 = vst [vmem:[#allocation2 + $0xca] sm:$0xff] %v3448_v3  ;;  %v10644_v41 = vld [vmem:[#allocation17_spill] sm:$0xff]  ;;  %v9422_v6 = vld [vmem:[#allocation2 + $0x121] sm:$0xff] }
 0x16d   : > { %6944 = vmatprep.mubr.f32.mxu0 %v3447_v16  ;;  %v2621_v48 = vmax.f32 %v2557_v13, %v3289_v54  ;;  %v2939_v34 = vmax.f32 %v2875_v40, %v3289_v54  ;;  %v2113_v1 = vmax.f32 %v2049_v4, %v9390_v11  ;;  %v2494_v53 = vmax.f32 %v2430_v19, %v9386_v37  ;;  %v3291_v2 = vld [vmem:[#allocation2 + $0x122] sm:$0xff] }
 0x16e   : > { %3479 = vst [vmem:[#allocation2 + $0xc2] sm:$0xff] %v3447_v16  ;;  %6945 = vmatmul.mubr.f32.gmra.mrb[12].mxu0 %v3448_v3  ;;  %v3321_v45 = vmax.f32 %v3257_v15, %v3289_v54  ;;  %v2367_v20 = vmax.f32 %v2303_v24, %v3353_v44  ;;  %v3130_v28 = vmax.f32 %v3066_v17, %v1978_v12  ;;  %v3355_v4 = vld [vmem:[#allocation2 + $0x123] sm:$0xff] }
 0x16f   : > { %v2812_v46 = vmax.f32 %v2748_v57, %v9386_v37  ;;  %v2685_v36 = vmax.f32 %v2621_v48, %v3353_v44  ;;  %v3003_v26 = vmax.f32 %v2939_v34, %v3353_v44  ;;  %v2240_v38 = vmax.f32 %v2176_v51, %v9401_v29  ;;  %6865 = vmatmul.mubr.f32.gmra.mrb[12].mxu1 %v10643_v27  ;;  %v10646_v51 = vld [vmem:[#allocation19_spill] sm:$0xff] }
 0x170   : > { %v2558_v8 = vmax.f32 %v2494_v53, %v9401_v29  ;;  %v3385_v10 = vmax.f32 %v3321_v45, %v3353_v44  ;;  %v2431_v25 = vmax.f32 %v2367_v20, %v9390_v11  ;;  %v3194_v22 = vmax.f32 %v3130_v28, %v9386_v37  ;;  %6867 = vmatprep.mubr.f32.mxu1 %v10644_v41  ;;  %v9436_v45 = vld [vmem:[#allocation2 + $0x124] sm:$0xff] }
 0x171   : > { %v2876_v42 = vmax.f32 %v2812_v46, %v9401_v29  ;;  %v2749_v14 = vmax.f32 %v2685_v36, %v9390_v11  ;;  %v3067_v52 = vmax.f32 %v3003_v26, %v9390_v11  ;;  %v2304_v49 = vmax.f32 %v2240_v38, %v3290_v32  ;;  %v9438_v20 = vld [vmem:[#allocation2 + $0x128] sm:$0xff] }
 0x172   : > { %v2622_v5 = vmax.f32 %v2558_v8, %v3290_v32  ;;  %v3449_v54 = vmax.f32 %v3385_v10, %v9390_v11  ;;  %v3258_v44 = vmax.f32 %v3194_v22, %v9401_v29  ;;  %v2050_v19 = vmax.f32 %v3354_v31, %v3290_v32  ;;  %v10647_v38 = vld [vmem:[#allocation20_spill] sm:$0xff] }
 0x173   : > { %v2940_v7 = vmax.f32 %v2876_v42, %v3290_v32  ;;  %v2368_v57 = vmax.f32 %v2304_v49, %v3354_v31  ;;  %v1979_v17 = vmax.f32 %v9100_v43, %v9121_v33  ;;  %v2177_v3 = vmax.f32 %v2113_v1, %v9412_v56  ;;  %6868 = vmatmul.mubr.f32.gmra.mrb[14].mxu1 %v10645_v39  ;;  %v6498_v43 = vld [vmem:[%s10494_s1 + $0x1c8] sm:$0xff]  ;;  %v9458_v39 = vld [vmem:[#allocation2 + $0x138] sm:$0xff] }
 0x174   : > { %v2686_v9 = vmax.f32 %v2622_v5, %v3354_v31  ;;  %6947 = vmatprep.mubr.f32.mxu0 %v3449_v54  ;;  %v3322_v16 = vmax.f32 %v3258_v44, %v3290_v32  ;;  %v2114_v11 = vmax.f32 %v2050_v19, %v3418_v21  ;;  %v2495_v40 = vmax.f32 %v2431_v25, %v9412_v56  ;;  %v9445_v10 = vld [vmem:[#allocation2 + $0x129] sm:$0xff] }
 0x175   : > { %v3004_v13 = vmax.f32 %v2940_v7, %v3354_v31  ;;  %3481 = vst [vmem:[#allocation2 + $0xda] sm:$0xff] %v3449_v54  ;;  %v2432_v33 = vmax.f32 %v2368_v57, %v3418_v21  ;;  %v3131_v24 = vmax.f32 %v3067_v52, %v1979_v17  ;;  %v2813_v12 = vmax.f32 %v2749_v14, %v9412_v56  ;;  %v10648_v25 = vld [vmem:[#allocation21_spill] sm:$0xff] }
 0x176   : > { %v2750_v15 = vmax.f32 %v2686_v9, %v3418_v21  ;;  %6870 = vmatprep.mubr.f32.mxu1 %v10646_v51  ;;  %v3386_v48 = vmax.f32 %v3322_v16, %v3354_v31  ;;  %v2241_v1 = vmax.f32 %v2177_v3, %v9422_v6  ;;  %v2559_v53 = vmax.f32 %v2495_v40, %v9422_v6  ;;  %v3292_v7 = vld [vmem:[#allocation2 + $0x12a] sm:$0xff]  ;;  %v10649_v16 = vld [vmem:[#allocation22_spill] sm:$0xff] }
 0x177   : > { %v3068_v34 = vmax.f32 %v3004_v13, %v3418_v21  ;;  %v3195_v28 = vmax.f32 %v3131_v24, %v9412_v56  ;;  %v2877_v46 = vmax.f32 %v2813_v12, %v9422_v6  ;;  %v2051_v36 = vmax.f32 %v3355_v4, %v3291_v2  ;;  %6871 = vmatmul.mubr.f32.gmra.mrb[16].mxu1 %v10647_v38  ;;  %v3356_v19 = vld [vmem:[#allocation2 + $0x12b] sm:$0xff]  ;;  %v3357_v38 = vld [vmem:[#allocation2 + $0x13b] sm:$0xff] }
 0x178   : > { %v7166_v26 = vpack.c.bf16 %v6498_v43, %v6497_v63  ;;  %v3450_v8 = vmax.f32 %v3386_v48, %v3418_v21  ;;  %v2305_v32 = vmax.f32 %v2241_v1, %v3291_v2  ;;  %v2623_v31 = vmax.f32 %v2559_v53, %v3291_v2  ;;  %6873 = vmatprep.mubr.f32.mxu1 %v10648_v25  ;;  %v3420_v63 = vld [vmem:[#allocation2 + $0x12c] sm:$0xff]  ;;  %v10650_v43 = vld [vmem:[#allocation23_spill] sm:$0xff] }
 0x179   : > { %v1980_v27 = vmax.f32 %v9179_v55, %v9193_v50  ;;  %v3259_v22 = vmax.f32 %v3195_v28, %v9422_v6  ;;  %v2941_v42 = vmax.f32 %v2877_v46, %v3291_v2  ;;  %v2115_v41 = vmax.f32 %v2051_v36, %v9436_v45  ;;  %v9469_v1 = vld [vmem:[#allocation2 + $0x139] sm:$0xff] }
 0x17a   : > { %7167 = vmatprep.subr.bf16.mxu0 %v7166_v26  ;;  %v2178_v14 = vmax.f32 %v2114_v11, %v9438_v20  ;;  %6948 = vmatmul.mubr.f32.gmra.mrb[14].mxu0 %v3450_v8  ;;  %v2369_v52 = vmax.f32 %v2305_v32, %v3355_v4  ;;  %v2687_v49 = vmax.f32 %v2623_v31, %v3355_v4 }
 0x17b   : > { %v3132_v5 = vmax.f32 %v3068_v34, %v1980_v27  ;;  %v2496_v21 = vmax.f32 %v2432_v33, %v9438_v20  ;;  %3482 = vst [vmem:[#allocation2 + $0xe2] sm:$0xff] %v3450_v8  ;;  %v3323_v55 = vmax.f32 %v3259_v22, %v3291_v2  ;;  %v3005_v50 = vmax.f32 %v2941_v42, %v3355_v4  ;;  %v10651_v8 = vld [vmem:[#allocation24_spill] sm:$0xff]  ;;  %v3421_v42 = vld [vmem:[#allocation2 + $0x13c] sm:$0xff] }
 0x17c   : > { %v2814_v54 = vmax.f32 %v2750_v15, %v9438_v20  ;;  %v2242_v44 = vmax.f32 %v2178_v14, %v9445_v10  ;;  %7169 = vmatpush3.bf16.msra.mxu0 %v7166_v26  ;;  %v2433_v57 = vmax.f32 %v2369_v52, %v9436_v45  ;;  %v2751_v9 = vmax.f32 %v2687_v49, %v9436_v45  ;;  %v3293_v26 = vld [vmem:[#allocation2 + $0x13a] sm:$0xff]  ;;  %v10652_v14 = vld [vmem:[#allocation25_spill] sm:$0xff] }
 0x17d   : > { %v3196_v17 = vmax.f32 %v3132_v5, %v9438_v20  ;;  %v2560_v3 = vmax.f32 %v2496_v21, %v9445_v10  ;;  %6874 = vmatmul.mubr.f32.gmra.mrb[18].mxu1 %v10649_v16  ;;  %v3387_v2 = vmax.f32 %v3323_v55, %v3355_v4  ;;  %v3069_v13 = vmax.f32 %v3005_v50, %v9436_v45  ;;  %v10654_v16 = vld [vmem:[#allocation27_spill] sm:$0xff] }
 0x17e   : > { %v2878_v11 = vmax.f32 %v2814_v54, %v9445_v10  ;;  %v2306_v40 = vmax.f32 %v2242_v44, %v3292_v7  ;;  %6876 = vmatprep.mubr.f32.mxu1 %v10650_v43  ;;  %v2052_v24 = vmax.f32 %v3356_v19, %v3292_v7  ;;  %v1981_v12 = vmax.f32 %v9224_v58, %v9227_v59 }
 0x17f   : > { %v3260_v33 = vmax.f32 %v3196_v17, %v9445_v10  ;;  %v2624_v15 = vmax.f32 %v2560_v3, %v3292_v7  ;;  %v3451_v51 = vmax.f32 %v3387_v2, %v9436_v45  ;;  %v2179_v4 = vmax.f32 %v2115_v41, %v9458_v39  ;;  %v9476_v41 = vld [vmem:[#allocation2 + $0x140] sm:$0xff] }
 0x180   : > { %v2942_v48 = vmax.f32 %v2878_v11, %v3292_v7  ;;  %v2370_v34 = vmax.f32 %v2306_v40, %v3356_v19  ;;  %v2116_v46 = vmax.f32 %v2052_v24, %v3420_v63  ;;  %v3133_v36 = vmax.f32 %v3069_v13, %v1981_v12 }
 0x181   : > { %v3324_v53 = vmax.f32 %v3260_v33, %v3292_v7  ;;  %v2688_v28 = vmax.f32 %v2624_v15, %v3356_v19  ;;  %6877 = vmatmul.mubr.f32.gmra.mrb[20].mxu1 %v10651_v8  ;;  %6950 = vmatprep.mubr.f32.mxu0 %v3451_v51  ;;  %v2497_v58 = vmax.f32 %v2433_v57, %v9458_v39  ;;  %v9484_v7 = vld [vmem:[#allocation2 + $0x141] sm:$0xff]  ;;  %v10656_v8 = vld [vmem:[#allocation29_spill] sm:$0xff] }
 0x182   : > { %v3006_v32 = vmax.f32 %v2942_v48, %v3356_v19  ;;  %v2434_v31 = vmax.f32 %v2370_v34, %v3420_v63  ;;  %v2815_v59 = vmax.f32 %v2751_v9, %v9458_v39  ;;  %3483 = vst [vmem:[#allocation2 + $0xf2] sm:$0xff] %v3451_v51  ;;  %v3197_v25 = vmax.f32 %v3133_v36, %v9458_v39  ;;  %v3294_v33 = vld [vmem:[#allocation2 + $0x142] sm:$0xff]  ;;  %v9494_v34 = vld [vmem:[#allocation2 + $0x150] sm:$0xff] }
 0x183   : > { %v3388_v45 = vmax.f32 %v3324_v53, %v3356_v19  ;;  %v2752_v27 = vmax.f32 %v2688_v28, %v3420_v63  ;;  %v2243_v22 = vmax.f32 %v2179_v4, %v9469_v1  ;;  %6879 = vmatprep.mubr.f32.mxu1 %v10652_v14  ;;  %v2561_v49 = vmax.f32 %v2497_v58, %v9469_v1  ;;  %v10653_v19 = vld [vmem:[#allocation26_spill] sm:$0xff]  ;;  %v3358_v15 = vld [vmem:[#allocation2 + $0x143] sm:$0xff] }
 0x184   : > { %v3070_v52 = vmax.f32 %v3006_v32, %v3420_v63  ;;  %v2879_v5 = vmax.f32 %v2815_v59, %v9469_v1  ;;  %v2053_v21 = vmax.f32 %v3357_v38, %v3293_v26  ;;  %v3261_v50 = vmax.f32 %v3197_v25, %v9469_v1  ;;  %v10655_v4 = vld [vmem:[#allocation28_spill] sm:$0xff] }
 0x185   : > { %v3452_v55 = vmax.f32 %v3388_v45, %v3420_v63  ;;  %v2307_v54 = vmax.f32 %v2243_v22, %v3293_v26  ;;  %v1982_v44 = vmax.f32 %v9234_v62, %v9268_v47  ;;  %6880 = vmatmul.mubr.f32.gmra.mrb[22].mxu1 %v10653_v19  ;;  %v2625_v57 = vmax.f32 %v2561_v49, %v3293_v26  ;;  %v9505_v22 = vld [vmem:[#allocation2 + $0x151] sm:$0xff] }
 0x186   : > { %v2943_v9 = vmax.f32 %v2879_v5, %v3293_v26  ;;  %v2117_v17 = vmax.f32 %v2053_v21, %v3421_v42  ;;  %v2180_v3 = vmax.f32 %v2116_v46, %v9476_v41  ;;  %6882 = vmatprep.mubr.f32.mxu1 %v10654_v16  ;;  %v3325_v2 = vmax.f32 %v3261_v50, %v3293_v26  ;;  %v9498_v26 = vld [vmem:[#allocation2 + $0x144] sm:$0xff]  ;;  %v3295_v5 = vld [vmem:[#allocation2 + $0x152] sm:$0xff] }
 0x187   : > { %6951 = vmatmul.mubr.f32.gmra.mrb[16].mxu0 %v3452_v55  ;;  %v2371_v13 = vmax.f32 %v2307_v54, %v3357_v38  ;;  %v3134_v11 = vmax.f32 %v3070_v52, %v1982_v44  ;;  %v2498_v40 = vmax.f32 %v2434_v31, %v9476_v41  ;;  %3484 = vst [vmem:[#allocation2 + $0xfa] sm:$0xff] %v3452_v55  ;;  %v10657_v44 = vld [vmem:[#allocation30_spill] sm:$0xff]  ;;  %v10658_v16 = vld [vmem:[#allocation31_spill] sm:$0xff] }
 0x188   : > { %v2689_v63 = vmax.f32 %v2625_v57, %v3357_v38  ;;  %v3007_v62 = vmax.f32 %v2943_v9, %v3357_v38  ;;  %v2816_v47 = vmax.f32 %v2752_v27, %v9476_v41  ;;  %v2244_v43 = vmax.f32 %v2180_v3, %v9484_v7  ;;  %v3359_v3 = vld [vmem:[#allocation2 + $0x153] sm:$0xff] }
 0x189   : > { %v3389_v24 = vmax.f32 %v3325_v2, %v3357_v38  ;;  %v2435_v12 = vmax.f32 %v2371_v13, %v3421_v42  ;;  %v3198_v51 = vmax.f32 %v3134_v11, %v9476_v41  ;;  %v2562_v48 = vmax.f32 %v2498_v40, %v9484_v7  ;;  %6883 = vmatmul.mubr.f32.gmra.mrb[24].mxu1 %v10655_v4  ;;  %v9525_v40 = vld [vmem:[#allocation2] sm:$0xff] }
 0x18a   : > { %v2753_v53 = vmax.f32 %v2689_v63, %v3421_v42  ;;  %v3071_v28 = vmax.f32 %v3007_v62, %v3421_v42  ;;  %v2880_v46 = vmax.f32 %v2816_v47, %v9484_v7  ;;  %v2308_v36 = vmax.f32 %v2244_v43, %v3294_v33  ;;  %6885 = vmatprep.mubr.f32.mxu1 %v10656_v8  ;;  %v9528_v62 = vld [vmem:[#allocation2 + $0x158] sm:$0xff] }
 0x18b   : > { %v3453_v32 = vmax.f32 %v3389_v24, %v3421_v42  ;;  %v3262_v38 = vmax.f32 %v3198_v51, %v9484_v7  ;;  %v2626_v31 = vmax.f32 %v2562_v48, %v3294_v33  ;;  %v2054_v58 = vmax.f32 %v3358_v15, %v3294_v33 }
 0x18c   : > { %v2944_v59 = vmax.f32 %v2880_v46, %v3294_v33  ;;  %v2372_v45 = vmax.f32 %v2308_v36, %v3358_v15  ;;  %v1983_v27 = vmax.f32 %v9291_v23, %v9304_v60  ;;  %v2181_v25 = vmax.f32 %v2117_v17, %v9494_v34  ;;  %v6499_v23 = vld [vmem:[%s10494_s1 + $0x1d0] sm:$0xff]  ;;  %v6500_v60 = vld [vmem:[%s10494_s1 + $0x1d8] sm:$0xff] }
 0x18d   : > { %6953 = vmatprep.mubr.f32.mxu0 %v3453_v32  ;;  %v3326_v14 = vmax.f32 %v3262_v38, %v3294_v33  ;;  %v2690_v52 = vmax.f32 %v2626_v31, %v3358_v15  ;;  %v2118_v49 = vmax.f32 %v2054_v58, %v9498_v26  ;;  %v2499_v42 = vmax.f32 %v2435_v12, %v9494_v34  ;;  %v3296_v58 = vld [vmem:[#allocation2 + $0x15a] sm:$0xff] }
 0x18e   : > { %3485 = vst [vmem:[#allocation2 + $0x10a] sm:$0xff] %v3453_v32  ;;  %v3008_v21 = vmax.f32 %v2944_v59, %v3358_v15  ;;  %v2436_v55 = vmax.f32 %v2372_v45, %v9498_v26  ;;  %v3135_v50 = vmax.f32 %v3071_v28, %v1983_v27  ;;  %v2817_v54 = vmax.f32 %v2753_v53, %v9494_v34  ;;  %v10659_v53 = vld [vmem:[#allocation32_spill] sm:$0xff] }
 0x18f   : > { %6886 = vmatmul.mubr.f32.gmra.mrb[26].mxu1 %v10657_v44  ;;  %v3390_v19 = vmax.f32 %v3326_v14, %v3358_v15  ;;  %v2754_v57 = vmax.f32 %v2690_v52, %v9498_v26  ;;  %v2245_v9 = vmax.f32 %v2181_v25, %v9505_v22  ;;  %v2563_v17 = vmax.f32 %v2499_v42, %v9505_v22  ;;  %v3423_v15 = vld [vmem:[#allocation2 + $0x154] sm:$0xff]  ;;  %v9540_v27 = vld [vmem:[#allocation2 + $0x168] sm:$0xff]  ;;  %v3424_v44 = vld [vmem:[#allocation2 + $0x15c] sm:$0xff] }
 0x190   : > { %6888 = vmatprep.mubr.f32.mxu1 %v10658_v16  ;;  %v3072_v2 = vmax.f32 %v3008_v21, %v9498_v26  ;;  %v3199_v13 = vmax.f32 %v3135_v50, %v9494_v34  ;;  %v2881_v11 = vmax.f32 %v2817_v54, %v9505_v22  ;;  %v2055_v63 = vmax.f32 %v9525_v40, %v3295_v5  ;;  %v3360_v42 = vld [vmem:[#allocation2 + $0x15b] sm:$0xff]  ;;  %v9553_v16 = vld [vmem:[#allocation2 + $0x169] sm:$0xff] }
 0x191   : > { %v3454_v47 = vmax.f32 %v3390_v19, %v9498_v26  ;;  %v2309_v43 = vmax.f32 %v2245_v9, %v3295_v5  ;;  %v2627_v33 = vmax.f32 %v2563_v17, %v3295_v5  ;;  %v7170_v24 = vpack.c.bf16 %v6500_v60, %v6499_v23  ;;  %v9536_v26 = vld [vmem:[#allocation2 + $0x159] sm:$0xff] }
 0x192   : > { %v3263_v12 = vmax.f32 %v3199_v13, %v9505_v22  ;;  %v2945_v51 = vmax.f32 %v2881_v11, %v3295_v5  ;;  %v2119_v48 = vmax.f32 %v2055_v63, %v3359_v3  ;;  %v1984_v4 = vmax.f32 %v9330_v35, %v9351_v61 }
 0x193   : > { %6889 = vmatmul.mubr.f32.gmra.mrb[28].mxu1 %v10659_v53  ;;  %6954 = vmatmul.mubr.f32.gmra.mrb[18].mxu0 %v3454_v47  ;;  %v2373_v28 = vmax.f32 %v2309_v43, %v3359_v3  ;;  %v2691_v46 = vmax.f32 %v2627_v33, %v3359_v3  ;;  %v2182_v36 = vmax.f32 %v2118_v49, %v9528_v62  ;;  %v3297_v33 = vld [vmem:[#allocation2 + $0x16a] sm:$0xff] }
 0x194   : > { %7171 = vmatprep.subr.bf16.mxu0 %v7170_v24  ;;  %3486 = vst [vmem:[#allocation2 + $0x112] sm:$0xff] %v3454_v47  ;;  %v3327_v8 = vmax.f32 %v3263_v12, %v3295_v5  ;;  %v3009_v32 = vmax.f32 %v2945_v51, %v3359_v3  ;;  %v2183_v38 = vmax.f32 %v2119_v48, %v3423_v15  ;;  %v10660_v5 = vld [vmem:[#allocation41_spill] sm:$0xff] }
 0x195   : > { %v3136_v31 = vmax.f32 %v3072_v2, %v1984_v4  ;;  %7173 = vmatpush3.bf16.msra.mxu0 %v7170_v24  ;;  %v2437_v59 = vmax.f32 %v2373_v28, %v3423_v15  ;;  %v2755_v45 = vmax.f32 %v2691_v46, %v3423_v15  ;;  %v2500_v35 = vmax.f32 %v2436_v55, %v9528_v62  ;;  %v9560_v4 = vld [vmem:[#allocation2 + $0x170] sm:$0xff] }
 0x196   : > { %v2818_v61 = vmax.f32 %v2754_v57, %v9528_v62  ;;  %6891 = vmatprep.mubr.f32.mxu1 %v10626_v18  ;;  %v3391_v25 = vmax.f32 %v3327_v8, %v3359_v3  ;;  %v3073_v14 = vmax.f32 %v3009_v32, %v3423_v15  ;;  %v2246_v49 = vmax.f32 %v2182_v36, %v9536_v26  ;;  %v3425_v8 = vld [vmem:[#allocation2 + $0x16c] sm:$0xff] }
 0x197   : > { %v3200_v52 = vmax.f32 %v3136_v31, %v9528_v62  ;;  %6892 = vmatmul.mubr.f32.gmra.mrb[30].mxu1 %v10660_v5  ;;  %v2564_v21 = vmax.f32 %v2500_v35, %v9536_v26  ;;  %v2056_v55 = vmax.f32 %v9525_v40, %v3296_v58  ;;  %v1985_v54 = vmax.f32 %v9367_v30, %v9380_v0 }
 0x198   : > { %v2882_v50 = vmax.f32 %v2818_v61, %v9536_v26  ;;  %v3455_v23 = vmax.f32 %v3391_v25, %v3423_v15  ;;  %v2310_v60 = vmax.f32 %v2246_v49, %v3296_v58  ;;  %v2247_v19 = vmax.f32 %v2183_v38, %v9540_v27  ;;  %v3361_v15 = vld [vmem:[#allocation2 + $0x16b] sm:$0xff] }
 0x199   : > { %v3264_v18 = vmax.f32 %v3200_v52, %v9536_v26  ;;  %v2628_v57 = vmax.f32 %v2564_v21, %v3296_v58  ;;  %v2120_v17 = vmax.f32 %v2056_v55, %v3360_v42  ;;  %v3137_v3 = vmax.f32 %v3073_v14, %v1985_v54  ;;  %v9567_v25 = vld [vmem:[#allocation2 + $0x171] sm:$0xff] }
 0x19a   : > { %v2946_v9 = vmax.f32 %v2882_v50, %v3296_v58  ;;  %6956 = vmatprep.mubr.f32.mxu0 %v3455_v23  ;;  %v2374_v13 = vmax.f32 %v2310_v60, %v3360_v42  ;;  %v2501_v11 = vmax.f32 %v2437_v59, %v9540_v27  ;;  %v2819_v30 = vmax.f32 %v2755_v45, %v9540_v27  ;;  %v3298_v54 = vld [vmem:[#allocation2 + $0x172] sm:$0xff] }
 0x19b   : > { %v3328_v2 = vmax.f32 %v3264_v18, %v3296_v58  ;;  %3487 = vst [vmem:[#allocation2 + $0x122] sm:$0xff] %v3455_v23  ;;  %v2692_v0 = vmax.f32 %v2628_v57, %v3360_v42  ;;  %v2184_v47 = vmax.f32 %v2120_v17, %v3424_v44  ;;  %v3201_v43 = vmax.f32 %v3137_v3, %v9540_v27  ;;  %v3362_v23 = vld [vmem:[#allocation2 + $0x173] sm:$0xff] }
 0x19c   : > { %v3010_v63 = vmax.f32 %v2946_v9, %v3360_v42  ;;  %v2438_v12 = vmax.f32 %v2374_v13, %v3424_v44  ;;  %v2311_v51 = vmax.f32 %v2247_v19, %v9553_v16  ;;  %v2565_v48 = vmax.f32 %v2501_v11, %v9553_v16  ;;  %v3426_v3 = vld [vmem:[#allocation2 + $0x174] sm:$0xff] }
 0x19d   : > { %v3392_v24 = vmax.f32 %v3328_v2, %v3360_v42  ;;  %v2756_v53 = vmax.f32 %v2692_v0, %v3424_v44  ;;  %v2883_v46 = vmax.f32 %v2819_v30, %v9553_v16  ;;  %v3265_v36 = vmax.f32 %v3201_v43, %v9553_v16  ;;  %v3235_v0 = vld [vmem:[#allocation2 + $0x181] sm:$0xff] }
 0x19e   : > { %v3074_v28 = vmax.f32 %v3010_v63, %v3424_v44  ;;  %v2375_v38 = vmax.f32 %v2311_v51, %v3297_v33  ;;  %v2629_v31 = vmax.f32 %v2565_v48, %v3297_v33  ;;  %v2057_v58 = vmax.f32 %v3361_v15, %v3297_v33  ;;  %v3299_v48 = vld [vmem:[#allocation2 + $0x182] sm:$0xff] }
 0x19f   : > { %v3456_v32 = vmax.f32 %v3392_v24, %v3424_v44  ;;  %v2947_v59 = vmax.f32 %v2883_v46, %v3297_v33  ;;  %v3329_v45 = vmax.f32 %v3265_v36, %v3297_v33  ;;  %v1986_v35 = vmax.f32 %v9386_v37, %v9401_v29  ;;  %v3171_v44 = vld [vmem:[#allocation2 + $0x180] sm:$0xff] }
 0x1a0   : > { %v2248_v61 = vmax.f32 %v2184_v47, %v9560_v4  ;;  %v2439_v14 = vmax.f32 %v2375_v38, %v3361_v15  ;;  %v2693_v52 = vmax.f32 %v2629_v31, %v3361_v15  ;;  %v2121_v49 = vmax.f32 %v2057_v58, %v3425_v8  ;;  %v3363_v58 = vld [vmem:[#allocation2 + $0x183] sm:$0xff] }
 0x1a1   : > { %6957 = vmatmul.mubr.f32.gmra.mrb[20].mxu0 %v3456_v32  ;;  %v2502_v42 = vmax.f32 %v2438_v12, %v9560_v4  ;;  %3488 = vst [vmem:[#allocation2 + $0x12a] sm:$0xff] %v3456_v32  ;;  %v3011_v5 = vmax.f32 %v2947_v59, %v3361_v15  ;;  %v3393_v21 = vmax.f32 %v3329_v45, %v3361_v15  ;;  %v3172_v59 = vld [vmem:[#allocation2 + $0x188] sm:$0xff] }
 0x1a2   : > { %v3138_v50 = vmax.f32 %v3074_v28, %v1986_v35  ;;  %v2820_v55 = vmax.f32 %v2756_v53, %v9560_v4  ;;  %v2503_v18 = vmax.f32 %v2439_v14, %v3425_v8  ;;  %v2757_v37 = vmax.f32 %v2693_v52, %v3425_v8 }
 0x1a3   : > { %v2312_v29 = vmax.f32 %v2248_v61, %v9567_v25  ;;  %v2566_v60 = vmax.f32 %v2502_v42, %v9567_v25  ;;  %v3075_v19 = vmax.f32 %v3011_v5, %v3425_v8  ;;  %v3457_v57 = vmax.f32 %v3393_v21, %v3425_v8  ;;  %v3427_v42 = vld [vmem:[#allocation2 + $0x184] sm:$0xff] }
 0x1a4   : > { %v3202_v9 = vmax.f32 %v3138_v50, %v9560_v4  ;;  %v2884_v17 = vmax.f32 %v2820_v55, %v9567_v25  ;;  %v2058_v11 = vmax.f32 %v3362_v23, %v3298_v54  ;;  %v1987_v30 = vmax.f32 %v9412_v56, %v9422_v6  ;;  %v6501_v56 = vld [vmem:[%s10494_s1 + $0x1e0] sm:$0xff]  ;;  %v6502_v6 = vld [vmem:[%s10494_s1 + $0x1e8] sm:$0xff] }
 0x1a5   : > { %v2376_v2 = vmax.f32 %v2312_v29, %v3298_v54  ;;  %v2630_v13 = vmax.f32 %v2566_v60, %v3298_v54  ;;  %6959 = vmatprep.mubr.f32.mxu0 %v3457_v57  ;;  %v2185_v43 = vmax.f32 %v2121_v49, %v3171_v44  ;;  %v2567_v33 = vmax.f32 %v2503_v18, %v3171_v44  ;;  %v3236_v50 = vld [vmem:[#allocation2 + $0x189] sm:$0xff] }
 0x1a6   : > { %v3266_v63 = vmax.f32 %v3202_v9, %v9567_v25  ;;  %v2948_v47 = vmax.f32 %v2884_v17, %v3298_v54  ;;  %3489 = vst [vmem:[#allocation2 + $0x13a] sm:$0xff] %v3457_v57  ;;  %v2122_v12 = vmax.f32 %v2058_v11, %v3426_v3  ;;  %v3139_v51 = vmax.f32 %v3075_v19, %v1987_v30  ;;  %v3300_v19 = vld [vmem:[#allocation2 + $0x18a] sm:$0xff] }
 0x1a7   : > { %v2440_v15 = vmax.f32 %v2376_v2, %v3362_v23  ;;  %v2694_v24 = vmax.f32 %v2630_v13, %v3362_v23  ;;  %v2821_v46 = vmax.f32 %v2757_v37, %v3171_v44  ;;  %v2249_v36 = vmax.f32 %v2185_v43, %v3235_v0  ;;  %v3173_v13 = vld [vmem:[#allocation2 + $0x198] sm:$0xff]  ;;  %v3364_v30 = vld [vmem:[#allocation2 + $0x18b] sm:$0xff] }
 0x1a8   : > { %v3330_v53 = vmax.f32 %v3266_v63, %v3298_v54  ;;  %v3012_v28 = vmax.f32 %v2948_v47, %v3362_v23  ;;  %v3203_v38 = vmax.f32 %v3139_v51, %v3171_v44  ;;  %v2631_v31 = vmax.f32 %v2567_v33, %v3235_v0  ;;  %v3237_v33 = vld [vmem:[#allocation2 + $0x199] sm:$0xff]  ;;  %v3428_v51 = vld [vmem:[#allocation2 + $0x18c] sm:$0xff] }
 0x1a9   : > { %v2504_v8 = vmax.f32 %v2440_v15, %v3426_v3  ;;  %v2758_v32 = vmax.f32 %v2694_v24, %v3426_v3  ;;  %v2885_v61 = vmax.f32 %v2821_v46, %v3235_v0  ;;  %v2313_v14 = vmax.f32 %v2249_v36, %v3299_v48 }
 0x1aa   : > { %v3394_v45 = vmax.f32 %v3330_v53, %v3362_v23  ;;  %v3076_v35 = vmax.f32 %v3012_v28, %v3426_v3  ;;  %v3267_v52 = vmax.f32 %v3203_v38, %v3235_v0  ;;  %v2695_v49 = vmax.f32 %v2631_v31, %v3299_v48  ;;  %v3174_v31 = vld [vmem:[#allocation2 + $0x1a0] sm:$0xff] }
 0x1ab   : > { %v7174_v5 = vpack.c.bf16 %v6502_v6, %v6501_v56  ;;  %v1988_v21 = vmax.f32 %v9438_v20, %v9445_v10  ;;  %v2949_v54 = vmax.f32 %v2885_v61, %v3299_v48  ;;  %v2377_v18 = vmax.f32 %v2313_v14, %v3363_v58  ;;  %v3301_v56 = vld [vmem:[#allocation2 + $0x19a] sm:$0xff] }
 0x1ac   : > { %v3458_v55 = vmax.f32 %v3394_v45, %v3426_v3  ;;  %v2186_v37 = vmax.f32 %v2122_v12, %v3172_v59  ;;  %v3331_v29 = vmax.f32 %v3267_v52, %v3299_v48  ;;  %v2759_v60 = vmax.f32 %v2695_v49, %v3363_v58  ;;  %v3365_v45 = vld [vmem:[#allocation2 + $0x19b] sm:$0xff] }
 0x1ad   : > { %7175 = vmatprep.subr.bf16.mxu0 %v7174_v5  ;;  %v3140_v44 = vmax.f32 %v3076_v35, %v1988_v21  ;;  %v2568_v23 = vmax.f32 %v2504_v8, %v3172_v59  ;;  %v3013_v57 = vmax.f32 %v2949_v54, %v3363_v58  ;;  %v2441_v9 = vmax.f32 %v2377_v18, %v3427_v42  ;;  %v6503_v35 = vld [vmem:[%s10494_s1 + $0x1f0] sm:$0xff]  ;;  %v6504_v61 = vld [vmem:[%s10494_s1 + $0x1f8] sm:$0xff] }
 0x1ae   : > { %6960 = vmatmul.mubr.f32.gmra.mrb[22].mxu0 %v3458_v55  ;;  %v2822_v17 = vmax.f32 %v2758_v32, %v3172_v59  ;;  %v2250_v2 = vmax.f32 %v2186_v37, %v3236_v50  ;;  %3490 = vst [vmem:[#allocation2 + $0x142] sm:$0xff] %v3458_v55  ;;  %v3395_v11 = vmax.f32 %v3331_v29, %v3363_v58  ;;  %v3302_v29 = vld [vmem:[#allocation2 + $0x1a2] sm:$0xff] }
 0x1af   : > { %v2823_v20 = vmax.f32 %v2759_v60, %v3427_v42  ;;  %v3204_v10 = vmax.f32 %v3140_v44, %v3172_v59  ;;  %v2632_v3 = vmax.f32 %v2568_v23, %v3236_v50  ;;  %7177 = vmatpush3.bf16.msra.mxu0 %v7174_v5  ;;  %v3077_v0 = vmax.f32 %v3013_v57, %v3427_v42 }
 0x1b0   : > { %v2886_v63 = vmax.f32 %v2822_v17, %v3236_v50  ;;  %v2314_v47 = vmax.f32 %v2250_v2, %v3300_v19  ;;  %v1989_v43 = vmax.f32 %v9458_v39, %v9469_v1  ;;  %v3459_v15 = vmax.f32 %v3395_v11, %v3427_v42  ;;  %v3238_v42 = vld [vmem:[#allocation2 + $0x1a1] sm:$0xff] }
 0x1b1   : > { %v3268_v24 = vmax.f32 %v3204_v10, %v3236_v50  ;;  %v2696_v12 = vmax.f32 %v2632_v3, %v3300_v19  ;;  %v2505_v48 = vmax.f32 %v2441_v9, %v3173_v13  ;;  %v2887_v36 = vmax.f32 %v2823_v20, %v3173_v13  ;;  %v3429_v50 = vld [vmem:[#allocation2 + $0x19c] sm:$0xff] }
 0x1b2   : > { %v2950_v53 = vmax.f32 %v2886_v63, %v3300_v19  ;;  %v2378_v28 = vmax.f32 %v2314_v47, %v3364_v30  ;;  %v3141_v46 = vmax.f32 %v3077_v0, %v1989_v43  ;;  %6962 = vmatprep.mubr.f32.mxu0 %v3459_v15  ;;  %v1990_v38 = vmax.f32 %v9476_v41, %v9484_v7  ;;  %v3531_v9 = vld [vmem:[#allocation2 + $0x1] sm:$0xff] }
 0x1b3   : > { %v3332_v6 = vmax.f32 %v3268_v24, %v3300_v19  ;;  %v2760_v8 = vmax.f32 %v2696_v12, %v3364_v30  ;;  %v2569_v32 = vmax.f32 %v2505_v48, %v3237_v33  ;;  %3491 = vst [vmem:[#allocation2 + $0x152] sm:$0xff] %v3459_v15  ;;  %v2951_v59 = vmax.f32 %v2887_v36, %v3237_v33  ;;  %v3595_v3 = vld [vmem:[#allocation2 + $0x2] sm:$0xff]  ;;  %v9611_v15 = vld [vmem:[#allocation2 + $0x33] sm:$0xff] }
 0x1b4   : > { %v3014_v39 = vmax.f32 %v2950_v53, %v3364_v30  ;;  %v2442_v1 = vmax.f32 %v2378_v28, %v3428_v51  ;;  %v3205_v58 = vmax.f32 %v3141_v46, %v3173_v13  ;;  %v1991_v41 = vmax.f32 %v9494_v34, %v9505_v22  ;;  %v3366_v13 = vld [vmem:[#allocation2 + $0x1a3] sm:$0xff]  ;;  %v9602_v0 = vld [vmem:[#allocation2 + $0x1b] sm:$0xff]  ;;  %v3239_v36 = vld [vmem:[#allocation2 + $0x1b1] sm:$0xff] }
 0x1b5   : > { %v3396_v14 = vmax.f32 %v3332_v6, %v3364_v30  ;;  %v2824_v52 = vmax.f32 %v2760_v8, %v3428_v51  ;;  %v2633_v49 = vmax.f32 %v2569_v32, %v3301_v56  ;;  %v3015_v21 = vmax.f32 %v2951_v59, %v3301_v56  ;;  %v9600_v30 = vld [vmem:[#allocation2 + $0x1a] sm:$0xff]  ;;  %v3430_v47 = vld [vmem:[#allocation2 + $0x1a4] sm:$0xff] }
 0x1b6   : > { %v3078_v7 = vmax.f32 %v3014_v39, %v3428_v51  ;;  %v3269_v5 = vmax.f32 %v3205_v58, %v3237_v33  ;;  %v2506_v55 = vmax.f32 %v2442_v1, %v3174_v31  ;;  %v7178_v60 = vpack.c.bf16 %v6504_v61, %v6503_v35  ;;  %v3659_v53 = vld [vmem:[#allocation2 + $0x3] sm:$0xff]  ;;  %v3303_v1 = vld [vmem:[#allocation2 + $0x1b2] sm:$0xff] }
 0x1b7   : > { %v3460_v54 = vmax.f32 %v3396_v14, %v3428_v51  ;;  %v2697_v18 = vmax.f32 %v2633_v49, %v3365_v45  ;;  %v2888_v37 = vmax.f32 %v2824_v52, %v3174_v31  ;;  %v3079_v23 = vmax.f32 %v3015_v21, %v3365_v45  ;;  %v9613_v28 = vld [vmem:[#allocation2 + $0x1c] sm:$0xff]  ;;  %v3723_v32 = vld [vmem:[#allocation2 + $0x4] sm:$0xff]  ;;  %v3367_v52 = vld [vmem:[#allocation2 + $0x1b3] sm:$0xff] }
 0x1b8   : > { %v3333_v44 = vmax.f32 %v3269_v5, %v3301_v56  ;;  %v3142_v19 = vmax.f32 %v3078_v7, %v1990_v38  ;;  %v2570_v57 = vmax.f32 %v2506_v55, %v3238_v42  ;;  %7179 = vmatprep.subr.bf16.mxu0 %v7178_v60  ;;  %v1992_v34 = vmax.f32 %v9528_v62, %v9536_v26  ;;  %v9609_v26 = vld [vmem:[#allocation2 + $0x32] sm:$0xff]  ;;  %v9625_v35 = vld [vmem:[#allocation2 + $0x48] sm:$0xff] }
 0x1b9   : > { %6963 = vmatmul.mubr.f32.gmra.mrb[24].mxu0 %v3460_v54  ;;  %v2761_v17 = vmax.f32 %v2697_v18, %v3429_v50  ;;  %v2952_v2 = vmax.f32 %v2888_v37, %v3238_v42  ;;  %3492 = vst [vmem:[#allocation2 + $0x15a] sm:$0xff] %v3460_v54  ;;  %v3143_v11 = vmax.f32 %v3079_v23, %v3429_v50  ;;  %v9619_v38 = vld [vmem:[#allocation2 + $0x30] sm:$0xff]  ;;  %v3240_v49 = vld [vmem:[#allocation2 + $0x1b9] sm:$0xff] }
 0x1ba   : > { %v3397_v22 = vmax.f32 %v3333_v44, %v3365_v45  ;;  %v3206_v20 = vmax.f32 %v3142_v19, %v3174_v31  ;;  %v2634_v10 = vmax.f32 %v2570_v57, %v3302_v29  ;;  %7181 = vmatpush3.bf16.msra.mxu0 %v7178_v60  ;;  %v1993_v43 = vmax.f32 %v9540_v27, %v9553_v16  ;;  %v9631_v54 = vld [vmem:[#allocation2 + $0x49] sm:$0xff]  ;;  %v3431_v44 = vld [vmem:[#allocation2 + $0x1b4] sm:$0xff] }
 0x1bb   : > { %v3016_v63 = vmax.f32 %v2952_v2, %v3302_v29  ;;  %v1994_v33 = vmax.f32 %v9560_v4, %v9567_v25  ;;  %v3563_v62 = vmax.f32 %v9525_v40, %v3531_v9  ;;  %v3207_v48 = vmax.f32 %v3143_v11, %v1991_v41  ;;  %v9617_v4 = vld [vmem:[#allocation2 + $0x34] sm:$0xff]  ;;  %v9633_v18 = vld [vmem:[#allocation2 + $0x4a] sm:$0xff]  ;;  %v9645_v11 = vld [vmem:[#allocation2 + $0x62] sm:$0xff] }
 0x1bc   : > { %v3461_v24 = vmax.f32 %v3397_v22, %v3429_v50  ;;  %v3270_v12 = vmax.f32 %v3206_v20, %v3238_v42  ;;  %v2698_v51 = vmax.f32 %v2634_v10, %v3366_v13  ;;  %v2825_v56 = vmax.f32 %v2761_v17, %v1993_v43  ;;  %v9627_v41 = vld [vmem:[#allocation2 + $0x31] sm:$0xff]  ;;  %v3304_v23 = vld [vmem:[#allocation2 + $0x1ba] sm:$0xff]  ;;  %v9647_v20 = vld [vmem:[#allocation2 + $0x63] sm:$0xff] }
 0x1bd   : > { %v3080_v46 = vmax.f32 %v3016_v63, %v3366_v13  ;;  %v3627_v27 = vmax.f32 %v3563_v62, %v3595_v3  ;;  %v3629_v16 = vmax.f32 %v9602_v0, %v9600_v30  ;;  %v3271_v8 = vmax.f32 %v3207_v48, %v3239_v36  ;;  %v9635_v37 = vld [vmem:[#allocation2 + $0x4b] sm:$0xff]  ;;  %v9638_v57 = vld [vmem:[#allocation2 + $0x19] sm:$0xff] }
 0x1be   : > { %6965 = vmatprep.mubr.f32.mxu0 %v3461_v24  ;;  %v3334_v25 = vmax.f32 %v3270_v12, %v3302_v29  ;;  %v2762_v6 = vmax.f32 %v2698_v51, %v3430_v47  ;;  %3493 = vst [vmem:[#allocation2 + $0x16a] sm:$0xff] %v3461_v24  ;;  %v3631_v31 = vmax.f32 %v9611_v15, %v9609_v26  ;;  %v9643_v22 = vld [vmem:[#allocation2 + $0x4c] sm:$0xff]  ;;  %v9654_v51 = vld [vmem:[#allocation2 + $0x60] sm:$0xff] }
 0x1bf   : > { %v3144_v39 = vmax.f32 %v3080_v46, %v3430_v47  ;;  %v2889_v58 = vmax.f32 %v2825_v56, %v9525_v40  ;;  %v3691_v59 = vmax.f32 %v3627_v27, %v3659_v53  ;;  %v3693_v45 = vmax.f32 %v3629_v16, %v9613_v28  ;;  %v9656_v48 = vld [vmem:[#allocation2 + $0x64] sm:$0xff]  ;;  %v3432_v16 = vld [vmem:[#allocation2 + $0x1bc] sm:$0xff] }
 0x1c0   : > { %v3398_v61 = vmax.f32 %v3334_v25, %v3366_v13  ;;  %v3335_v14 = vmax.f32 %v3271_v8, %v3303_v1  ;;  %v2826_v42 = vmax.f32 %v2762_v6, %v1994_v33  ;;  %v3695_v7 = vmax.f32 %v3631_v31, %v9617_v4  ;;  %v3368_v33 = vld [vmem:[#allocation2 + $0x1bb] sm:$0xff]  ;;  %v3532_v31 = vld [vmem:[#allocation2 + $0x9] sm:$0xff] }
 0x1c1   : > { %v3208_v5 = vmax.f32 %v3144_v39, %v1992_v34  ;;  %v2953_v21 = vmax.f32 %v2889_v58, %v3239_v36  ;;  %v3755_v50 = vmax.f32 %v3691_v59, %v3723_v32  ;;  %v3757_v55 = vmax.f32 %v3693_v45, %v9619_v38  ;;  %v9664_v32 = vld [vmem:[#allocation2 + $0x61] sm:$0xff]  ;;  %v3241_v39 = vld [vmem:[#allocation2 + $0x1c9] sm:$0xff] }
 0x1c2   : > { %v3462_v29 = vmax.f32 %v3398_v61, %v3430_v47  ;;  %v3399_v60 = vmax.f32 %v3335_v14, %v3367_v52  ;;  %v2890_v19 = vmax.f32 %v2826_v42, %v9525_v40  ;;  %v3759_v9 = vmax.f32 %v3695_v7, %v9625_v35  ;;  %v9671_v61 = vld [vmem:[#allocation2 + $0x3a] sm:$0xff]  ;;  %v3596_v7 = vld [vmem:[#allocation2 + $0xa] sm:$0xff] }
 0x1c3   : > { %v3272_v17 = vmax.f32 %v3208_v5, %v3240_v49  ;;  %v3017_v2 = vmax.f32 %v2953_v21, %v3303_v1  ;;  %v3819_v13 = vmax.f32 %v3755_v50, %v9525_v40  ;;  %v3821_v34 = vmax.f32 %v3757_v55, %v9627_v41  ;;  %v9673_v14 = vld [vmem:[#allocation2 + $0x3b] sm:$0xff]  ;;  %v3305_v5 = vld [vmem:[#allocation2 + $0x1ca] sm:$0xff] }
 0x1c4   : > { %6966 = vmatmul.mubr.f32.gmra.mrb[26].mxu0 %v3462_v29  ;;  %v3463_v10 = vmax.f32 %v3399_v60, %v3431_v44  ;;  %v2954_v3 = vmax.f32 %v2890_v19, %v3240_v49  ;;  %3494 = vst [vmem:[#allocation2 + $0x172] sm:$0xff] %v3462_v29  ;;  %v3823_v63 = vmax.f32 %v3759_v9, %v9631_v54  ;;  %v9681_v60 = vld [vmem:[#allocation2 + $0x3c] sm:$0xff]  ;;  %v3660_v9 = vld [vmem:[#allocation2 + $0xb] sm:$0xff] }
 0x1c5   : > { %v3633_v47 = vmax.f32 %v9635_v37, %v9633_v18  ;;  %v3336_v43 = vmax.f32 %v3272_v17, %v3304_v23  ;;  %v3081_v62 = vmax.f32 %v3017_v2, %v3367_v52  ;;  %v3883_v24 = vmax.f32 %v3819_v13, %v9638_v57  ;;  %v3369_v2 = vld [vmem:[#allocation2 + $0x1cb] sm:$0xff] }
 0x1c6   : > { %v3885_v12 = vmax.f32 %v3821_v34, %v9609_v26  ;;  %6968 = vmatprep.mubr.f32.mxu0 %v3463_v10  ;;  %v3018_v53 = vmax.f32 %v2954_v3, %v3304_v23  ;;  %3495 = vst [vmem:[#allocation2 + $0x182] sm:$0xff] %v3463_v10  ;;  %v3887_v46 = vmax.f32 %v3823_v63, %v9633_v18  ;;  %v3242_v23 = vld [vmem:[#allocation2 + $0x1d1] sm:$0xff] }
 0x1c7   : > { %v3697_v36 = vmax.f32 %v3633_v47, %v9643_v22  ;;  %v3635_v56 = vmax.f32 %v9647_v20, %v9645_v11  ;;  %v3400_v27 = vmax.f32 %v3336_v43, %v3368_v33  ;;  %v3145_v25 = vmax.f32 %v3081_v62, %v3431_v44  ;;  %v9690_v63 = vld [vmem:[#allocation2 + $0x50] sm:$0xff] }
 0x1c8   : > { %v3947_v6 = vmax.f32 %v3883_v24, %v9600_v30  ;;  %v3949_v8 = vmax.f32 %v3885_v12, %v9611_v15  ;;  %v3082_v1 = vmax.f32 %v3018_v53, %v3368_v33  ;;  %v3951_v58 = vmax.f32 %v3887_v46, %v9635_v37  ;;  %v3306_v43 = vld [vmem:[#allocation2 + $0x1d2] sm:$0xff] }
 0x1c9   : > { %v3761_v59 = vmax.f32 %v3697_v36, %v9654_v51  ;;  %v9669_v45 = vmax.f32 %v3635_v56, %v9656_v48  ;;  %v3464_v52 = vmax.f32 %v3400_v27, %v3432_v16  ;;  %v3209_v30 = vmax.f32 %v3145_v25, %v9525_v40  ;;  %v3724_v62 = vld [vmem:[#allocation2 + $0xc] sm:$0xff] }
 0x1ca   : > { %v4011_v49 = vmax.f32 %v3947_v6, %v9602_v0  ;;  %v4013_v42 = vmax.f32 %v3949_v8, %v9617_v4  ;;  %v3146_v21 = vmax.f32 %v3082_v1, %v3432_v16  ;;  %v4015_v50 = vmax.f32 %v3951_v58, %v9643_v22  ;;  %v3433_v12 = vld [vmem:[#allocation2 + $0x1cc] sm:$0xff] }
 0x1cb   : > { %v3825_v55 = vmax.f32 %v3761_v59, %v9664_v32  ;;  %v3564_v29 = vmax.f32 %v9525_v40, %v3532_v31  ;;  %6969 = vmatmul.mubr.f32.gmra.mrb[28].mxu0 %v3464_v52  ;;  %v3273_v44 = vmax.f32 %v3209_v30, %v3241_v39  ;;  %3496 = vst [vmem:[#allocation2 + $0x18a] sm:$0xff] %v3464_v52  ;;  %v9697_v27 = vld [vmem:[#allocation2 + $0x51] sm:$0xff] }
 0x1cc   : > { %v4075_v19 = vmax.f32 %v4011_v49, %v9613_v28  ;;  %v4077_v0 = vmax.f32 %v4013_v42, %v9625_v35  ;;  %v3632_v17 = vmax.f32 %v9673_v14, %v9671_v61  ;;  %v3210_v13 = vmax.f32 %v3146_v21, %v9525_v40  ;;  %v3370_v25 = vld [vmem:[#allocation2 + $0x1d3] sm:$0xff]  ;;  %v9708_v49 = vld [vmem:[#allocation2 + $0x6a] sm:$0xff] }
 0x1cd   : > { %v4079_v34 = vmax.f32 %v4015_v50, %v9654_v51  ;;  %v3889_v10 = vmax.f32 %v3825_v55, %v9645_v11  ;;  %v3628_v3 = vmax.f32 %v3564_v29, %v3596_v7  ;;  %v3337_v47 = vmax.f32 %v3273_v44, %v3305_v5  ;;  %v9702_v39 = vld [vmem:[#allocation2 + $0x52] sm:$0xff] }
 0x1ce   : > { %v4139_v28 = vmax.f32 %v4075_v19, %v9619_v38  ;;  %v4141_v33 = vmax.f32 %v4077_v0, %v9631_v54  ;;  %v3696_v24 = vmax.f32 %v3632_v17, %v9681_v60  ;;  %v3274_v53 = vmax.f32 %v3210_v13, %v3242_v23  ;;  %v9704_v1 = vld [vmem:[#allocation2 + $0x53] sm:$0xff]  ;;  %v9710_v42 = vld [vmem:[#allocation2 + $0x6b] sm:$0xff] }
 0x1cf   : > { %v4143_v46 = vmax.f32 %v4079_v34, %v9664_v32  ;;  %v3953_v36 = vmax.f32 %v3889_v10, %v9647_v20  ;;  %v3692_v56 = vmax.f32 %v3628_v3, %v3660_v9  ;;  %v3401_v16 = vmax.f32 %v3337_v47, %v3369_v2  ;;  %v3434_v5 = vld [vmem:[#allocation2 + $0x1d4] sm:$0xff]  ;;  %v9721_v9 = vld [vmem:[#allocation2 + $0x6c] sm:$0xff]  ;;  %v9725_v2 = vld [vmem:[#allocation2 + $0x21] sm:$0xff] }
 0x1d0   : > { %v4203_v6 = vmax.f32 %v4139_v28, %v9627_v41  ;;  %v4205_v8 = vmax.f32 %v4141_v33, %v9633_v18  ;;  %v3760_v31 = vmax.f32 %v3696_v24, %v9690_v63  ;;  %v3338_v58 = vmax.f32 %v3274_v53, %v3306_v43  ;;  %v9715_v29 = vld [vmem:[#allocation2 + $0x54] sm:$0xff]  ;;  %v9728_v34 = vld [vmem:[#allocation2 + $0x68] sm:$0xff] }
 0x1d1   : > { %v4207_v59 = vmax.f32 %v4143_v46, %v9645_v11  ;;  %v4017_v52 = vmax.f32 %v3953_v36, %v9656_v48  ;;  %v3756_v30 = vmax.f32 %v3692_v56, %v3724_v62  ;;  %v3465_v7 = vmax.f32 %v3401_v16, %v3433_v12  ;;  %v9732_v3 = vld [vmem:[#allocation2 + $0x78] sm:$0xff]  ;;  %v9739_v24 = vld [vmem:[#allocation2 + $0x22] sm:$0xff] }
 0x1d2   : > { %v4267_v21 = vmax.f32 %v4203_v6, %v9609_v26  ;;  %v4269_v50 = vmax.f32 %v4205_v8, %v9635_v37  ;;  %v3824_v55 = vmax.f32 %v3760_v31, %v9697_v27  ;;  %v3402_v44 = vmax.f32 %v3338_v58, %v3370_v25  ;;  %v9742_v53 = vld [vmem:[#allocation2 + $0x69] sm:$0xff]  ;;  %v9747_v36 = vld [vmem:[#allocation2 + $0x79] sm:$0xff] }
 0x1d3   : > { %v4271_v23 = vmax.f32 %v4207_v59, %v9647_v20  ;;  %v3820_v19 = vmax.f32 %v3756_v30, %v9525_v40  ;;  %v3634_v0 = vmax.f32 %v9704_v1, %v9702_v39  ;;  %6971 = vmatprep.mubr.f32.mxu0 %v3465_v7  ;;  %3497 = vst [vmem:[#allocation2 + $0x19a] sm:$0xff] %v3465_v7  ;;  %v9757_v31 = vld [vmem:[#allocation2 + $0x23] sm:$0xff] }
 0x1d4   : > { %v4331_v26 = vmax.f32 %v4267_v21, %v9611_v15  ;;  %v4333_v17 = vmax.f32 %v4269_v50, %v9643_v22  ;;  %v3888_v13 = vmax.f32 %v3824_v55, %v9702_v39  ;;  %v3636_v10 = vmax.f32 %v9710_v42, %v9708_v49  ;;  %v9767_v50 = vld [vmem:[#allocation2 + $0x24] sm:$0xff] }
 0x1d5   : > { %v3466_v47 = vmax.f32 %v3402_v44, %v3434_v5  ;;  %v4335_v43 = vmax.f32 %v4271_v23, %v9656_v48  ;;  %v3884_v28 = vmax.f32 %v3820_v19, %v9725_v2  ;;  %v3698_v15 = vmax.f32 %v3634_v0, %v9715_v29  ;;  %v9771_v23 = vld [vmem:[#allocation2 + $0x7a] sm:$0xff] }
 0x1d6   : > { %v4395_v33 = vmax.f32 %v4331_v26, %v9617_v4  ;;  %v4397_v62 = vmax.f32 %v4333_v17, %v9654_v51  ;;  %v3952_v12 = vmax.f32 %v3888_v13, %v9704_v1  ;;  %v9745_v46 = vmax.f32 %v3636_v10, %v9721_v9 }
 0x1d7   : > { %6972 = vmatmul.mubr.f32.gmra.mrb[30].mxu0 %v3466_v47  ;;  %3498 = vst [vmem:[#allocation2 + $0x1a2] sm:$0xff] %v3466_v47  ;;  %v3948_v56 = vmax.f32 %v3884_v28, %v9739_v24  ;;  %v3762_v16 = vmax.f32 %v3698_v15, %v9728_v34  ;;  %v3565_v4 = vmax.f32 %v9525_v40, %v9638_v57  ;;  %v9779_v47 = vld [vmem:[#allocation2 + $0x38] sm:$0xff] }
 0x1d8   : > { %v3763_v25 = vmax.f32 %v9669_v45, %v9732_v3  ;;  %v4459_v6 = vmax.f32 %v4395_v33, %v9625_v35  ;;  %v4461_v8 = vmax.f32 %v4397_v62, %v9664_v32  ;;  %v4016_v58 = vmax.f32 %v3952_v12, %v9715_v29 }
 0x1d9   : > { %v4081_v59 = vmax.f32 %v4017_v52, %v9732_v3  ;;  %v4012_v30 = vmax.f32 %v3948_v56, %v9757_v31  ;;  %v3826_v7 = vmax.f32 %v3762_v16, %v9742_v53  ;;  %v4399_v5 = vmax.f32 %v4335_v43, %v9732_v3  ;;  %v4941_v52 = vld [vmem:[#allocation2 + $0x7b] sm:$0xff] }
 0x1da   : > { %v3827_v57 = vmax.f32 %v3763_v25, %v9747_v36  ;;  %v4523_v45 = vmax.f32 %v4459_v6, %v9631_v54  ;;  %v4525_v21 = vmax.f32 %v4461_v8, %v9645_v11  ;;  %v4080_v55 = vmax.f32 %v4016_v58, %v9728_v34  ;;  %v9787_v56 = vld [vmem:[#allocation2 + $0x7c] sm:$0xff] }
 0x1db   : > { %v4145_v44 = vmax.f32 %v4081_v59, %v9747_v36  ;;  %v4076_v19 = vmax.f32 %v4012_v30, %v9767_v50  ;;  %v3890_v0 = vmax.f32 %v3826_v7, %v9708_v49  ;;  %v4463_v26 = vmax.f32 %v4399_v5, %v9747_v36  ;;  %v9791_v25 = vld [vmem:[#allocation2 + $0x39] sm:$0xff] }
 0x1dc   : > { %v3891_v17 = vmax.f32 %v3827_v57, %v9771_v23  ;;  %v4587_v13 = vmax.f32 %v4523_v45, %v9633_v18  ;;  %v4589_v10 = vmax.f32 %v4525_v21, %v9647_v20  ;;  %v4144_v43 = vmax.f32 %v4080_v55, %v9742_v53  ;;  %v9803_v21 = vld [vmem:[#allocation2 + $0x80] sm:$0xff] }
 0x1dd   : > { %v4209_v28 = vmax.f32 %v4145_v44, %v9771_v23  ;;  %v4140_v15 = vmax.f32 %v4076_v19, %v9779_v47  ;;  %v3954_v33 = vmax.f32 %v3890_v0, %v9710_v42  ;;  %v4527_v62 = vmax.f32 %v4463_v26, %v9771_v23  ;;  %v9805_v55 = vld [vmem:[#allocation2 + $0x82] sm:$0xff] }
 0x1de   : > { %v3637_v12 = vmax.f32 %v4941_v52, %v9771_v23  ;;  %v4651_v18 = vmax.f32 %v4587_v13, %v9635_v37  ;;  %v4653_v16 = vmax.f32 %v4589_v10, %v9656_v48  ;;  %v4208_v6 = vmax.f32 %v4144_v43, %v9708_v49  ;;  %v9807_v44 = vld [vmem:[#allocation2 + $0x83] sm:$0xff] }
 0x1df   : > { %v9794_v8 = vmax.f32 %v3891_v17, %v4941_v52  ;;  %v4204_v58 = vmax.f32 %v4140_v15, %v9791_v25  ;;  %v4018_v59 = vmax.f32 %v3954_v33, %v9721_v9  ;;  %v4273_v30 = vmax.f32 %v4209_v28, %v4941_v52  ;;  %v9819_v43 = vld [vmem:[#allocation2 + $0x81] sm:$0xff] }
 0x1e0   : > { %v4591_v7 = vmax.f32 %v4527_v62, %v4941_v52  ;;  %v4715_v5 = vmax.f32 %v4651_v18, %v9643_v22  ;;  %v4272_v57 = vmax.f32 %v4208_v6, %v9710_v42  ;;  %v4717_v45 = vmax.f32 %v4653_v16, %v3565_v4  ;;  %v9821_v28 = vld [vmem:[#allocation2 + $0x84] sm:$0xff] }
 0x1e1   : > { %v9801_v37 = vmax.f32 %v3637_v12, %v9787_v56  ;;  %v4268_v19 = vmax.f32 %v4204_v58, %v9671_v61  ;;  %v4019_v0 = vmax.f32 %v9794_v8, %v9787_v56  ;;  %v4337_v26 = vmax.f32 %v4273_v30, %v9787_v56 }
 0x1e2   : > { %v4655_v22 = vmax.f32 %v4591_v7, %v9787_v56  ;;  %v4779_v4 = vmax.f32 %v4715_v5, %v9654_v51  ;;  %v4336_v17 = vmax.f32 %v4272_v57, %v9721_v9  ;;  %v4781_v13 = vmax.f32 %v4717_v45, %v9732_v3 }
 0x1e3   : > { %v3566_v10 = vmax.f32 %v9525_v40, %v9725_v2  ;;  %v4332_v15 = vmax.f32 %v4268_v19, %v9673_v14  ;;  %v3764_v33 = vmax.f32 %v9745_v46, %v9803_v21  ;;  %v4082_v62 = vmax.f32 %v4018_v59, %v9803_v21 }
 0x1e4   : > { %v3638_v12 = vmax.f32 %v9807_v44, %v9805_v55  ;;  %v4843_v18 = vmax.f32 %v4779_v4, %v9664_v32  ;;  %v4845_v16 = vmax.f32 %v4781_v13, %v9747_v36  ;;  %v4400_v2 = vmax.f32 %v4336_v17, %v9803_v21 }
 0x1e5   : > { %v3630_v40 = vmax.f32 %v3566_v10, %v9739_v24  ;;  %v4396_v6 = vmax.f32 %v4332_v15, %v9681_v60  ;;  %v3828_v8 = vmax.f32 %v3764_v33, %v9819_v43  ;;  %v4146_v58 = vmax.f32 %v4082_v62, %v9819_v43 }
 0x1e6   : > { %v9837_v46 = vmax.f32 %v3638_v12, %v9821_v28  ;;  %v4907_v59 = vmax.f32 %v4843_v18, %v9645_v11  ;;  %v4909_v30 = vmax.f32 %v4845_v16, %v9771_v23  ;;  %v4464_v5 = vmax.f32 %v4400_v2, %v9819_v43  ;;  %v4943_v12 = vld [vmem:[#allocation2 + $0x93] sm:$0xff] }
 0x1e7   : > { %v3694_v7 = vmax.f32 %v3630_v40, %v9757_v31  ;;  %v4460_v24 = vmax.f32 %v4396_v6, %v9690_v63  ;;  %v3892_v57 = vmax.f32 %v3828_v8, %v9805_v55  ;;  %v4210_v45 = vmax.f32 %v4146_v58, %v9805_v55  ;;  %v9853_v31 = vld [vmem:[#allocation2 + $0x90] sm:$0xff] }
 0x1e8   : > { %v3567_v19 = vmax.f32 %v9619_v38, %v9627_v41  ;;  %v4971_v4 = vmax.f32 %v4907_v59, %v9647_v20  ;;  %v9849_v17 = vmax.f32 %v4909_v30, %v4941_v52  ;;  %v4528_v23 = vmax.f32 %v4464_v5, %v9805_v55  ;;  %v4879_v52 = vld [vmem:[#allocation2 + $0x92] sm:$0xff] }
 0x1e9   : > { %v3758_v11 = vmax.f32 %v3694_v7, %v9767_v50  ;;  %v4524_v13 = vmax.f32 %v4460_v24, %v9697_v27  ;;  %v3956_v10 = vmax.f32 %v3892_v57, %v9807_v44  ;;  %v4274_v15 = vmax.f32 %v4210_v45, %v9807_v44  ;;  %v9863_v50 = vld [vmem:[#allocation2 + $0x91] sm:$0xff] }
 0x1ea   : > { %v4719_v33 = vmax.f32 %v4655_v22, %v3567_v19  ;;  %v5035_v62 = vmax.f32 %v4971_v4, %v9656_v48  ;;  %v5037_v38 = vmax.f32 %v9849_v17, %v9787_v56  ;;  %v4592_v20 = vmax.f32 %v4528_v23, %v9807_v44  ;;  %v9874_v58 = vld [vmem:[#allocation2 + $0x94] sm:$0xff] }
 0x1eb   : > { %v3822_v41 = vmax.f32 %v3758_v11, %v9779_v47  ;;  %v4588_v18 = vmax.f32 %v4524_v13, %v9702_v39  ;;  %v4020_v16 = vmax.f32 %v3956_v10, %v9821_v28  ;;  %v4338_v40 = vmax.f32 %v4274_v15, %v9821_v28  ;;  %v9884_v45 = vld [vmem:[#allocation2 + $0x98] sm:$0xff] }
 0x1ec   : > { %v3765_v48 = vmax.f32 %v9801_v37, %v9853_v31  ;;  %7006 = vmatprep.mubr.f32.mxu0 %v5035_v62  ;;  %v4656_v2 = vmax.f32 %v4592_v20, %v9821_v28  ;;  %v4083_v6 = vmax.f32 %v4019_v0, %v9853_v31  ;;  %v4401_v8 = vmax.f32 %v4337_v26, %v9853_v31 }
 0x1ed   : > { %v3886_v22 = vmax.f32 %v3822_v41, %v9791_v25  ;;  %v4652_v59 = vmax.f32 %v4588_v18, %v9704_v1  ;;  %v4783_v30 = vmax.f32 %v4719_v33, %v9853_v31  ;;  %v3639_v5 = vmax.f32 %v4943_v12, %v4879_v52 }
 0x1ee   : > { %v3829_v7 = vmax.f32 %v3765_v48, %v9863_v50  ;;  %v4147_v24 = vmax.f32 %v4083_v6, %v9863_v50  ;;  %v4465_v57 = vmax.f32 %v4401_v8, %v9863_v50  ;;  %v3568_v0 = vmax.f32 %v9779_v47, %v9791_v25  ;;  %v9897_v48 = vld [vmem:[#allocation2 + $0x99] sm:$0xff] }
 0x1ef   : > { %v3950_v37 = vmax.f32 %v3886_v22, %v9671_v61  ;;  %v4716_v26 = vmax.f32 %v4652_v59, %v9715_v29  ;;  %v4847_v19 = vmax.f32 %v4783_v30, %v9863_v50  ;;  %v9889_v11 = vmax.f32 %v3639_v5, %v9874_v58  ;;  %v4880_v6 = vld [vmem:[#allocation2 + $0x9a] sm:$0xff] }
 0x1f0   : > { %v3893_v4 = vmax.f32 %v3829_v7, %v4879_v52  ;;  %v4211_v61 = vmax.f32 %v4147_v24, %v4879_v52  ;;  %v4529_v13 = vmax.f32 %v4465_v57, %v4879_v52  ;;  %v4720_v10 = vmax.f32 %v4656_v2, %v3568_v0  ;;  %v4944_v8 = vld [vmem:[#allocation2 + $0x9b] sm:$0xff] }
 0x1f1   : > { %v4014_v23 = vmax.f32 %v3950_v37, %v9673_v14  ;;  %v4780_v15 = vmax.f32 %v4716_v26, %v9728_v34  ;;  %v4911_v33 = vmax.f32 %v4847_v19, %v4879_v52  ;;  %v3766_v47 = vmax.f32 %v9837_v46, %v9884_v45 }
 0x1f2   : > { %v3957_v62 = vmax.f32 %v3893_v4, %v4943_v12  ;;  %v4275_v41 = vmax.f32 %v4211_v61, %v4943_v12  ;;  %v4593_v20 = vmax.f32 %v4529_v13, %v4943_v12  ;;  %v4084_v18 = vmax.f32 %v4020_v16, %v9884_v45  ;;  %v9921_v61 = vld [vmem:[#allocation2 + $0xa8] sm:$0xff] }
 0x1f3   : > { %v4078_v25 = vmax.f32 %v4014_v23, %v9681_v60  ;;  %v4844_v14 = vmax.f32 %v4780_v15, %v9742_v53  ;;  %v9900_v22 = vmax.f32 %v4911_v33, %v4943_v12  ;;  %v4402_v52 = vmax.f32 %v4338_v40, %v9884_v45  ;;  %v9913_v40 = vld [vmem:[#allocation2 + $0x9c] sm:$0xff] }
 0x1f4   : > { %v4021_v2 = vmax.f32 %v3957_v62, %v9874_v58  ;;  %v4339_v60 = vmax.f32 %v4275_v41, %v9874_v58  ;;  %v4657_v59 = vmax.f32 %v4593_v20, %v9874_v58  ;;  %v4784_v16 = vmax.f32 %v4720_v10, %v9884_v45 }
 0x1f5   : > { %v4142_v46 = vmax.f32 %v4078_v25, %v9690_v63  ;;  %v4908_v30 = vmax.f32 %v4844_v14, %v9708_v49  ;;  %v5039_v12 = vmax.f32 %v9900_v22, %v9874_v58  ;;  %v3830_v7 = vmax.f32 %v3766_v47, %v9897_v48  ;;  %v4885_v22 = vld [vmem:[#allocation2 + $0xda] sm:$0xff] }
 0x1f6   : > { %v4148_v5 = vmax.f32 %v4084_v18, %v9897_v48  ;;  %v4466_v24 = vmax.f32 %v4402_v52, %v9897_v48  ;;  %v4848_v57 = vmax.f32 %v4784_v16, %v9897_v48  ;;  %v3640_v0 = vmax.f32 %v4944_v8, %v4880_v6  ;;  %v4945_v52 = vld [vmem:[#allocation2 + $0xab] sm:$0xff] }
 0x1f7   : > { %v4206_v37 = vmax.f32 %v4142_v46, %v9697_v27  ;;  %v4972_v26 = vmax.f32 %v4908_v30, %v9710_v42  ;;  %v3894_v19 = vmax.f32 %v3830_v7, %v4880_v6  ;;  %v3569_v23 = vmax.f32 %v9625_v35, %v9631_v54  ;;  %v9931_v54 = vld [vmem:[#allocation2 + $0xa9] sm:$0xff] }
 0x1f8   : > { %v4212_v4 = vmax.f32 %v4148_v5, %v4880_v6  ;;  %v4530_v10 = vmax.f32 %v4466_v24, %v4880_v6  ;;  %v4912_v15 = vmax.f32 %v4848_v57, %v4880_v6  ;;  %v3704_v33 = vmax.f32 %v3640_v0, %v9913_v40  ;;  %v9947_v5 = vld [vmem:[#allocation2 + $0xac] sm:$0xff] }
 0x1f9   : > { %v4270_v13 = vmax.f32 %v4206_v37, %v9702_v39  ;;  %v5036_v62 = vmax.f32 %v4972_v26, %v9721_v9  ;;  %v3958_v47 = vmax.f32 %v3894_v19, %v4944_v8  ;;  %v4721_v41 = vmax.f32 %v4657_v59, %v3569_v23  ;;  %v4881_v39 = vld [vmem:[#allocation2 + $0xaa] sm:$0xff] }
 0x1fa   : > { %v4276_v25 = vmax.f32 %v4212_v4, %v4944_v8  ;;  %v4594_v18 = vmax.f32 %v4530_v10, %v4944_v8  ;;  %v9927_v14 = vmax.f32 %v4912_v15, %v4944_v8  ;;  %v3767_v35 = vmax.f32 %v9889_v11, %v9921_v61  ;;  %v9958_v4 = vld [vmem:[#allocation2 + $0xb1] sm:$0xff] }
 0x1fb   : > { %v4334_v20 = vmax.f32 %v4270_v13, %v9704_v1  ;;  %7007 = vmatmul.mubr.f32.vlgmr.msra.gmra.mrb[0].mxu0 %v5036_v62  ;;  %v4022_v6 = vmax.f32 %v3958_v47, %v9913_v40  ;;  %v4085_v16 = vmax.f32 %v4021_v2, %v9921_v61  ;;  %v4403_v59 = vmax.f32 %v4339_v60, %v9921_v61  ;;  %v9937_v1 = vld [vmem:[#allocation2 + $0xb0] sm:$0xff] }
 0x1fc   : > { %v4340_v46 = vmax.f32 %v4276_v25, %v9913_v40  ;;  %7009 = vmatprep.mubr.f32.mxu0 %v5037_v38  ;;  %v4658_v8 = vmax.f32 %v4594_v18, %v9913_v40  ;;  %v5040_v30 = vmax.f32 %v9927_v14, %v9913_v40  ;;  %v4785_v7 = vmax.f32 %v4721_v41, %v9921_v61  ;;  %v4882_v18 = vld [vmem:[#allocation2 + $0xb2] sm:$0xff]  ;;  %v10058_v40 = vld [vmem:[#allocation2 + $0xe0] sm:$0xff] }
 0x1fd   : > { %v4398_v11 = vmax.f32 %v4334_v20, %v9715_v29  ;;  %v3831_v2 = vmax.f32 %v3767_v35, %v9931_v54  ;;  %v4149_v60 = vmax.f32 %v4085_v16, %v9931_v54  ;;  %v4467_v37 = vmax.f32 %v4403_v59, %v9931_v54  ;;  %v4946_v35 = vld [vmem:[#allocation2 + $0xb3] sm:$0xff] }
 0x1fe   : > { %v3641_v24 = vmax.f32 %v4945_v52, %v4881_v39  ;;  %v4849_v29 = vmax.f32 %v4785_v7, %v9931_v54  ;;  %v3570_v17 = vmax.f32 %v9690_v63, %v9697_v27  ;;  %v3768_v38 = vmax.f32 %v3704_v33, %v9937_v1  ;;  %v9979_v7 = vld [vmem:[#allocation2 + $0xb4] sm:$0xff] }
 0x1ff   : > { %v4462_v56 = vmax.f32 %v4398_v11, %v9728_v34  ;;  %v3895_v57 = vmax.f32 %v3831_v2, %v4881_v39  ;;  %v4213_v0 = vmax.f32 %v4149_v60, %v4881_v39  ;;  %v4531_v26 = vmax.f32 %v4467_v37, %v4881_v39  ;;  %v9972_v11 = vld [vmem:[#allocation2 + $0xc0] sm:$0xff] }
 0x200   : > { %v3705_v19 = vmax.f32 %v3641_v24, %v9947_v5  ;;  %v4913_v13 = vmax.f32 %v4849_v29, %v4881_v39  ;;  %v4722_v10 = vmax.f32 %v4658_v8, %v3570_v17  ;;  %v4086_v15 = vmax.f32 %v4022_v6, %v9937_v1 }
 0x201   : > { %v4526_v23 = vmax.f32 %v4462_v56, %v9742_v53  ;;  %v3959_v62 = vmax.f32 %v3895_v57, %v4945_v52  ;;  %v4277_v47 = vmax.f32 %v4213_v0, %v4945_v52  ;;  %v4595_v25 = vmax.f32 %v4531_v26, %v4945_v52 }
 0x202   : > { %v4404_v63 = vmax.f32 %v4340_v46, %v9937_v1  ;;  %v9964_v33 = vmax.f32 %v4913_v13, %v4945_v52  ;;  %v4786_v41 = vmax.f32 %v4722_v10, %v9937_v1  ;;  %v3832_v20 = vmax.f32 %v3768_v38, %v9958_v4 }
 0x203   : > { %v4590_v27 = vmax.f32 %v4526_v23, %v9708_v49  ;;  %v4023_v39 = vmax.f32 %v3959_v62, %v9947_v5  ;;  %v4341_v16 = vmax.f32 %v4277_v47, %v9947_v5  ;;  %v4659_v6 = vmax.f32 %v4595_v25, %v9947_v5  ;;  %v9986_v23 = vld [vmem:[#allocation2 + $0xc1] sm:$0xff] }
 0x204   : > { %v4150_v59 = vmax.f32 %v4086_v15, %v9958_v4  ;;  %v5041_v52 = vmax.f32 %v9964_v33, %v9947_v5  ;;  %v4468_v46 = vmax.f32 %v4404_v63, %v9958_v4  ;;  %v4850_v8 = vmax.f32 %v4786_v41, %v9958_v4  ;;  %v9996_v63 = vld [vmem:[#allocation2 + $0xc8] sm:$0xff] }
 0x205   : > { %v4654_v49 = vmax.f32 %v4590_v27, %v9710_v42  ;;  %v3896_v2 = vmax.f32 %v3832_v20, %v4882_v18  ;;  %v3642_v37 = vmax.f32 %v4946_v35, %v4882_v18  ;;  %v3571_v24 = vmax.f32 %v9654_v51, %v9664_v32  ;;  %v4883_v32 = vld [vmem:[#allocation2 + $0xc2] sm:$0xff] }
 0x206   : > { %v4214_v60 = vmax.f32 %v4150_v59, %v4882_v18  ;;  %v4532_v29 = vmax.f32 %v4468_v46, %v4882_v18  ;;  %v4914_v17 = vmax.f32 %v4850_v8, %v4882_v18  ;;  %v3769_v42 = vmax.f32 %v3705_v19, %v9972_v11 }
 0x207   : > { %v4718_v56 = vmax.f32 %v4654_v49, %v9721_v9  ;;  %v3960_v38 = vmax.f32 %v3896_v2, %v4946_v35  ;;  %v3706_v0 = vmax.f32 %v3642_v37, %v9979_v7  ;;  %v4723_v26 = vmax.f32 %v4659_v6, %v3571_v24  ;;  %v4947_v9 = vld [vmem:[#allocation2 + $0xc3] sm:$0xff] }
 0x208   : > { %v4278_v57 = vmax.f32 %v4214_v60, %v4946_v35  ;;  %v4596_v10 = vmax.f32 %v4532_v29, %v4946_v35  ;;  %v9989_v15 = vmax.f32 %v4914_v17, %v4946_v35  ;;  %v4087_v51 = vmax.f32 %v4023_v39, %v9972_v11  ;;  %v10003_v35 = vld [vmem:[#allocation2 + $0xc4] sm:$0xff] }
 0x209   : > { %v4782_v13 = vmax.f32 %v4718_v56, %v9803_v21  ;;  %v4024_v62 = vmax.f32 %v3960_v38, %v9979_v7  ;;  %v4405_v47 = vmax.f32 %v4341_v16, %v9972_v11  ;;  %v4787_v25 = vmax.f32 %v4723_v26, %v9972_v11  ;;  %v10013_v29 = vld [vmem:[#allocation2 + $0xc9] sm:$0xff] }
 0x20a   : > { %v4342_v19 = vmax.f32 %v4278_v57, %v9979_v7  ;;  %v4660_v41 = vmax.f32 %v4596_v10, %v9979_v7  ;;  %v5042_v20 = vmax.f32 %v9989_v15, %v9979_v7  ;;  %v3833_v18 = vmax.f32 %v3769_v42, %v9986_v23  ;;  %v5014_v15 = vld [vmem:[#allocation2 + $0xe4] sm:$0xff] }
 0x20b   : > { %v4846_v27 = vmax.f32 %v4782_v13, %v9819_v43  ;;  %v4151_v39 = vmax.f32 %v4087_v51, %v9986_v23  ;;  %v4469_v6 = vmax.f32 %v4405_v47, %v9986_v23  ;;  %v4851_v16 = vmax.f32 %v4787_v25, %v9986_v23  ;;  %v10024_v47 = vld [vmem:[#allocation2 + $0xd8] sm:$0xff] }
 0x20c   : > { %v3643_v59 = vmax.f32 %v4947_v9, %v4883_v32  ;;  %v3897_v46 = vmax.f32 %v3833_v18, %v4883_v32  ;;  %v3572_v8 = vmax.f32 %v9728_v34, %v9742_v53  ;;  %v3770_v2 = vmax.f32 %v3706_v0, %v9996_v63  ;;  %v4884_v53 = vld [vmem:[#allocation2 + $0xca] sm:$0xff] }
 0x20d   : > { %v4910_v49 = vmax.f32 %v4846_v27, %v9805_v55  ;;  %v4215_v60 = vmax.f32 %v4151_v39, %v4883_v32  ;;  %v4533_v37 = vmax.f32 %v4469_v6, %v4883_v32  ;;  %v4915_v24 = vmax.f32 %v4851_v16, %v4883_v32  ;;  %v4948_v0 = vld [vmem:[#allocation2 + $0xcb] sm:$0xff]  ;;  %v10035_v6 = vld [vmem:[#allocation2 + $0xd9] sm:$0xff] }
 0x20e   : > { %v3707_v56 = vmax.f32 %v3643_v59, %v10003_v35  ;;  %v3961_v42 = vmax.f32 %v3897_v46, %v4947_v9  ;;  %v4724_v38 = vmax.f32 %v4660_v41, %v3572_v8  ;;  %v4088_v57 = vmax.f32 %v4024_v62, %v9996_v63  ;;  %v10031_v27 = vld [vmem:[#allocation2 + $0xcc] sm:$0xff] }
 0x20f   : > { %v4974_v17 = vmax.f32 %v4910_v49, %v9807_v44  ;;  %v4279_v55 = vmax.f32 %v4215_v60, %v4947_v9  ;;  %v4597_v26 = vmax.f32 %v4533_v37, %v4947_v9  ;;  %v10017_v13 = vmax.f32 %v4915_v24, %v4947_v9 }
 0x210   : > { %v4406_v34 = vmax.f32 %v4342_v19, %v9996_v63  ;;  %v4025_v51 = vmax.f32 %v3961_v42, %v10003_v35  ;;  %v4788_v32 = vmax.f32 %v4724_v38, %v9996_v63  ;;  %v3834_v44 = vmax.f32 %v3770_v2, %v10013_v29 }
 0x211   : > { %v5038_v10 = vmax.f32 %v4974_v17, %v9821_v28  ;;  %v4343_v62 = vmax.f32 %v4279_v55, %v10003_v35  ;;  %v4661_v25 = vmax.f32 %v4597_v26, %v10003_v35  ;;  %v5043_v9 = vmax.f32 %v10017_v13, %v10003_v35  ;;  %v5013_v13 = vld [vmem:[#allocation2 + $0xdc] sm:$0xff] }
 0x212   : > { %v4152_v19 = vmax.f32 %v4088_v57, %v10013_v29  ;;  %v4470_v28 = vmax.f32 %v4406_v34, %v10013_v29  ;;  %v4852_v41 = vmax.f32 %v4788_v32, %v10013_v29  ;;  %v3898_v18 = vmax.f32 %v3834_v44, %v4884_v53 }
 0x213   : > { %7010 = vmatmul.mubr.f32.gmra.mrb[2].mxu0 %v5038_v10  ;;  %v3644_v39 = vmax.f32 %v4948_v0, %v4884_v53  ;;  %v3573_v35 = vmax.f32 %v9732_v3, %v9747_v36  ;;  %v3771_v59 = vmax.f32 %v3707_v56, %v10024_v47  ;;  %v4089_v49 = vmax.f32 %v4025_v51, %v10024_v47  ;;  %v10065_v10 = vld [vmem:[#allocation2 + $0xe1] sm:$0xff] }
 0x214   : > { %7012 = vmatprep.mubr.f32.mxu0 %v5039_v12  ;;  %v4216_v16 = vmax.f32 %v4152_v19, %v4884_v53  ;;  %v4534_v46 = vmax.f32 %v4470_v28, %v4884_v53  ;;  %v4916_v8 = vmax.f32 %v4852_v41, %v4884_v53  ;;  %v3962_v2 = vmax.f32 %v3898_v18, %v4948_v0  ;;  %v4949_v12 = vld [vmem:[#allocation2 + $0xdb] sm:$0xff]  ;;  %v4950_v19 = vld [vmem:[#allocation2 + $0xe3] sm:$0xff] }
 0x215   : > { %v3708_v60 = vmax.f32 %v3644_v39, %v10031_v27  ;;  %v4725_v24 = vmax.f32 %v4661_v25, %v3573_v35  ;;  %v4407_v17 = vmax.f32 %v4343_v62, %v10024_v47  ;;  %v3835_v58 = vmax.f32 %v3771_v59, %v10035_v6  ;;  %v4886_v25 = vld [vmem:[#allocation2 + $0xe2] sm:$0xff] }
 0x216   : > { %v4280_v37 = vmax.f32 %v4216_v16, %v4948_v0  ;;  %v4598_v3 = vmax.f32 %v4534_v46, %v4948_v0  ;;  %v4980_v36 = vmax.f32 %v4916_v8, %v4948_v0  ;;  %v4026_v56 = vmax.f32 %v3962_v2, %v10031_v27 }
 0x217   : > { %7013 = vmatmul.mubr.f32.gmra.mrb[4].mxu0 %v5040_v30  ;;  %v4153_v42 = vmax.f32 %v4089_v49, %v10035_v6  ;;  %v4789_v57 = vmax.f32 %v4725_v24, %v10024_v47  ;;  %v4471_v55 = vmax.f32 %v4407_v17, %v10035_v6  ;;  %v3899_v26 = vmax.f32 %v3835_v58, %v4885_v22 }
 0x218   : > { %7015 = vmatprep.mubr.f32.mxu0 %v5041_v52  ;;  %v4344_v38 = vmax.f32 %v4280_v37, %v10031_v27  ;;  %v4662_v14 = vmax.f32 %v4598_v3, %v10031_v27  ;;  %v5044_v30 = vmax.f32 %v4980_v36, %v10031_v27  ;;  %v3645_v53 = vmax.f32 %v4949_v12, %v4885_v22 }
 0x219   : > { %v4217_v34 = vmax.f32 %v4153_v42, %v4885_v22  ;;  %v4853_v0 = vmax.f32 %v4789_v57, %v10035_v6  ;;  %v4535_v5 = vmax.f32 %v4471_v55, %v4885_v22  ;;  %v3963_v33 = vmax.f32 %v3899_v26, %v4949_v12  ;;  %v4951_v57 = vld [vmem:[#allocation2 + $0xf3] sm:$0xff] }
 0x21a   : > { %v3574_v52 = vmax.f32 %v9803_v21, %v9819_v43  ;;  %v3709_v32 = vmax.f32 %v3645_v53, %v5013_v13  ;;  %v3772_v44 = vmax.f32 %v3708_v60, %v10058_v40  ;;  %v4090_v62 = vmax.f32 %v4026_v56, %v10058_v40  ;;  %v10081_v60 = vld [vmem:[#allocation2 + $0xf1] sm:$0xff] }
 0x21b   : > { %7016 = vmatmul.mubr.f32.gmra.mrb[6].mxu0 %v5042_v20  ;;  %v4281_v51 = vmax.f32 %v4217_v34, %v4949_v12  ;;  %v4917_v27 = vmax.f32 %v4853_v0, %v4885_v22  ;;  %v4599_v28 = vmax.f32 %v4535_v5, %v4949_v12  ;;  %v4027_v41 = vmax.f32 %v3963_v33, %v5013_v13  ;;  %v10075_v20 = vld [vmem:[#allocation2 + $0xf0] sm:$0xff]  ;;  %v10091_v33 = vld [vmem:[#allocation2 + $0xf8] sm:$0xff] }
 0x21c   : > { %7018 = vmatprep.mubr.f32.mxu0 %v5043_v9  ;;  %v4726_v18 = vmax.f32 %v4662_v14, %v3574_v52  ;;  %v4408_v43 = vmax.f32 %v4344_v38, %v10058_v40  ;;  %v3836_v39 = vmax.f32 %v3772_v44, %v10065_v10  ;;  %v4154_v7 = vmax.f32 %v4090_v62, %v10065_v10  ;;  %v5015_v5 = vld [vmem:[#allocation2 + $0xf4] sm:$0xff] }
 0x21d   : > { %v4345_v21 = vmax.f32 %v4281_v51, %v5013_v13  ;;  %v4981_v16 = vmax.f32 %v4917_v27, %v4949_v12  ;;  %v4663_v35 = vmax.f32 %v4599_v28, %v5013_v13  ;;  %v3646_v49 = vmax.f32 %v4950_v19, %v4886_v25 }
 0x21e   : > { %v4790_v59 = vmax.f32 %v4726_v18, %v10058_v40  ;;  %v4472_v9 = vmax.f32 %v4408_v43, %v10065_v10  ;;  %v3900_v46 = vmax.f32 %v3836_v39, %v4886_v25  ;;  %v4218_v8 = vmax.f32 %v4154_v7, %v4886_v25  ;;  %v4888_v39 = vld [vmem:[#allocation2 + $0xfa] sm:$0xff] }
 0x21f   : > { %7019 = vmatmul.mubr.f32.gmra.mrb[8].mxu0 %v5044_v30  ;;  %v3575_v2 = vmax.f32 %v9853_v31, %v9863_v50  ;;  %v5045_v37 = vmax.f32 %v4981_v16, %v5013_v13  ;;  %v3710_v17 = vmax.f32 %v3646_v49, %v5014_v15  ;;  %v3773_v58 = vmax.f32 %v3709_v32, %v10075_v20  ;;  %v4887_v50 = vld [vmem:[#allocation2 + $0xf2] sm:$0xff]  ;;  %v4952_v7 = vld [vmem:[#allocation2 + $0xfb] sm:$0xff] }
 0x220   : > { %v4854_v24 = vmax.f32 %v4790_v59, %v10065_v10  ;;  %v4536_v22 = vmax.f32 %v4472_v9, %v4886_v25  ;;  %v3964_v12 = vmax.f32 %v3900_v46, %v4950_v19  ;;  %v4282_v3 = vmax.f32 %v4218_v8, %v4950_v19  ;;  %v5016_v46 = vld [vmem:[#allocation2 + $0xfc] sm:$0xff]  ;;  %v10103_v8 = vld [vmem:[#allocation2 + $0x108] sm:$0xff] }
 0x221   : > { %v4727_v36 = vmax.f32 %v4663_v35, %v3575_v2  ;;  %7021 = vmatprep.mubr.f32.mxu0 %v5045_v37  ;;  %v4091_v42 = vmax.f32 %v4027_v41, %v10075_v20  ;;  %v4409_v38 = vmax.f32 %v4345_v21, %v10075_v20  ;;  %v3837_v31 = vmax.f32 %v3773_v58, %v10081_v60 }
 0x222   : > { %v4918_v56 = vmax.f32 %v4854_v24, %v4886_v25  ;;  %v4600_v55 = vmax.f32 %v4536_v22, %v4950_v19  ;;  %v4028_v26 = vmax.f32 %v3964_v12, %v5014_v15  ;;  %v4346_v13 = vmax.f32 %v4282_v3, %v5014_v15 }
 0x223   : > { %v4791_v14 = vmax.f32 %v4727_v36, %v10075_v20  ;;  %v4155_v34 = vmax.f32 %v4091_v42, %v10081_v60  ;;  %v4473_v53 = vmax.f32 %v4409_v38, %v10081_v60  ;;  %v3901_v0 = vmax.f32 %v3837_v31, %v4887_v50  ;;  %v10108_v36 = vld [vmem:[#allocation2 + $0x109] sm:$0xff] }
 0x224   : > { %v4982_v30 = vmax.f32 %v4918_v56, %v4950_v19  ;;  %v4664_v52 = vmax.f32 %v4600_v55, %v5014_v15  ;;  %v3647_v32 = vmax.f32 %v4951_v57, %v4887_v50  ;;  %v3576_v44 = vmax.f32 %v9884_v45, %v9897_v48  ;;  %v10096_v19 = vld [vmem:[#allocation2 + $0xf9] sm:$0xff] }
 0x225   : > { %v4855_v51 = vmax.f32 %v4791_v14, %v10081_v60  ;;  %v4219_v25 = vmax.f32 %v4155_v34, %v4887_v50  ;;  %v4537_v27 = vmax.f32 %v4473_v53, %v4887_v50  ;;  %v3965_v28 = vmax.f32 %v3901_v0, %v4951_v57 }
 0x226   : > { %v5046_v62 = vmax.f32 %v4982_v30, %v5014_v15  ;;  %v3711_v18 = vmax.f32 %v3647_v32, %v5015_v5  ;;  %v4728_v21 = vmax.f32 %v4664_v52, %v3576_v44  ;;  %v3774_v43 = vmax.f32 %v3710_v17, %v10091_v33 }
 0x227   : > { %v4919_v41 = vmax.f32 %v4855_v51, %v4887_v50  ;;  %v4283_v16 = vmax.f32 %v4219_v25, %v4951_v57  ;;  %v4601_v35 = vmax.f32 %v4537_v27, %v4951_v57  ;;  %v4029_v59 = vmax.f32 %v3965_v28, %v5015_v5  ;;  %v10113_v50 = vpop.f32.mrb[0].mxu1  ;;  %v5017_v28 = vld [vmem:[#allocation2 + $0x10c] sm:$0xff] }
 0x228   : > { %7022 = vmatmul.mubr.f32.gmra.mrb[10].mxu0 %v5046_v62  ;;  %v4092_v49 = vmax.f32 %v4028_v26, %v10091_v33  ;;  %v4410_v48 = vmax.f32 %v4346_v13, %v10091_v33  ;;  %v4792_v15 = vmax.f32 %v4728_v21, %v10091_v33  ;;  %v3838_v9 = vmax.f32 %v3774_v43, %v10096_v19  ;;  %v10116_v14 = vpop.f32.mrb[1].mxu1 }
 0x229   : > { %v4983_v45 = vmax.f32 %v4919_v41, %v4951_v57  ;;  %v4347_v2 = vmax.f32 %v4283_v16, %v5015_v5  ;;  %v4665_v37 = vmax.f32 %v4601_v35, %v5015_v5  ;;  %v3648_v17 = vmax.f32 %v4952_v7, %v4888_v39  ;;  %v10123_v41 = vld [vmem:[#allocation2 + $0x110] sm:$0xff] }
 0x22a   : > { %v4156_v24 = vmax.f32 %v4092_v49, %v10096_v19  ;;  %v4474_v22 = vmax.f32 %v4410_v48, %v10096_v19  ;;  %v4856_v12 = vmax.f32 %v4792_v15, %v10096_v19  ;;  %v3902_v3 = vmax.f32 %v3838_v9, %v4888_v39  ;;  %v10132_v48 = vld [vmem:[#allocation2 + $0x111] sm:$0xff] }
 0x22b   : > { %v5047_v58 = vmax.f32 %v4983_v45, %v5015_v5  ;;  %v3712_v42 = vmax.f32 %v3648_v17, %v5016_v46  ;;  %v3577_v38 = vmax.f32 %v9921_v61, %v9931_v54  ;;  %v3775_v31 = vmax.f32 %v3711_v18, %v10103_v8  ;;  %v4889_v5 = vld [vmem:[#allocation2 + $0x10a] sm:$0xff]  ;;  %v10125_v18 = vpop.f32.mrb[2].mxu1 }
 0x22c   : > { %v4220_v56 = vmax.f32 %v4156_v24, %v4888_v39  ;;  %v4538_v57 = vmax.f32 %v4474_v22, %v4888_v39  ;;  %v4920_v55 = vmax.f32 %v4856_v12, %v4888_v39  ;;  %v3966_v26 = vmax.f32 %v3902_v3, %v4952_v7  ;;  %v4953_v61 = vld [vmem:[#allocation2 + $0x10b] sm:$0xff]  ;;  %v10127_v35 = vpop.f32.mrb[3].mxu1  ;;  %v4954_v24 = vld [vmem:[#allocation2 + $0x113] sm:$0xff] }
 0x22d   : > { %7024 = vmatprep.mubr.f32.mxu0 %v5047_v58  ;;  %v4093_v13 = vmax.f32 %v4029_v59, %v10103_v8  ;;  %v4729_v34 = vmax.f32 %v4665_v37, %v3577_v38  ;;  %v4411_v53 = vmax.f32 %v4347_v2, %v10103_v8  ;;  %v3839_v0 = vmax.f32 %v3775_v31, %v10108_v36  ;;  %v4890_v37 = vld [vmem:[#allocation2 + $0x112] sm:$0xff] }
 0x22e   : > { %v4284_v30 = vmax.f32 %v4220_v56, %v4952_v7  ;;  %v4602_v54 = vmax.f32 %v4538_v57, %v4952_v7  ;;  %v4984_v52 = vmax.f32 %v4920_v55, %v4952_v7  ;;  %v4030_v51 = vmax.f32 %v3966_v26, %v5016_v46  ;;  %v5018_v31 = vld [vmem:[#allocation2 + $0x114] sm:$0xff]  ;;  %v10141_v57 = vld [vmem:[#allocation2 + $0x120] sm:$0xff] }
 0x22f   : > { %v4157_v32 = vmax.f32 %v4093_v13, %v10108_v36  ;;  %v4793_v62 = vmax.f32 %v4729_v34, %v10103_v8  ;;  %v4475_v25 = vmax.f32 %v4411_v53, %v10108_v36  ;;  %v3903_v27 = vmax.f32 %v3839_v0, %v4889_v5  ;;  %v10136_v3 = vpop.f32.mrb[4].mxu1 }
 0x230   : > { %v4348_v44 = vmax.f32 %v4284_v30, %v5016_v46  ;;  %v4666_v21 = vmax.f32 %v4602_v54, %v5016_v46  ;;  %v5048_v43 = vmax.f32 %v4984_v52, %v5016_v46  ;;  %v3649_v16 = vmax.f32 %v4953_v61, %v4889_v5  ;;  %v10149_v54 = vld [vmem:[#allocation2 + $0x121] sm:$0xff] }
 0x231   : > { %v4221_v39 = vmax.f32 %v4157_v32, %v4889_v5  ;;  %v4857_v7 = vmax.f32 %v4793_v62, %v10108_v36  ;;  %v4539_v59 = vmax.f32 %v4475_v25, %v4889_v5  ;;  %v3967_v49 = vmax.f32 %v3903_v27, %v4953_v61 }
 0x232   : > { %v3578_v45 = vmax.f32 %v9937_v1, %v9958_v4  ;;  %7025 = vmatmul.mubr.f32.gmra.mrb[12].mxu0 %v5048_v43  ;;  %v3713_v9 = vmax.f32 %v3649_v16, %v5017_v28  ;;  %v3776_v2 = vmax.f32 %v3712_v42, %v10123_v41  ;;  %v4094_v46 = vmax.f32 %v4030_v51, %v10123_v41  ;;  %v10143_v42 = vpop.f32.mrb[5].mxu1  ;;  %v4891_v16 = vld [vmem:[#allocation2 + $0x122] sm:$0xff] }
 0x233   : > { %v4285_v15 = vmax.f32 %v4221_v39, %v4953_v61  ;;  %v4921_v17 = vmax.f32 %v4857_v7, %v4889_v5  ;;  %v4603_v58 = vmax.f32 %v4539_v59, %v4953_v61  ;;  %v4031_v22 = vmax.f32 %v3967_v49, %v5017_v28  ;;  %v4955_v7 = vld [vmem:[#allocation2 + $0x123] sm:$0xff] }
 0x234   : > { %v4730_v12 = vmax.f32 %v4666_v21, %v3578_v45  ;;  %v4412_v1 = vmax.f32 %v4348_v44, %v10123_v41  ;;  %v3840_v4 = vmax.f32 %v3776_v2, %v10132_v48  ;;  %v4158_v38 = vmax.f32 %v4094_v46, %v10132_v48 }
 0x235   : > { %v4349_v56 = vmax.f32 %v4285_v15, %v5017_v28  ;;  %v4985_v55 = vmax.f32 %v4921_v17, %v4953_v61  ;;  %v4667_v26 = vmax.f32 %v4603_v58, %v5017_v28  ;;  %v3650_v30 = vmax.f32 %v4954_v24, %v4890_v37  ;;  %v10153_v61 = vpop.f32.mrb[6].mxu1  ;;  %v10163_v58 = vld [vmem:[#allocation2 + $0x128] sm:$0xff] }
 0x236   : > { %v4794_v13 = vmax.f32 %v4730_v12, %v10123_v41  ;;  %v4476_v34 = vmax.f32 %v4412_v1, %v10132_v48  ;;  %v3904_v53 = vmax.f32 %v3840_v4, %v4890_v37  ;;  %v4222_v0 = vmax.f32 %v4158_v38, %v4890_v37  ;;  %v10155_v43 = vpop.f32.mrb[7].mxu1 }
 0x237   : > { %v3579_v5 = vmax.f32 %v9972_v11, %v9986_v23  ;;  %v5049_v52 = vmax.f32 %v4985_v55, %v5017_v28  ;;  %v3714_v32 = vmax.f32 %v3650_v30, %v5018_v31  ;;  %v3777_v44 = vmax.f32 %v3713_v9, %v10141_v57 }
 0x238   : > { %v4858_v51 = vmax.f32 %v4794_v13, %v10132_v48  ;;  %v4540_v62 = vmax.f32 %v4476_v34, %v4890_v37  ;;  %v3968_v25 = vmax.f32 %v3904_v53, %v4954_v24  ;;  %v4286_v27 = vmax.f32 %v4222_v0, %v4954_v24  ;;  %v10170_v13 = vld [vmem:[#allocation2 + $0x129] sm:$0xff] }
 0x239   : > { %v4731_v21 = vmax.f32 %v4667_v26, %v3579_v5  ;;  %7027 = vmatprep.mubr.f32.mxu0 %v5049_v52  ;;  %v4095_v11 = vmax.f32 %v4031_v22, %v10141_v57  ;;  %v4413_v23 = vmax.f32 %v4349_v56, %v10141_v57  ;;  %v3841_v28 = vmax.f32 %v3777_v44, %v10149_v54  ;;  %v10168_v4 = vpop.f32.mrb[8].mxu1  ;;  %v4892_v52 = vld [vmem:[#allocation2 + $0x12a] sm:$0xff] }
 0x23a   : > { %v4922_v39 = vmax.f32 %v4858_v51, %v4890_v37  ;;  %v4604_v59 = vmax.f32 %v4540_v62, %v4954_v24  ;;  %v4032_v49 = vmax.f32 %v3968_v25, %v5018_v31  ;;  %v4350_v45 = vmax.f32 %v4286_v27, %v5018_v31  ;;  %v5019_v37 = vld [vmem:[#allocation2 + $0x124] sm:$0xff]  ;;  %v10172_v30 = vpop.f32.mrb[9].mxu1 }
 0x23b   : > { %v4795_v15 = vmax.f32 %v4731_v21, %v10141_v57  ;;  %v4159_v2 = vmax.f32 %v4095_v11, %v10149_v54  ;;  %v4477_v46 = vmax.f32 %v4413_v23, %v10149_v54  ;;  %v3905_v17 = vmax.f32 %v3841_v28, %v4891_v16  ;;  %v4956_v51 = vld [vmem:[#allocation2 + $0x12b] sm:$0xff]  ;;  %v10179_v11 = vld [vmem:[#allocation2 + $0x138] sm:$0xff] }
 0x23c   : > { %v4986_v9 = vmax.f32 %v4922_v39, %v4954_v24  ;;  %v4668_v22 = vmax.f32 %v4604_v59, %v5018_v31  ;;  %v3651_v56 = vmax.f32 %v4955_v7, %v4891_v16  ;;  %v3580_v1 = vmax.f32 %v9996_v63, %v10013_v29  ;;  %v5020_v39 = vld [vmem:[#allocation2 + $0x12c] sm:$0xff] }
 0x23d   : > { %v4859_v12 = vmax.f32 %v4795_v15, %v10149_v54  ;;  %v4223_v55 = vmax.f32 %v4159_v2, %v4891_v16  ;;  %v4541_v24 = vmax.f32 %v4477_v46, %v4891_v16  ;;  %v3969_v26 = vmax.f32 %v3905_v17, %v4955_v7  ;;  %v10181_v23 = vpop.f32.mrb[10].mxu1  ;;  %v10188_v2 = vld [vmem:[#allocation2 + $0x139] sm:$0xff] }
 0x23e   : > { %v5050_v38 = vmax.f32 %v4986_v9, %v5018_v31  ;;  %v3715_v53 = vmax.f32 %v3651_v56, %v5019_v37  ;;  %v4732_v0 = vmax.f32 %v4668_v22, %v3580_v1  ;;  %v3778_v5 = vmax.f32 %v3714_v32, %v10163_v58  ;;  %v10184_v15 = vpop.f32.mrb[11].mxu1 }
 0x23f   : > { %v4923_v34 = vmax.f32 %v4859_v12, %v4891_v16  ;;  %v4287_v44 = vmax.f32 %v4223_v55, %v4955_v7  ;;  %v4605_v63 = vmax.f32 %v4541_v24, %v4955_v7  ;;  %v4033_v29 = vmax.f32 %v3969_v26, %v5019_v37 }
 0x240   : > { %7028 = vmatmul.mubr.f32.gmra.mrb[14].mxu0 %v5050_v38  ;;  %v4096_v31 = vmax.f32 %v4032_v49, %v10163_v58  ;;  %v4414_v25 = vmax.f32 %v4350_v45, %v10163_v58  ;;  %v4796_v27 = vmax.f32 %v4732_v0, %v10163_v58  ;;  %v3842_v21 = vmax.f32 %v3778_v5, %v10170_v13  ;;  %v4893_v0 = vld [vmem:[#allocation2 + $0x13a] sm:$0xff] }
 0x241   : > { %v4987_v62 = vmax.f32 %v4923_v34, %v4955_v7  ;;  %v4351_v32 = vmax.f32 %v4287_v44, %v5019_v37  ;;  %v4669_v28 = vmax.f32 %v4605_v63, %v5019_v37  ;;  %v3652_v59 = vmax.f32 %v4956_v51, %v4892_v52  ;;  %v4957_v5 = vld [vmem:[#allocation2 + $0x13b] sm:$0xff] }
 0x242   : > { %v4160_v16 = vmax.f32 %v4096_v31, %v10170_v13  ;;  %v4478_v7 = vmax.f32 %v4414_v25, %v10170_v13  ;;  %v4860_v45 = vmax.f32 %v4796_v27, %v10170_v13  ;;  %v3906_v9 = vmax.f32 %v3842_v21, %v4892_v52  ;;  %v10196_v44 = vpop.f32.mrb[12].mxu1  ;;  %v5021_v27 = vld [vmem:[#allocation2 + $0x13c] sm:$0xff] }
 0x243   : > { %v5051_v49 = vmax.f32 %v4987_v62, %v5019_v37  ;;  %v3716_v17 = vmax.f32 %v3652_v59, %v5020_v39  ;;  %v3581_v22 = vmax.f32 %v10024_v47, %v10035_v6  ;;  %v3779_v12 = vmax.f32 %v3715_v53, %v10179_v11  ;;  %v10199_v31 = vpop.f32.mrb[13].mxu1  ;;  %v10203_v21 = vld [vmem:[#allocation2 + $0x140] sm:$0xff] }
 0x244   : > { %v4224_v46 = vmax.f32 %v4160_v16, %v4892_v52  ;;  %v4542_v56 = vmax.f32 %v4478_v7, %v4892_v52  ;;  %v4924_v1 = vmax.f32 %v4860_v45, %v4892_v52  ;;  %v3970_v38 = vmax.f32 %v3906_v9, %v4956_v51  ;;  %v10208_v9 = vld [vmem:[#allocation2 + $0x141] sm:$0xff] }
 0x245   : > { %7030 = vmatprep.mubr.f32.mxu0 %v5051_v49  ;;  %v4097_v37 = vmax.f32 %v4033_v29, %v10179_v11  ;;  %v4733_v24 = vmax.f32 %v4669_v28, %v3581_v22  ;;  %v4415_v26 = vmax.f32 %v4351_v32, %v10179_v11  ;;  %v3843_v34 = vmax.f32 %v3779_v12, %v10188_v2 }
 0x246   : > { %v4288_v55 = vmax.f32 %v4224_v46, %v4956_v51  ;;  %v4606_v63 = vmax.f32 %v4542_v56, %v4956_v51  ;;  %v4988_v47 = vmax.f32 %v4924_v1, %v4956_v51  ;;  %v4034_v6 = vmax.f32 %v3970_v38, %v5020_v39  ;;  %v10210_v46 = vpop.f32.mrb[14].mxu1  ;;  %v4894_v1 = vld [vmem:[#allocation2 + $0x142] sm:$0xff] }
 0x247   : > { %v4161_v53 = vmax.f32 %v4097_v37, %v10188_v2  ;;  %v4797_v29 = vmax.f32 %v4733_v24, %v10179_v11  ;;  %v4479_v62 = vmax.f32 %v4415_v26, %v10188_v2  ;;  %v3907_v25 = vmax.f32 %v3843_v34, %v4893_v0  ;;  %10661 = vst [vmem:[#allocation36_spill] sm:$0xff] %v10210_v46  ;;  %v4958_v38 = vld [vmem:[#allocation2 + $0x143] sm:$0xff]  ;;  %v10214_v37 = vpop.f32.mrb[15].mxu1 }
 0x248   : > { %v4352_v52 = vmax.f32 %v4288_v55, %v5020_v39  ;;  %v4670_v32 = vmax.f32 %v4606_v63, %v5020_v39  ;;  %v5052_v28 = vmax.f32 %v4988_v47, %v5020_v39  ;;  %v3653_v59 = vmax.f32 %v4957_v5, %v4893_v0  ;;  %10662 = vst [vmem:[#allocation35_spill] sm:$0xff] %v10214_v37 }
 0x249   : > { %v4225_v16 = vmax.f32 %v4161_v53, %v4893_v0  ;;  %v4861_v51 = vmax.f32 %v4797_v29, %v10188_v2  ;;  %v4543_v49 = vmax.f32 %v4479_v62, %v4893_v0  ;;  %v3971_v7 = vmax.f32 %v3907_v25, %v4957_v5  ;;  %v5022_v53 = vld [vmem:[#allocation2 + $0x144] sm:$0xff]  ;;  %v10219_v29 = vld [vmem:[#allocation2 + $0x150] sm:$0xff] }
 0x24a   : > { %v3582_v45 = vmax.f32 %v10058_v40, %v10065_v10  ;;  %7031 = vmatmul.mubr.f32.gmra.mrb[16].mxu0 %v5052_v28  ;;  %v3717_v12 = vmax.f32 %v3653_v59, %v5021_v27  ;;  %v3780_v56 = vmax.f32 %v3716_v17, %v10203_v21  ;;  %v4098_v39 = vmax.f32 %v4034_v6, %v10203_v21  ;;  %v10222_v28 = vpop.f32.mrb[16].mxu1  ;;  %v10227_v59 = vld [vmem:[#allocation2 + $0x151] sm:$0xff] }
 0x24b   : > { %v4289_v22 = vmax.f32 %v4225_v16, %v4957_v5  ;;  %v4925_v55 = vmax.f32 %v4861_v51, %v4893_v0  ;;  %v4607_v24 = vmax.f32 %v4543_v49, %v4957_v5  ;;  %v4035_v26 = vmax.f32 %v3971_v7, %v5021_v27  ;;  %10663 = vst [vmem:[#allocation33_spill] sm:$0xff] %v10222_v28  ;;  %v10229_v51 = vpop.f32.mrb[17].mxu1 }
 0x24c   : > { %v4734_v34 = vmax.f32 %v4670_v32, %v3582_v45  ;;  %v4416_v10 = vmax.f32 %v4352_v52, %v10203_v21  ;;  %v3844_v63 = vmax.f32 %v3780_v56, %v10208_v9  ;;  %v4162_v47 = vmax.f32 %v4098_v39, %v10208_v9  ;;  %10664 = vst [vmem:[#allocation37_spill] sm:$0xff] %v10229_v51 }
 0x24d   : > { %v4353_v40 = vmax.f32 %v4289_v22, %v5021_v27  ;;  %v4989_v17 = vmax.f32 %v4925_v55, %v4957_v5  ;;  %v4671_v6 = vmax.f32 %v4607_v24, %v5021_v27  ;;  %v3654_v25 = vmax.f32 %v4958_v38, %v4894_v1  ;;  %v4895_v24 = vld [vmem:[#allocation2 + $0x152] sm:$0xff] }
 0x24e   : > { %v4798_v62 = vmax.f32 %v4734_v34, %v10203_v21  ;;  %v4480_v0 = vmax.f32 %v4416_v10, %v10208_v9  ;;  %v3908_v32 = vmax.f32 %v3844_v63, %v4894_v1  ;;  %v4226_v16 = vmax.f32 %v4162_v47, %v4894_v1 }
 0x24f   : > { %v3583_v52 = vmax.f32 %v10075_v20, %v10081_v60  ;;  %v5053_v49 = vmax.f32 %v4989_v17, %v5021_v27  ;;  %v3718_v7 = vmax.f32 %v3654_v25, %v5022_v53  ;;  %v3781_v45 = vmax.f32 %v3717_v12, %v10219_v29 }
 0x250   : > { %v4862_v5 = vmax.f32 %v4798_v62, %v10208_v9  ;;  %v4544_v22 = vmax.f32 %v4480_v0, %v4894_v1  ;;  %v3972_v56 = vmax.f32 %v3908_v32, %v4958_v38  ;;  %v4290_v39 = vmax.f32 %v4226_v16, %v4958_v38  ;;  %v4959_v62 = vld [vmem:[#allocation2 + $0x153] sm:$0xff]  ;;  %v10237_v12 = vpop.f32.mrb[18].mxu1 }
 0x251   : > { %v4735_v55 = vmax.f32 %v4671_v6, %v3583_v52  ;;  %7033 = vmatprep.mubr.f32.mxu0 %v5053_v49  ;;  %v4099_v10 = vmax.f32 %v4035_v26, %v10219_v29  ;;  %v4417_v20 = vmax.f32 %v4353_v40, %v10219_v29  ;;  %v3845_v60 = vmax.f32 %v3781_v45, %v10227_v59  ;;  %v10244_v40 = vld [vmem:[#allocation2 + $0x158] sm:$0xff]  ;;  %v10246_v32 = vpop.f32.mrb[19].mxu1 }
 0x252   : > { %v4926_v34 = vmax.f32 %v4862_v5, %v4894_v1  ;;  %v4608_v63 = vmax.f32 %v4544_v22, %v4958_v38  ;;  %v4036_v27 = vmax.f32 %v3972_v56, %v5022_v53  ;;  %v4354_v47 = vmax.f32 %v4290_v39, %v5022_v53  ;;  %10665 = vst [vmem:[#allocation39_spill] sm:$0xff] %v10237_v12  ;;  %v10241_v1 = vld [vmem:[#allocation2] sm:$0xff]  ;;  %v5023_v5 = vld [vmem:[#allocation2 + $0x154] sm:$0xff] }
 0x253   : > { %v4799_v17 = vmax.f32 %v4735_v55, %v10219_v29  ;;  %v4163_v6 = vmax.f32 %v4099_v10, %v10227_v59  ;;  %v4481_v0 = vmax.f32 %v4417_v20, %v10227_v59  ;;  %v3655_v26 = vmax.f32 %v10241_v1, %v4895_v24  ;;  %10666 = vst [vmem:[#allocation40_spill] sm:$0xff] %v10246_v32  ;;  %v10252_v12 = vld [vmem:[#allocation2 + $0x159] sm:$0xff] }
 0x254   : > { %v4990_v25 = vmax.f32 %v4926_v34, %v4958_v38  ;;  %v4672_v16 = vmax.f32 %v4608_v63, %v5022_v53  ;;  %v3909_v49 = vmax.f32 %v3845_v60, %v4895_v24  ;;  %v3584_v38 = vmax.f32 %v10091_v33, %v10096_v19  ;;  %v10254_v32 = vpop.f32.mrb[20].mxu1  ;;  %v4896_v33 = vld [vmem:[#allocation2 + $0x15a] sm:$0xff] }
 0x255   : > { %v4863_v52 = vmax.f32 %v4799_v17, %v10227_v59  ;;  %v4227_v22 = vmax.f32 %v4163_v6, %v4895_v24  ;;  %v4545_v56 = vmax.f32 %v4481_v0, %v4895_v24  ;;  %v3719_v39 = vmax.f32 %v3655_v26, %v4959_v62  ;;  %10667 = vst [vmem:[#allocation42_spill] sm:$0xff] %v10254_v32  ;;  %v10257_v19 = vpop.f32.mrb[21].mxu1 }
 0x256   : > { %v5054_v45 = vmax.f32 %v4990_v25, %v5022_v53  ;;  %v3973_v34 = vmax.f32 %v3909_v49, %v4959_v62  ;;  %v4736_v10 = vmax.f32 %v4672_v16, %v3584_v38  ;;  %v3782_v20 = vmax.f32 %v3718_v7, %v10244_v40  ;;  %10668 = vst [vmem:[#allocation43_spill] sm:$0xff] %v10257_v19  ;;  %v10261_v7 = vld [vmem:[#allocation2 + $0x168] sm:$0xff]  ;;  %v4960_v49 = vld [vmem:[#allocation2 + $0x15b] sm:$0xff] }
 0x257   : > { %v4927_v55 = vmax.f32 %v4863_v52, %v4895_v24  ;;  %v4291_v63 = vmax.f32 %v4227_v22, %v4959_v62  ;;  %v4609_v60 = vmax.f32 %v4545_v56, %v4959_v62  ;;  %v3783_v17 = vmax.f32 %v3719_v39, %v5023_v5  ;;  %v5024_v39 = vld [vmem:[#allocation2 + $0x15c] sm:$0xff]  ;;  %v4961_v19 = vld [vmem:[#allocation2 + $0x16b] sm:$0xff] }
 0x258   : > { %7034 = vmatmul.mubr.f32.gmra.mrb[18].mxu0 %v5054_v45  ;;  %v4100_v51 = vmax.f32 %v4036_v27, %v10244_v40  ;;  %v4037_v25 = vmax.f32 %v3973_v34, %v5023_v5  ;;  %v4418_v24 = vmax.f32 %v4354_v47, %v10244_v40  ;;  %v4800_v6 = vmax.f32 %v4736_v10, %v10244_v40  ;;  %v10268_v22 = vpop.f32.mrb[22].mxu1  ;;  %v10273_v10 = vld [vmem:[#allocation2 + $0x169] sm:$0xff] }
 0x259   : > { %v4991_v53 = vmax.f32 %v4927_v55, %v4959_v62  ;;  %v4355_v0 = vmax.f32 %v4291_v63, %v5023_v5  ;;  %v4673_v26 = vmax.f32 %v4609_v60, %v5023_v5  ;;  %v3846_v16 = vmax.f32 %v3782_v20, %v10252_v12  ;;  %10669 = vst [vmem:[#allocation38_spill] sm:$0xff] %v10268_v22 }
 0x25a   : > { %v4164_v52 = vmax.f32 %v4100_v51, %v10252_v12  ;;  %v4482_v27 = vmax.f32 %v4418_v24, %v10252_v12  ;;  %v4864_v45 = vmax.f32 %v4800_v6, %v10252_v12  ;;  %v3656_v62 = vmax.f32 %v10241_v1, %v4896_v33  ;;  %v10275_v51 = vpop.f32.mrb[23].mxu1 }
 0x25b   : > { %v5055_v38 = vmax.f32 %v4991_v53, %v5023_v5  ;;  %v3910_v47 = vmax.f32 %v3846_v16, %v4896_v33  ;;  %v3585_v55 = vmax.f32 %v10103_v8, %v10108_v36  ;;  %v3847_v34 = vmax.f32 %v3783_v17, %v10261_v7  ;;  %10670 = vst [vmem:[#allocation44_spill] sm:$0xff] %v10275_v51  ;;  %v4897_v17 = vld [vmem:[#allocation2 + $0x16a] sm:$0xff] }
 0x25c   : > { %v4228_v56 = vmax.f32 %v4164_v52, %v4896_v33  ;;  %v4546_v5 = vmax.f32 %v4482_v27, %v4896_v33  ;;  %v4928_v20 = vmax.f32 %v4864_v45, %v4896_v33  ;;  %v3720_v63 = vmax.f32 %v3656_v62, %v4960_v49  ;;  %v10280_v32 = vpop.f32.mrb[24].mxu1  ;;  %v10284_v45 = vld [vmem:[#allocation2 + $0x170] sm:$0xff] }
 0x25d   : > { %7036 = vmatprep.mubr.f32.mxu0 %v5055_v38  ;;  %v4101_v60 = vmax.f32 %v4037_v25, %v10261_v7  ;;  %v3974_v53 = vmax.f32 %v3910_v47, %v4960_v49  ;;  %v4737_v6 = vmax.f32 %v4673_v26, %v3585_v55  ;;  %v4419_v16 = vmax.f32 %v4355_v0, %v10261_v7  ;;  %v5025_v47 = vld [vmem:[#allocation2 + $0x16c] sm:$0xff] }
 0x25e   : > { %v4292_v24 = vmax.f32 %v4228_v56, %v4960_v49  ;;  %v4610_v52 = vmax.f32 %v4546_v5, %v4960_v49  ;;  %v4992_v22 = vmax.f32 %v4928_v20, %v4960_v49  ;;  %v3784_v8 = vmax.f32 %v3720_v63, %v5024_v39  ;;  %10671 = vst [vmem:[#allocation45_spill] sm:$0xff] %v10280_v32  ;;  %v10290_v20 = vld [vmem:[#allocation2 + $0x171] sm:$0xff] }
 0x25f   : > { %v3911_v36 = vmax.f32 %v3847_v34, %v10273_v10  ;;  %v4038_v38 = vmax.f32 %v3974_v53, %v5024_v39  ;;  %v4801_v33 = vmax.f32 %v4737_v6, %v10261_v7  ;;  %v4165_v25 = vmax.f32 %v4101_v60, %v10273_v10 }
 0x260   : > { %v4356_v27 = vmax.f32 %v4292_v24, %v5024_v39  ;;  %v4674_v26 = vmax.f32 %v4610_v52, %v5024_v39  ;;  %v5056_v62 = vmax.f32 %v4992_v22, %v5024_v39  ;;  %v4483_v0 = vmax.f32 %v4419_v16, %v10273_v10  ;;  %v4898_v52 = vld [vmem:[#allocation2 + $0x172] sm:$0xff] }
 0x261   : > { %v3975_v49 = vmax.f32 %v3911_v36, %v4897_v17  ;;  %v4865_v56 = vmax.f32 %v4801_v33, %v10273_v10  ;;  %v4229_v55 = vmax.f32 %v4165_v25, %v4897_v17  ;;  %v3657_v34 = vmax.f32 %v4961_v19, %v4897_v17  ;;  %v4962_v36 = vld [vmem:[#allocation2 + $0x173] sm:$0xff] }
 0x262   : > { %v3586_v5 = vmax.f32 %v10123_v41, %v10132_v48  ;;  %7037 = vmatmul.mubr.f32.gmra.mrb[20].mxu0 %v5056_v62  ;;  %v4547_v63 = vmax.f32 %v4483_v0, %v4897_v17  ;;  %v3848_v53 = vmax.f32 %v3784_v8, %v10284_v45  ;;  %v4102_v22 = vmax.f32 %v4038_v38, %v10284_v45  ;;  %v4771_v38 = vld [vmem:[#allocation2 + $0x180] sm:$0xff] }
 0x263   : > { %v4039_v60 = vmax.f32 %v3975_v49, %v4961_v19  ;;  %v4929_v39 = vmax.f32 %v4865_v56, %v4897_v17  ;;  %v4293_v24 = vmax.f32 %v4229_v55, %v4961_v19  ;;  %v3721_v6 = vmax.f32 %v3657_v34, %v5025_v47  ;;  %v5026_v49 = vld [vmem:[#allocation2 + $0x174] sm:$0xff] }
 0x264   : > { %v4738_v16 = vmax.f32 %v4674_v26, %v3586_v5  ;;  %v4611_v33 = vmax.f32 %v4547_v63, %v4961_v19  ;;  %v4420_v32 = vmax.f32 %v4356_v27, %v10284_v45  ;;  %v3912_v41 = vmax.f32 %v3848_v53, %v10290_v20 }
 0x265   : > { %v4103_v25 = vmax.f32 %v4039_v60, %v5025_v47  ;;  %v4993_v48 = vmax.f32 %v4929_v39, %v4961_v19  ;;  %v4357_v62 = vmax.f32 %v4293_v24, %v5025_v47  ;;  %v4166_v8 = vmax.f32 %v4102_v22, %v10290_v20  ;;  %v4835_v19 = vld [vmem:[#allocation2 + $0x181] sm:$0xff] }
 0x266   : > { %v4802_v0 = vmax.f32 %v4738_v16, %v10284_v45  ;;  %v4675_v17 = vmax.f32 %v4611_v33, %v5025_v47  ;;  %v4484_v56 = vmax.f32 %v4420_v32, %v10290_v20  ;;  %v3976_v26 = vmax.f32 %v3912_v41, %v4898_v52  ;;  %v4899_v32 = vld [vmem:[#allocation2 + $0x182] sm:$0xff] }
 0x267   : > { %v3658_v55 = vmax.f32 %v4962_v36, %v4898_v52  ;;  %v5057_v34 = vmax.f32 %v4993_v48, %v5025_v47  ;;  %v4230_v63 = vmax.f32 %v4166_v8, %v4898_v52  ;;  %v3587_v27 = vmax.f32 %v10141_v57, %v10149_v54  ;;  %v4963_v54 = vld [vmem:[#allocation2 + $0x183] sm:$0xff] }
 0x268   : > { %v4866_v5 = vmax.f32 %v4802_v0, %v10290_v20  ;;  %v4548_v60 = vmax.f32 %v4484_v56, %v4898_v52  ;;  %v4040_v53 = vmax.f32 %v3976_v26, %v4962_v36  ;;  %v3785_v24 = vmax.f32 %v3721_v6, %v4771_v38  ;;  %v4772_v0 = vld [vmem:[#allocation2 + $0x188] sm:$0xff] }
 0x269   : > { %v3722_v39 = vmax.f32 %v3658_v55, %v5026_v49  ;;  %7039 = vmatprep.mubr.f32.mxu0 %v5057_v34  ;;  %v4294_v16 = vmax.f32 %v4230_v63, %v4962_v36  ;;  %v4739_v33 = vmax.f32 %v4675_v17, %v3587_v27  ;;  %v4167_v51 = vmax.f32 %v4103_v25, %v4771_v38 }
 0x26a   : > { %v4930_v22 = vmax.f32 %v4866_v5, %v4898_v52  ;;  %v4612_v41 = vmax.f32 %v4548_v60, %v4962_v36  ;;  %v4104_v28 = vmax.f32 %v4040_v53, %v5026_v49  ;;  %v4421_v47 = vmax.f32 %v4357_v62, %v4771_v38  ;;  %v4836_v52 = vld [vmem:[#allocation2 + $0x189] sm:$0xff] }
 0x26b   : > { %v3849_v48 = vmax.f32 %v3785_v24, %v4835_v19  ;;  %v4358_v37 = vmax.f32 %v4294_v16, %v5026_v49  ;;  %v4803_v46 = vmax.f32 %v4739_v33, %v4771_v38  ;;  %v4231_v57 = vmax.f32 %v4167_v51, %v4835_v19  ;;  %v5027_v5 = vld [vmem:[#allocation2 + $0x184] sm:$0xff]  ;;  %v10304_v16 = vpop.f32.mrb[25].mxu1 }
 0x26c   : > { %v4994_v8 = vmax.f32 %v4930_v22, %v4962_v36  ;;  %v4676_v56 = vmax.f32 %v4612_v41, %v5026_v49  ;;  %v4485_v26 = vmax.f32 %v4421_v47, %v4835_v19  ;;  %v3588_v6 = vmax.f32 %v10163_v58, %v10170_v13  ;;  %v4900_v53 = vld [vmem:[#allocation2 + $0x18a] sm:$0xff]  ;;  %v10306_v41 = vpop.f32.mrb[26].mxu1 }
 0x26d   : > { %v3913_v55 = vmax.f32 %v3849_v48, %v4899_v32  ;;  %v4867_v25 = vmax.f32 %v4803_v46, %v4835_v19  ;;  %v4295_v34 = vmax.f32 %v4231_v57, %v4899_v32  ;;  %v3786_v63 = vmax.f32 %v3722_v39, %v4772_v0  ;;  %v4964_v46 = vld [vmem:[#allocation2 + $0x18b] sm:$0xff]  ;;  %v4773_v19 = vld [vmem:[#allocation2 + $0x198] sm:$0xff] }
 0x26e   : > { %v5058_v17 = vmax.f32 %v4994_v8, %v5026_v49  ;;  %v4549_v62 = vmax.f32 %v4485_v26, %v4899_v32  ;;  %v4740_v60 = vmax.f32 %v4676_v56, %v3588_v6  ;;  %v4168_v36 = vmax.f32 %v4104_v28, %v4772_v0  ;;  %v5028_v56 = vld [vmem:[#allocation2 + $0x18c] sm:$0xff]  ;;  %v4837_v26 = vld [vmem:[#allocation2 + $0x199] sm:$0xff] }
 0x26f   : > { %v3977_v27 = vmax.f32 %v3913_v55, %v4963_v54  ;;  %v4931_v51 = vmax.f32 %v4867_v25, %v4899_v32  ;;  %v4359_v38 = vmax.f32 %v4295_v34, %v4963_v54  ;;  %v4422_v24 = vmax.f32 %v4358_v37, %v4772_v0 }
 0x270   : > { %7040 = vmatmul.mubr.f32.gmra.mrb[22].mxu0 %v5058_v17  ;;  %v3850_v22 = vmax.f32 %v3786_v63, %v4836_v52  ;;  %v4613_v33 = vmax.f32 %v4549_v62, %v4963_v54  ;;  %v4804_v13 = vmax.f32 %v4740_v60, %v4772_v0  ;;  %v4232_v49 = vmax.f32 %v4168_v36, %v4836_v52 }
 0x271   : > { %v4041_v58 = vmax.f32 %v3977_v27, %v5027_v5  ;;  %v4995_v39 = vmax.f32 %v4931_v51, %v4963_v54  ;;  %v4423_v47 = vmax.f32 %v4359_v38, %v5027_v5  ;;  %v4486_v48 = vmax.f32 %v4422_v24, %v4836_v52  ;;  %v4901_v54 = vld [vmem:[#allocation2 + $0x19a] sm:$0xff] }
 0x272   : > { %v3914_v28 = vmax.f32 %v3850_v22, %v4900_v53  ;;  %v4677_v8 = vmax.f32 %v4613_v33, %v5027_v5  ;;  %v4868_v57 = vmax.f32 %v4804_v13, %v4836_v52  ;;  %v4296_v32 = vmax.f32 %v4232_v49, %v4900_v53  ;;  %v4774_v27 = vld [vmem:[#allocation2 + $0x1a0] sm:$0xff] }
 0x273   : > { %v3589_v37 = vmax.f32 %v10179_v11, %v10188_v2  ;;  %v5059_v55 = vmax.f32 %v4995_v39, %v5027_v5  ;;  %v4550_v6 = vmax.f32 %v4486_v48, %v4900_v53  ;;  %v4105_v17 = vmax.f32 %v4041_v58, %v4773_v19  ;;  %v4965_v24 = vld [vmem:[#allocation2 + $0x19b] sm:$0xff] }
 0x274   : > { %v3978_v0 = vmax.f32 %v3914_v28, %v4964_v46  ;;  %v4932_v25 = vmax.f32 %v4868_v57, %v4900_v53  ;;  %v4360_v34 = vmax.f32 %v4296_v32, %v4964_v46  ;;  %v4487_v62 = vmax.f32 %v4423_v47, %v4773_v19  ;;  %v4838_v22 = vld [vmem:[#allocation2 + $0x1a1] sm:$0xff] }
 0x275   : > { %v4741_v63 = vmax.f32 %v4677_v8, %v3589_v37  ;;  %7042 = vmatprep.mubr.f32.mxu0 %v5059_v55  ;;  %v4614_v60 = vmax.f32 %v4550_v6, %v4964_v46  ;;  %v4169_v52 = vmax.f32 %v4105_v17, %v4837_v26  ;;  %v3590_v51 = vmax.f32 %v10203_v21, %v10208_v9  ;;  %v5029_v47 = vld [vmem:[#allocation2 + $0x19c] sm:$0xff] }
 0x276   : > { %v4042_v36 = vmax.f32 %v3978_v0, %v5028_v56  ;;  %v4996_v38 = vmax.f32 %v4932_v25, %v4964_v46  ;;  %v4424_v11 = vmax.f32 %v4360_v34, %v5028_v56  ;;  %v4551_v5 = vmax.f32 %v4487_v62, %v4837_v26  ;;  %v4902_v28 = vld [vmem:[#allocation2 + $0x1a2] sm:$0xff] }
 0x277   : > { %v4805_v2 = vmax.f32 %v4741_v63, %v4773_v19  ;;  %v4678_v33 = vmax.f32 %v4614_v60, %v5028_v56  ;;  %v4233_v53 = vmax.f32 %v4169_v52, %v4901_v54  ;;  %v3591_v21 = vmax.f32 %v10219_v29, %v10227_v59  ;;  %v4966_v37 = vld [vmem:[#allocation2 + $0x1a3] sm:$0xff]  ;;  %v4839_v52 = vld [vmem:[#allocation2 + $0x1b1] sm:$0xff] }
 0x278   : > { %v4106_v58 = vmax.f32 %v4042_v36, %v4774_v27  ;;  %v5060_v13 = vmax.f32 %v4996_v38, %v5028_v56  ;;  %v4615_v39 = vmax.f32 %v4551_v5, %v4901_v54  ;;  %v4488_v48 = vmax.f32 %v4424_v11, %v4774_v27  ;;  %v5030_v34 = vld [vmem:[#allocation2 + $0x1a4] sm:$0xff] }
 0x279   : > { %v4869_v49 = vmax.f32 %v4805_v2, %v4837_v26  ;;  %v4297_v8 = vmax.f32 %v4233_v53, %v4965_v24  ;;  %v4742_v57 = vmax.f32 %v4678_v33, %v3590_v51  ;;  %v3593_v55 = vmax.f32 %v10261_v7, %v10273_v10  ;;  %v4903_v2 = vld [vmem:[#allocation2 + $0x1b2] sm:$0xff] }
 0x27a   : > { %v4170_v32 = vmax.f32 %v4106_v58, %v4838_v22  ;;  %7043 = vmatmul.mubr.f32.gmra.mrb[24].mxu0 %v5060_v13  ;;  %v4679_v46 = vmax.f32 %v4615_v39, %v4965_v24  ;;  %v4552_v19 = vmax.f32 %v4488_v48, %v4838_v22  ;;  %v3594_v29 = vmax.f32 %v10284_v45, %v10290_v20  ;;  %v4967_v45 = vld [vmem:[#allocation2 + $0x1b3] sm:$0xff] }
 0x27b   : > { %v4933_v9 = vmax.f32 %v4869_v49, %v4901_v54  ;;  %v4361_v56 = vmax.f32 %v4297_v8, %v5029_v47  ;;  %v4806_v26 = vmax.f32 %v4742_v57, %v4774_v27  ;;  %v3592_v7 = vmax.f32 %v10244_v40, %v10252_v12  ;;  %v4840_v53 = vld [vmem:[#allocation2 + $0x1b9] sm:$0xff] }
 0x27c   : > { %v4234_v6 = vmax.f32 %v4170_v32, %v4902_v28  ;;  %v4743_v17 = vmax.f32 %v4679_v46, %v5029_v47  ;;  %v4616_v25 = vmax.f32 %v4552_v19, %v4902_v28  ;;  %v5031_v40 = vld [vmem:[#allocation2 + $0x1b4] sm:$0xff] }
 0x27d   : > { %v4997_v0 = vmax.f32 %v4933_v9, %v4965_v24  ;;  %v4870_v63 = vmax.f32 %v4806_v26, %v4838_v22  ;;  %v4425_v60 = vmax.f32 %v4361_v56, %v3593_v55  ;;  %v4968_v32 = vld [vmem:[#allocation2 + $0x1bb] sm:$0xff]  ;;  %v4841_v56 = vld [vmem:[#allocation2 + $0x1c9] sm:$0xff] }
 0x27e   : > { %v4298_v62 = vmax.f32 %v4234_v6, %v4966_v37  ;;  %v4680_v54 = vmax.f32 %v4616_v25, %v4966_v37  ;;  %v4807_v36 = vmax.f32 %v4743_v17, %v3591_v21  ;;  %v10322_v21 = vpop.f32.mrb[27].mxu1  ;;  %v5032_v55 = vld [vmem:[#allocation2 + $0x1bc] sm:$0xff]  ;;  %v4905_v17 = vld [vmem:[#allocation2 + $0x1ca] sm:$0xff] }
 0x27f   : > { %v5061_v59 = vmax.f32 %v4997_v0, %v5029_v47  ;;  %v4934_v10 = vmax.f32 %v4870_v63, %v4902_v28  ;;  %v4489_v51 = vmax.f32 %v4425_v60, %v10241_v1  ;;  %v4904_v47 = vld [vmem:[#allocation2 + $0x1ba] sm:$0xff]  ;;  %v10324_v19 = vpop.f32.mrb[28].mxu1  ;;  %v4969_v60 = vld [vmem:[#allocation2 + $0x1cb] sm:$0xff] }
 0x280   : > { %v4362_v27 = vmax.f32 %v4298_v62, %v5030_v34  ;;  %v4744_v38 = vmax.f32 %v4680_v54, %v5030_v34  ;;  %v4871_v11 = vmax.f32 %v4807_v36, %v4839_v52  ;;  %v10327_v25 = vpop.f32.mrb[29].mxu1  ;;  %v5033_v36 = vld [vmem:[#allocation2 + $0x1cc] sm:$0xff] }
 0x281   : > { %7045 = vmatprep.mubr.f32.mxu0 %v5061_v59  ;;  %v4998_v5 = vmax.f32 %v4934_v10, %v4966_v37  ;;  %v4553_v24 = vmax.f32 %v4489_v51, %v4839_v52  ;;  %v10329_v62 = vpop.f32.mrb[30].mxu1  ;;  %v4906_v52 = vld [vmem:[#allocation2 + $0x1d2] sm:$0xff] }
 0x282   : > { %v4426_v22 = vmax.f32 %v4362_v27, %v3594_v29  ;;  %v4935_v33 = vmax.f32 %v4871_v11, %v4903_v2  ;;  %v4808_v20 = vmax.f32 %v4744_v38, %v3592_v7  ;;  %v4842_v29 = vld [vmem:[#allocation2 + $0x1d1] sm:$0xff]  ;;  %v10332_v7 = vpop.f32.mrb[31].mxu1 }
 0x283   : > { %v5062_v58 = vmax.f32 %v4998_v5, %v5030_v34  ;;  %v4617_v13 = vmax.f32 %v4553_v24, %v4903_v2  ;;  %v4970_v51 = vld [vmem:[#allocation2 + $0x1d3] sm:$0xff] }
 0x284   : > { %v4490_v49 = vmax.f32 %v4426_v22, %v10241_v1  ;;  %v4999_v12 = vmax.f32 %v4935_v33, %v4967_v45  ;;  %v4872_v39 = vmax.f32 %v4808_v20, %v4840_v53  ;;  %v5034_v2 = vld [vmem:[#allocation2 + $0x1d4] sm:$0xff]  ;;  %v10337_v33 = vld [vmem:[%s10495_s2] ss:$0 sm:$0xff] }
 0x285   : > { %7046 = vmatmul.mubr.f32.gmra.mrb[26].mxu0 %v5062_v58  ;;  %v4681_v48 = vmax.f32 %v4617_v13, %v4967_v45 }
 0x286   : > { %v4554_v28 = vmax.f32 %v4490_v49, %v4840_v53  ;;  %v5063_v8 = vmax.f32 %v4999_v12, %v5031_v40  ;;  %v4936_v57 = vmax.f32 %v4872_v39, %v4904_v47 }
 0x287   : > { %v4745_v9 = vmax.f32 %v4681_v48, %v5031_v40 }
 0x288   : > { %v4618_v46 = vmax.f32 %v4554_v28, %v4904_v47  ;;  %7048 = vmatprep.mubr.f32.mxu0 %v5063_v8  ;;  %v5000_v37 = vmax.f32 %v4936_v57, %v4968_v32 }
 0x289   : > { %v4809_v26 = vmax.f32 %v4745_v9, %v10241_v1 }
 0x28a   : > { %v4682_v6 = vmax.f32 %v4618_v46, %v4968_v32  ;;  %v5064_v0 = vmax.f32 %v5000_v37, %v5032_v55 }
 0x28b   : > { %v4873_v34 = vmax.f32 %v4809_v26, %v4841_v56 }
 0x28c   : > { %v4746_v63 = vmax.f32 %v4682_v6, %v5032_v55  ;;  %7049 = vmatmul.mubr.f32.gmra.mrb[28].mxu0 %v5064_v0 }
 0x28d   : > { %v4937_v59 = vmax.f32 %v4873_v34, %v4905_v17 }
 0x28e   : > { %v4810_v54 = vmax.f32 %v4746_v63, %v10241_v1 }
 0x28f   : > { %v5001_v10 = vmax.f32 %v4937_v59, %v4969_v60 }
 0x290   : > { %v4874_v27 = vmax.f32 %v4810_v54, %v4842_v29 }
 0x291   : > { %v5065_v38 = vmax.f32 %v5001_v10, %v5033_v36 }
 0x292   : > { %v4938_v11 = vmax.f32 %v4874_v27, %v4906_v52 }
 0x293   : > { %7051 = vmatprep.mubr.f32.mxu0 %v5065_v38 }
 0x294   : > { %v5002_v5 = vmax.f32 %v4938_v11, %v4970_v51 }
 0x296   : > { %v5066_v24 = vmax.f32 %v5002_v5, %v5034_v2 }
 0x298   : > { %7052 = vmatmul.mubr.f32.gmra.mrb[30].mxu0 %v5066_v24 }
 0x2ce   : > { %v7008_v22 = vpop.f32.mrb[0].mxu0 }
 0x2cf   : > { %v7182_v1 = vadd.f32 %v7008_v22, %v10113_v50  ;;  %v5907_v45 = vpop.f32.mrb[1].mxu0 }
 0x2d0   : > { %v7183_v20 = vadd.f32 %v5907_v45, %v10116_v14 }
 0x2d1   : > { %v6106_v53 = vadd.f32 %v7182_v1, %v10337_v33 }
 0x2d2   : > { %v6105_v58 = vadd.f32 %v7183_v20, %v10337_v33 }
 0x2d3   : > { %v6507_v13 = vmul.f32 -1.442695, %v6106_v53 }
 0x2d4   : > { %v6506_v49 = vmul.f32 -1.442695, %v6105_v58 }
 0x2d5   : > { %7287 = vpow2.f32 %v6507_v13 }
 0x2d6   : > { %7289 = vpow2.f32 %v6506_v49 }
 0x2df   : > { %v7288_v12 = vpop.eup %7287 }
 0x2e0   : > { %v7290_v40 = vpop.eup %7289  ;;  %v6234_v39 = vadd.f32 1.0, %v7288_v12 }
 0x2e1   : > { %v6233_v47 = vadd.f32 1.0, %v7290_v40 }
 0x2e2   : > { %7291 = vrcp.f32 %v6234_v39 }
 0x2e3   : > { %7293 = vrcp.f32 %v6233_v47 }
 0x2e6   : > { %v7011_v48 = vpop.f32.mrb[2].mxu0 }
 0x2e7   : > { %v7184_v50 = vadd.f32 %v7011_v48, %v10125_v18  ;;  %v5917_v28 = vpop.f32.mrb[3].mxu0 }
 0x2e8   : > { %v7185_v14 = vadd.f32 %v5917_v28, %v10127_v35 }
 0x2e9   : > { %v10346_v8 = vadd.f32 %v7184_v50, %v10337_v33 }
 0x2ea   : > { %v10349_v57 = vadd.f32 %v7185_v14, %v10337_v33  ;;  %v7014_v32 = vpop.f32.mrb[4].mxu0 }
 0x2eb   : > { %v6509_v9 = vmul.f32 -1.442695, %v10346_v8  ;;  %v7186_v46 = vadd.f32 %v7014_v32, %v10136_v3  ;;  %v5927_v37 = vpop.f32.mrb[5].mxu0 }
 0x2ec   : > { %v6508_v55 = vmul.f32 -1.442695, %v10349_v57  ;;  %v7187_v56 = vadd.f32 %v5927_v37, %v10143_v42  ;;  %v7292_v18 = vpop.eup %7291 }
 0x2ed   : > { %7295 = vpow2.f32 %v6509_v9  ;;  %v10363_v35 = vadd.f32 %v7186_v46, %v10337_v33  ;;  %v7294_v26 = vpop.eup %7293  ;;  %v6330_v3 = vmul.f32 %v7292_v18, %v6106_v53 }
 0x2ee   : > { %7297 = vpow2.f32 %v6508_v55  ;;  %v10366_v6 = vadd.f32 %v7187_v56, %v10337_v33  ;;  %v7017_v42 = vpop.f32.mrb[6].mxu0  ;;  %v6329_v0 = vmul.f32 %v7294_v26, %v6105_v58 }
 0x2ef   : > { %v6511_v17 = vmul.f32 -1.442695, %v10363_v35  ;;  %v7188_v34 = vadd.f32 %v7017_v42, %v10153_v61  ;;  %v5937_v63 = vpop.f32.mrb[7].mxu0  ;;  %6362 = vst [vmem:[%s10360_s4 + $0x8] sm:$0xff] %v6330_v3 }
 0x2f0   : > { %v6510_v60 = vmul.f32 -1.442695, %v10366_v6  ;;  %v7189_v29 = vadd.f32 %v5937_v63, %v10155_v43  ;;  %6361 = vst [vmem:[%s10360_s4] sm:$0xff] %v6329_v0 }
 0x2f1   : > { %7299 = vpow2.f32 %v6511_v17  ;;  %v10375_v59 = vadd.f32 %v7188_v34, %v10337_v33 }
 0x2f2   : > { %7301 = vpow2.f32 %v6510_v60  ;;  %v10378_v54 = vadd.f32 %v7189_v29, %v10337_v33  ;;  %v7020_v36 = vpop.f32.mrb[8].mxu0 }
 0x2f3   : > { %v6513_v52 = vmul.f32 -1.442695, %v10375_v59  ;;  %v7190_v61 = vadd.f32 %v7020_v36, %v10168_v4  ;;  %v5947_v10 = vpop.f32.mrb[9].mxu0 }
 0x2f4   : > { %v6512_v27 = vmul.f32 -1.442695, %v10378_v54  ;;  %v7191_v51 = vadd.f32 %v5947_v10, %v10172_v30 }
 0x2f5   : > { %7303 = vpow2.f32 %v6513_v52  ;;  %v10385_v43 = vadd.f32 %v7190_v61, %v10337_v33 }
 0x2f6   : > { %7305 = vpow2.f32 %v6512_v27  ;;  %v10388_v38 = vadd.f32 %v7191_v51, %v10337_v33 }
 0x2f7   : > { %v7296_v11 = vpop.eup %7295  ;;  %v6515_v2 = vmul.f32 -1.442695, %v10385_v43 }
 0x2f8   : > { %v7298_v5 = vpop.eup %7297  ;;  %v6236_v24 = vadd.f32 1.0, %v7296_v11  ;;  %v6514_v4 = vmul.f32 -1.442695, %v10388_v38 }
 0x2f9   : > { %v6235_v22 = vadd.f32 1.0, %v7298_v5  ;;  %7307 = vpow2.f32 %v6515_v2  ;;  %v10672_v5 = vld [vmem:[#allocation36_spill] sm:$0xff] }
 0x2fa   : > { %7309 = vrcp.f32 %v6236_v24 }
 0x2fb   : > { %v7300_v1 = vpop.eup %7299  ;;  %7311 = vrcp.f32 %v6235_v22  ;;  %v7023_v30 = vpop.f32.mrb[10].mxu0 }
 0x2fc   : > { %v7302_v45 = vpop.eup %7301  ;;  %v6238_v20 = vadd.f32 1.0, %v7300_v1  ;;  %7313 = vpow2.f32 %v6514_v4  ;;  %v7192_v53 = vadd.f32 %v7023_v30, %v10181_v23  ;;  %v5957_v58 = vpop.f32.mrb[11].mxu0  ;;  %v10673_v4 = vld [vmem:[#allocation35_spill] sm:$0xff] }
 0x2fd   : > { %v6237_v13 = vadd.f32 1.0, %v7302_v45  ;;  %v7193_v49 = vadd.f32 %v5957_v58, %v10184_v15 }
 0x2fe   : > { %7315 = vrcp.f32 %v6238_v20  ;;  %v10395_v12 = vadd.f32 %v7192_v53, %v10337_v33 }
 0x2ff   : > { %v7304_v40 = vpop.eup %7303  ;;  %7317 = vrcp.f32 %v6237_v13  ;;  %v10398_v39 = vadd.f32 %v7193_v49, %v10337_v33 }
 0x300   : > { %v7306_v47 = vpop.eup %7305  ;;  %v6240_v48 = vadd.f32 1.0, %v7304_v40  ;;  %v6517_v50 = vmul.f32 -1.442695, %v10395_v12 }
 0x301   : > { %v6239_v28 = vadd.f32 1.0, %v7306_v47  ;;  %v6516_v23 = vmul.f32 -1.442695, %v10398_v39 }
 0x302   : > { %7319 = vrcp.f32 %v6240_v48 }
 0x303   : > { %v7308_v14 = vpop.eup %7307  ;;  %7321 = vrcp.f32 %v6239_v28 }
 0x304   : > { %v7310_v15 = vpop.eup %7309  ;;  %v6242_v32 = vadd.f32 1.0, %v7308_v14  ;;  %7323 = vpow2.f32 %v6517_v50  ;;  %v10674_v50 = vld [vmem:[#allocation33_spill] sm:$0xff] }
 0x305   : > { %v7312_v9 = vpop.eup %7311  ;;  %v6332_v46 = vmul.f32 %v7310_v15, %v10346_v8  ;;  %7325 = vpow2.f32 %v6516_v23  ;;  %v7026_v56 = vpop.f32.mrb[12].mxu0  ;;  %v10675_v14 = vld [vmem:[#allocation37_spill] sm:$0xff] }
 0x306   : > { %v7314_v37 = vpop.eup %7313  ;;  %v6331_v55 = vmul.f32 %v7312_v9, %v10349_v57  ;;  %7327 = vrcp.f32 %v6242_v32  ;;  %v7194_v26 = vadd.f32 %v7026_v56, %v10196_v44  ;;  %v5967_v3 = vpop.f32.mrb[13].mxu0 }
 0x307   : > { %6364 = vst [vmem:[%s10360_s4 + $0x18] sm:$0xff] %v6332_v46  ;;  %v6241_v18 = vadd.f32 1.0, %v7314_v37  ;;  %v7195_v0 = vadd.f32 %v5967_v3, %v10199_v31 }
 0x308   : > { %v7316_v42 = vpop.eup %7315  ;;  %6363 = vst [vmem:[%s10360_s4 + $0x10] sm:$0xff] %v6331_v55  ;;  %v6118_v57 = vadd.f32 %v7194_v26, %v10337_v33 }
 0x309   : > { %v7318_v17 = vpop.eup %7317  ;;  %v6334_v8 = vmul.f32 %v7316_v42, %v10363_v35  ;;  %7329 = vrcp.f32 %v6241_v18  ;;  %v6117_v63 = vadd.f32 %v7195_v0, %v10337_v33 }
 0x30a   : > { %v6333_v34 = vmul.f32 %v7318_v17, %v10366_v6  ;;  %v6519_v60 = vmul.f32 -1.442695, %v6118_v57  ;;  %v10676_v17 = vld [vmem:[#allocation39_spill] sm:$0xff] }
 0x30b   : > { %6366 = vst [vmem:[%s10360_s4 + $0x28] sm:$0xff] %v6334_v8  ;;  %v6518_v29 = vmul.f32 -1.442695, %v6117_v63 }
 0x30c   : > { %v7320_v44 = vpop.eup %7319  ;;  %6365 = vst [vmem:[%s10360_s4 + $0x20] sm:$0xff] %v6333_v34  ;;  %7331 = vpow2.f32 %v6519_v60  ;;  %v10677_v60 = vld [vmem:[#allocation40_spill] sm:$0xff] }
 0x30d   : > { %v7322_v36 = vpop.eup %7321  ;;  %v6336_v31 = vmul.f32 %v7320_v44, %v10375_v59  ;;  %7333 = vpow2.f32 %v6518_v29 }
 0x30e   : > { %v7324_v35 = vpop.eup %7323  ;;  %v6335_v52 = vmul.f32 %v7322_v36, %v10378_v54 }
 0x30f   : > { %v7326_v61 = vpop.eup %7325  ;;  %6368 = vst [vmem:[%s10360_s4 + $0x38] sm:$0xff] %v6336_v31  ;;  %v6244_v6 = vadd.f32 1.0, %v7324_v35 }
 0x310   : > { %v7328_v10 = vpop.eup %7327  ;;  %6367 = vst [vmem:[%s10360_s4 + $0x30] sm:$0xff] %v6335_v52  ;;  %v6243_v27 = vadd.f32 1.0, %v7326_v61 }
 0x311   : > { %v6338_v51 = vmul.f32 %v7328_v10, %v10385_v43  ;;  %7335 = vrcp.f32 %v6244_v6 }
 0x312   : > { %7337 = vrcp.f32 %v6243_v27 }
 0x313   : > { %v7330_v11 = vpop.eup %7329  ;;  %6370 = vst [vmem:[%s10360_s4 + $0x48] sm:$0xff] %v6338_v51  ;;  %v7029_v2 = vpop.f32.mrb[14].mxu0 }
 0x314   : > { %v6337_v59 = vmul.f32 %v7330_v11, %v10388_v38  ;;  %v7196_v24 = vadd.f32 %v7029_v2, %v10672_v5  ;;  %v5977_v54 = vpop.f32.mrb[15].mxu0  ;;  %v10678_v2 = vld [vmem:[#allocation42_spill] sm:$0xff] }
 0x315   : > { %v7197_v22 = vadd.f32 %v5977_v54, %v10673_v4 }
 0x316   : > { %6369 = vst [vmem:[%s10360_s4 + $0x40] sm:$0xff] %v6337_v59  ;;  %v6120_v1 = vadd.f32 %v7196_v24, %v10337_v33  ;;  %v7332_v30 = vpop.eup %7331  ;;  %v10679_v24 = vld [vmem:[#allocation43_spill] sm:$0xff] }
 0x317   : > { %v6119_v45 = vadd.f32 %v7197_v22, %v10337_v33  ;;  %v7334_v43 = vpop.eup %7333  ;;  %v6246_v20 = vadd.f32 1.0, %v7332_v30 }
 0x318   : > { %v6521_v53 = vmul.f32 -1.442695, %v6120_v1  ;;  %v6245_v58 = vadd.f32 1.0, %v7334_v43 }
 0x319   : > { %v6520_v13 = vmul.f32 -1.442695, %v6119_v45  ;;  %7339 = vrcp.f32 %v6246_v20 }
 0x31a   : > { %7341 = vrcp.f32 %v6245_v58 }
 0x31b   : > { %v7336_v38 = vpop.eup %7335  ;;  %7343 = vpow2.f32 %v6521_v53 }
 0x31c   : > { %v7338_v49 = vpop.eup %7337  ;;  %v6340_v40 = vmul.f32 %v7336_v38, %v10395_v12  ;;  %7345 = vpow2.f32 %v6520_v13 }
 0x31d   : > { %v6339_v47 = vmul.f32 %v7338_v49, %v10398_v39  ;;  %v7032_v48 = vpop.f32.mrb[16].mxu0 }
 0x31e   : > { %6372 = vst [vmem:[%s10360_s4 + $0x58] sm:$0xff] %v6340_v40  ;;  %v7198_v28 = vadd.f32 %v7032_v48, %v10674_v50  ;;  %v5987_v23 = vpop.f32.mrb[17].mxu0 }
 0x31f   : > { %6371 = vst [vmem:[%s10360_s4 + $0x50] sm:$0xff] %v6339_v47  ;;  %v7199_v15 = vadd.f32 %v5987_v23, %v10675_v14  ;;  %v10680_v47 = vld [vmem:[#allocation38_spill] sm:$0xff] }
 0x320   : > { %v6122_v32 = vadd.f32 %v7198_v28, %v10337_v33  ;;  %v10681_v28 = vld [vmem:[#allocation44_spill] sm:$0xff] }
 0x321   : > { %v6121_v9 = vadd.f32 %v7199_v15, %v10337_v33 }
 0x322   : > { %v6523_v46 = vmul.f32 -1.442695, %v6122_v32 }
 0x323   : > { %v7340_v12 = vpop.eup %7339  ;;  %v6522_v37 = vmul.f32 -1.442695, %v6121_v9 }
 0x324   : > { %v7342_v55 = vpop.eup %7341  ;;  %v6342_v39 = vmul.f32 %v7340_v12, %v6118_v57  ;;  %7347 = vpow2.f32 %v6523_v46 }
 0x325   : > { %v7344_v56 = vpop.eup %7343  ;;  %v6341_v18 = vmul.f32 %v7342_v55, %v6117_v63  ;;  %7349 = vpow2.f32 %v6522_v37 }
 0x326   : > { %v7346_v26 = vpop.eup %7345  ;;  %6374 = vst [vmem:[%s10360_s4 + $0x68] sm:$0xff] %v6342_v39  ;;  %v6248_v3 = vadd.f32 1.0, %v7344_v56 }
 0x327   : > { %6373 = vst [vmem:[%s10360_s4 + $0x60] sm:$0xff] %v6341_v18  ;;  %v6247_v42 = vadd.f32 1.0, %v7346_v26 }
 0x328   : > { %7351 = vrcp.f32 %v6248_v3 }
 0x329   : > { %7353 = vrcp.f32 %v6247_v42  ;;  %v10682_v42 = vld [vmem:[#allocation45_spill] sm:$0xff] }
 0x32b   : > { %v7035_v0 = vpop.f32.mrb[18].mxu0 }
 0x32c   : > { %v7200_v8 = vadd.f32 %v7035_v0, %v10676_v17  ;;  %v5997_v34 = vpop.f32.mrb[19].mxu0 }
 0x32d   : > { %v7201_v44 = vadd.f32 %v5997_v34, %v10677_v60 }
 0x32e   : > { %v6124_v29 = vadd.f32 %v7200_v8, %v10337_v33  ;;  %v7348_v57 = vpop.eup %7347 }
 0x32f   : > { %v6123_v63 = vadd.f32 %v7201_v44, %v10337_v33  ;;  %v7350_v36 = vpop.eup %7349  ;;  %v6250_v31 = vadd.f32 1.0, %v7348_v57 }
 0x330   : > { %v6525_v35 = vmul.f32 -1.442695, %v6124_v29  ;;  %v6249_v52 = vadd.f32 1.0, %v7350_v36 }
 0x331   : > { %v6524_v61 = vmul.f32 -1.442695, %v6123_v63  ;;  %7355 = vrcp.f32 %v6250_v31 }
 0x332   : > { %v7352_v6 = vpop.eup %7351  ;;  %7357 = vrcp.f32 %v6249_v52 }
 0x333   : > { %v7354_v10 = vpop.eup %7353  ;;  %v6344_v27 = vmul.f32 %v7352_v6, %v6120_v1  ;;  %7359 = vpow2.f32 %v6525_v35 }
 0x334   : > { %v6343_v51 = vmul.f32 %v7354_v10, %v6119_v45  ;;  %7361 = vpow2.f32 %v6524_v61 }
 0x335   : > { %6376 = vst [vmem:[%s10360_s4 + $0x78] sm:$0xff] %v6344_v27  ;;  %v7038_v11 = vpop.f32.mrb[20].mxu0 }
 0x336   : > { %6375 = vst [vmem:[%s10360_s4 + $0x70] sm:$0xff] %v6343_v51  ;;  %v7202_v59 = vadd.f32 %v7038_v11, %v10678_v2  ;;  %v6007_v5 = vpop.f32.mrb[21].mxu0 }
 0x337   : > { %v7203_v54 = vadd.f32 %v6007_v5, %v10679_v24 }
 0x338   : > { %v6126_v4 = vadd.f32 %v7202_v59, %v10337_v33 }
 0x339   : > { %v6125_v22 = vadd.f32 %v7203_v54, %v10337_v33 }
 0x33a   : > { %v6527_v30 = vmul.f32 -1.442695, %v6126_v4 }
 0x33b   : > { %v7356_v43 = vpop.eup %7355  ;;  %v6526_v1 = vmul.f32 -1.442695, %v6125_v22 }
 0x33c   : > { %v7358_v20 = vpop.eup %7357  ;;  %v6346_v45 = vmul.f32 %v7356_v43, %v6122_v32  ;;  %7363 = vpow2.f32 %v6527_v30 }
 0x33d   : > { %v7360_v53 = vpop.eup %7359  ;;  %v6345_v58 = vmul.f32 %v7358_v20, %v6121_v9  ;;  %7365 = vpow2.f32 %v6526_v1 }
 0x33e   : > { %v7362_v13 = vpop.eup %7361  ;;  %6378 = vst [vmem:[%s10360_s4 + $0x88] sm:$0xff] %v6346_v45  ;;  %v6252_v38 = vadd.f32 1.0, %v7360_v53 }
 0x33f   : > { %6377 = vst [vmem:[%s10360_s4 + $0x80] sm:$0xff] %v6345_v58  ;;  %v6251_v49 = vadd.f32 1.0, %v7362_v13 }
 0x340   : > { %7367 = vrcp.f32 %v6252_v38 }
 0x341   : > { %7369 = vrcp.f32 %v6251_v49 }
 0x343   : > { %v7041_v40 = vpop.f32.mrb[22].mxu0 }
 0x344   : > { %v7204_v48 = vadd.f32 %v7041_v40, %v10680_v47  ;;  %v6017_v50 = vpop.f32.mrb[23].mxu0 }
 0x345   : > { %v7205_v23 = vadd.f32 %v6017_v50, %v10681_v28 }
 0x346   : > { %v10451_v14 = vadd.f32 %v7204_v48, %v10337_v33  ;;  %v7364_v15 = vpop.eup %7363 }
 0x347   : > { %v10454_v32 = vadd.f32 %v7205_v23, %v10337_v33  ;;  %v7366_v9 = vpop.eup %7365  ;;  %v6254_v46 = vadd.f32 1.0, %v7364_v15 }
 0x348   : > { %v6529_v12 = vmul.f32 -1.442695, %v10451_v14  ;;  %v6253_v37 = vadd.f32 1.0, %v7366_v9 }
 0x349   : > { %v6528_v55 = vmul.f32 -1.442695, %v10454_v32  ;;  %7371 = vrcp.f32 %v6254_v46 }
 0x34a   : > { %v7368_v39 = vpop.eup %7367  ;;  %7373 = vrcp.f32 %v6253_v37 }
 0x34b   : > { %v7370_v56 = vpop.eup %7369  ;;  %v6348_v18 = vmul.f32 %v7368_v39, %v6124_v29  ;;  %7375 = vpow2.f32 %v6529_v12 }
 0x34c   : > { %v6347_v26 = vmul.f32 %v7370_v56, %v6123_v63  ;;  %7377 = vpow2.f32 %v6528_v55 }
 0x34d   : > { %6380 = vst [vmem:[%s10360_s4 + $0x98] sm:$0xff] %v6348_v18  ;;  %v7044_v3 = vpop.f32.mrb[24].mxu0 }
 0x34e   : > { %6379 = vst [vmem:[%s10360_s4 + $0x90] sm:$0xff] %v6347_v26  ;;  %v7206_v0 = vadd.f32 %v7044_v3, %v10682_v42  ;;  %v6027_v17 = vpop.f32.mrb[25].mxu0 }
 0x34f   : > { %v7207_v8 = vadd.f32 %v6027_v17, %v10304_v16 }
 0x350   : > { %v6130_v34 = vadd.f32 %v7206_v0, %v10337_v33 }
 0x351   : > { %v6129_v60 = vadd.f32 %v7207_v8, %v10337_v33 }
 0x352   : > { %v6531_v44 = vmul.f32 -1.442695, %v6130_v34 }
 0x353   : > { %v7372_v57 = vpop.eup %7371  ;;  %v6530_v29 = vmul.f32 -1.442695, %v6129_v60 }
 0x354   : > { %v7374_v36 = vpop.eup %7373  ;;  %v6350_v63 = vmul.f32 %v7372_v57, %v6126_v4  ;;  %7379 = vpow2.f32 %v6531_v44 }
 0x355   : > { %v7376_v31 = vpop.eup %7375  ;;  %v6349_v35 = vmul.f32 %v7374_v36, %v6125_v22  ;;  %7381 = vpow2.f32 %v6530_v29 }
 0x356   : > { %v7378_v52 = vpop.eup %7377  ;;  %6382 = vst [vmem:[%s10360_s4 + $0xa8] sm:$0xff] %v6350_v63  ;;  %v6256_v61 = vadd.f32 1.0, %v7376_v31 }
 0x357   : > { %6381 = vst [vmem:[%s10360_s4 + $0xa0] sm:$0xff] %v6349_v35  ;;  %v6255_v6 = vadd.f32 1.0, %v7378_v52 }
 0x358   : > { %7383 = vrcp.f32 %v6256_v61  ;;  %v7047_v16 = vpop.f32.mrb[26].mxu0 }
 0x359   : > { %7385 = vrcp.f32 %v6255_v6  ;;  %v7208_v10 = vadd.f32 %v7047_v16, %v10306_v41  ;;  %v6037_v27 = vpop.f32.mrb[27].mxu0 }
 0x35a   : > { %v7209_v51 = vadd.f32 %v6037_v27, %v10322_v21 }
 0x35b   : > { %v6132_v11 = vadd.f32 %v7208_v10, %v10337_v33 }
 0x35c   : > { %v6131_v2 = vadd.f32 %v7209_v51, %v10337_v33 }
 0x35d   : > { %v6533_v59 = vmul.f32 -1.442695, %v6132_v11 }
 0x35e   : > { %v7380_v5 = vpop.eup %7379  ;;  %v6532_v24 = vmul.f32 -1.442695, %v6131_v2 }
 0x35f   : > { %v7382_v54 = vpop.eup %7381  ;;  %v6258_v4 = vadd.f32 1.0, %v7380_v5  ;;  %7387 = vpow2.f32 %v6533_v59  ;;  %v7050_v22 = vpop.f32.mrb[28].mxu0 }
 0x360   : > { %v6257_v30 = vadd.f32 1.0, %v7382_v54  ;;  %7389 = vpow2.f32 %v6532_v24  ;;  %v7210_v41 = vadd.f32 %v7050_v22, %v10324_v19  ;;  %v6047_v43 = vpop.f32.mrb[29].mxu0 }
 0x361   : > { %7391 = vrcp.f32 %v6258_v4  ;;  %v7211_v21 = vadd.f32 %v6047_v43, %v10327_v25 }
 0x362   : > { %v7384_v1 = vpop.eup %7383  ;;  %7393 = vrcp.f32 %v6257_v30  ;;  %v6134_v20 = vadd.f32 %v7210_v41, %v10337_v33 }
 0x363   : > { %v7386_v45 = vpop.eup %7385  ;;  %v6352_v53 = vmul.f32 %v7384_v1, %v10451_v14  ;;  %v6133_v58 = vadd.f32 %v7211_v21, %v10337_v33 }
 0x364   : > { %v6351_v13 = vmul.f32 %v7386_v45, %v10454_v32  ;;  %v6535_v38 = vmul.f32 -1.442695, %v6134_v20 }
 0x365   : > { %6384 = vst [vmem:[%s10360_s4 + $0xb8] sm:$0xff] %v6352_v53  ;;  %v6534_v49 = vmul.f32 -1.442695, %v6133_v58 }
 0x366   : > { %6383 = vst [vmem:[%s10360_s4 + $0xb0] sm:$0xff] %v6351_v13  ;;  %7395 = vpow2.f32 %v6535_v38 }
 0x367   : > { %7397 = vpow2.f32 %v6534_v49 }
 0x369   : > { %v7388_v19 = vpop.eup %7387 }
 0x36a   : > { %v7390_v25 = vpop.eup %7389  ;;  %v6260_v40 = vadd.f32 1.0, %v7388_v19 }
 0x36b   : > { %v7053_v47 = vpop.f32.mrb[30].mxu0  ;;  %v7392_v48 = vpop.eup %7391  ;;  %v6259_v50 = vadd.f32 1.0, %v7390_v25 }
 0x36c   : > { %v7212_v28 = vadd.f32 %v7053_v47, %v10329_v62  ;;  %v6057_v23 = vpop.f32.mrb[31].mxu0  ;;  %v7394_v14 = vpop.eup %7393  ;;  %v6354_v15 = vmul.f32 %v7392_v48, %v6130_v34  ;;  %7399 = vrcp.f32 %v6260_v40 }
 0x36d   : > { %v7213_v32 = vadd.f32 %v6057_v23, %v10332_v7  ;;  %v6353_v9 = vmul.f32 %v7394_v14, %v6129_v60  ;;  %7401 = vrcp.f32 %v6259_v50 }
 0x36e   : > { %v6136_v46 = vadd.f32 %v7212_v28, %v10337_v33  ;;  %6386 = vst [vmem:[%s10360_s4 + $0xc8] sm:$0xff] %v6354_v15 }
 0x36f   : > { %v6135_v12 = vadd.f32 %v7213_v32, %v10337_v33  ;;  %6385 = vst [vmem:[%s10360_s4 + $0xc0] sm:$0xff] %v6353_v9 }
 0x370   : > { %v6537_v37 = vmul.f32 -1.442695, %v6136_v46  ;;  %v7396_v55 = vpop.eup %7395 }
 0x371   : > { %v6536_v39 = vmul.f32 -1.442695, %v6135_v12  ;;  %v7398_v62 = vpop.eup %7397  ;;  %v6262_v56 = vadd.f32 1.0, %v7396_v55 }
 0x372   : > { %7403 = vpow2.f32 %v6537_v37  ;;  %v6261_v18 = vadd.f32 1.0, %v7398_v62 }
 0x373   : > { %7405 = vpow2.f32 %v6536_v39 }
 0x374   : > { %7407 = vrcp.f32 %v6262_v56 }
 0x375   : > { %7409 = vrcp.f32 %v6261_v18 }
 0x376   : > { %v7400_v7 = vpop.eup %7399 }
 0x377   : > { %v7402_v26 = vpop.eup %7401  ;;  %v6356_v3 = vmul.f32 %v7400_v7, %v6132_v11 }
 0x378   : > { %v6355_v42 = vmul.f32 %v7402_v26, %v6131_v2 }
 0x379   : > { %6388 = vst [vmem:[%s10360_s4 + $0xd8] sm:$0xff] %v6356_v3 }
 0x37a   : > { %6387 = vst [vmem:[%s10360_s4 + $0xd0] sm:$0xff] %v6355_v42 }
 0x37c   : > { %v7404_v33 = vpop.eup %7403 }
 0x37d   : > { %v7406_v0 = vpop.eup %7405  ;;  %v6264_v17 = vadd.f32 1.0, %v7404_v33 }
 0x37e   : > { %v7408_v8 = vpop.eup %7407  ;;  %v6263_v34 = vadd.f32 1.0, %v7406_v0 }
 0x37f   : > { %v7410_v60 = vpop.eup %7409  ;;  %v6358_v44 = vmul.f32 %v7408_v8, %v6134_v20  ;;  %7411 = vrcp.f32 %v6264_v17 }
 0x380   : > { %v6357_v57 = vmul.f32 %v7410_v60, %v6133_v58  ;;  %7413 = vrcp.f32 %v6263_v34 }
 0x381   : > { %6390 = vst [vmem:[%s10360_s4 + $0xe8] sm:$0xff] %v6358_v44 }
 0x382   : > { %6389 = vst [vmem:[%s10360_s4 + $0xe0] sm:$0xff] %v6357_v57 }
 0x389   : > { %v7412_v29 = vpop.eup %7411 }
 0x38a   : > { %v7414_v36 = vpop.eup %7413  ;;  %v6360_v63 = vmul.f32 %v7412_v29, %v6136_v46 }
 0x38b   : > { %v6359_v31 = vmul.f32 %v7414_v36, %v6135_v12 }
 0x38c   : > { %6392 = vst [vmem:[%s10360_s4 + $0xf8] sm:$0xff] %v6360_v63 }
 0x38d   : > { %6391 = vst [vmem:[%s10360_s4 + $0xf0] sm:$0xff] %v6359_v31 }
 0x38e PF: > { %s13_s12 = sadd.s32 1, %s7434_s12  }
 0x38f   : > { %p10_p4 = scmp.ge.s32.totalorder %s13_s12, 4  }
 0x391   :  { %12 = sbr.rel (!%p10_p4) target bundleno = 1 (0x1), region = 69 }

</bundles_post_ra>
